<compile_context>
chip_gen: v5e
topology: v5e:2x2
jax: 0.10.0
libtpu: 0.0.40
codegen_flags: <defaults>
</compile_context>

<pallas_src>
import functools

import jax
import jax.numpy as jnp
from jax.experimental import pallas as pl
from jax.experimental.pallas import tpu as pltpu


def _round_up(x, m):
    return (x + m - 1) // m * m


# ---------------------------------------------------------------------------
# Pallas kernel: fused  act(A @ W + b)   (M-tiled grid, W/bias grid-invariant)
# ---------------------------------------------------------------------------
def _mm_bias_act_kernel(a_ref, w_ref, b_ref, o_ref, *, alpha):
    acc = jnp.dot(a_ref[...], w_ref[...], preferred_element_type=jnp.float32)
    acc = acc + b_ref[...]                       # (1, N) broadcasts over rows (f32)
    if alpha is not None:                        # LeakyReLU(alpha)
        acc = jnp.where(acc >= 0.0, acc, jnp.float32(alpha) * acc)
    o_ref[...] = acc.astype(o_ref.dtype)


def matmul_bias_act(a, w, b_row, *, alpha, out_dtype, block_m=512):
    """act(a @ w + b). a:(M,K) bf16, w:(K,N) bf16, b_row:(1,N) f32 -> (M,N) out_dtype."""
    M, K = a.shape
    K2, N = w.shape
    assert K == K2, (K, K2)
    tm = min(block_m, _round_up(M, 8))           # multiple of 8, partial last block OK
    grid_m = pl.cdiv(M, tm)

    return pl.pallas_call(
        functools.partial(_mm_bias_act_kernel, alpha=alpha),
        out_shape=jax.ShapeDtypeStruct((M, N), out_dtype),
        grid=(grid_m,),
        in_specs=[
            pl.BlockSpec((tm, K), lambda i: (i, 0)),   # A: row tiles
            pl.BlockSpec((K, N), lambda i: (0, 0)),    # W: full, grid-invariant
            pl.BlockSpec((1, N), lambda i: (0, 0)),    # bias: full, grid-invariant
        ],
        out_specs=pl.BlockSpec((tm, N), lambda i: (i, 0)),
        compiler_params=pltpu.CompilerParams(
            dimension_semantics=("parallel",)),        # row tiles independent (v7x 2 TCs)
    )(a, w, b_row)


# ---------------------------------------------------------------------------
# Pallas kernel: fused FC head  ->  (LeakyReLU(x @ W1 + b1)) @ W2 + b2
# ---------------------------------------------------------------------------
def _fc_head_kernel(x_ref, w1_ref, b1_ref, w2_ref, b2_ref, o_ref, *, alpha):
    h = jnp.dot(x_ref[...], w1_ref[...], preferred_element_type=jnp.float32)
    h = h + b1_ref[...]
    h = jnp.where(h >= 0.0, h, jnp.float32(alpha) * h)
    o = jnp.dot(h.astype(w2_ref.dtype), w2_ref[...],
                preferred_element_type=jnp.float32)
    o_ref[...] = o + b2_ref[...]


def fc_head(x, w1, b1, w2, b2, *, alpha):
    B, F = x.shape
    F2, H = w1.shape
    H2, O = w2.shape
    assert F == F2 and H == H2
    return pl.pallas_call(
        functools.partial(_fc_head_kernel, alpha=alpha),
        out_shape=jax.ShapeDtypeStruct((B, O), jnp.float32),
        grid=(1,),
        in_specs=[
            pl.BlockSpec((B, F), lambda i: (0, 0)),
            pl.BlockSpec((F, H), lambda i: (0, 0)),
            pl.BlockSpec((1, H), lambda i: (0, 0)),
            pl.BlockSpec((H, O), lambda i: (0, 0)),
            pl.BlockSpec((1, O), lambda i: (0, 0)),
        ],
        out_specs=pl.BlockSpec((B, O), lambda i: (0, 0)),
    )(x, w1, b1, w2, b2)


# ---------------------------------------------------------------------------
# Conv2d (kernel 3, stride 2, no padding) via im2col glue + Pallas matmul kernel
# ---------------------------------------------------------------------------
def conv2d_leakyrelu(x_nhwc, w_mat, b_row, *, ksize, stride, alpha):
    N, H, W, Cin = x_nhwc.shape
    Kp, Cout = w_mat.shape
    KH = KW = ksize
    OH = (H - KH) // stride + 1
    OW = (W - KW) // stride + 1

    # im2col: patch ordering (kh, kw, ci) — matches the packed weight layout.
    patches = []
    for i in range(KH):
        for j in range(KW):
            patches.append(
                x_nhwc[:, i:i + stride * (OH - 1) + 1:stride,
                          j:j + stride * (OW - 1) + 1:stride, :]
            )
    a = jnp.concatenate(patches, axis=-1).reshape(N * OH * OW, KH * KW * Cin)
    K = a.shape[1]
    if Kp != K:                                   # tiny pad (K -> mult of 16) for bf16
        a = jnp.pad(a, ((0, 0), (0, Kp - K)))

    out = matmul_bias_act(a, w_mat, b_row, alpha=alpha, out_dtype=x_nhwc.dtype)
    return out.reshape(N, OH, OW, Cout)


# ---------------------------------------------------------------------------
# Parameter construction (deterministic, PyTorch-style uniform init) + packing
# ---------------------------------------------------------------------------
def init_params(key, S, C, num_anchors, img_size):
    conv_cfg = [(3, 64), (64, 64), (64, 64), (64, 64), (64, 64), (64, 64)]
    params = {"convs": [], "fc": []}

    h = img_size
    for (cin, cout) in conv_cfg:
        key, kw, kb = jax.random.split(key, 3)
        fan_in = cin * 3 * 3
        bound = 1.0 / jnp.sqrt(fan_in)
        w = jax.random.uniform(kw, (cout, cin, 3, 3), jnp.float32, -bound, bound)
        b = jax.random.uniform(kb, (cout,), jnp.float32, -bound, bound)
        params["convs"].append((w, b))
        h = (h - 3) // 2 + 1   # stride 2, kernel 3, pad 0

    n_features = 64 * h * h
    out_features = S * S * num_anchors * (C + 5)
    fc_cfg = [(n_features, 2048), (2048, out_features)]
    for (fin, fout) in fc_cfg:
        key, kw, kb = jax.random.split(key, 3)
        bound = 1.0 / jnp.sqrt(fin)
        w = jax.random.uniform(kw, (fin, fout), jnp.float32, -bound, bound)
        b = jax.random.uniform(kb, (fout,), jnp.float32, -bound, bound)
        params["fc"].append((w, b))
    return params


def pack_params(params):
    """One-time packing: transpose/reshape conv weights to (K, Cout), cast to bf16."""
    packed = {"convs": [], "fc": []}
    for (w, b) in params["convs"]:
        cout, cin, kh, kw = w.shape
        K = kh * kw * cin
        Kp = _round_up(K, 16)
        # (Cout, Cin, KH, KW) -> (KH, KW, Cin, Cout) -> (K, Cout), zero-pad K a little.
        w_mat = jnp.transpose(w, (2, 3, 1, 0)).reshape(K, cout)
        if Kp != K:
            w_mat = jnp.pad(w_mat, ((0, Kp - K), (0, 0)))
        packed["convs"].append((w_mat.astype(jnp.bfloat16),
                                b.reshape(1, -1).astype(jnp.float32)))
    for (w, b) in params["fc"]:
        packed["fc"].append((w.astype(jnp.bfloat16),
                             b.reshape(1, -1).astype(jnp.float32)))
    return packed


# ---------------------------------------------------------------------------
# Forward pass (mirrors Model.forward)
# ---------------------------------------------------------------------------
def model_forward(packed, x_nchw, alpha=0.2):
    x = jnp.transpose(x_nchw, (0, 2, 3, 1)).astype(jnp.bfloat16)   # NCHW -> NHWC, bf16
    for (w_mat, b_row) in packed["convs"]:
        x = conv2d_leakyrelu(x, w_mat, b_row, ksize=3, stride=2, alpha=alpha)
    # nn.Flatten on NCHW tensors flattens in (C, H, W) order:
    x = jnp.transpose(x, (0, 3, 1, 2)).reshape(x.shape[0], -1)

    (w1, b1), (w2, b2) = packed["fc"]
    return fc_head(x, w1, b1, w2, b2, alpha=alpha)                 # fused FC head


if __name__ == "__main__":
    # Small-but-valid configuration: IMG_SIZE=127 is the minimum spatial size that
    # survives six stride-2, kernel-3, pad-0 convs (127->63->31->15->7->3->1).
    S, C, IMG_SIZE = 2, 3, 127
    NUM_ANCHORS = 7            # len(anchors_default)
    BATCH = 2

    key = jax.random.PRNGKey(0)
    key, kx = jax.random.split(key)
    params = init_params(key, S, C, NUM_ANCHORS, IMG_SIZE)
    packed = pack_params(params)   # one-time weight packing (not in the forward path)

    x = jax.random.normal(kx, (BATCH, 3, IMG_SIZE, IMG_SIZE), jnp.float32)

    forward = jax.jit(model_forward)
    out = forward(packed, x)
    out = jax.block_until_ready(out)

    expected = (BATCH, S * S * NUM_ANCHORS * (C + 5))
    assert out.shape == expected, (out.shape, expected)
    assert out.dtype == jnp.float32
    assert jnp.all(jnp.isfinite(out))
    print("KERNEL_OK")
</pallas_src>

<mosaic_0001>
module attributes {stable_mosaic.version = 11 : i64} {
  func.func @_mm_bias_act_kernel(%arg0: i32, %arg1: memref<512x32xbf16, #tpu.memory_space<vmem>>, %arg2: memref<32x64xbf16, #tpu.memory_space<vmem>>, %arg3: memref<1x64xf32, #tpu.memory_space<vmem>>, %arg4: memref<512x64xbf16, #tpu.memory_space<vmem>>) attributes {dimension_semantics = [#tpu.dimension_semantics<parallel>], iteration_bounds = array<i64: 16>, scalar_prefetch = 0 : i64, scratch_operands = 0 : i64, tpu.core_type = #tpu.core_type<tc>, window_params = [{transform_indices = @transform_0, window_bounds = array<i64: 512, 32>}, {pipeline_mode = #tpu.pipeline_mode<synchronous>, transform_indices = @transform_1, window_bounds = array<i64: 32, 64>}, {pipeline_mode = #tpu.pipeline_mode<synchronous>, transform_indices = @transform_2, window_bounds = array<i64: 1, 64>}, {transform_indices = @transform_3, window_bounds = array<i64: 512, 64>}]} {
    %c0 = arith.constant 0 : index
    %c0_0 = arith.constant 0 : index
    %0 = vector.load %arg1[%c0, %c0_0] : memref<512x32xbf16, #tpu.memory_space<vmem>>, vector<512x32xbf16>
    %c0_1 = arith.constant 0 : index
    %c0_2 = arith.constant 0 : index
    %1 = vector.load %arg2[%c0_1, %c0_2] : memref<32x64xbf16, #tpu.memory_space<vmem>>, vector<32x64xbf16>
    %cst = arith.constant dense<0.000000e+00> : vector<512x64xf32>
    %2 = tpu.matmul %0, %1, %cst {dimension_numbers = #tpu.dot_dimension_numbers<[1], [0], [0], [1], [0, 0, 1, 1], [], []>} : vector<512x32xbf16>, vector<32x64xbf16>, vector<512x64xf32> -> vector<512x64xf32>
    %c0_3 = arith.constant 0 : index
    %c0_4 = arith.constant 0 : index
    %3 = vector.load %arg3[%c0_3, %c0_4] : memref<1x64xf32, #tpu.memory_space<vmem>>, vector<1x64xf32>
    %4 = vector.broadcast %3 : vector<1x64xf32> to vector<512x64xf32>
    %5 = arith.addf %2, %4 : vector<512x64xf32>
    %cst_5 = arith.constant 0.000000e+00 : f32
    %6 = vector.broadcast %cst_5 : f32 to vector<512x64xf32>
    %7 = arith.cmpf oge, %5, %6 : vector<512x64xf32>
    %cst_6 = arith.constant 2.000000e-01 : f32
    %8 = vector.broadcast %cst_6 : f32 to vector<512x64xf32>
    %9 = arith.mulf %8, %5 : vector<512x64xf32>
    %10 = arith.select %7, %5, %9 : vector<512x64xi1>, vector<512x64xf32>
    %11 = arith.truncf %10 : vector<512x64xf32> to vector<512x64xbf16>
    %c0_7 = arith.constant 0 : index
    %c0_8 = arith.constant 0 : index
    %12 = vector.load %arg4[%c0_7, %c0_8] : memref<512x64xbf16, #tpu.memory_space<vmem>>, vector<512x64xbf16>
    tpu.vector_store %arg4[%c0_7, %c0_8], %11 {strides = array<i32>} : memref<512x64xbf16, #tpu.memory_space<vmem>>, vector<512x64xbf16>,
    return
  }
  func.func @transform_0(%arg0: i32) -> (i32, i32) {
    %c0_i32 = arith.constant 0 : i32
    %c0_i32_0 = arith.constant 0 : i32
    return %arg0, %c0_i32 : i32, i32
  }
  func.func @transform_1(%arg0: i32) -> (i32, i32) {
    %c0_i32 = arith.constant 0 : i32
    %c0_i32_0 = arith.constant 0 : i32
    %c0_i32_1 = arith.constant 0 : i32
    return %c0_i32, %c0_i32_0 : i32, i32
  }
  func.func @transform_2(%arg0: i32) -> (i32, i32) {
    %c0_i32 = arith.constant 0 : i32
    %c0_i32_0 = arith.constant 0 : i32
    %c0_i32_1 = arith.constant 0 : i32
    return %c0_i32, %c0_i32_0 : i32, i32
  }
  func.func @transform_3(%arg0: i32) -> (i32, i32) {
    %c0_i32 = arith.constant 0 : i32
    %c0_i32_0 = arith.constant 0 : i32
    return %arg0, %c0_i32 : i32, i32
  }
}

module attributes {stable_mosaic.version = 11 : i64} {
  func.func @_mm_bias_act_kernel(%arg0: i32, %arg1: memref<512x576xbf16, #tpu.memory_space<vmem>>, %arg2: memref<576x64xbf16, #tpu.memory_space<vmem>>, %arg3: memref<1x64xf32, #tpu.memory_space<vmem>>, %arg4: memref<512x64xbf16, #tpu.memory_space<vmem>>) attributes {dimension_semantics = [#tpu.dimension_semantics<parallel>], iteration_bounds = array<i64: 4>, scalar_prefetch = 0 : i64, scratch_operands = 0 : i64, tpu.core_type = #tpu.core_type<tc>, window_params = [{transform_indices = @transform_0, window_bounds = array<i64: 512, 576>}, {pipeline_mode = #tpu.pipeline_mode<synchronous>, transform_indices = @transform_1, window_bounds = array<i64: 576, 64>}, {pipeline_mode = #tpu.pipeline_mode<synchronous>, transform_indices = @transform_2, window_bounds = array<i64: 1, 64>}, {transform_indices = @transform_3, window_bounds = array<i64: 512, 64>}]} {
    %c0 = arith.constant 0 : index
    %c0_0 = arith.constant 0 : index
    %0 = vector.load %arg1[%c0, %c0_0] : memref<512x576xbf16, #tpu.memory_space<vmem>>, vector<512x576xbf16>
    %c0_1 = arith.constant 0 : index
    %c0_2 = arith.constant 0 : index
    %1 = vector.load %arg2[%c0_1, %c0_2] : memref<576x64xbf16, #tpu.memory_space<vmem>>, vector<576x64xbf16>
    %cst = arith.constant dense<0.000000e+00> : vector<512x64xf32>
    %2 = tpu.matmul %0, %1, %cst {dimension_numbers = #tpu.dot_dimension_numbers<[1], [0], [0], [1], [0, 0, 1, 1], [], []>} : vector<512x576xbf16>, vector<576x64xbf16>, vector<512x64xf32> -> vector<512x64xf32>
    %c0_3 = arith.constant 0 : index
    %c0_4 = arith.constant 0 : index
    %3 = vector.load %arg3[%c0_3, %c0_4] : memref<1x64xf32, #tpu.memory_space<vmem>>, vector<1x64xf32>
    %4 = vector.broadcast %3 : vector<1x64xf32> to vector<512x64xf32>
    %5 = arith.addf %2, %4 : vector<512x64xf32>
    %cst_5 = arith.constant 0.000000e+00 : f32
    %6 = vector.broadcast %cst_5 : f32 to vector<512x64xf32>
    %7 = arith.cmpf oge, %5, %6 : vector<512x64xf32>
    %cst_6 = arith.constant 2.000000e-01 : f32
    %8 = vector.broadcast %cst_6 : f32 to vector<512x64xf32>
    %9 = arith.mulf %8, %5 : vector<512x64xf32>
    %10 = arith.select %7, %5, %9 : vector<512x64xi1>, vector<512x64xf32>
    %11 = arith.truncf %10 : vector<512x64xf32> to vector<512x64xbf16>
    %c0_7 = arith.constant 0 : index
    %c0_8 = arith.constant 0 : index
    %12 = vector.load %arg4[%c0_7, %c0_8] : memref<512x64xbf16, #tpu.memory_space<vmem>>, vector<512x64xbf16>
    tpu.vector_store %arg4[%c0_7, %c0_8], %11 {strides = array<i32>} : memref<512x64xbf16, #tpu.memory_space<vmem>>, vector<512x64xbf16>,
    return
  }
  func.func @transform_0(%arg0: i32) -> (i32, i32) {
    %c0_i32 = arith.constant 0 : i32
    %c0_i32_0 = arith.constant 0 : i32
    return %arg0, %c0_i32 : i32, i32
  }
  func.func @transform_1(%arg0: i32) -> (i32, i32) {
    %c0_i32 = arith.constant 0 : i32
    %c0_i32_0 = arith.constant 0 : i32
    %c0_i32_1 = arith.constant 0 : i32
    return %c0_i32, %c0_i32_0 : i32, i32
  }
  func.func @transform_2(%arg0: i32) -> (i32, i32) {
    %c0_i32 = arith.constant 0 : i32
    %c0_i32_0 = arith.constant 0 : i32
    %c0_i32_1 = arith.constant 0 : i32
    return %c0_i32, %c0_i32_0 : i32, i32
  }
  func.func @transform_3(%arg0: i32) -> (i32, i32) {
    %c0_i32 = arith.constant 0 : i32
    %c0_i32_0 = arith.constant 0 : i32
    return %arg0, %c0_i32 : i32, i32
  }
}

module attributes {stable_mosaic.version = 11 : i64} {
  func.func @_mm_bias_act_kernel(%arg0: i32, %arg1: memref<456x576xbf16, #tpu.memory_space<vmem>>, %arg2: memref<576x64xbf16, #tpu.memory_space<vmem>>, %arg3: memref<1x64xf32, #tpu.memory_space<vmem>>, %arg4: memref<456x64xbf16, #tpu.memory_space<vmem>>) attributes {dimension_semantics = [#tpu.dimension_semantics<parallel>], iteration_bounds = array<i64: 1>, scalar_prefetch = 0 : i64, scratch_operands = 0 : i64, tpu.core_type = #tpu.core_type<tc>, window_params = [{transform_indices = @transform_0, window_bounds = array<i64: 456, 576>}, {pipeline_mode = #tpu.pipeline_mode<synchronous>, transform_indices = @transform_1, window_bounds = array<i64: 576, 64>}, {pipeline_mode = #tpu.pipeline_mode<synchronous>, transform_indices = @transform_2, window_bounds = array<i64: 1, 64>}, {transform_indices = @transform_3, window_bounds = array<i64: 456, 64>}]} {
    %c0 = arith.constant 0 : index
    %c0_0 = arith.constant 0 : index
    %0 = vector.load %arg1[%c0, %c0_0] : memref<456x576xbf16, #tpu.memory_space<vmem>>, vector<456x576xbf16>
    %c0_1 = arith.constant 0 : index
    %c0_2 = arith.constant 0 : index
    %1 = vector.load %arg2[%c0_1, %c0_2] : memref<576x64xbf16, #tpu.memory_space<vmem>>, vector<576x64xbf16>
    %cst = arith.constant dense<0.000000e+00> : vector<456x64xf32>
    %2 = tpu.matmul %0, %1, %cst {dimension_numbers = #tpu.dot_dimension_numbers<[1], [0], [0], [1], [0, 0, 1, 1], [], []>} : vector<456x576xbf16>, vector<576x64xbf16>, vector<456x64xf32> -> vector<456x64xf32>
    %c0_3 = arith.constant 0 : index
    %c0_4 = arith.constant 0 : index
    %3 = vector.load %arg3[%c0_3, %c0_4] : memref<1x64xf32, #tpu.memory_space<vmem>>, vector<1x64xf32>
    %4 = vector.broadcast %3 : vector<1x64xf32> to vector<456x64xf32>
    %5 = arith.addf %2, %4 : vector<456x64xf32>
    %cst_5 = arith.constant 0.000000e+00 : f32
    %6 = vector.broadcast %cst_5 : f32 to vector<456x64xf32>
    %7 = arith.cmpf oge, %5, %6 : vector<456x64xf32>
    %cst_6 = arith.constant 2.000000e-01 : f32
    %8 = vector.broadcast %cst_6 : f32 to vector<456x64xf32>
    %9 = arith.mulf %8, %5 : vector<456x64xf32>
    %10 = arith.select %7, %5, %9 : vector<456x64xi1>, vector<456x64xf32>
    %11 = arith.truncf %10 : vector<456x64xf32> to vector<456x64xbf16>
    %c0_7 = arith.constant 0 : index
    %c0_8 = arith.constant 0 : index
    %12 = vector.load %arg4[%c0_7, %c0_8] : memref<456x64xbf16, #tpu.memory_space<vmem>>, vector<456x64xbf16>
    tpu.vector_store %arg4[%c0_7, %c0_8], %11 {strides = array<i32>} : memref<456x64xbf16, #tpu.memory_space<vmem>>, vector<456x64xbf16>,
    return
  }
  func.func @transform_0(%arg0: i32) -> (i32, i32) {
    %c0_i32 = arith.constant 0 : i32
    %c0_i32_0 = arith.constant 0 : i32
    return %arg0, %c0_i32 : i32, i32
  }
  func.func @transform_1(%arg0: i32) -> (i32, i32) {
    %c0_i32 = arith.constant 0 : i32
    %c0_i32_0 = arith.constant 0 : i32
    %c0_i32_1 = arith.constant 0 : i32
    return %c0_i32, %c0_i32_0 : i32, i32
  }
  func.func @transform_2(%arg0: i32) -> (i32, i32) {
    %c0_i32 = arith.constant 0 : i32
    %c0_i32_0 = arith.constant 0 : i32
    %c0_i32_1 = arith.constant 0 : i32
    return %c0_i32, %c0_i32_0 : i32, i32
  }
  func.func @transform_3(%arg0: i32) -> (i32, i32) {
    %c0_i32 = arith.constant 0 : i32
    %c0_i32_0 = arith.constant 0 : i32
    return %arg0, %c0_i32 : i32, i32
  }
}

module attributes {stable_mosaic.version = 11 : i64} {
  func.func @_mm_bias_act_kernel(%arg0: i32, %arg1: memref<104x576xbf16, #tpu.memory_space<vmem>>, %arg2: memref<576x64xbf16, #tpu.memory_space<vmem>>, %arg3: memref<1x64xf32, #tpu.memory_space<vmem>>, %arg4: memref<104x64xbf16, #tpu.memory_space<vmem>>) attributes {dimension_semantics = [#tpu.dimension_semantics<parallel>], iteration_bounds = array<i64: 1>, scalar_prefetch = 0 : i64, scratch_operands = 0 : i64, tpu.core_type = #tpu.core_type<tc>, window_params = [{transform_indices = @transform_0, window_bounds = array<i64: 104, 576>}, {pipeline_mode = #tpu.pipeline_mode<synchronous>, transform_indices = @transform_1, window_bounds = array<i64: 576, 64>}, {pipeline_mode = #tpu.pipeline_mode<synchronous>, transform_indices = @transform_2, window_bounds = array<i64: 1, 64>}, {transform_indices = @transform_3, window_bounds = array<i64: 104, 64>}]} {
    %c0 = arith.constant 0 : index
    %c0_0 = arith.constant 0 : index
    %0 = vector.load %arg1[%c0, %c0_0] : memref<104x576xbf16, #tpu.memory_space<vmem>>, vector<104x576xbf16>
    %c0_1 = arith.constant 0 : index
    %c0_2 = arith.constant 0 : index
    %1 = vector.load %arg2[%c0_1, %c0_2] : memref<576x64xbf16, #tpu.memory_space<vmem>>, vector<576x64xbf16>
    %cst = arith.constant dense<0.000000e+00> : vector<104x64xf32>
    %2 = tpu.matmul %0, %1, %cst {dimension_numbers = #tpu.dot_dimension_numbers<[1], [0], [0], [1], [0, 0, 1, 1], [], []>} : vector<104x576xbf16>, vector<576x64xbf16>, vector<104x64xf32> -> vector<104x64xf32>
    %c0_3 = arith.constant 0 : index
    %c0_4 = arith.constant 0 : index
    %3 = vector.load %arg3[%c0_3, %c0_4] : memref<1x64xf32, #tpu.memory_space<vmem>>, vector<1x64xf32>
    %4 = vector.broadcast %3 : vector<1x64xf32> to vector<104x64xf32>
    %5 = arith.addf %2, %4 : vector<104x64xf32>
    %cst_5 = arith.constant 0.000000e+00 : f32
    %6 = vector.broadcast %cst_5 : f32 to vector<104x64xf32>
    %7 = arith.cmpf oge, %5, %6 : vector<104x64xf32>
    %cst_6 = arith.constant 2.000000e-01 : f32
    %8 = vector.broadcast %cst_6 : f32 to vector<104x64xf32>
    %9 = arith.mulf %8, %5 : vector<104x64xf32>
    %10 = arith.select %7, %5, %9 : vector<104x64xi1>, vector<104x64xf32>
    %11 = arith.truncf %10 : vector<104x64xf32> to vector<104x64xbf16>
    %c0_7 = arith.constant 0 : index
    %c0_8 = arith.constant 0 : index
    %12 = vector.load %arg4[%c0_7, %c0_8] : memref<104x64xbf16, #tpu.memory_space<vmem>>, vector<104x64xbf16>
    tpu.vector_store %arg4[%c0_7, %c0_8], %11 {strides = array<i32>} : memref<104x64xbf16, #tpu.memory_space<vmem>>, vector<104x64xbf16>,
    return
  }
  func.func @transform_0(%arg0: i32) -> (i32, i32) {
    %c0_i32 = arith.constant 0 : i32
    %c0_i32_0 = arith.constant 0 : i32
    return %arg0, %c0_i32 : i32, i32
  }
  func.func @transform_1(%arg0: i32) -> (i32, i32) {
    %c0_i32 = arith.constant 0 : i32
    %c0_i32_0 = arith.constant 0 : i32
    %c0_i32_1 = arith.constant 0 : i32
    return %c0_i32, %c0_i32_0 : i32, i32
  }
  func.func @transform_2(%arg0: i32) -> (i32, i32) {
    %c0_i32 = arith.constant 0 : i32
    %c0_i32_0 = arith.constant 0 : i32
    %c0_i32_1 = arith.constant 0 : i32
    return %c0_i32, %c0_i32_0 : i32, i32
  }
  func.func @transform_3(%arg0: i32) -> (i32, i32) {
    %c0_i32 = arith.constant 0 : i32
    %c0_i32_0 = arith.constant 0 : i32
    return %arg0, %c0_i32 : i32, i32
  }
}

module attributes {stable_mosaic.version = 11 : i64} {
  func.func @_mm_bias_act_kernel(%arg0: i32, %arg1: memref<24x576xbf16, #tpu.memory_space<vmem>>, %arg2: memref<576x64xbf16, #tpu.memory_space<vmem>>, %arg3: memref<1x64xf32, #tpu.memory_space<vmem>>, %arg4: memref<24x64xbf16, #tpu.memory_space<vmem>>) attributes {dimension_semantics = [#tpu.dimension_semantics<parallel>], iteration_bounds = array<i64: 1>, scalar_prefetch = 0 : i64, scratch_operands = 0 : i64, tpu.core_type = #tpu.core_type<tc>, window_params = [{transform_indices = @transform_0, window_bounds = array<i64: 24, 576>}, {pipeline_mode = #tpu.pipeline_mode<synchronous>, transform_indices = @transform_1, window_bounds = array<i64: 576, 64>}, {pipeline_mode = #tpu.pipeline_mode<synchronous>, transform_indices = @transform_2, window_bounds = array<i64: 1, 64>}, {transform_indices = @transform_3, window_bounds = array<i64: 24, 64>}]} {
    %c0 = arith.constant 0 : index
    %c0_0 = arith.constant 0 : index
    %0 = vector.load %arg1[%c0, %c0_0] : memref<24x576xbf16, #tpu.memory_space<vmem>>, vector<24x576xbf16>
    %c0_1 = arith.constant 0 : index
    %c0_2 = arith.constant 0 : index
    %1 = vector.load %arg2[%c0_1, %c0_2] : memref<576x64xbf16, #tpu.memory_space<vmem>>, vector<576x64xbf16>
    %cst = arith.constant dense<0.000000e+00> : vector<24x64xf32>
    %2 = tpu.matmul %0, %1, %cst {dimension_numbers = #tpu.dot_dimension_numbers<[1], [0], [0], [1], [0, 0, 1, 1], [], []>} : vector<24x576xbf16>, vector<576x64xbf16>, vector<24x64xf32> -> vector<24x64xf32>
    %c0_3 = arith.constant 0 : index
    %c0_4 = arith.constant 0 : index
    %3 = vector.load %arg3[%c0_3, %c0_4] : memref<1x64xf32, #tpu.memory_space<vmem>>, vector<1x64xf32>
    %4 = vector.broadcast %3 : vector<1x64xf32> to vector<24x64xf32>
    %5 = arith.addf %2, %4 : vector<24x64xf32>
    %cst_5 = arith.constant 0.000000e+00 : f32
    %6 = vector.broadcast %cst_5 : f32 to vector<24x64xf32>
    %7 = arith.cmpf oge, %5, %6 : vector<24x64xf32>
    %cst_6 = arith.constant 2.000000e-01 : f32
    %8 = vector.broadcast %cst_6 : f32 to vector<24x64xf32>
    %9 = arith.mulf %8, %5 : vector<24x64xf32>
    %10 = arith.select %7, %5, %9 : vector<24x64xi1>, vector<24x64xf32>
    %11 = arith.truncf %10 : vector<24x64xf32> to vector<24x64xbf16>
    %c0_7 = arith.constant 0 : index
    %c0_8 = arith.constant 0 : index
    %12 = vector.load %arg4[%c0_7, %c0_8] : memref<24x64xbf16, #tpu.memory_space<vmem>>, vector<24x64xbf16>
    tpu.vector_store %arg4[%c0_7, %c0_8], %11 {strides = array<i32>} : memref<24x64xbf16, #tpu.memory_space<vmem>>, vector<24x64xbf16>,
    return
  }
  func.func @transform_0(%arg0: i32) -> (i32, i32) {
    %c0_i32 = arith.constant 0 : i32
    %c0_i32_0 = arith.constant 0 : i32
    return %arg0, %c0_i32 : i32, i32
  }
  func.func @transform_1(%arg0: i32) -> (i32, i32) {
    %c0_i32 = arith.constant 0 : i32
    %c0_i32_0 = arith.constant 0 : i32
    %c0_i32_1 = arith.constant 0 : i32
    return %c0_i32, %c0_i32_0 : i32, i32
  }
  func.func @transform_2(%arg0: i32) -> (i32, i32) {
    %c0_i32 = arith.constant 0 : i32
    %c0_i32_0 = arith.constant 0 : i32
    %c0_i32_1 = arith.constant 0 : i32
    return %c0_i32, %c0_i32_0 : i32, i32
  }
  func.func @transform_3(%arg0: i32) -> (i32, i32) {
    %c0_i32 = arith.constant 0 : i32
    %c0_i32_0 = arith.constant 0 : i32
    return %arg0, %c0_i32 : i32, i32
  }
}

module attributes {stable_mosaic.version = 11 : i64} {
  func.func @_mm_bias_act_kernel(%arg0: i32, %arg1: memref<8x576xbf16, #tpu.memory_space<vmem>>, %arg2: memref<576x64xbf16, #tpu.memory_space<vmem>>, %arg3: memref<1x64xf32, #tpu.memory_space<vmem>>, %arg4: memref<8x64xbf16, #tpu.memory_space<vmem>>) attributes {dimension_semantics = [#tpu.dimension_semantics<parallel>], iteration_bounds = array<i64: 1>, scalar_prefetch = 0 : i64, scratch_operands = 0 : i64, tpu.core_type = #tpu.core_type<tc>, window_params = [{transform_indices = @transform_0, window_bounds = array<i64: 8, 576>}, {pipeline_mode = #tpu.pipeline_mode<synchronous>, transform_indices = @transform_1, window_bounds = array<i64: 576, 64>}, {pipeline_mode = #tpu.pipeline_mode<synchronous>, transform_indices = @transform_2, window_bounds = array<i64: 1, 64>}, {transform_indices = @transform_3, window_bounds = array<i64: 8, 64>}]} {
    %c0 = arith.constant 0 : index
    %c0_0 = arith.constant 0 : index
    %0 = vector.load %arg1[%c0, %c0_0] : memref<8x576xbf16, #tpu.memory_space<vmem>>, vector<8x576xbf16>
    %c0_1 = arith.constant 0 : index
    %c0_2 = arith.constant 0 : index
    %1 = vector.load %arg2[%c0_1, %c0_2] : memref<576x64xbf16, #tpu.memory_space<vmem>>, vector<576x64xbf16>
    %cst = arith.constant dense<0.000000e+00> : vector<8x64xf32>
    %2 = tpu.matmul %0, %1, %cst {dimension_numbers = #tpu.dot_dimension_numbers<[1], [0], [0], [1], [0, 0, 1, 1], [], []>} : vector<8x576xbf16>, vector<576x64xbf16>, vector<8x64xf32> -> vector<8x64xf32>
    %c0_3 = arith.constant 0 : index
    %c0_4 = arith.constant 0 : index
    %3 = vector.load %arg3[%c0_3, %c0_4] : memref<1x64xf32, #tpu.memory_space<vmem>>, vector<1x64xf32>
    %4 = vector.broadcast %3 : vector<1x64xf32> to vector<8x64xf32>
    %5 = arith.addf %2, %4 : vector<8x64xf32>
    %cst_5 = arith.constant 0.000000e+00 : f32
    %6 = vector.broadcast %cst_5 : f32 to vector<8x64xf32>
    %7 = arith.cmpf oge, %5, %6 : vector<8x64xf32>
    %cst_6 = arith.constant 2.000000e-01 : f32
    %8 = vector.broadcast %cst_6 : f32 to vector<8x64xf32>
    %9 = arith.mulf %8, %5 : vector<8x64xf32>
    %10 = arith.select %7, %5, %9 : vector<8x64xi1>, vector<8x64xf32>
    %11 = arith.truncf %10 : vector<8x64xf32> to vector<8x64xbf16>
    %c0_7 = arith.constant 0 : index
    %c0_8 = arith.constant 0 : index
    %12 = vector.load %arg4[%c0_7, %c0_8] : memref<8x64xbf16, #tpu.memory_space<vmem>>, vector<8x64xbf16>
    tpu.vector_store %arg4[%c0_7, %c0_8], %11 {strides = array<i32>} : memref<8x64xbf16, #tpu.memory_space<vmem>>, vector<8x64xbf16>,
    return
  }
  func.func @transform_0(%arg0: i32) -> (i32, i32) {
    %c0_i32 = arith.constant 0 : i32
    %c0_i32_0 = arith.constant 0 : i32
    return %arg0, %c0_i32 : i32, i32
  }
  func.func @transform_1(%arg0: i32) -> (i32, i32) {
    %c0_i32 = arith.constant 0 : i32
    %c0_i32_0 = arith.constant 0 : i32
    %c0_i32_1 = arith.constant 0 : i32
    return %c0_i32, %c0_i32_0 : i32, i32
  }
  func.func @transform_2(%arg0: i32) -> (i32, i32) {
    %c0_i32 = arith.constant 0 : i32
    %c0_i32_0 = arith.constant 0 : i32
    %c0_i32_1 = arith.constant 0 : i32
    return %c0_i32, %c0_i32_0 : i32, i32
  }
  func.func @transform_3(%arg0: i32) -> (i32, i32) {
    %c0_i32 = arith.constant 0 : i32
    %c0_i32_0 = arith.constant 0 : i32
    return %arg0, %c0_i32 : i32, i32
  }
}

module attributes {stable_mosaic.version = 11 : i64} {
  func.func @_fc_head_kernel(%arg0: i32, %arg1: memref<2x64xbf16, #tpu.memory_space<vmem>>, %arg2: memref<64x2048xbf16, #tpu.memory_space<vmem>>, %arg3: memref<1x2048xf32, #tpu.memory_space<vmem>>, %arg4: memref<2048x224xbf16, #tpu.memory_space<vmem>>, %arg5: memref<1x224xf32, #tpu.memory_space<vmem>>, %arg6: memref<2x224xf32, #tpu.memory_space<vmem>>) attributes {dimension_semantics = [#tpu.dimension_semantics<arbitrary>], iteration_bounds = array<i64: 1>, scalar_prefetch = 0 : i64, scratch_operands = 0 : i64, tpu.core_type = #tpu.core_type<tc>, window_params = [{pipeline_mode = #tpu.pipeline_mode<synchronous>, transform_indices = @transform_0, window_bounds = array<i64: 2, 64>}, {pipeline_mode = #tpu.pipeline_mode<synchronous>, transform_indices = @transform_1, window_bounds = array<i64: 64, 2048>}, {pipeline_mode = #tpu.pipeline_mode<synchronous>, transform_indices = @transform_2, window_bounds = array<i64: 1, 2048>}, {pipeline_mode = #tpu.pipeline_mode<synchronous>, transform_indices = @transform_3, window_bounds = array<i64: 2048, 224>}, {pipeline_mode = #tpu.pipeline_mode<synchronous>, transform_indices = @transform_4, window_bounds = array<i64: 1, 224>}, {pipeline_mode = #tpu.pipeline_mode<synchronous>, transform_indices = @transform_5, window_bounds = array<i64: 2, 224>}]} {
    %c0 = arith.constant 0 : index
    %c0_0 = arith.constant 0 : index
    %0 = vector.load %arg1[%c0, %c0_0] : memref<2x64xbf16, #tpu.memory_space<vmem>>, vector<2x64xbf16>
    %c0_1 = arith.constant 0 : index
    %c0_2 = arith.constant 0 : index
    %1 = vector.load %arg2[%c0_1, %c0_2] : memref<64x2048xbf16, #tpu.memory_space<vmem>>, vector<64x2048xbf16>
    %cst = arith.constant dense<0.000000e+00> : vector<2x2048xf32>
    %2 = tpu.matmul %0, %1, %cst {dimension_numbers = #tpu.dot_dimension_numbers<[1], [0], [0], [1], [0, 0, 1, 1], [], []>} : vector<2x64xbf16>, vector<64x2048xbf16>, vector<2x2048xf32> -> vector<2x2048xf32>
    %c0_3 = arith.constant 0 : index
    %c0_4 = arith.constant 0 : index
    %3 = vector.load %arg3[%c0_3, %c0_4] : memref<1x2048xf32, #tpu.memory_space<vmem>>, vector<1x2048xf32>
    %4 = vector.broadcast %3 : vector<1x2048xf32> to vector<2x2048xf32>
    %5 = arith.addf %2, %4 : vector<2x2048xf32>
    %cst_5 = arith.constant 0.000000e+00 : f32
    %6 = vector.broadcast %cst_5 : f32 to vector<2x2048xf32>
    %7 = arith.cmpf oge, %5, %6 : vector<2x2048xf32>
    %cst_6 = arith.constant 2.000000e-01 : f32
    %8 = vector.broadcast %cst_6 : f32 to vector<2x2048xf32>
    %9 = arith.mulf %8, %5 : vector<2x2048xf32>
    %10 = arith.select %7, %5, %9 : vector<2x2048xi1>, vector<2x2048xf32>
    %11 = arith.truncf %10 : vector<2x2048xf32> to vector<2x2048xbf16>
    %c0_7 = arith.constant 0 : index
    %c0_8 = arith.constant 0 : index
    %12 = vector.load %arg4[%c0_7, %c0_8] : memref<2048x224xbf16, #tpu.memory_space<vmem>>, vector<2048x224xbf16>
    %cst_9 = arith.constant dense<0.000000e+00> : vector<2x224xf32>
    %13 = tpu.matmul %11, %12, %cst_9 {dimension_numbers = #tpu.dot_dimension_numbers<[1], [0], [0], [1], [0, 0, 1, 1], [], []>} : vector<2x2048xbf16>, vector<2048x224xbf16>, vector<2x224xf32> -> vector<2x224xf32>
    %c0_10 = arith.constant 0 : index
    %c0_11 = arith.constant 0 : index
    %14 = vector.load %arg5[%c0_10, %c0_11] : memref<1x224xf32, #tpu.memory_space<vmem>>, vector<1x224xf32>
    %15 = vector.broadcast %14 : vector<1x224xf32> to vector<2x224xf32>
    %16 = arith.addf %13, %15 : vector<2x224xf32>
    %c0_12 = arith.constant 0 : index
    %c0_13 = arith.constant 0 : index
    %17 = vector.load %arg6[%c0_12, %c0_13] : memref<2x224xf32, #tpu.memory_space<vmem>>, vector<2x224xf32>
    tpu.vector_store %arg6[%c0_12, %c0_13], %16 {strides = array<i32>} : memref<2x224xf32, #tpu.memory_space<vmem>>, vector<2x224xf32>,
    return
  }
  func.func @transform_0(%arg0: i32) -> (i32, i32) {
    %c0_i32 = arith.constant 0 : i32
    %c0_i32_0 = arith.constant 0 : i32
    %c0_i32_1 = arith.constant 0 : i32
    return %c0_i32, %c0_i32_0 : i32, i32
  }
  func.func @transform_1(%arg0: i32) -> (i32, i32) {
    %c0_i32 = arith.constant 0 : i32
    %c0_i32_0 = arith.constant 0 : i32
    %c0_i32_1 = arith.constant 0 : i32
    return %c0_i32, %c0_i32_0 : i32, i32
  }
  func.func @transform_2(%arg0: i32) -> (i32, i32) {
    %c0_i32 = arith.constant 0 : i32
    %c0_i32_0 = arith.constant 0 : i32
    %c0_i32_1 = arith.constant 0 : i32
    return %c0_i32, %c0_i32_0 : i32, i32
  }
  func.func @transform_3(%arg0: i32) -> (i32, i32) {
    %c0_i32 = arith.constant 0 : i32
    %c0_i32_0 = arith.constant 0 : i32
    %c0_i32_1 = arith.constant 0 : i32
    return %c0_i32, %c0_i32_0 : i32, i32
  }
  func.func @transform_4(%arg0: i32) -> (i32, i32) {
    %c0_i32 = arith.constant 0 : i32
    %c0_i32_0 = arith.constant 0 : i32
    %c0_i32_1 = arith.constant 0 : i32
    return %c0_i32, %c0_i32_0 : i32, i32
  }
  func.func @transform_5(%arg0: i32) -> (i32, i32) {
    %c0_i32 = arith.constant 0 : i32
    %c0_i32_0 = arith.constant 0 : i32
    %c0_i32_1 = arith.constant 0 : i32
    return %c0_i32, %c0_i32_0 : i32, i32
  }
}

</mosaic_0001>

<bundles_post_ra>
// kernel: model_forward.7
= control target key start
LH: loop header
LB: loop body
LE: loop exit
PB: predicated region body
PF: predicated region fallthrough
CT: control target
= control target key end

     0   :  { %s1796_s12 = smov 0   ;;  %s1798_s13 = smov 0   ;;  %s2247_s0 = inlined_call_operand.vmem [shape: bf16[7938,32], index: 0, kind: input, shape index: {}]   ;;  %s2248_s1 = inlined_call_operand.vmem [shape: bf16[32,64], index: 1, kind: input, shape index: {}]   ;;  %s2249_s2 = inlined_call_operand.vmem [shape: f32[1,64], index: 2, kind: input, shape index: {}]   ;;  %s2250_s3 = inlined_call_operand.vmem [shape: bf16[7938,64], index: 3, kind: output, shape index: {}]  }
   0x1   :  { %s1800_s14 = smov 0  }
   0x2 LB: > { %s1809_s15 = sadd.s32 4294967295, %s1742_s14   ;;  %s1811_s16 = sadd.s32 1, %s1742_s14   ;;  %s1742_s14 = sphi %s1800_s14, %s2259_s14   ;;  %s1738_s13 = sphi %s1798_s13, %s2258_s13   ;;  %s1734_s12 = sphi %s1796_s12, %s2257_s12  }
   0x3   : > { %s85_s17 = ssub.s32 %s1742_s14, %s1811_s16  ;;  %s88_s18 = sadd.s32 1, %s1738_s13 }
   0x4   : > { %p86_p0 = scmp.eq.s32.totalorder %s85_s17, 0  ;;  %p98_p1 = scmp.ne.s32.totalorder %s1738_s13, %s1734_s12 }
   0x5   : > { %p99_p2 = scmp.eq.s32.totalorder %s1809_s15, 15  ;;  %p1367_p3 = scmp.ge.s32.totalorder %s1742_s14, 1 }
   0x6   : > { %s1819_s19 = scalar_select %p86_p0, %s1738_s13, %s88_s18  }
   0x7   : > { %p1821_p4 = por %p99_p2, %p98_p1  ;;  %p146_p5 = scmp.lt.s32.totalorder %s1742_s14, 17 }
   0x9   : > { %p147_p6 = pnand %p1367_p3, %p146_p5 }
   0xa   : > { %s1829_s23 = sshll.u32 (!%p147_p6), %s1809_s15, 6  ;;  %s170_s6 = sand.u32 (!%p147_p6), 1, %s1734_s12  }
   0xb   : > { %150 = sbr.rel (%p147_p6) target bundleno = 350 (0x15e), region = 32  ;;  %p178_p7 = scmp.lt.s32.totalorder (!%p147_p6), %s1829_s23, 992 }
   0xc   : > { %s1368_s7 = sshll.u32 (!%p147_p6), %s170_s6, 8 }
   0xd   : > { %s1913_s8 = scalar_lea.vmem (!%p147_p6), [#allocation2], %s1368_s7  }
  0x10   : > { %v1589_v0 = vld [vmem:[%s2248_s1 + $0x8] sm:$0xff]  ;;  %v1588_v1 = vld [vmem:[%s2248_s1] sm:$0xff]  ;;  %s179_s26 = scalar_select %p178_p7, %s1829_s23, 992  ;;  %vm437_vm0 = vcmask 261120   ;;  %vm959_vm3 = vcmask 519168  }
  0x11   : > { %540 = vmatpush.bf16.msra.mxu0 %v1589_v0  ;;  %1593 = vmatpush.bf16.msra.mxu1 %v1589_v0  ;;  %v1908_v34 = vld [vmem:[%s2249_s2] ss:$0 sm:$0xff]  ;;  %s1032_s9 = ssub.s32 (%p1821_p4), 993, %s1829_s23  ;;  %s1590_s10 = sshll.u32 (%p1821_p4), %s1809_s15, 8 }
  0x12   : > { %1594 = vmatpush.bf16.msra.mxu2 %v1589_v0  ;;  %1595 = vmatpush.bf16.msra.mxu3 %v1589_v0  ;;  %s1370_s27 = sshll.u32 %s179_s26, 2  ;;  %p1033_p8 = scmp.lt.s32.totalorder (%p1821_p4), %s1032_s9, 64 }
  0x13   : > { %s1839_s30 = scalar_lea.vmem %s2247_s0, %s1370_s27  ;;  %s2112_s14 = scalar_lea.vmem (%p1821_p4), %s2250_s3, %s1590_s10  }
  0x14   : > { %v1556_v2 = vld [vmem:[%s1839_s30] sm:$0xff]  ;;  %v1557_v6 = vld [vmem:[%s1839_s30 + $0x8] sm:$0xff]  ;;  %v1558_v10 = vld [vmem:[%s1839_s30 + $0x10] sm:$0xff] }
  0x15   : > { %541 = vmatpush.bf16.msra.mxu0 %v1588_v1  ;;  %1596 = vmatpush.bf16.msra.mxu1 %v1588_v1  ;;  %v1564_v3 = vld [vmem:[%s1839_s30 + $0x40] sm:$0xff]  ;;  %v1565_v7 = vld [vmem:[%s1839_s30 + $0x48] sm:$0xff]  ;;  %v1566_v11 = vld [vmem:[%s1839_s30 + $0x50] sm:$0xff] }
  0x16   : > { %1597 = vmatpush.bf16.msra.mxu2 %v1588_v1  ;;  %1598 = vmatpush.bf16.msra.mxu3 %v1588_v1  ;;  %v1572_v4 = vld [vmem:[%s1839_s30 + $0x80] sm:$0xff]  ;;  %v1573_v8 = vld [vmem:[%s1839_s30 + $0x88] sm:$0xff]  ;;  %v1574_v12 = vld [vmem:[%s1839_s30 + $0x90] sm:$0xff] }
  0x17   : > { %v1580_v5 = vld [vmem:[%s1839_s30 + $0xc0] sm:$0xff]  ;;  %v1581_v9 = vld [vmem:[%s1839_s30 + $0xc8] sm:$0xff]  ;;  %v1582_v13 = vld [vmem:[%s1839_s30 + $0xd0] sm:$0xff] }
  0x18   : > { %1507 = vmatmul.msk.bf16.vlgmr.msra.gmra.mxu0 %vm437_vm0, %v1556_v2  ;;  %1515 = vmatmul.msk.bf16.vlgmr.msra.gmra.mxu1 %vm437_vm0, %v1564_v3  ;;  %v1559_v14 = vld [vmem:[%s1839_s30 + $0x18] sm:$0xff]  ;;  %v1560_v18 = vld [vmem:[%s1839_s30 + $0x20] sm:$0xff]  ;;  %v1561_v22 = vld [vmem:[%s1839_s30 + $0x28] sm:$0xff] }
  0x19   : > { %1523 = vmatmul.msk.bf16.vlgmr.msra.gmra.mxu2 %vm437_vm0, %v1572_v4  ;;  %1531 = vmatmul.msk.bf16.vlgmr.msra.gmra.mxu3 %vm437_vm0, %v1580_v5  ;;  %v1567_v15 = vld [vmem:[%s1839_s30 + $0x58] sm:$0xff]  ;;  %v1568_v19 = vld [vmem:[%s1839_s30 + $0x60] sm:$0xff]  ;;  %v1569_v23 = vld [vmem:[%s1839_s30 + $0x68] sm:$0xff] }
  0x1a   : > { %v1575_v16 = vld [vmem:[%s1839_s30 + $0x98] sm:$0xff]  ;;  %v1576_v20 = vld [vmem:[%s1839_s30 + $0xa0] sm:$0xff]  ;;  %v1577_v24 = vld [vmem:[%s1839_s30 + $0xa8] sm:$0xff] }
  0x1b   : > { %v1583_v17 = vld [vmem:[%s1839_s30 + $0xd8] sm:$0xff]  ;;  %v1584_v21 = vld [vmem:[%s1839_s30 + $0xe0] sm:$0xff]  ;;  %v1585_v25 = vld [vmem:[%s1839_s30 + $0xe8] sm:$0xff] }
  0x1c   : > { %v1562_v26 = vld [vmem:[%s1839_s30 + $0x30] sm:$0xff]  ;;  %v1563_v30 = vld [vmem:[%s1839_s30 + $0x38] sm:$0xff] }
  0x1d   : > { %v1570_v27 = vld [vmem:[%s1839_s30 + $0x70] sm:$0xff]  ;;  %v1571_v31 = vld [vmem:[%s1839_s30 + $0x78] sm:$0xff] }
  0x1e   : > { %v1578_v28 = vld [vmem:[%s1839_s30 + $0xb0] sm:$0xff]  ;;  %v1579_v32 = vld [vmem:[%s1839_s30 + $0xb8] sm:$0xff] }
  0x1f   : > { %v1586_v29 = vld [vmem:[%s1839_s30 + $0xf0] sm:$0xff]  ;;  %v1587_v33 = vld [vmem:[%s1839_s30 + $0xf8] sm:$0xff] }
  0x28   : > { %1508 = vmatmul.msk.bf16.gmra.mxu0 %vm437_vm0, %v1557_v6  ;;  %1516 = vmatmul.msk.bf16.gmra.mxu1 %vm437_vm0, %v1565_v7 }
  0x29   : > { %1524 = vmatmul.msk.bf16.gmra.mxu2 %vm437_vm0, %v1573_v8  ;;  %1532 = vmatmul.msk.bf16.gmra.mxu3 %vm437_vm0, %v1581_v9 }
  0x38   : > { %1509 = vmatmul.msk.bf16.gmra.mxu0 %vm437_vm0, %v1558_v10  ;;  %1517 = vmatmul.msk.bf16.gmra.mxu1 %vm437_vm0, %v1566_v11 }
  0x39   : > { %1525 = vmatmul.msk.bf16.gmra.mxu2 %vm437_vm0, %v1574_v12  ;;  %1533 = vmatmul.msk.bf16.gmra.mxu3 %vm437_vm0, %v1582_v13 }
  0x48   : > { %1510 = vmatmul.msk.bf16.gmra.mxu0 %vm437_vm0, %v1559_v14  ;;  %1518 = vmatmul.msk.bf16.gmra.mxu1 %vm437_vm0, %v1567_v15 }
  0x49   : > { %1526 = vmatmul.msk.bf16.gmra.mxu2 %vm437_vm0, %v1575_v16  ;;  %1534 = vmatmul.msk.bf16.gmra.mxu3 %vm437_vm0, %v1583_v17 }
  0x58   : > { %1511 = vmatmul.msk.bf16.gmra.mxu0 %vm437_vm0, %v1560_v18  ;;  %1519 = vmatmul.msk.bf16.gmra.mxu1 %vm437_vm0, %v1568_v19 }
  0x59   : > { %1527 = vmatmul.msk.bf16.gmra.mxu2 %vm437_vm0, %v1576_v20  ;;  %1535 = vmatmul.msk.bf16.gmra.mxu3 %vm437_vm0, %v1584_v21 }
  0x68   : > { %1512 = vmatmul.msk.bf16.gmra.mxu0 %vm437_vm0, %v1561_v22  ;;  %1520 = vmatmul.msk.bf16.gmra.mxu1 %vm437_vm0, %v1569_v23 }
  0x69   : > { %1528 = vmatmul.msk.bf16.gmra.mxu2 %vm437_vm0, %v1577_v24  ;;  %1536 = vmatmul.msk.bf16.gmra.mxu3 %vm437_vm0, %v1585_v25 }
  0x78   : > { %1513 = vmatmul.msk.bf16.gmra.mxu0 %vm437_vm0, %v1562_v26  ;;  %1521 = vmatmul.msk.bf16.gmra.mxu1 %vm437_vm0, %v1570_v27 }
  0x79   : > { %1529 = vmatmul.msk.bf16.gmra.mxu2 %vm437_vm0, %v1578_v28  ;;  %1537 = vmatmul.msk.bf16.gmra.mxu3 %vm437_vm0, %v1586_v29 }
  0x88   : > { %1514 = vmatmul.msk.bf16.gmra.mxu0 %vm437_vm0, %v1563_v30  ;;  %1522 = vmatmul.msk.bf16.gmra.mxu1 %vm437_vm0, %v1571_v31 }
  0x89   : > { %1530 = vmatmul.msk.bf16.gmra.mxu2 %vm437_vm0, %v1579_v32  ;;  %1538 = vmatmul.msk.bf16.gmra.mxu3 %vm437_vm0, %v1587_v33 }
  0x95   : > { %v543_v35 = vpop.f32.mrf.mxu0  ;;  %v583_v36 = vpop.f32.mrf.mxu1 }
  0x96   : > { %v544_v37 = vadd.f32 %v1908_v34, %v543_v35  ;;  %v584_v38 = vadd.f32 %v1908_v34, %v583_v36 }
  0x98   : > { %vm703_vm1 = vcmp.ge.f32.partialorder %v544_v37, 0.0  ;;  %v767_v39 = vmul.f32 0.2, %v544_v37  ;;  %vm719_vm2 = vcmp.ge.f32.partialorder %v584_v38, 0.0  ;;  %v783_v40 = vmul.f32 0.2, %v584_v38 }
  0x9a   : > { %v831_v41 = vsel %vm703_vm1, %v544_v37, %v767_v39  ;;  %v847_v42 = vsel %vm719_vm2, %v584_v38, %v783_v40 }
  0x9b   : > { %v895_v43 = vpack.c.bf16 %v831_v41, %v831_v41  ;;  %v911_v44 = vpack.c.bf16 %v847_v42, %v847_v42 }
  0x9c   : > { %v623_v45 = vpop.f32.mrf.mxu2  ;;  %v663_v46 = vpop.f32.mrf.mxu3 }
  0x9d   : > { %960 = vst.msk [vmem:[%s1913_s8] sm:$0xf] %vm959_vm3, %v895_v43  ;;  %v624_v47 = vadd.f32 %v1908_v34, %v623_v45  ;;  %v664_v48 = vadd.f32 %v1908_v34, %v663_v46  ;;  %v545_v49 = vpop.f32.mrf.mxu0  ;;  %v585_v50 = vpop.f32.mrf.mxu1 }
  0x9e   : > { %976 = vst.msk [vmem:[%s1913_s8 + $0x40] sm:$0xf] %vm959_vm3, %v911_v44  ;;  %v546_v51 = vadd.f32 %v1908_v34, %v545_v49  ;;  %v586_v52 = vadd.f32 %v1908_v34, %v585_v50 }
  0x9f   : > { %vm735_vm4 = vcmp.ge.f32.partialorder %v624_v47, 0.0  ;;  %v799_v53 = vmul.f32 0.2, %v624_v47  ;;  %vm751_vm5 = vcmp.ge.f32.partialorder %v664_v48, 0.0  ;;  %v815_v54 = vmul.f32 0.2, %v664_v48 }
  0xa0   : > { %vm704_vm6 = vcmp.ge.f32.partialorder %v546_v51, 0.0  ;;  %v768_v55 = vmul.f32 0.2, %v546_v51  ;;  %vm720_vm7 = vcmp.ge.f32.partialorder %v586_v52, 0.0  ;;  %v784_v56 = vmul.f32 0.2, %v586_v52 }
  0xa1   : > { %v863_v57 = vsel %vm735_vm4, %v624_v47, %v799_v53  ;;  %v879_v58 = vsel %vm751_vm5, %v664_v48, %v815_v54 }
  0xa2   : > { %v927_v59 = vpack.c.bf16 %v863_v57, %v863_v57  ;;  %v943_v60 = vpack.c.bf16 %v879_v58, %v879_v58  ;;  %v832_v61 = vsel %vm704_vm6, %v546_v51, %v768_v55  ;;  %v848_v62 = vsel %vm720_vm7, %v586_v52, %v784_v56 }
  0xa3   : > { %v896_v63 = vpack.c.bf16 %v832_v61, %v832_v61  ;;  %v912_v0 = vpack.c.bf16 %v848_v62, %v848_v62 }
  0xa4   : > { %992 = vst.msk [vmem:[%s1913_s8 + $0x80] sm:$0xf] %vm959_vm3, %v927_v59  ;;  %v625_v1 = vpop.f32.mrf.mxu2  ;;  %v665_v2 = vpop.f32.mrf.mxu3 }
  0xa5   : > { %1008 = vst.msk [vmem:[%s1913_s8 + $0xc0] sm:$0xf] %vm959_vm3, %v943_v60  ;;  %v626_v3 = vadd.f32 %v1908_v34, %v625_v1  ;;  %v666_v4 = vadd.f32 %v1908_v34, %v665_v2  ;;  %v548_v5 = vpop.f32.mrf.mxu0  ;;  %v588_v6 = vpop.f32.mrf.mxu1 }
  0xa6   : > { %961 = vst.msk [vmem:[%s1913_s8 + $0x4] sm:$0xf] %vm959_vm3, %v896_v63  ;;  %v549_v7 = vadd.f32 %v1908_v34, %v548_v5  ;;  %v589_v8 = vadd.f32 %v1908_v34, %v588_v6 }
  0xa7   : > { %977 = vst.msk [vmem:[%s1913_s8 + $0x44] sm:$0xf] %vm959_vm3, %v912_v0  ;;  %vm736_vm8 = vcmp.ge.f32.partialorder %v626_v3, 0.0  ;;  %v800_v9 = vmul.f32 0.2, %v626_v3  ;;  %vm752_vm9 = vcmp.ge.f32.partialorder %v666_v4, 0.0 }
  0xa8   : > { %v816_v10 = vmul.f32 0.2, %v666_v4  ;;  %vm705_vm10 = vcmp.ge.f32.partialorder %v549_v7, 0.0  ;;  %v769_v11 = vmul.f32 0.2, %v549_v7  ;;  %vm721_vm11 = vcmp.ge.f32.partialorder %v589_v8, 0.0 }
  0xa9   : > { %v864_v12 = vsel %vm736_vm8, %v626_v3, %v800_v9  ;;  %v785_v13 = vmul.f32 0.2, %v589_v8 }
  0xaa   : > { %v928_v14 = vpack.c.bf16 %v864_v12, %v864_v12  ;;  %v880_v15 = vsel %vm752_vm9, %v666_v4, %v816_v10  ;;  %v833_v16 = vsel %vm705_vm10, %v549_v7, %v769_v11 }
  0xab   : > { %v944_v17 = vpack.c.bf16 %v880_v15, %v880_v15  ;;  %v897_v18 = vpack.c.bf16 %v833_v16, %v833_v16  ;;  %v849_v19 = vsel %vm721_vm11, %v589_v8, %v785_v13 }
  0xac   : > { %993 = vst.msk [vmem:[%s1913_s8 + $0x84] sm:$0xf] %vm959_vm3, %v928_v14  ;;  %v913_v20 = vpack.c.bf16 %v849_v19, %v849_v19  ;;  %v628_v21 = vpop.f32.mrf.mxu2  ;;  %v668_v22 = vpop.f32.mrf.mxu3 }
  0xad   : > { %1009 = vst.msk [vmem:[%s1913_s8 + $0xc4] sm:$0xf] %vm959_vm3, %v944_v17  ;;  %v629_v23 = vadd.f32 %v1908_v34, %v628_v21  ;;  %v669_v24 = vadd.f32 %v1908_v34, %v668_v22  ;;  %v550_v25 = vpop.f32.mrf.mxu0  ;;  %v590_v26 = vpop.f32.mrf.mxu1 }
  0xae   : > { %962 = vst.msk [vmem:[%s1913_s8 + $0x8] sm:$0xf] %vm959_vm3, %v897_v18  ;;  %v551_v27 = vadd.f32 %v1908_v34, %v550_v25  ;;  %v591_v28 = vadd.f32 %v1908_v34, %v590_v26 }
  0xaf   : > { %978 = vst.msk [vmem:[%s1913_s8 + $0x48] sm:$0xf] %vm959_vm3, %v913_v20  ;;  %vm737_vm12 = vcmp.ge.f32.partialorder %v629_v23, 0.0  ;;  %v801_v29 = vmul.f32 0.2, %v629_v23  ;;  %vm753_vm13 = vcmp.ge.f32.partialorder %v669_v24, 0.0 }
  0xb0   : > { %v817_v30 = vmul.f32 0.2, %v669_v24  ;;  %vm706_vm14 = vcmp.ge.f32.partialorder %v551_v27, 0.0  ;;  %v770_v31 = vmul.f32 0.2, %v551_v27  ;;  %vm722_vm15 = vcmp.ge.f32.partialorder %v591_v28, 0.0 }
  0xb1   : > { %v865_v32 = vsel %vm737_vm12, %v629_v23, %v801_v29  ;;  %v786_v33 = vmul.f32 0.2, %v591_v28 }
  0xb2   : > { %v929_v35 = vpack.c.bf16 %v865_v32, %v865_v32  ;;  %v881_v36 = vsel %vm753_vm13, %v669_v24, %v817_v30  ;;  %v834_v37 = vsel %vm706_vm14, %v551_v27, %v770_v31 }
  0xb3   : > { %v945_v38 = vpack.c.bf16 %v881_v36, %v881_v36  ;;  %v898_v39 = vpack.c.bf16 %v834_v37, %v834_v37  ;;  %v850_v40 = vsel %vm722_vm15, %v591_v28, %v786_v33 }
  0xb4   : > { %994 = vst.msk [vmem:[%s1913_s8 + $0x88] sm:$0xf] %vm959_vm3, %v929_v35  ;;  %v914_v41 = vpack.c.bf16 %v850_v40, %v850_v40  ;;  %v630_v42 = vpop.f32.mrf.mxu2  ;;  %v670_v43 = vpop.f32.mrf.mxu3 }
  0xb5   : > { %1010 = vst.msk [vmem:[%s1913_s8 + $0xc8] sm:$0xf] %vm959_vm3, %v945_v38  ;;  %v631_v44 = vadd.f32 %v1908_v34, %v630_v42  ;;  %v671_v45 = vadd.f32 %v1908_v34, %v670_v43  ;;  %v553_v46 = vpop.f32.mrf.mxu0  ;;  %v593_v47 = vpop.f32.mrf.mxu1 }
  0xb6   : > { %963 = vst.msk [vmem:[%s1913_s8 + $0xc] sm:$0xf] %vm959_vm3, %v898_v39  ;;  %v554_v48 = vadd.f32 %v1908_v34, %v553_v46  ;;  %v594_v49 = vadd.f32 %v1908_v34, %v593_v47 }
  0xb7   : > { %979 = vst.msk [vmem:[%s1913_s8 + $0x4c] sm:$0xf] %vm959_vm3, %v914_v41  ;;  %vm738_vm0 = vcmp.ge.f32.partialorder %v631_v44, 0.0  ;;  %v802_v50 = vmul.f32 0.2, %v631_v44  ;;  %vm754_vm1 = vcmp.ge.f32.partialorder %v671_v45, 0.0 }
  0xb8   : > { %v818_v51 = vmul.f32 0.2, %v671_v45  ;;  %vm707_vm2 = vcmp.ge.f32.partialorder %v554_v48, 0.0  ;;  %v771_v52 = vmul.f32 0.2, %v554_v48  ;;  %vm723_vm4 = vcmp.ge.f32.partialorder %v594_v49, 0.0 }
  0xb9   : > { %v866_v53 = vsel %vm738_vm0, %v631_v44, %v802_v50  ;;  %v787_v54 = vmul.f32 0.2, %v594_v49 }
  0xba   : > { %v930_v55 = vpack.c.bf16 %v866_v53, %v866_v53  ;;  %v882_v56 = vsel %vm754_vm1, %v671_v45, %v818_v51  ;;  %v835_v57 = vsel %vm707_vm2, %v554_v48, %v771_v52 }
  0xbb   : > { %v946_v58 = vpack.c.bf16 %v882_v56, %v882_v56  ;;  %v899_v59 = vpack.c.bf16 %v835_v57, %v835_v57  ;;  %v851_v60 = vsel %vm723_vm4, %v594_v49, %v787_v54 }
  0xbc   : > { %995 = vst.msk [vmem:[%s1913_s8 + $0x8c] sm:$0xf] %vm959_vm3, %v930_v55  ;;  %v915_v61 = vpack.c.bf16 %v851_v60, %v851_v60  ;;  %v633_v62 = vpop.f32.mrf.mxu2  ;;  %v673_v63 = vpop.f32.mrf.mxu3 }
  0xbd   : > { %1011 = vst.msk [vmem:[%s1913_s8 + $0xcc] sm:$0xf] %vm959_vm3, %v946_v58  ;;  %v634_v0 = vadd.f32 %v1908_v34, %v633_v62  ;;  %v674_v1 = vadd.f32 %v1908_v34, %v673_v63  ;;  %v555_v2 = vpop.f32.mrf.mxu0  ;;  %v595_v3 = vpop.f32.mrf.mxu1 }
  0xbe   : > { %964 = vst.msk [vmem:[%s1913_s8 + $0x10] sm:$0xf] %vm959_vm3, %v899_v59  ;;  %v556_v4 = vadd.f32 %v1908_v34, %v555_v2  ;;  %v596_v5 = vadd.f32 %v1908_v34, %v595_v3 }
  0xbf   : > { %980 = vst.msk [vmem:[%s1913_s8 + $0x50] sm:$0xf] %vm959_vm3, %v915_v61  ;;  %vm739_vm5 = vcmp.ge.f32.partialorder %v634_v0, 0.0  ;;  %v803_v6 = vmul.f32 0.2, %v634_v0  ;;  %vm755_vm6 = vcmp.ge.f32.partialorder %v674_v1, 0.0 }
  0xc0   : > { %v819_v7 = vmul.f32 0.2, %v674_v1  ;;  %vm708_vm7 = vcmp.ge.f32.partialorder %v556_v4, 0.0  ;;  %v772_v8 = vmul.f32 0.2, %v556_v4  ;;  %vm724_vm8 = vcmp.ge.f32.partialorder %v596_v5, 0.0 }
  0xc1   : > { %v867_v9 = vsel %vm739_vm5, %v634_v0, %v803_v6  ;;  %v788_v10 = vmul.f32 0.2, %v596_v5 }
  0xc2   : > { %v931_v11 = vpack.c.bf16 %v867_v9, %v867_v9  ;;  %v883_v12 = vsel %vm755_vm6, %v674_v1, %v819_v7  ;;  %v836_v13 = vsel %vm708_vm7, %v556_v4, %v772_v8 }
  0xc3   : > { %v947_v14 = vpack.c.bf16 %v883_v12, %v883_v12  ;;  %v900_v15 = vpack.c.bf16 %v836_v13, %v836_v13  ;;  %v852_v16 = vsel %vm724_vm8, %v596_v5, %v788_v10 }
  0xc4   : > { %996 = vst.msk [vmem:[%s1913_s8 + $0x90] sm:$0xf] %vm959_vm3, %v931_v11  ;;  %v916_v17 = vpack.c.bf16 %v852_v16, %v852_v16  ;;  %v635_v18 = vpop.f32.mrf.mxu2  ;;  %v675_v19 = vpop.f32.mrf.mxu3 }
  0xc5   : > { %1012 = vst.msk [vmem:[%s1913_s8 + $0xd0] sm:$0xf] %vm959_vm3, %v947_v14  ;;  %v636_v20 = vadd.f32 %v1908_v34, %v635_v18  ;;  %v676_v21 = vadd.f32 %v1908_v34, %v675_v19  ;;  %v558_v22 = vpop.f32.mrf.mxu0  ;;  %v598_v23 = vpop.f32.mrf.mxu1 }
  0xc6   : > { %965 = vst.msk [vmem:[%s1913_s8 + $0x14] sm:$0xf] %vm959_vm3, %v900_v15  ;;  %v559_v24 = vadd.f32 %v1908_v34, %v558_v22  ;;  %v599_v25 = vadd.f32 %v1908_v34, %v598_v23 }
  0xc7   : > { %981 = vst.msk [vmem:[%s1913_s8 + $0x54] sm:$0xf] %vm959_vm3, %v916_v17  ;;  %vm740_vm9 = vcmp.ge.f32.partialorder %v636_v20, 0.0  ;;  %v804_v26 = vmul.f32 0.2, %v636_v20  ;;  %vm756_vm10 = vcmp.ge.f32.partialorder %v676_v21, 0.0 }
  0xc8   : > { %v820_v27 = vmul.f32 0.2, %v676_v21  ;;  %vm709_vm11 = vcmp.ge.f32.partialorder %v559_v24, 0.0  ;;  %v773_v28 = vmul.f32 0.2, %v559_v24  ;;  %vm725_vm12 = vcmp.ge.f32.partialorder %v599_v25, 0.0 }
  0xc9   : > { %v868_v29 = vsel %vm740_vm9, %v636_v20, %v804_v26  ;;  %v789_v30 = vmul.f32 0.2, %v599_v25 }
  0xca   : > { %v932_v31 = vpack.c.bf16 %v868_v29, %v868_v29  ;;  %v884_v32 = vsel %vm756_vm10, %v676_v21, %v820_v27  ;;  %v837_v33 = vsel %vm709_vm11, %v559_v24, %v773_v28 }
  0xcb   : > { %v948_v35 = vpack.c.bf16 %v884_v32, %v884_v32  ;;  %v901_v36 = vpack.c.bf16 %v837_v33, %v837_v33  ;;  %v853_v37 = vsel %vm725_vm12, %v599_v25, %v789_v30 }
  0xcc   : > { %997 = vst.msk [vmem:[%s1913_s8 + $0x94] sm:$0xf] %vm959_vm3, %v932_v31  ;;  %v917_v38 = vpack.c.bf16 %v853_v37, %v853_v37  ;;  %v638_v39 = vpop.f32.mrf.mxu2  ;;  %v678_v40 = vpop.f32.mrf.mxu3 }
  0xcd   : > { %1013 = vst.msk [vmem:[%s1913_s8 + $0xd4] sm:$0xf] %vm959_vm3, %v948_v35  ;;  %v639_v41 = vadd.f32 %v1908_v34, %v638_v39  ;;  %v679_v42 = vadd.f32 %v1908_v34, %v678_v40  ;;  %v560_v43 = vpop.f32.mrf.mxu0  ;;  %v600_v44 = vpop.f32.mrf.mxu1 }
  0xce   : > { %966 = vst.msk [vmem:[%s1913_s8 + $0x18] sm:$0xf] %vm959_vm3, %v901_v36  ;;  %v561_v45 = vadd.f32 %v1908_v34, %v560_v43  ;;  %v601_v46 = vadd.f32 %v1908_v34, %v600_v44 }
  0xcf   : > { %982 = vst.msk [vmem:[%s1913_s8 + $0x58] sm:$0xf] %vm959_vm3, %v917_v38  ;;  %vm741_vm13 = vcmp.ge.f32.partialorder %v639_v41, 0.0  ;;  %v805_v47 = vmul.f32 0.2, %v639_v41  ;;  %vm757_vm14 = vcmp.ge.f32.partialorder %v679_v42, 0.0 }
  0xd0   : > { %v821_v48 = vmul.f32 0.2, %v679_v42  ;;  %vm710_vm15 = vcmp.ge.f32.partialorder %v561_v45, 0.0  ;;  %v774_v49 = vmul.f32 0.2, %v561_v45  ;;  %vm726_vm0 = vcmp.ge.f32.partialorder %v601_v46, 0.0 }
  0xd1   : > { %v869_v50 = vsel %vm741_vm13, %v639_v41, %v805_v47  ;;  %v790_v51 = vmul.f32 0.2, %v601_v46 }
  0xd2   : > { %v933_v52 = vpack.c.bf16 %v869_v50, %v869_v50  ;;  %v885_v53 = vsel %vm757_vm14, %v679_v42, %v821_v48  ;;  %v838_v54 = vsel %vm710_vm15, %v561_v45, %v774_v49 }
  0xd3   : > { %v949_v55 = vpack.c.bf16 %v885_v53, %v885_v53  ;;  %v902_v56 = vpack.c.bf16 %v838_v54, %v838_v54  ;;  %v854_v57 = vsel %vm726_vm0, %v601_v46, %v790_v51 }
  0xd4   : > { %998 = vst.msk [vmem:[%s1913_s8 + $0x98] sm:$0xf] %vm959_vm3, %v933_v52  ;;  %v918_v58 = vpack.c.bf16 %v854_v57, %v854_v57  ;;  %v640_v59 = vpop.f32.mrf.mxu2  ;;  %v680_v60 = vpop.f32.mrf.mxu3 }
  0xd5   : > { %1014 = vst.msk [vmem:[%s1913_s8 + $0xd8] sm:$0xf] %vm959_vm3, %v949_v55  ;;  %v641_v61 = vadd.f32 %v1908_v34, %v640_v59  ;;  %v681_v62 = vadd.f32 %v1908_v34, %v680_v60  ;;  %v563_v63 = vpop.f32.mrf.mxu0  ;;  %v603_v0 = vpop.f32.mrf.mxu1 }
  0xd6   : > { %967 = vst.msk [vmem:[%s1913_s8 + $0x1c] sm:$0xf] %vm959_vm3, %v902_v56  ;;  %v564_v1 = vadd.f32 %v1908_v34, %v563_v63  ;;  %v604_v2 = vadd.f32 %v1908_v34, %v603_v0 }
  0xd7   : > { %983 = vst.msk [vmem:[%s1913_s8 + $0x5c] sm:$0xf] %vm959_vm3, %v918_v58  ;;  %vm742_vm1 = vcmp.ge.f32.partialorder %v641_v61, 0.0  ;;  %v806_v3 = vmul.f32 0.2, %v641_v61  ;;  %vm758_vm2 = vcmp.ge.f32.partialorder %v681_v62, 0.0 }
  0xd8   : > { %v822_v4 = vmul.f32 0.2, %v681_v62  ;;  %vm711_vm4 = vcmp.ge.f32.partialorder %v564_v1, 0.0  ;;  %v775_v5 = vmul.f32 0.2, %v564_v1  ;;  %vm727_vm5 = vcmp.ge.f32.partialorder %v604_v2, 0.0 }
  0xd9   : > { %v870_v6 = vsel %vm742_vm1, %v641_v61, %v806_v3  ;;  %v791_v7 = vmul.f32 0.2, %v604_v2 }
  0xda   : > { %v934_v8 = vpack.c.bf16 %v870_v6, %v870_v6  ;;  %v886_v9 = vsel %vm758_vm2, %v681_v62, %v822_v4  ;;  %v839_v10 = vsel %vm711_vm4, %v564_v1, %v775_v5 }
  0xdb   : > { %v950_v11 = vpack.c.bf16 %v886_v9, %v886_v9  ;;  %v903_v12 = vpack.c.bf16 %v839_v10, %v839_v10  ;;  %v855_v13 = vsel %vm727_vm5, %v604_v2, %v791_v7 }
  0xdc   : > { %999 = vst.msk [vmem:[%s1913_s8 + $0x9c] sm:$0xf] %vm959_vm3, %v934_v8  ;;  %v919_v14 = vpack.c.bf16 %v855_v13, %v855_v13  ;;  %v643_v15 = vpop.f32.mrf.mxu2  ;;  %v683_v16 = vpop.f32.mrf.mxu3 }
  0xdd   : > { %1015 = vst.msk [vmem:[%s1913_s8 + $0xdc] sm:$0xf] %vm959_vm3, %v950_v11  ;;  %v644_v17 = vadd.f32 %v1908_v34, %v643_v15  ;;  %v684_v18 = vadd.f32 %v1908_v34, %v683_v16  ;;  %v565_v19 = vpop.f32.mrf.mxu0  ;;  %v605_v20 = vpop.f32.mrf.mxu1 }
  0xde   : > { %968 = vst.msk [vmem:[%s1913_s8 + $0x20] sm:$0xf] %vm959_vm3, %v903_v12  ;;  %v566_v21 = vadd.f32 %v1908_v34, %v565_v19  ;;  %v606_v22 = vadd.f32 %v1908_v34, %v605_v20 }
  0xdf   : > { %984 = vst.msk [vmem:[%s1913_s8 + $0x60] sm:$0xf] %vm959_vm3, %v919_v14  ;;  %vm743_vm6 = vcmp.ge.f32.partialorder %v644_v17, 0.0  ;;  %v807_v23 = vmul.f32 0.2, %v644_v17  ;;  %vm759_vm7 = vcmp.ge.f32.partialorder %v684_v18, 0.0 }
  0xe0   : > { %v823_v24 = vmul.f32 0.2, %v684_v18  ;;  %vm712_vm8 = vcmp.ge.f32.partialorder %v566_v21, 0.0  ;;  %v776_v25 = vmul.f32 0.2, %v566_v21  ;;  %vm728_vm9 = vcmp.ge.f32.partialorder %v606_v22, 0.0 }
  0xe1   : > { %v871_v26 = vsel %vm743_vm6, %v644_v17, %v807_v23  ;;  %v792_v27 = vmul.f32 0.2, %v606_v22 }
  0xe2   : > { %v935_v28 = vpack.c.bf16 %v871_v26, %v871_v26  ;;  %v887_v29 = vsel %vm759_vm7, %v684_v18, %v823_v24  ;;  %v840_v30 = vsel %vm712_vm8, %v566_v21, %v776_v25 }
  0xe3   : > { %v951_v31 = vpack.c.bf16 %v887_v29, %v887_v29  ;;  %v904_v32 = vpack.c.bf16 %v840_v30, %v840_v30  ;;  %v856_v33 = vsel %vm728_vm9, %v606_v22, %v792_v27 }
  0xe4   : > { %1000 = vst.msk [vmem:[%s1913_s8 + $0xa0] sm:$0xf] %vm959_vm3, %v935_v28  ;;  %v920_v35 = vpack.c.bf16 %v856_v33, %v856_v33  ;;  %v645_v36 = vpop.f32.mrf.mxu2  ;;  %v685_v37 = vpop.f32.mrf.mxu3 }
  0xe5   : > { %1016 = vst.msk [vmem:[%s1913_s8 + $0xe0] sm:$0xf] %vm959_vm3, %v951_v31  ;;  %v646_v38 = vadd.f32 %v1908_v34, %v645_v36  ;;  %v686_v39 = vadd.f32 %v1908_v34, %v685_v37  ;;  %v568_v40 = vpop.f32.mrf.mxu0  ;;  %v608_v41 = vpop.f32.mrf.mxu1 }
  0xe6   : > { %969 = vst.msk [vmem:[%s1913_s8 + $0x24] sm:$0xf] %vm959_vm3, %v904_v32  ;;  %v569_v42 = vadd.f32 %v1908_v34, %v568_v40  ;;  %v609_v43 = vadd.f32 %v1908_v34, %v608_v41 }
  0xe7   : > { %985 = vst.msk [vmem:[%s1913_s8 + $0x64] sm:$0xf] %vm959_vm3, %v920_v35  ;;  %vm744_vm10 = vcmp.ge.f32.partialorder %v646_v38, 0.0  ;;  %v808_v44 = vmul.f32 0.2, %v646_v38  ;;  %vm760_vm11 = vcmp.ge.f32.partialorder %v686_v39, 0.0 }
  0xe8   : > { %v824_v45 = vmul.f32 0.2, %v686_v39  ;;  %vm713_vm12 = vcmp.ge.f32.partialorder %v569_v42, 0.0  ;;  %v777_v46 = vmul.f32 0.2, %v569_v42  ;;  %vm729_vm13 = vcmp.ge.f32.partialorder %v609_v43, 0.0 }
  0xe9   : > { %v872_v47 = vsel %vm744_vm10, %v646_v38, %v808_v44  ;;  %v793_v48 = vmul.f32 0.2, %v609_v43 }
  0xea   : > { %v936_v49 = vpack.c.bf16 %v872_v47, %v872_v47  ;;  %v888_v50 = vsel %vm760_vm11, %v686_v39, %v824_v45  ;;  %v841_v51 = vsel %vm713_vm12, %v569_v42, %v777_v46 }
  0xeb   : > { %v952_v52 = vpack.c.bf16 %v888_v50, %v888_v50  ;;  %v905_v53 = vpack.c.bf16 %v841_v51, %v841_v51  ;;  %v857_v54 = vsel %vm729_vm13, %v609_v43, %v793_v48 }
  0xec   : > { %1001 = vst.msk [vmem:[%s1913_s8 + $0xa4] sm:$0xf] %vm959_vm3, %v936_v49  ;;  %v921_v55 = vpack.c.bf16 %v857_v54, %v857_v54  ;;  %v648_v56 = vpop.f32.mrf.mxu2  ;;  %v688_v57 = vpop.f32.mrf.mxu3 }
  0xed   : > { %1017 = vst.msk [vmem:[%s1913_s8 + $0xe4] sm:$0xf] %vm959_vm3, %v952_v52  ;;  %v649_v58 = vadd.f32 %v1908_v34, %v648_v56  ;;  %v689_v59 = vadd.f32 %v1908_v34, %v688_v57  ;;  %v570_v60 = vpop.f32.mrf.mxu0  ;;  %v610_v61 = vpop.f32.mrf.mxu1 }
  0xee   : > { %970 = vst.msk [vmem:[%s1913_s8 + $0x28] sm:$0xf] %vm959_vm3, %v905_v53  ;;  %v571_v62 = vadd.f32 %v1908_v34, %v570_v60  ;;  %v611_v63 = vadd.f32 %v1908_v34, %v610_v61 }
  0xef   : > { %986 = vst.msk [vmem:[%s1913_s8 + $0x68] sm:$0xf] %vm959_vm3, %v921_v55  ;;  %vm745_vm14 = vcmp.ge.f32.partialorder %v649_v58, 0.0  ;;  %v809_v0 = vmul.f32 0.2, %v649_v58  ;;  %vm761_vm15 = vcmp.ge.f32.partialorder %v689_v59, 0.0 }
  0xf0   : > { %v825_v1 = vmul.f32 0.2, %v689_v59  ;;  %vm714_vm0 = vcmp.ge.f32.partialorder %v571_v62, 0.0  ;;  %v778_v2 = vmul.f32 0.2, %v571_v62  ;;  %vm730_vm1 = vcmp.ge.f32.partialorder %v611_v63, 0.0 }
  0xf1   : > { %v873_v3 = vsel %vm745_vm14, %v649_v58, %v809_v0  ;;  %v794_v4 = vmul.f32 0.2, %v611_v63 }
  0xf2   : > { %v937_v5 = vpack.c.bf16 %v873_v3, %v873_v3  ;;  %v889_v6 = vsel %vm761_vm15, %v689_v59, %v825_v1  ;;  %v842_v7 = vsel %vm714_vm0, %v571_v62, %v778_v2 }
  0xf3   : > { %v953_v8 = vpack.c.bf16 %v889_v6, %v889_v6  ;;  %v906_v9 = vpack.c.bf16 %v842_v7, %v842_v7  ;;  %v858_v10 = vsel %vm730_vm1, %v611_v63, %v794_v4 }
  0xf4   : > { %1002 = vst.msk [vmem:[%s1913_s8 + $0xa8] sm:$0xf] %vm959_vm3, %v937_v5  ;;  %v922_v11 = vpack.c.bf16 %v858_v10, %v858_v10  ;;  %v650_v12 = vpop.f32.mrf.mxu2  ;;  %v690_v13 = vpop.f32.mrf.mxu3 }
  0xf5   : > { %1018 = vst.msk [vmem:[%s1913_s8 + $0xe8] sm:$0xf] %vm959_vm3, %v953_v8  ;;  %v651_v14 = vadd.f32 %v1908_v34, %v650_v12  ;;  %v691_v15 = vadd.f32 %v1908_v34, %v690_v13  ;;  %v573_v16 = vpop.f32.mrf.mxu0  ;;  %v613_v17 = vpop.f32.mrf.mxu1 }
  0xf6   : > { %971 = vst.msk [vmem:[%s1913_s8 + $0x2c] sm:$0xf] %vm959_vm3, %v906_v9  ;;  %v574_v18 = vadd.f32 %v1908_v34, %v573_v16  ;;  %v614_v19 = vadd.f32 %v1908_v34, %v613_v17 }
  0xf7   : > { %987 = vst.msk [vmem:[%s1913_s8 + $0x6c] sm:$0xf] %vm959_vm3, %v922_v11  ;;  %vm746_vm2 = vcmp.ge.f32.partialorder %v651_v14, 0.0  ;;  %v810_v20 = vmul.f32 0.2, %v651_v14  ;;  %vm762_vm4 = vcmp.ge.f32.partialorder %v691_v15, 0.0 }
  0xf8   : > { %v826_v21 = vmul.f32 0.2, %v691_v15  ;;  %vm715_vm5 = vcmp.ge.f32.partialorder %v574_v18, 0.0  ;;  %v779_v22 = vmul.f32 0.2, %v574_v18  ;;  %vm731_vm6 = vcmp.ge.f32.partialorder %v614_v19, 0.0 }
  0xf9   : > { %v874_v23 = vsel %vm746_vm2, %v651_v14, %v810_v20  ;;  %v795_v24 = vmul.f32 0.2, %v614_v19 }
  0xfa   : > { %v938_v25 = vpack.c.bf16 %v874_v23, %v874_v23  ;;  %v890_v26 = vsel %vm762_vm4, %v691_v15, %v826_v21  ;;  %v843_v27 = vsel %vm715_vm5, %v574_v18, %v779_v22 }
  0xfb   : > { %v954_v28 = vpack.c.bf16 %v890_v26, %v890_v26  ;;  %v907_v29 = vpack.c.bf16 %v843_v27, %v843_v27  ;;  %v859_v30 = vsel %vm731_vm6, %v614_v19, %v795_v24 }
  0xfc   : > { %1003 = vst.msk [vmem:[%s1913_s8 + $0xac] sm:$0xf] %vm959_vm3, %v938_v25  ;;  %v923_v31 = vpack.c.bf16 %v859_v30, %v859_v30  ;;  %v653_v32 = vpop.f32.mrf.mxu2  ;;  %v693_v33 = vpop.f32.mrf.mxu3 }
  0xfd   : > { %1019 = vst.msk [vmem:[%s1913_s8 + $0xec] sm:$0xf] %vm959_vm3, %v954_v28  ;;  %v654_v35 = vadd.f32 %v1908_v34, %v653_v32  ;;  %v694_v36 = vadd.f32 %v1908_v34, %v693_v33  ;;  %v575_v37 = vpop.f32.mrf.mxu0  ;;  %v615_v38 = vpop.f32.mrf.mxu1 }
  0xfe   : > { %972 = vst.msk [vmem:[%s1913_s8 + $0x30] sm:$0xf] %vm959_vm3, %v907_v29  ;;  %v576_v39 = vadd.f32 %v1908_v34, %v575_v37  ;;  %v616_v40 = vadd.f32 %v1908_v34, %v615_v38 }
  0xff   : > { %988 = vst.msk [vmem:[%s1913_s8 + $0x70] sm:$0xf] %vm959_vm3, %v923_v31  ;;  %vm747_vm7 = vcmp.ge.f32.partialorder %v654_v35, 0.0  ;;  %v811_v41 = vmul.f32 0.2, %v654_v35  ;;  %vm763_vm8 = vcmp.ge.f32.partialorder %v694_v36, 0.0 }
 0x100   : > { %v827_v42 = vmul.f32 0.2, %v694_v36  ;;  %vm716_vm9 = vcmp.ge.f32.partialorder %v576_v39, 0.0  ;;  %v780_v43 = vmul.f32 0.2, %v576_v39  ;;  %vm732_vm10 = vcmp.ge.f32.partialorder %v616_v40, 0.0 }
 0x101   : > { %v875_v44 = vsel %vm747_vm7, %v654_v35, %v811_v41  ;;  %v796_v45 = vmul.f32 0.2, %v616_v40 }
 0x102   : > { %v939_v46 = vpack.c.bf16 %v875_v44, %v875_v44  ;;  %v891_v47 = vsel %vm763_vm8, %v694_v36, %v827_v42  ;;  %v844_v48 = vsel %vm716_vm9, %v576_v39, %v780_v43 }
 0x103   : > { %v955_v49 = vpack.c.bf16 %v891_v47, %v891_v47  ;;  %v908_v50 = vpack.c.bf16 %v844_v48, %v844_v48  ;;  %v860_v51 = vsel %vm732_vm10, %v616_v40, %v796_v45 }
 0x104   : > { %1004 = vst.msk [vmem:[%s1913_s8 + $0xb0] sm:$0xf] %vm959_vm3, %v939_v46  ;;  %v924_v52 = vpack.c.bf16 %v860_v51, %v860_v51  ;;  %v655_v53 = vpop.f32.mrf.mxu2  ;;  %v695_v54 = vpop.f32.mrf.mxu3 }
 0x105   : > { %1020 = vst.msk [vmem:[%s1913_s8 + $0xf0] sm:$0xf] %vm959_vm3, %v955_v49  ;;  %v656_v55 = vadd.f32 %v1908_v34, %v655_v53  ;;  %v696_v56 = vadd.f32 %v1908_v34, %v695_v54  ;;  %v578_v57 = vpop.f32.mrf.mxu0  ;;  %v618_v58 = vpop.f32.mrf.mxu1 }
 0x106   : > { %973 = vst.msk [vmem:[%s1913_s8 + $0x34] sm:$0xf] %vm959_vm3, %v908_v50  ;;  %v579_v59 = vadd.f32 %v1908_v34, %v578_v57  ;;  %v619_v60 = vadd.f32 %v1908_v34, %v618_v58 }
 0x107   : > { %989 = vst.msk [vmem:[%s1913_s8 + $0x74] sm:$0xf] %vm959_vm3, %v924_v52  ;;  %vm748_vm11 = vcmp.ge.f32.partialorder %v656_v55, 0.0  ;;  %v812_v61 = vmul.f32 0.2, %v656_v55  ;;  %vm764_vm12 = vcmp.ge.f32.partialorder %v696_v56, 0.0 }
 0x108   : > { %v828_v62 = vmul.f32 0.2, %v696_v56  ;;  %vm717_vm13 = vcmp.ge.f32.partialorder %v579_v59, 0.0  ;;  %v781_v63 = vmul.f32 0.2, %v579_v59  ;;  %vm733_vm14 = vcmp.ge.f32.partialorder %v619_v60, 0.0 }
 0x109   : > { %v876_v0 = vsel %vm748_vm11, %v656_v55, %v812_v61  ;;  %v797_v1 = vmul.f32 0.2, %v619_v60 }
 0x10a   : > { %v940_v2 = vpack.c.bf16 %v876_v0, %v876_v0  ;;  %v892_v3 = vsel %vm764_vm12, %v696_v56, %v828_v62  ;;  %v845_v4 = vsel %vm717_vm13, %v579_v59, %v781_v63 }
 0x10b   : > { %v956_v5 = vpack.c.bf16 %v892_v3, %v892_v3  ;;  %v909_v6 = vpack.c.bf16 %v845_v4, %v845_v4  ;;  %v861_v7 = vsel %vm733_vm14, %v619_v60, %v797_v1 }
 0x10c   : > { %1005 = vst.msk [vmem:[%s1913_s8 + $0xb4] sm:$0xf] %vm959_vm3, %v940_v2  ;;  %v925_v8 = vpack.c.bf16 %v861_v7, %v861_v7  ;;  %v658_v9 = vpop.f32.mrf.mxu2  ;;  %v698_v10 = vpop.f32.mrf.mxu3 }
 0x10d   : > { %1021 = vst.msk [vmem:[%s1913_s8 + $0xf4] sm:$0xf] %vm959_vm3, %v956_v5  ;;  %v659_v11 = vadd.f32 %v1908_v34, %v658_v9  ;;  %v699_v12 = vadd.f32 %v1908_v34, %v698_v10  ;;  %v580_v13 = vpop.f32.mrf.mxu0  ;;  %v620_v14 = vpop.f32.mrf.mxu1 }
 0x10e   : > { %974 = vst.msk [vmem:[%s1913_s8 + $0x38] sm:$0xf] %vm959_vm3, %v909_v6  ;;  %v581_v15 = vadd.f32 %v1908_v34, %v580_v13  ;;  %v621_v16 = vadd.f32 %v1908_v34, %v620_v14 }
 0x10f   : > { %990 = vst.msk [vmem:[%s1913_s8 + $0x78] sm:$0xf] %vm959_vm3, %v925_v8  ;;  %vm749_vm15 = vcmp.ge.f32.partialorder %v659_v11, 0.0  ;;  %v813_v17 = vmul.f32 0.2, %v659_v11  ;;  %vm765_vm0 = vcmp.ge.f32.partialorder %v699_v12, 0.0 }
 0x110   : > { %v829_v18 = vmul.f32 0.2, %v699_v12  ;;  %vm718_vm1 = vcmp.ge.f32.partialorder %v581_v15, 0.0  ;;  %v782_v19 = vmul.f32 0.2, %v581_v15  ;;  %vm734_vm2 = vcmp.ge.f32.partialorder %v621_v16, 0.0 }
 0x111   : > { %v877_v20 = vsel %vm749_vm15, %v659_v11, %v813_v17  ;;  %v798_v21 = vmul.f32 0.2, %v621_v16 }
 0x112   : > { %v941_v22 = vpack.c.bf16 %v877_v20, %v877_v20  ;;  %v893_v23 = vsel %vm765_vm0, %v699_v12, %v829_v18  ;;  %v846_v24 = vsel %vm718_vm1, %v581_v15, %v782_v19 }
 0x113   : > { %v957_v25 = vpack.c.bf16 %v893_v23, %v893_v23  ;;  %v910_v26 = vpack.c.bf16 %v846_v24, %v846_v24  ;;  %v862_v27 = vsel %vm734_vm2, %v621_v16, %v798_v21 }
 0x114   : > { %1006 = vst.msk [vmem:[%s1913_s8 + $0xb8] sm:$0xf] %vm959_vm3, %v941_v22  ;;  %v926_v28 = vpack.c.bf16 %v862_v27, %v862_v27  ;;  %v660_v29 = vpop.f32.mrf.mxu2  ;;  %v700_v30 = vpop.f32.mrf.mxu3 }
 0x115   : > { %1022 = vst.msk [vmem:[%s1913_s8 + $0xf8] sm:$0xf] %vm959_vm3, %v957_v25  ;;  %v661_v31 = vadd.f32 %v1908_v34, %v660_v29  ;;  %v701_v32 = vadd.f32 %v1908_v34, %v700_v30 }
 0x116   : > { %975 = vst.msk [vmem:[%s1913_s8 + $0x3c] sm:$0xf] %vm959_vm3, %v910_v26 }
 0x117   : > { %991 = vst.msk [vmem:[%s1913_s8 + $0x7c] sm:$0xf] %vm959_vm3, %v926_v28  ;;  %vm750_vm4 = vcmp.ge.f32.partialorder %v661_v31, 0.0  ;;  %v814_v33 = vmul.f32 0.2, %v661_v31  ;;  %vm766_vm5 = vcmp.ge.f32.partialorder %v701_v32, 0.0 }
 0x118   : > { %v830_v35 = vmul.f32 0.2, %v701_v32 }
 0x119   : > { %v878_v36 = vsel %vm750_vm4, %v661_v31, %v814_v33  ;;  %1030 = sbr.rel (!%p1821_p4) target bundleno = 350 (0x15e), region = 36 }
 0x11a   : > { %v942_v37 = vpack.c.bf16 %v878_v36, %v878_v36  ;;  %v894_v38 = vsel %vm766_vm5, %v701_v32, %v830_v35 }
 0x11b   : > { %v958_v39 = vpack.c.bf16 %v894_v38, %v894_v38 }
 0x11c   : > { %1007 = vst.msk [vmem:[%s1913_s8 + $0xbc] sm:$0xf] %vm959_vm3, %v942_v37 }
 0x11d   : > { %1023 = vst.msk [vmem:[%s1913_s8 + $0xfc] sm:$0xf] %vm959_vm3, %v958_v39 }
 0x11e   : > { %s2261_s9 = smov (!%p1033_p8, %s1032_s9), 64 }
 0x11f   : > { %s1541_s17 = sshll.u32 %s2261_s9, 2 }
 0x120   : > { %p1544_p9 = scmp.eq.s32.totalorder %s1541_s17, 0 }
 0x121   : > { %s2118_s18 = sshrl.u32 (!%p1544_p9), %s2261_s9, 5 }
 0x122   : > { %1041 = sbr.rel (%p1544_p9) target bundleno = 350 (0x15e), region = 40  ;;  %p1545_p10 = scmp.le.s32.totalorder (!%p1544_p9), %s2118_s18, 0 }
 0x127   : > { %1320 = sbr.rel (%p1545_p10) target bundleno = 333 (0x14d), region = 112  ;;  %s2252_s15 = smov (!%p1545_p10), %s2112_s14 }
 0x128   : > { %s2253_s20 = smov (!%p1545_p10), %s1913_s8  ;;  %s2127_s21 = smov (!%p1545_p10), 0  }
 0x129   : > { %s2129_s22 = smov (!%p1545_p10), 0  }
 0x12c LB: >> { %v1058_v34 = vld [vmem:[%s1750_s20] sm:$0xf]  ;;  %v1060_v40 = vld [vmem:[%s1750_s20 + $0x4] sm:$0xf]  ;;  %v1062_v41 = vld [vmem:[%s1750_s20 + $0x8] sm:$0xf]  ;;  %s1758_s22 = sphi %s2129_s22, %s1052_s22   ;;  %s1754_s21 = sphi %s2127_s21, %s2256_s21   ;;  %s1750_s20 = sphi %s2253_s20, %s2255_s20   ;;  %s1746_s15 = sphi %s2252_s15, %s2254_s15  }
 0x12d   : >> { %1059 = vst [vmem:[%s1746_s15] sm:$0xf] %v1058_v34  ;;  %v1064_v42 = vld [vmem:[%s1750_s20 + $0xc] sm:$0xf]  ;;  %v1066_v43 = vld [vmem:[%s1750_s20 + $0x10] sm:$0xf]  ;;  %s1122_s23 = sadd.s32 1, %s1754_s21 }
 0x12e   : >> { %1061 = vst [vmem:[%s1746_s15 + $0x4] sm:$0xf] %v1060_v40  ;;  %v1068_v44 = vld [vmem:[%s1750_s20 + $0x14] sm:$0xf]  ;;  %v1070_v45 = vld [vmem:[%s1750_s20 + $0x18] sm:$0xf]  ;;  %p1123_p11 = scmp.ge.s32.totalorder %s1122_s23, %s2118_s18 }
 0x12f   : >> { %1063 = vst [vmem:[%s1746_s15 + $0x8] sm:$0xf] %v1062_v41  ;;  %v1072_v46 = vld [vmem:[%s1750_s20 + $0x1c] sm:$0xf]  ;;  %v1074_v47 = vld [vmem:[%s1750_s20 + $0x20] sm:$0xf] }
 0x130   : >> { %1065 = vst [vmem:[%s1746_s15 + $0xc] sm:$0xf] %v1064_v42  ;;  %v1076_v48 = vld [vmem:[%s1750_s20 + $0x24] sm:$0xf]  ;;  %v1078_v49 = vld [vmem:[%s1750_s20 + $0x28] sm:$0xf] }
 0x131   : >> { %1067 = vst [vmem:[%s1746_s15 + $0x10] sm:$0xf] %v1066_v43  ;;  %v1080_v50 = vld [vmem:[%s1750_s20 + $0x2c] sm:$0xf]  ;;  %v1082_v51 = vld [vmem:[%s1750_s20 + $0x30] sm:$0xf] }
 0x132   : >> { %1069 = vst [vmem:[%s1746_s15 + $0x14] sm:$0xf] %v1068_v44  ;;  %v1084_v52 = vld [vmem:[%s1750_s20 + $0x34] sm:$0xf]  ;;  %v1086_v53 = vld [vmem:[%s1750_s20 + $0x38] sm:$0xf] }
 0x133   : >> { %1071 = vst [vmem:[%s1746_s15 + $0x18] sm:$0xf] %v1070_v45  ;;  %v1088_v54 = vld [vmem:[%s1750_s20 + $0x3c] sm:$0xf]  ;;  %v1090_v55 = vld [vmem:[%s1750_s20 + $0x40] sm:$0xf] }
 0x134   : >> { %1073 = vst [vmem:[%s1746_s15 + $0x1c] sm:$0xf] %v1072_v46  ;;  %v1092_v56 = vld [vmem:[%s1750_s20 + $0x44] sm:$0xf]  ;;  %s2263_s23 = smov (%p1123_p11, %s1122_s23), 0  ;;  %s1052_s22 = sadd.s32 1, %s1758_s22  }
 0x135   : >> { %1075 = vst [vmem:[%s1746_s15 + $0x20] sm:$0xf] %v1074_v47  ;;  %v1094_v57 = vld [vmem:[%s1750_s20 + $0x48] sm:$0xf]  ;;  %v1096_v58 = vld [vmem:[%s1750_s20 + $0x4c] sm:$0xf]  ;;  %p1051_p12 = scmp.ge.s32.totalorder %s1052_s22, %s2118_s18  ;;  %s2256_s21 = smov %s2263_s23 }
 0x136   : >> { %1077 = vst [vmem:[%s1746_s15 + $0x24] sm:$0xf] %v1076_v48  ;;  %s1546_s24 = sshll.u32 %s2263_s23, 7  ;;  %v1098_v59 = vld [vmem:[%s1750_s20 + $0x50] sm:$0xf] }
 0x137   : >> { %1079 = vst [vmem:[%s1746_s15 + $0x28] sm:$0xf] %v1078_v49  ;;  %s2188_s25 = scalar_lea.vmem %s1913_s8, %s1546_s24 [#allocation2]   ;;  %s1128_s26 = scalar_lea.vmem %s2112_s14, %s1546_s24   ;;  %v1100_v60 = vld [vmem:[%s1750_s20 + $0x54] sm:$0xf]  ;;  %v1102_v61 = vld [vmem:[%s1750_s20 + $0x58] sm:$0xf] }
 0x138   : >> { %1081 = vst [vmem:[%s1746_s15 + $0x2c] sm:$0xf] %v1080_v50  ;;  %v1104_v62 = vld [vmem:[%s1750_s20 + $0x5c] sm:$0xf]  ;;  %v1106_v63 = vld [vmem:[%s1750_s20 + $0x60] sm:$0xf] }
 0x139   : >> { %1083 = vst [vmem:[%s1746_s15 + $0x30] sm:$0xf] %v1082_v51  ;;  %v1108_v0 = vld [vmem:[%s1750_s20 + $0x64] sm:$0xf]  ;;  %v1110_v1 = vld [vmem:[%s1750_s20 + $0x68] sm:$0xf] }
 0x13a   : >> { %1085 = vst [vmem:[%s1746_s15 + $0x34] sm:$0xf] %v1084_v52  ;;  %v1112_v2 = vld [vmem:[%s1750_s20 + $0x6c] sm:$0xf]  ;;  %v1114_v3 = vld [vmem:[%s1750_s20 + $0x70] sm:$0xf] }
 0x13b   : >> { %1087 = vst [vmem:[%s1746_s15 + $0x38] sm:$0xf] %v1086_v53  ;;  %v1116_v4 = vld [vmem:[%s1750_s20 + $0x74] sm:$0xf]  ;;  %v1118_v5 = vld [vmem:[%s1750_s20 + $0x78] sm:$0xf] }
 0x13c   : >> { %1089 = vst [vmem:[%s1746_s15 + $0x3c] sm:$0xf] %v1088_v54  ;;  %v1120_v6 = vld [vmem:[%s1750_s20 + $0x7c] sm:$0xf]  ;;  %s2255_s20 = smov %s2188_s25 }
 0x13d   : >> { %1091 = vst [vmem:[%s1746_s15 + $0x40] sm:$0xf] %v1090_v55 }
 0x13e   : >> { %1093 = vst [vmem:[%s1746_s15 + $0x44] sm:$0xf] %v1092_v56 }
 0x13f   : >> { %1095 = vst [vmem:[%s1746_s15 + $0x48] sm:$0xf] %v1094_v57 }
 0x140   : >> { %1097 = vst [vmem:[%s1746_s15 + $0x4c] sm:$0xf] %v1096_v58 }
 0x141   : >> { %1099 = vst [vmem:[%s1746_s15 + $0x50] sm:$0xf] %v1098_v59 }
 0x142   : >> { %1101 = vst [vmem:[%s1746_s15 + $0x54] sm:$0xf] %v1100_v60 }
 0x143   : >> { %1103 = vst [vmem:[%s1746_s15 + $0x58] sm:$0xf] %v1102_v61 }
 0x144   : >> { %1105 = vst [vmem:[%s1746_s15 + $0x5c] sm:$0xf] %v1104_v62 }
 0x145   : >> { %1107 = vst [vmem:[%s1746_s15 + $0x60] sm:$0xf] %v1106_v63 }
 0x146   : >> { %1109 = vst [vmem:[%s1746_s15 + $0x64] sm:$0xf] %v1108_v0 }
 0x147   : >> { %1111 = vst [vmem:[%s1746_s15 + $0x68] sm:$0xf] %v1110_v1 }
 0x148   : >> { %1113 = vst [vmem:[%s1746_s15 + $0x6c] sm:$0xf] %v1112_v2  ;;  %1054 = sbr.rel (!%p1051_p12) target bundleno = 300 (0x12c), region = 118 }
 0x149   : >> { %1115 = vst [vmem:[%s1746_s15 + $0x70] sm:$0xf] %v1114_v3 }
 0x14a   : >> { %1117 = vst [vmem:[%s1746_s15 + $0x74] sm:$0xf] %v1116_v4 }
 0x14b   : >> { %1119 = vst [vmem:[%s1746_s15 + $0x78] sm:$0xf] %v1118_v5 }
 0x14c   : >> { %1121 = vst [vmem:[%s1746_s15 + $0x7c] sm:$0xf] %v1120_v6  ;;  %s2254_s15 = smov %s1128_s26 }
 0x14d PF: > { %s2229_s27 = sand.u32 31, %s2261_s9   ;;  %s1591_s28 = sshll.u32 %s2118_s18, 7 }
 0x14e   : > { %s1133_s29 = scalar_lea.vmem %s1913_s8, %s1591_s28 [#allocation2]   ;;  %s1135_s30 = scalar_lea.vmem %s2112_s14, %s1591_s28  }
 0x14f   : > { %p1551_p13 = scmp.le.s32.totalorder %s2229_s27, 0 }
 0x150   : > { %s1760_s4 = smov (!%p1551_p13), %s1135_s30   ;;  %s1764_s5 = smov (!%p1551_p13), %s1133_s29  }
 0x151   : > { %1334 = sbr.rel (%p1551_p13) target bundleno = 350 (0x15e), region = 123  ;;  %s1768_s6 = smov (!%p1551_p13), 0  }
 0x152   : > { %s1772_s7 = smov (!%p1551_p13), 0  }
 0x156 LB: >> { %v1145_v7 = vld [vmem:[%s1766_s5] sm:$0xf]  ;;  %s1147_s9 = sadd.s32 1, %s1770_s6  ;;  %s1139_s7 = sadd.s32 1, %s1774_s7   ;;  %s1774_s7 = sphi %s1772_s7, %s1139_s7   ;;  %s1770_s6 = sphi %s1768_s6, %s1769_s6   ;;  %s1766_s5 = sphi %s1764_s5, %s1152_s5   ;;  %s1762_s4 = sphi %s1760_s4, %s1153_s4  }
 0x157   : >> { %1146 = vst [vmem:[%s1762_s4] sm:$0xf] %v1145_v7  ;;  %p1148_p0 = scmp.ge.s32.totalorder %s1147_s9, %s2229_s27  ;;  %p1138_p1 = scmp.ge.s32.totalorder %s1139_s7, %s2229_s27 }
 0x159   : >> { %s2265_s9 = smov (%p1148_p0, %s1147_s9), 0  ;;  %1141 = sbr.rel (!%p1138_p1) target bundleno = 342 (0x156), region = 129 }
 0x15a   : >> { %s1552_s8 = sshll.u32 %s2265_s9, 2  ;;  %s1769_s6 = smov %s2265_s9  }
 0x15b   : >> { %s1152_s5 = scalar_lea.vmem %s1133_s29, %s1552_s8 [#allocation2]   ;;  %s1153_s4 = scalar_lea.vmem %s1135_s30, %s1552_s8  }
 0x15e PF: > { %p10_p2 = scmp.ge.s32.totalorder %s1811_s16, 18   ;;  %s2257_s12 = smov %s1738_s13 }
 0x15f   : > { %s2258_s13 = smov %s1819_s19  ;;  %s2259_s14 = smov %s1811_s16 }
 0x160   :  { %12 = sbr.rel (!%p10_p2) target bundleno = 2 (0x2), region = 140 }

// kernel: model_forward.8
= control target key start
LH: loop header
LB: loop body
LE: loop exit
PB: predicated region body
PF: predicated region fallthrough
CT: control target
= control target key end

     0   :  { %s4351_s12 = smov 0   ;;  %s4353_s13 = smov 0   ;;  %s5394_s0 = inlined_call_operand.vmem [shape: bf16[1922,576], index: 0, kind: input, shape index: {}]   ;;  %s5395_s1 = inlined_call_operand.vmem [shape: bf16[576,64], index: 1, kind: input, shape index: {}]   ;;  %s5396_s2 = inlined_call_operand.vmem [shape: f32[1,64], index: 2, kind: input, shape index: {}]   ;;  %s5397_s3 = inlined_call_operand.vmem [shape: bf16[1922,64], index: 3, kind: output, shape index: {}]  }
   0x1   :  { %s4355_s14 = smov 0  }
   0x2 LB: > { %s4364_s15 = sadd.s32 4294967295, %s4297_s14   ;;  %s4366_s16 = sadd.s32 1, %s4297_s14   ;;  %s4297_s14 = sphi %s4355_s14, %s5456_s14   ;;  %s4293_s13 = sphi %s4353_s13, %s5455_s13   ;;  %s4289_s12 = sphi %s4351_s12, %s5454_s12  }
   0x3   : > { %s85_s17 = ssub.s32 %s4297_s14, %s4366_s16  ;;  %s88_s18 = sadd.s32 1, %s4293_s13 }
   0x4   : > { %p86_p0 = scmp.eq.s32.totalorder %s85_s17, 0  ;;  %p98_p1 = scmp.ne.s32.totalorder %s4293_s13, %s4289_s12 }
   0x5   : > { %p99_p2 = scmp.eq.s32.totalorder %s4364_s15, 3  ;;  %p3091_p3 = scmp.ge.s32.totalorder %s4297_s14, 1 }
   0x6   : > { %s4374_s19 = scalar_select %p86_p0, %s4293_s13, %s88_s18  }
   0x7   : > { %p4376_p4 = por %p99_p2, %p98_p1  ;;  %p149_p5 = scmp.lt.s32.totalorder %s4297_s14, 5 }
   0x9   : > { %p150_p6 = pnand %p3091_p3, %p149_p5 }
   0xb   : > { %153 = sbr.rel (%p150_p6) target bundleno = 888 (0x378), region = 32 }
  0x10   : > { %v4095_v0 = vld [vmem:[%s5395_s1 + $0x38] sm:$0xff]  ;;  %v4094_v1 = vld [vmem:[%s5395_s1 + $0x30] sm:$0xff]  ;;  %v4093_v2 = vld [vmem:[%s5395_s1 + $0x28] sm:$0xff]  ;;  %s4390_s27 = sshll.u32 %s4364_s15, 6  ;;  %vm1485_vm0 = vcmask 523264   ;;  %s175_s23 = sand.u32 1, %s4289_s12  }
  0x11   : > { %4127 = vmatpush.bf16.msra.mxu1 %v4095_v0  ;;  %4128 = vmatpush.bf16.msra.mxu2 %v4095_v0  ;;  %v4092_v3 = vld [vmem:[%s5395_s1 + $0x20] sm:$0xff]  ;;  %p184_p7 = scmp.lt.s32.totalorder %s4390_s27, 240  ;;  %v4091_v4 = vld [vmem:[%s5395_s1 + $0x18] sm:$0xff]  ;;  %v4090_v5 = vld [vmem:[%s5395_s1 + $0x10] sm:$0xff]  ;;  %s3092_s24 = sshll.u32 %s175_s23, 8  ;;  %vm2683_vm2 = vcmask 519168  }
  0x12   : > { %4129 = vmatpush.bf16.msra.mxu3 %v4095_v0  ;;  %1582 = vmatpush.bf16.msra.mxu0 %v4095_v0  ;;  %v4089_v6 = vld [vmem:[%s5395_s1 + $0x8] sm:$0xff]  ;;  %v4088_v7 = vld [vmem:[%s5395_s1] sm:$0xff]  ;;  %v4111_v16 = vld [vmem:[%s5395_s1 + $0xb8] sm:$0xff]  ;;  %s4789_s12 = scalar_lea.vmem [#allocation2], %s3092_s24   ;;  %s2756_s29 = ssub.s32 (%p4376_p4), 241, %s4390_s27 }
  0x13   : > { %s185_s5 = scalar_select %p184_p7, %s4390_s27, 240  ;;  %v4119_v17 = vld [vmem:[%s5395_s1 + $0xf8] sm:$0xff]  ;;  %v4110_v24 = vld [vmem:[%s5395_s1 + $0xb0] sm:$0xff]  ;;  %v4109_v28 = vld [vmem:[%s5395_s1 + $0xa8] sm:$0xff] }
  0x14   : > { %v4103_v22 = vld [vmem:[%s5395_s1 + $0x78] sm:$0xff]  ;;  %v4118_v25 = vld [vmem:[%s5395_s1 + $0xf0] sm:$0xff]  ;;  %v4117_v29 = vld [vmem:[%s5395_s1 + $0xe8] sm:$0xff]  ;;  %s4124_s30 = sshll.u32 (%p4376_p4), %s4364_s15, 8  ;;  %p2757_p8 = scmp.lt.s32.totalorder (%p4376_p4), %s2756_s29, 64 }
  0x15   : > { %4130 = vmatpush.bf16.msra.mxu1 %v4094_v1  ;;  %4131 = vmatpush.bf16.msra.mxu2 %v4094_v1  ;;  %s4151_s8 = smul.u32 20, %s185_s5  ;;  %v4123_v23 = vld [vmem:[%s5395_s1 + $0x118] sm:$0xff]  ;;  %v4102_v26 = vld [vmem:[%s5395_s1 + $0x70] sm:$0xff]  ;;  %v4101_v30 = vld [vmem:[%s5395_s1 + $0x68] sm:$0xff]  ;;  %s5259_s6 = scalar_lea.vmem (%p4376_p4), %s5397_s3, %s4124_s30  }
  0x16   : > { %4132 = vmatpush.bf16.msra.mxu3 %v4094_v1  ;;  %1583 = vmatpush.bf16.msra.mxu0 %v4094_v1  ;;  %v4122_v27 = vld [vmem:[%s5395_s1 + $0x110] sm:$0xff]  ;;  %v4108_v43 = vld [vmem:[%s5395_s1 + $0xa0] sm:$0xff]  ;;  %v4107_v58 = vld [vmem:[%s5395_s1 + $0x98] sm:$0xff] }
  0x17   : > { %s4409_s17 = scalar_lea.vmem %s5394_s0, %s4151_s8  ;;  %v4116_v44 = vld [vmem:[%s5395_s1 + $0xe0] sm:$0xff]  ;;  %v4115_v59 = vld [vmem:[%s5395_s1 + $0xd8] sm:$0xff]  ;;  %v4121_v61 = vld [vmem:[%s5395_s1 + $0x108] sm:$0xff] }
  0x18   : > { %v3257_v8 = vld [vmem:[%s4409_s17 + $0x140] sm:$0xf]  ;;  %v3970_v9 = vld [vmem:[%s4409_s17 + $0x150] sm:$0xf0]  ;;  %v3277_v31 = vld [vmem:[%s4409_s17 + $0x168] sm:$0xf] }
  0x19   : > { %4133 = vmatpush.bf16.msra.mxu1 %v4093_v2  ;;  %4134 = vmatpush.bf16.msra.mxu2 %v4093_v2  ;;  %v3417_v10 = vld [vmem:[%s4409_s17 + $0x280] sm:$0xf]  ;;  %v4010_v11 = vld [vmem:[%s4409_s17 + $0x290] sm:$0xf0]  ;;  %v3258_v18 = vor.u32 %v3970_v9, %v3257_v8  ;;  %v3975_v32 = vld [vmem:[%s4409_s17 + $0x178] sm:$0xf0] }
  0x1a   : > { %4135 = vmatpush.bf16.msra.mxu3 %v4093_v2  ;;  %1584 = vmatpush.bf16.msra.mxu0 %v4093_v2  ;;  %v3577_v12 = vld [vmem:[%s4409_s17 + $0x3c0] sm:$0xf]  ;;  %v4050_v13 = vld [vmem:[%s4409_s17 + $0x3d0] sm:$0xf0]  ;;  %v3418_v19 = vor.u32 %v4010_v11, %v3417_v10  ;;  %v3437_v33 = vld [vmem:[%s4409_s17 + $0x2a8] sm:$0xf]  ;;  %v3278_v39 = vor.u32 %v3975_v32, %v3277_v31 }
  0x1b   : > { %v3097_v14 = vld [vmem:[%s4409_s17] sm:$0xf]  ;;  %v3930_v15 = vld [vmem:[%s4409_s17 + $0x10] sm:$0xf0]  ;;  %v3578_v20 = vor.u32 %v4050_v13, %v3577_v12  ;;  %v4015_v34 = vld [vmem:[%s4409_s17 + $0x2b8] sm:$0xf0] }
  0x1c   : > { %v3098_v21 = vor.u32 %v3930_v15, %v3097_v14  ;;  %v3597_v35 = vld [vmem:[%s4409_s17 + $0x3e8] sm:$0xf]  ;;  %v4055_v36 = vld [vmem:[%s4409_s17 + $0x3f8] sm:$0xf0]  ;;  %v3438_v40 = vor.u32 %v4015_v34, %v3437_v33  ;;  %v4100_v45 = vld [vmem:[%s5395_s1 + $0x60] sm:$0xff] }
  0x1d   : > { %4136 = vmatpush.bf16.msra.mxu1 %v4092_v3  ;;  %4137 = vmatpush.bf16.msra.mxu2 %v4092_v3  ;;  %v3117_v37 = vld [vmem:[%s4409_s17 + $0x28] sm:$0xf]  ;;  %v3935_v38 = vld [vmem:[%s4409_s17 + $0x38] sm:$0xf0]  ;;  %v3598_v41 = vor.u32 %v4055_v36, %v3597_v35  ;;  %v3297_v46 = vld [vmem:[%s4409_s17 + $0x190] sm:$0xf] }
  0x1e   : > { %4138 = vmatpush.bf16.msra.mxu3 %v4092_v3  ;;  %1585 = vmatpush.bf16.msra.mxu0 %v4092_v3  ;;  %v3118_v42 = vor.u32 %v3935_v38, %v3117_v37  ;;  %v3980_v47 = vld [vmem:[%s4409_s17 + $0x1a0] sm:$0xf0]  ;;  %v3457_v48 = vld [vmem:[%s4409_s17 + $0x2d0] sm:$0xf]  ;;  %v4099_v60 = vld [vmem:[%s5395_s1 + $0x58] sm:$0xff] }
  0x1f   : > { %v4020_v49 = vld [vmem:[%s4409_s17 + $0x2e0] sm:$0xf0]  ;;  %v3617_v50 = vld [vmem:[%s4409_s17 + $0x410] sm:$0xf]  ;;  %v3298_v54 = vor.u32 %v3980_v47, %v3297_v46  ;;  %v3317_v62 = vld [vmem:[%s4409_s17 + $0x1b8] sm:$0xf] }
  0x20   : > { %v4060_v51 = vld [vmem:[%s4409_s17 + $0x420] sm:$0xf0]  ;;  %v3137_v52 = vld [vmem:[%s4409_s17 + $0x50] sm:$0xf]  ;;  %v3458_v55 = vor.u32 %v4020_v49, %v3457_v48  ;;  %v3985_v63 = vld [vmem:[%s4409_s17 + $0x1c8] sm:$0xf0] }
  0x21   : > { %4139 = vmatpush.bf16.msra.mxu1 %v4091_v4  ;;  %4140 = vmatpush.bf16.msra.mxu2 %v4091_v4  ;;  %v3940_v53 = vld [vmem:[%s4409_s17 + $0x60] sm:$0xf0]  ;;  %v3618_v56 = vor.u32 %v4060_v51, %v3617_v50  ;;  %v3477_v0 = vld [vmem:[%s4409_s17 + $0x2f8] sm:$0xf]  ;;  %v4025_v1 = vld [vmem:[%s4409_s17 + $0x308] sm:$0xf0] }
  0x22   : > { %4141 = vmatpush.bf16.msra.mxu3 %v4091_v4  ;;  %1586 = vmatpush.bf16.msra.mxu0 %v4091_v4  ;;  %v3138_v57 = vor.u32 %v3940_v53, %v3137_v52  ;;  %v3637_v2 = vld [vmem:[%s4409_s17 + $0x438] sm:$0xf]  ;;  %v4065_v3 = vld [vmem:[%s4409_s17 + $0x448] sm:$0xf0]  ;;  %v4106_v10 = vld [vmem:[%s5395_s1 + $0x90] sm:$0xff] }
  0x23   : > { %v3157_v4 = vld [vmem:[%s4409_s17 + $0x78] sm:$0xf]  ;;  %v3638_v8 = vor.u32 %v4065_v3, %v3637_v2  ;;  %v4114_v11 = vld [vmem:[%s5395_s1 + $0xd0] sm:$0xff]  ;;  %v3337_v13 = vld [vmem:[%s4409_s17 + $0x1e0] sm:$0xf] }
  0x24   : > { %v4098_v12 = vld [vmem:[%s5395_s1 + $0x50] sm:$0xff]  ;;  %v3497_v15 = vld [vmem:[%s4409_s17 + $0x320] sm:$0xf]  ;;  %v3517_v31 = vld [vmem:[%s4409_s17 + $0x348] sm:$0xf] }
  0x25   : > { %4142 = vmatpush.bf16.msra.mxu1 %v4090_v5  ;;  %4143 = vmatpush.bf16.msra.mxu2 %v4090_v5  ;;  %v3990_v14 = vld [vmem:[%s4409_s17 + $0x1f0] sm:$0xf0]  ;;  %v4035_v32 = vld [vmem:[%s4409_s17 + $0x358] sm:$0xf0]  ;;  %v3677_v33 = vld [vmem:[%s4409_s17 + $0x488] sm:$0xf] }
  0x26   : > { %4144 = vmatpush.bf16.msra.mxu3 %v4090_v5  ;;  %1587 = vmatpush.bf16.msra.mxu0 %v4090_v5  ;;  %v3945_v5 = vld [vmem:[%s4409_s17 + $0x88] sm:$0xf0]  ;;  %v4075_v34 = vld [vmem:[%s4409_s17 + $0x498] sm:$0xf0]  ;;  %v3197_v35 = vld [vmem:[%s4409_s17 + $0xc8] sm:$0xf]  ;;  %v3518_v38 = vor.u32 %v4035_v32, %v3517_v31 }
  0x27   : > { %v3158_v9 = vor.u32 %v3945_v5, %v3157_v4  ;;  %v3955_v36 = vld [vmem:[%s4409_s17 + $0xd8] sm:$0xf0]  ;;  %v3537_v46 = vld [vmem:[%s4409_s17 + $0x370] sm:$0xf]  ;;  %v4040_v47 = vld [vmem:[%s4409_s17 + $0x380] sm:$0xf0] }
  0x28   : > { %v3697_v48 = vld [vmem:[%s4409_s17 + $0x4b0] sm:$0xf]  ;;  %v4080_v49 = vld [vmem:[%s4409_s17 + $0x4c0] sm:$0xf0]  ;;  %v3538_v53 = vor.u32 %v4040_v47, %v3537_v46  ;;  %v3099_v5 = vld [vmem:[%s4409_s17 + $0x14] sm:$0xf0] }
  0x29   : > { %4145 = vmatpush.bf16.msra.mxu1 %v4089_v6  ;;  %4146 = vmatpush.bf16.msra.mxu2 %v4089_v6  ;;  %v3217_v50 = vld [vmem:[%s4409_s17 + $0xf0] sm:$0xf]  ;;  %v3960_v51 = vld [vmem:[%s4409_s17 + $0x100] sm:$0xf0]  ;;  %v3939_v46 = vld [vmem:[%s4409_s17 + $0x5c] sm:$0xf] }
  0x2a   : > { %4147 = vmatpush.bf16.msra.mxu3 %v4089_v6  ;;  %1588 = vmatpush.bf16.msra.mxu0 %v4089_v6  ;;  %v3318_v6 = vor.u32 %v3985_v63, %v3317_v62  ;;  %v3237_v62 = vld [vmem:[%s4409_s17 + $0x118] sm:$0xf]  ;;  %v3965_v63 = vld [vmem:[%s4409_s17 + $0x128] sm:$0xf0]  ;;  %v3928_v4 = vld [vmem:[%s4409_s17 + $0x4] sm:$0xf] }
  0x2b   : > { %v3238_v3 = vor.u32 %v3965_v63, %v3237_v62  ;;  %v3147_v47 = vld [vmem:[%s4409_s17 + $0x6c] sm:$0xf0]  ;;  %v3943_v62 = vld [vmem:[%s4409_s17 + $0x7c] sm:$0xf] }
  0x2c   : > { %v3159_v63 = vld [vmem:[%s4409_s17 + $0x8c] sm:$0xf0] }
  0x2d   : > { %4148 = vmatpush.bf16.msra.mxu1 %v4088_v7  ;;  %4149 = vmatpush.bf16.msra.mxu2 %v4088_v7 }
  0x2e   : > { %4150 = vmatpush.bf16.msra.mxu3 %v4088_v7  ;;  %1589 = vmatpush.bf16.msra.mxu0 %v4088_v7  ;;  %v3478_v7 = vor.u32 %v4025_v1, %v3477_v0 }
  0x30   : > { %1630 = vmatmul.bf16.vlgmr.msra.gmra.mxu1 %v3258_v18  ;;  %1670 = vmatmul.bf16.vlgmr.msra.gmra.mxu2 %v3418_v19  ;;  %v4070_v18 = vld [vmem:[%s4409_s17 + $0x470] sm:$0xf0]  ;;  %v3177_v19 = vld [vmem:[%s4409_s17 + $0xa0] sm:$0xf] }
  0x31   : > { %1920 = vmatpush.bf16.msrb.mxu2 %v4111_v16  ;;  %1710 = vmatmul.bf16.vlgmr.msra.gmra.mxu3 %v3578_v20  ;;  %v4030_v16 = vld [vmem:[%s4409_s17 + $0x330] sm:$0xf0] }
  0x32   : > { %2089 = vmatpush.bf16.msrb.mxu3 %v4119_v17  ;;  %1590 = vmatmul.bf16.vlgmr.msra.gmra.mxu0 %v3098_v21  ;;  %v3657_v17 = vld [vmem:[%s4409_s17 + $0x460] sm:$0xf]  ;;  %v3950_v20 = vld [vmem:[%s4409_s17 + $0xb0] sm:$0xf0]  ;;  %v3338_v21 = vor.u32 %v3990_v14, %v3337_v13 }
  0x33   : > { %1751 = vmatpush.bf16.msrb.mxu1 %v4103_v22  ;;  %2262 = vmatpush.bf16.msrb.mxu0 %v4123_v23  ;;  %v3498_v22 = vor.u32 %v4030_v16, %v3497_v15  ;;  %v3658_v23 = vor.u32 %v4070_v18, %v3657_v17 }
  0x35   : > { %1921 = vmatpush.bf16.msrb.mxu2 %v4110_v24  ;;  %v3178_v24 = vor.u32 %v3950_v20, %v3177_v19 }
  0x36   : > { %2090 = vmatpush.bf16.msrb.mxu3 %v4118_v25  ;;  %v4105_v25 = vld [vmem:[%s5395_s1 + $0x88] sm:$0xff] }
  0x37   : > { %1752 = vmatpush.bf16.msrb.mxu1 %v4102_v26  ;;  %2263 = vmatpush.bf16.msrb.mxu0 %v4122_v27  ;;  %v4113_v26 = vld [vmem:[%s5395_s1 + $0xc8] sm:$0xff] }
  0x38   : > { %v4097_v27 = vld [vmem:[%s5395_s1 + $0x48] sm:$0xff] }
  0x39   : > { %1922 = vmatpush.bf16.msrb.mxu2 %v4109_v28  ;;  %v4120_v28 = vld [vmem:[%s5395_s1 + $0x100] sm:$0xff] }
  0x3a   : > { %2091 = vmatpush.bf16.msrb.mxu3 %v4117_v29  ;;  %v3357_v29 = vld [vmem:[%s4409_s17 + $0x208] sm:$0xf] }
  0x3b   : > { %1753 = vmatpush.bf16.msrb.mxu1 %v4101_v30  ;;  %2264 = vmatpush.bf16.msrb.mxu0 %v4121_v61  ;;  %v3995_v30 = vld [vmem:[%s4409_s17 + $0x218] sm:$0xf0]  ;;  %v4085_v61 = vld [vmem:[%s4409_s17 + $0x4e8] sm:$0xf0] }
  0x3c   : > { %v3358_v37 = vor.u32 %v3995_v30, %v3357_v29  ;;  %v3937_v29 = vld [vmem:[%s4409_s17 + $0x48] sm:$0xf0] }
  0x3d   : > { %1923 = vmatpush.bf16.msrb.mxu2 %v4108_v43  ;;  %v4096_v43 = vld [vmem:[%s5395_s1 + $0x40] sm:$0xff] }
  0x3e   : > { %2092 = vmatpush.bf16.msrb.mxu3 %v4116_v44  ;;  %v3377_v44 = vld [vmem:[%s4409_s17 + $0x230] sm:$0xf] }
  0x3f   : > { %1754 = vmatpush.bf16.msrb.mxu1 %v4100_v45  ;;  %2265 = vmatpush.bf16.msrb.mxu0 %v4120_v28  ;;  %v4000_v45 = vld [vmem:[%s4409_s17 + $0x240] sm:$0xf0]  ;;  %v3133_v28 = vld [vmem:[%s4409_s17 + $0x38] sm:$0xf] }
  0x40   : > { %1635 = vmatmul.bf16.gmra.mxu1 %v3278_v39  ;;  %1675 = vmatmul.bf16.gmra.mxu2 %v3438_v40  ;;  %v3678_v39 = vor.u32 %v4075_v34, %v3677_v33  ;;  %v3198_v40 = vor.u32 %v3955_v36, %v3197_v35  ;;  %v3378_v52 = vor.u32 %v4000_v45, %v3377_v44  ;;  %v3145_v44 = vld [vmem:[%s4409_s17 + $0x58] sm:$0xf]  ;;  %v3941_v45 = vld [vmem:[%s4409_s17 + $0x68] sm:$0xf0] }
  0x41   : > { %1715 = vmatmul.bf16.gmra.mxu3 %v3598_v41  ;;  %1924 = vmatpush.bf16.msrb.mxu2 %v4107_v58  ;;  %v4104_v41 = vld [vmem:[%s5395_s1 + $0x80] sm:$0xff]  ;;  %v3557_v58 = vld [vmem:[%s4409_s17 + $0x398] sm:$0xf]  ;;  %v3134_v36 = vor.u32 %v3937_v29, %v3133_v28  ;;  %v3949_v28 = vld [vmem:[%s4409_s17 + $0xac] sm:$0xf] }
  0x42   : > { %1595 = vmatmul.bf16.gmra.mxu0 %v3118_v42  ;;  %2093 = vmatpush.bf16.msrb.mxu3 %v4115_v59  ;;  %v4112_v42 = vld [vmem:[%s5395_s1 + $0xc0] sm:$0xff]  ;;  %v4045_v59 = vld [vmem:[%s4409_s17 + $0x3a8] sm:$0xf0] }
  0x43   : > { %1755 = vmatpush.bf16.msrb.mxu1 %v4099_v60  ;;  %v3717_v60 = vld [vmem:[%s4409_s17 + $0x4d8] sm:$0xf]  ;;  %v3558_v1 = vor.u32 %v4045_v59, %v3557_v58  ;;  %v3187_v29 = vld [vmem:[%s4409_s17 + $0xbc] sm:$0xf0] }
  0x44   : > { %v3718_v2 = vor.u32 %v4085_v61, %v3717_v60 }
  0x45   : > { %1925 = vmatpush.bf16.msrb.mxu2 %v4106_v10  ;;  %v3113_v10 = vld [vmem:[%s4409_s17 + $0x10] sm:$0xf] }
  0x46   : > { %2094 = vmatpush.bf16.msrb.mxu3 %v4114_v11  ;;  %v3932_v11 = vld [vmem:[%s4409_s17 + $0x20] sm:$0xf0] }
  0x47   : > { %1756 = vmatpush.bf16.msrb.mxu1 %v4098_v12  ;;  %v3102_v12 = vor.u32 %v3928_v4, %v3099_v5  ;;  %v3114_v16 = vor.u32 %v3932_v11, %v3113_v10  ;;  %v3173_v4 = vld [vmem:[%s4409_s17 + $0x88] sm:$0xf]  ;;  %v3947_v5 = vld [vmem:[%s4409_s17 + $0x98] sm:$0xf0] }
  0x49   : > { %1926 = vmatpush.bf16.msrb.mxu2 %v4105_v25  ;;  %v3936_v25 = vld [vmem:[%s4409_s17 + $0x40] sm:$0xf0] }
  0x4a   : > { %2095 = vmatpush.bf16.msrb.mxu3 %v4113_v26  ;;  %v3934_v26 = vld [vmem:[%s4409_s17 + $0x34] sm:$0xf] }
  0x4b   : > { %1757 = vmatpush.bf16.msrb.mxu1 %v4097_v27  ;;  %v3127_v27 = vld [vmem:[%s4409_s17 + $0x44] sm:$0xf0] }
  0x4c   : > { %v3130_v35 = vor.u32 %v3934_v26, %v3127_v27  ;;  %v3185_v26 = vld [vmem:[%s4409_s17 + $0xa8] sm:$0xf]  ;;  %v3951_v27 = vld [vmem:[%s4409_s17 + $0xb8] sm:$0xf0] }
  0x4d   : > { %1927 = vmatpush.bf16.msrb.mxu2 %v4104_v41 }
  0x4e   : > { %2096 = vmatpush.bf16.msrb.mxu3 %v4112_v42  ;;  %v3938_v42 = vld [vmem:[%s4409_s17 + $0x54] sm:$0xf] }
  0x4f   : > { %1758 = vmatpush.bf16.msrb.mxu1 %v4096_v43  ;;  %v3139_v43 = vld [vmem:[%s4409_s17 + $0x64] sm:$0xf0] }
  0x50   : > { %1640 = vmatmul.bf16.gmra.mxu1 %v3298_v54  ;;  %1680 = vmatmul.bf16.gmra.mxu2 %v3458_v55  ;;  %v3698_v54 = vor.u32 %v4080_v49, %v3697_v48  ;;  %v3218_v55 = vor.u32 %v3960_v51, %v3217_v50  ;;  %v3153_v48 = vld [vmem:[%s4409_s17 + $0x60] sm:$0xf]  ;;  %v3942_v49 = vld [vmem:[%s4409_s17 + $0x70] sm:$0xf0] }
  0x51   : > { %1720 = vmatmul.bf16.gmra.mxu3 %v3618_v56  ;;  %v3397_v56 = vld [vmem:[%s4409_s17 + $0x258] sm:$0xf] }
  0x52   : > { %1600 = vmatmul.bf16.gmra.mxu0 %v3138_v57  ;;  %v4005_v57 = vld [vmem:[%s4409_s17 + $0x268] sm:$0xf0] }
  0x53   : > { %v3398_v0 = vor.u32 %v4005_v57, %v3397_v56  ;;  %v3154_v56 = vor.u32 %v3942_v49, %v3153_v48 }
  0x60   : > { %1645 = vmatmul.bf16.gmra.mxu1 %v3318_v6  ;;  %1685 = vmatmul.bf16.gmra.mxu2 %v3478_v7  ;;  %v3105_v6 = vld [vmem:[%s4409_s17 + $0x8] sm:$0xf]  ;;  %v3931_v7 = vld [vmem:[%s4409_s17 + $0x18] sm:$0xf0] }
  0x61   : > { %1725 = vmatmul.bf16.gmra.mxu3 %v3638_v8  ;;  %v3929_v8 = vld [vmem:[%s4409_s17 + $0xc] sm:$0xf]  ;;  %v3106_v13 = vor.u32 %v3931_v7, %v3105_v6 }
  0x62   : > { %1605 = vmatmul.bf16.gmra.mxu0 %v3158_v9  ;;  %v3107_v9 = vld [vmem:[%s4409_s17 + $0x1c] sm:$0xf0] }
  0x63   : > { %v3110_v15 = vor.u32 %v3929_v8, %v3107_v9  ;;  %v3162_v8 = vor.u32 %v3943_v62, %v3159_v63  ;;  %v3205_v62 = vld [vmem:[%s4409_s17 + $0xd0] sm:$0xf]  ;;  %v3956_v63 = vld [vmem:[%s4409_s17 + $0xe0] sm:$0xf0] }
  0x70   : > { %1650 = vmatmul.bf16.gmra.mxu1 %v3338_v21  ;;  %1690 = vmatmul.bf16.gmra.mxu2 %v3498_v22  ;;  %v3933_v22 = vld [vmem:[%s4409_s17 + $0x2c] sm:$0xf] }
  0x71   : > { %1730 = vmatmul.bf16.gmra.mxu3 %v3658_v23  ;;  %v3119_v23 = vld [vmem:[%s4409_s17 + $0x3c] sm:$0xf0] }
  0x72   : > { %1610 = vmatmul.bf16.gmra.mxu0 %v3178_v24  ;;  %v3125_v24 = vld [vmem:[%s4409_s17 + $0x30] sm:$0xf]  ;;  %v3122_v32 = vor.u32 %v3933_v22, %v3119_v23 }
  0x73   : > { %v3126_v33 = vor.u32 %v3936_v25, %v3125_v24  ;;  %v3948_v24 = vld [vmem:[%s4409_s17 + $0xa4] sm:$0xf]  ;;  %v3179_v25 = vld [vmem:[%s4409_s17 + $0xb4] sm:$0xf0] }
  0x80   : > { %1655 = vmatmul.bf16.gmra.mxu1 %v3358_v37  ;;  %1695 = vmatmul.bf16.gmra.mxu2 %v3518_v38 }
  0x81   : > { %1735 = vmatmul.bf16.gmra.mxu3 %v3678_v39 }
  0x82   : > { %1615 = vmatmul.bf16.gmra.mxu0 %v3198_v40 }
  0x90   : > { %1660 = vmatmul.bf16.gmra.mxu1 %v3378_v52  ;;  %1700 = vmatmul.bf16.gmra.mxu2 %v3538_v53  ;;  %v3142_v52 = vor.u32 %v3938_v42, %v3139_v43  ;;  %v3146_v53 = vor.u32 %v3941_v45, %v3145_v44  ;;  %v3182_v42 = vor.u32 %v3948_v24, %v3179_v25 }
  0x91   : > { %1740 = vmatmul.bf16.gmra.mxu3 %v3698_v54  ;;  %v3186_v43 = vor.u32 %v3951_v27, %v3185_v26  ;;  %v3190_v45 = vor.u32 %v3949_v28, %v3187_v29 }
  0x92   : > { %1620 = vmatmul.bf16.gmra.mxu0 %v3218_v55  ;;  %v3150_v55 = vor.u32 %v3939_v46, %v3147_v47 }
  0xa0   : > { %1665 = vmatmul.bf16.gmra.mxu1 %v3398_v0  ;;  %1705 = vmatmul.bf16.gmra.mxu2 %v3558_v1  ;;  %v3165_v0 = vld [vmem:[%s4409_s17 + $0x80] sm:$0xf]  ;;  %v3946_v1 = vld [vmem:[%s4409_s17 + $0x90] sm:$0xf0] }
  0xa1   : > { %1745 = vmatmul.bf16.gmra.mxu3 %v3718_v2  ;;  %v3944_v2 = vld [vmem:[%s4409_s17 + $0x84] sm:$0xf]  ;;  %v3166_v9 = vor.u32 %v3946_v1, %v3165_v0  ;;  %v3954_v0 = vld [vmem:[%s4409_s17 + $0xd4] sm:$0xf]  ;;  %v3207_v1 = vld [vmem:[%s4409_s17 + $0xe4] sm:$0xf0] }
  0xa2   : > { %1625 = vmatmul.bf16.gmra.mxu0 %v3238_v3  ;;  %v3167_v3 = vld [vmem:[%s4409_s17 + $0x94] sm:$0xf0] }
  0xa3   : > { %v3170_v11 = vor.u32 %v3944_v2, %v3167_v3  ;;  %v3213_v2 = vld [vmem:[%s4409_s17 + $0xd8] sm:$0xf]  ;;  %v3957_v3 = vld [vmem:[%s4409_s17 + $0xe8] sm:$0xf0] }
  0xa4   : > { %v3214_v24 = vor.u32 %v3957_v3, %v3213_v2 }
  0xad   : > { %v4570_v14 = vpop.f32.mrf.mxu1 }
  0xaf   : > { %v4572_v17 = vpop.f32.mrf.mxu0 }
  0xb0   : > { %1759 = vmatmul.bf16.vlgmr.msrb.gmra.mxu1 %v3102_v12  ;;  %1928 = vmatmul.bf16.vlgmr.msrb.gmra.mxu2 %v3106_v13  ;;  %v3174_v12 = vor.u32 %v3947_v5, %v3173_v4 }
  0xb1   : > { %2097 = vmatmul.bf16.vlgmr.msrb.gmra.mxu3 %v3110_v15 }
  0xb2   : > { %3879 = vmatmul.msk.bf16.vlgmr.msrb.gmra.mxu0 %vm1485_vm0, %v3114_v16 }
  0xb3   : > { %v4575_v18 = vpop.f32.mrf.mxu2 }
  0xb4   : > { %v4577_v19 = vpop.f32.mrf.mxu3 }
  0xb5   : > { %5399 = vst [vmem:[#allocation3_spill] sm:$0xff] %v4577_v19  ;;  %v4579_v20 = vpop.f32.mrf.mxu1 }
  0xb7   : > { %v4581_v21 = vpop.f32.mrf.mxu0 }
  0xbb   : > { %v4591_v30 = vpop.f32.mrf.mxu2 }
  0xbc   : > { %v4593_v31 = vpop.f32.mrf.mxu3 }
  0xbd   : > { %5400 = vst [vmem:[#allocation4_spill] sm:$0xff] %v4593_v31  ;;  %v4595_v34 = vpop.f32.mrf.mxu1  ;;  %v4773_v31 = vld [vmem:[%s5396_s2] ss:$0 sm:$0xff] }
  0xbf   : > { %v4597_v37 = vpop.f32.mrf.mxu0 }
  0xc0   : > { %1764 = vmatmul.bf16.gmra.mxu1 %v3122_v32  ;;  %1933 = vmatmul.bf16.gmra.mxu2 %v3126_v33  ;;  %v3193_v32 = vld [vmem:[%s4409_s17 + $0xb0] sm:$0xf]  ;;  %v3952_v33 = vld [vmem:[%s4409_s17 + $0xc0] sm:$0xf0] }
  0xc1   : > { %2102 = vmatmul.bf16.gmra.mxu3 %v3130_v35  ;;  %v3194_v46 = vor.u32 %v3952_v33, %v3193_v32  ;;  %v3958_v32 = vld [vmem:[%s4409_s17 + $0xf4] sm:$0xf]  ;;  %v3219_v33 = vld [vmem:[%s4409_s17 + $0x104] sm:$0xf0] }
  0xc2   : > { %3880 = vmatmul.msk.bf16.gmra.mxu0 %vm1485_vm0, %v3134_v36 }
  0xc3   : > { %v4600_v38 = vpop.f32.mrf.mxu2 }
  0xc4   : > { %v4602_v39 = vpop.f32.mrf.mxu3 }
  0xc5   : > { %5401 = vst [vmem:[#allocation5_spill] sm:$0xff] %v4602_v39  ;;  %v4604_v40 = vpop.f32.mrf.mxu1 }
  0xc7   : > { %v4606_v41 = vpop.f32.mrf.mxu0 }
  0xcb   : > { %v4616_v50 = vpop.f32.mrf.mxu2 }
  0xcc   : > { %v4618_v51 = vpop.f32.mrf.mxu3 }
  0xcd   : > { %5402 = vst [vmem:[#allocation6_spill] sm:$0xff] %v4618_v51  ;;  %v4620_v54 = vpop.f32.mrf.mxu1 }
  0xcf   : > { %v4622_v57 = vpop.f32.mrf.mxu0 }
  0xd0   : > { %1769 = vmatmul.bf16.gmra.mxu1 %v3142_v52  ;;  %1938 = vmatmul.bf16.gmra.mxu2 %v3146_v53 }
  0xd1   : > { %2107 = vmatmul.bf16.gmra.mxu3 %v3150_v55  ;;  %v3953_v55 = vld [vmem:[%s4409_s17 + $0xcc] sm:$0xf] }
  0xd2   : > { %3881 = vmatmul.msk.bf16.gmra.mxu0 %vm1485_vm0, %v3154_v56  ;;  %v3199_v56 = vld [vmem:[%s4409_s17 + $0xdc] sm:$0xf0] }
  0xd3   : > { %v4625_v58 = vpop.f32.mrf.mxu2 }
  0xd4   : > { %v4627_v59 = vpop.f32.mrf.mxu3 }
  0xd5   : > { %5403 = vst [vmem:[#allocation7_spill] sm:$0xff] %v4627_v59  ;;  %v4629_v60 = vpop.f32.mrf.mxu1 }
  0xd7   : > { %v4631_v61 = vpop.f32.mrf.mxu0 }
  0xdb   : > { %v4641_v6 = vpop.f32.mrf.mxu2 }
  0xdc   : > { %v4643_v7 = vpop.f32.mrf.mxu3 }
  0xdd   : > { %5404 = vst [vmem:[#allocation8_spill] sm:$0xff] %v4643_v7  ;;  %v4645_v10 = vpop.f32.mrf.mxu1  ;;  %v3273_v7 = vld [vmem:[%s4409_s17 + $0x150] sm:$0xf] }
  0xdf   : > { %v4647_v13 = vpop.f32.mrf.mxu0 }
  0xe0   : > { %1774 = vmatmul.bf16.gmra.mxu1 %v3162_v8  ;;  %1943 = vmatmul.bf16.gmra.mxu2 %v3166_v9  ;;  %v3202_v8 = vor.u32 %v3953_v55, %v3199_v56  ;;  %v3206_v9 = vor.u32 %v3956_v63, %v3205_v62  ;;  %v3233_v55 = vld [vmem:[%s4409_s17 + $0x100] sm:$0xf]  ;;  %v3962_v56 = vld [vmem:[%s4409_s17 + $0x110] sm:$0xf0] }
  0xe1   : > { %2112 = vmatmul.bf16.gmra.mxu3 %v3170_v11 }
  0xe2   : > { %3882 = vmatmul.msk.bf16.gmra.mxu0 %vm1485_vm0, %v3174_v12  ;;  %v3210_v12 = vor.u32 %v3954_v0, %v3207_v1  ;;  %v3222_v0 = vor.u32 %v3958_v32, %v3219_v33 }
  0xe3   : > { %v4650_v15 = vpop.f32.mrf.mxu2 }
  0xe4   : > { %v4652_v16 = vpop.f32.mrf.mxu3 }
  0xe5   : > { %5405 = vst [vmem:[#allocation9_spill] sm:$0xff] %v4652_v16  ;;  %v4654_v22 = vpop.f32.mrf.mxu1  ;;  %v3267_v16 = vld [vmem:[%s4409_s17 + $0x15c] sm:$0xf0] }
  0xe7   : > { %v4656_v23 = vpop.f32.mrf.mxu0 }
  0xeb   : > { %v4666_v35 = vpop.f32.mrf.mxu2 }
  0xec   : > { %5406 = vst [vmem:[#allocation10_spill] sm:$0xff] %v4666_v35  ;;  %v4668_v36 = vpop.f32.mrf.mxu3 }
  0xed   : > { %5407 = vst [vmem:[#allocation11_spill] sm:$0xff] %v4668_v36  ;;  %v4670_v44 = vpop.f32.mrf.mxu1 }
  0xef   : > { %v4672_v47 = vpop.f32.mrf.mxu0 }
  0xf0   : > { %1779 = vmatmul.bf16.gmra.mxu1 %v3182_v42  ;;  %1948 = vmatmul.bf16.gmra.mxu2 %v3186_v43  ;;  %v3225_v42 = vld [vmem:[%s4409_s17 + $0xf8] sm:$0xf]  ;;  %v3961_v43 = vld [vmem:[%s4409_s17 + $0x108] sm:$0xf0] }
  0xf1   : > { %2117 = vmatmul.bf16.gmra.mxu3 %v3190_v45  ;;  %v3959_v45 = vld [vmem:[%s4409_s17 + $0xfc] sm:$0xf]  ;;  %v3226_v1 = vor.u32 %v3961_v43, %v3225_v42  ;;  %v3239_v43 = vld [vmem:[%s4409_s17 + $0x12c] sm:$0xf0] }
  0xf2   : > { %3883 = vmatmul.msk.bf16.gmra.mxu0 %vm1485_vm0, %v3194_v46  ;;  %v3227_v46 = vld [vmem:[%s4409_s17 + $0x10c] sm:$0xf0]  ;;  %v3963_v42 = vld [vmem:[%s4409_s17 + $0x11c] sm:$0xf] }
  0xf3   : > { %v4675_v48 = vpop.f32.mrf.mxu2  ;;  %v3230_v3 = vor.u32 %v3959_v45, %v3227_v46  ;;  %v3245_v45 = vld [vmem:[%s4409_s17 + $0x120] sm:$0xf]  ;;  %v3966_v46 = vld [vmem:[%s4409_s17 + $0x130] sm:$0xf0] }
  0xf4   : > { %5408 = vst [vmem:[#allocation12_spill] sm:$0xff] %v4675_v48  ;;  %v4677_v49 = vpop.f32.mrf.mxu3 }
  0xf5   : > { %5409 = vst [vmem:[#allocation13_spill] sm:$0xff] %v4677_v49  ;;  %v4679_v52 = vpop.f32.mrf.mxu1 }
  0xf7   : > { %v4681_v53 = vpop.f32.mrf.mxu0 }
  0xfb   : > { %v4691_v4 = vpop.f32.mrf.mxu2 }
  0xfc   : > { %5410 = vst [vmem:[#allocation14_spill] sm:$0xff] %v4691_v4  ;;  %v4693_v5 = vpop.f32.mrf.mxu3 }
  0xfd   : > { %5411 = vst [vmem:[#allocation15_spill] sm:$0xff] %v4693_v5  ;;  %v4695_v11 = vpop.f32.mrf.mxu1 }
  0xff   : > { %v4697_v25 = vpop.f32.mrf.mxu0 }
 0x100   : > { %1784 = vmatmul.bf16.gmra.mxu1 %v3202_v8  ;;  %1953 = vmatmul.bf16.gmra.mxu2 %v3206_v9  ;;  %v3234_v8 = vor.u32 %v3962_v56, %v3233_v55  ;;  %v3964_v55 = vld [vmem:[%s4409_s17 + $0x124] sm:$0xf]  ;;  %v3247_v56 = vld [vmem:[%s4409_s17 + $0x134] sm:$0xf0] }
 0x101   : > { %2122 = vmatmul.bf16.gmra.mxu3 %v3210_v12  ;;  %v3250_v5 = vor.u32 %v3964_v55, %v3247_v56  ;;  %v3259_v55 = vld [vmem:[%s4409_s17 + $0x154] sm:$0xf0]  ;;  %v3971_v56 = vld [vmem:[%s4409_s17 + $0x158] sm:$0xf0] }
 0x102   : > { %3884 = vmatmul.msk.bf16.gmra.mxu0 %vm1485_vm0, %v3214_v24 }
 0x103   : > { %v4700_v26 = vpop.f32.mrf.mxu2 }
 0x104   : > { %5412 = vst [vmem:[#allocation16_spill] sm:$0xff] %v4700_v26  ;;  %v4702_v27 = vpop.f32.mrf.mxu3 }
 0x105   : > { %5413 = vst [vmem:[#allocation17_spill] sm:$0xff] %v4702_v27  ;;  %v4704_v28 = vpop.f32.mrf.mxu1 }
 0x107   : > { %v4706_v29 = vpop.f32.mrf.mxu0 }
 0x10b   : > { %v4716_v62 = vpop.f32.mrf.mxu2 }
 0x10c   : > { %5414 = vst [vmem:[#allocation18_spill] sm:$0xff] %v4716_v62  ;;  %v4718_v63 = vpop.f32.mrf.mxu3 }
 0x10d   : > { %5415 = vst [vmem:[#allocation19_spill] sm:$0xff] %v4718_v63  ;;  %v4720_v2 = vpop.f32.mrf.mxu1  ;;  %v3253_v63 = vld [vmem:[%s4409_s17 + $0x128] sm:$0xf] }
 0x10f   : > { %v4722_v9 = vpop.f32.mrf.mxu0 }
 0x110   : > { %1789 = vmatmul.bf16.gmra.mxu1 %v3222_v0  ;;  %1958 = vmatmul.bf16.gmra.mxu2 %v3226_v1  ;;  %v3967_v0 = vld [vmem:[%s4409_s17 + $0x138] sm:$0xf0] }
 0x111   : > { %2127 = vmatmul.bf16.gmra.mxu3 %v3230_v3  ;;  %v3254_v49 = vor.u32 %v3967_v0, %v3253_v63  ;;  %v3265_v63 = vld [vmem:[%s4409_s17 + $0x148] sm:$0xf]  ;;  %v3969_v0 = vld [vmem:[%s4409_s17 + $0x14c] sm:$0xf] }
 0x112   : > { %3885 = vmatmul.msk.bf16.gmra.mxu0 %vm1485_vm0, %v3234_v8  ;;  %v3242_v8 = vor.u32 %v3963_v42, %v3239_v43  ;;  %v3266_v59 = vor.u32 %v3971_v56, %v3265_v63  ;;  %v3270_v51 = vor.u32 %v3969_v0, %v3267_v16  ;;  %v3973_v0 = vld [vmem:[%s4409_s17 + $0x16c] sm:$0xf] }
 0x113   : > { %v4725_v12 = vpop.f32.mrf.mxu2 }
 0x114   : > { %5416 = vst [vmem:[#allocation20_spill] sm:$0xff] %v4725_v12  ;;  %v4727_v24 = vpop.f32.mrf.mxu3 }
 0x115   : > { %5417 = vst [vmem:[#allocation21_spill] sm:$0xff] %v4727_v24  ;;  %v4729_v32 = vpop.f32.mrf.mxu1  ;;  %v3246_v24 = vor.u32 %v3966_v46, %v3245_v45  ;;  %v3968_v46 = vld [vmem:[%s4409_s17 + $0x144] sm:$0xf] }
 0x117   : > { %v4731_v33 = vpop.f32.mrf.mxu0 }
 0x11b   : > { %v4741_v1 = vpop.f32.mrf.mxu2 }
 0x11c   : > { %5418 = vst [vmem:[#allocation22_spill] sm:$0xff] %v4741_v1  ;;  %v4743_v3 = vpop.f32.mrf.mxu3 }
 0x11d   : > { %5419 = vst [vmem:[#allocation23_spill] sm:$0xff] %v4743_v3  ;;  %v4745_v27 = vpop.f32.mrf.mxu1 }
 0x11f   : > { %v4747_v36 = vpop.f32.mrf.mxu0 }
 0x120   : > { %1794 = vmatmul.bf16.gmra.mxu1 %v3242_v8  ;;  %1963 = vmatmul.bf16.gmra.mxu2 %v3246_v24  ;;  %v3972_v8 = vld [vmem:[%s4409_s17 + $0x160] sm:$0xf0] }
 0x121   : > { %2132 = vmatmul.bf16.gmra.mxu3 %v3250_v5  ;;  %v3274_v39 = vor.u32 %v3972_v8, %v3273_v7  ;;  %v3279_v8 = vld [vmem:[%s4409_s17 + $0x17c] sm:$0xf0] }
 0x122   : > { %3886 = vmatmul.msk.bf16.gmra.mxu0 %vm1485_vm0, %v3254_v49  ;;  %v3262_v49 = vor.u32 %v3968_v46, %v3259_v55  ;;  %v3282_v62 = vor.u32 %v3973_v0, %v3279_v8  ;;  %v3978_v0 = vld [vmem:[%s4409_s17 + $0x194] sm:$0xf] }
 0x123   : > { %v4750_v3 = vpop.f32.mrf.mxu2 }
 0x124   : > { %5420 = vst [vmem:[#allocation24_spill] sm:$0xff] %v4750_v3  ;;  %v4752_v42 = vpop.f32.mrf.mxu3  ;;  %v1592_v3 = vadd.f32 %v4773_v31, %v4572_v17 }
 0x125   : > { %5421 = vst [vmem:[#allocation25_spill] sm:$0xff] %v4752_v42  ;;  %v4754_v43 = vpop.f32.mrf.mxu1 }
 0x127   : > { %v4756_v45 = vpop.f32.mrf.mxu0 }
 0x12b   : > { %v4766_v24 = vpop.f32.mrf.mxu2 }
 0x12c   : > { %5422 = vst [vmem:[#allocation26_spill] sm:$0xff] %v4766_v24  ;;  %v4768_v5 = vpop.f32.mrf.mxu3  ;;  %v3977_v24 = vld [vmem:[%s4409_s17 + $0x188] sm:$0xf0] }
 0x12d   : > { %5423 = vst [vmem:[#allocation27_spill] sm:$0xff] %v4768_v5  ;;  %v1760_v42 = vpop.f32.mrf.mxu1  ;;  %v3293_v5 = vld [vmem:[%s4409_s17 + $0x178] sm:$0xf] }
 0x12e   : > { %v1761_v7 = vadd.f32 %v1760_v42, %v1592_v3  ;;  %v3974_v3 = vld [vmem:[%s4409_s17 + $0x174] sm:$0xf]  ;;  %v3287_v42 = vld [vmem:[%s4409_s17 + $0x184] sm:$0xf0] }
 0x12f   : > { %v2267_v19 = vpop.f32.mrf.mxu0 }
 0x130   : > { %1799 = vmatmul.bf16.gmra.mxu1 %v3262_v49  ;;  %1968 = vmatmul.bf16.gmra.mxu2 %v3266_v59  ;;  %v3976_v49 = vld [vmem:[%s4409_s17 + $0x180] sm:$0xf0] }
 0x131   : > { %2137 = vmatmul.bf16.gmra.mxu3 %v3270_v51  ;;  %v1594_v51 = vadd.f32 %v4773_v31, %v4581_v21 }
 0x132   : > { %3887 = vmatmul.msk.bf16.gmra.mxu0 %vm1485_vm0, %v3274_v39  ;;  %v3285_v39 = vld [vmem:[%s4409_s17 + $0x170] sm:$0xf] }
 0x133   : > { %v1929_v16 = vpop.f32.mrf.mxu2  ;;  %v3286_v26 = vor.u32 %v3976_v49, %v3285_v39  ;;  %v3299_v39 = vld [vmem:[%s4409_s17 + $0x1a4] sm:$0xf0]  ;;  %v3305_v49 = vld [vmem:[%s4409_s17 + $0x198] sm:$0xf] }
 0x134   : > { %v1930_v46 = vadd.f32 %v1929_v16, %v1761_v7  ;;  %v2098_v55 = vpop.f32.mrf.mxu3 }
 0x135   : > { %v1762_v63 = vpop.f32.mrf.mxu1 }
 0x136   : > { %v2099_v56 = vadd.f32 %v2098_v55, %v1930_v46  ;;  %v1763_v16 = vadd.f32 %v1762_v63, %v1594_v51  ;;  %v1597_v63 = vadd.f32 %v4773_v31, %v4597_v37 }
 0x137   : > { %v2269_v17 = vpop.f32.mrf.mxu0 }
 0x138   : > { %v2268_v59 = vadd.f32 %v2267_v19, %v2099_v56  ;;  %v3290_v19 = vor.u32 %v3974_v3, %v3287_v42  ;;  %v3294_v56 = vor.u32 %v3977_v24, %v3293_v5  ;;  %v3981_v3 = vld [vmem:[%s4409_s17 + $0x1a8] sm:$0xf0]  ;;  %v3979_v42 = vld [vmem:[%s4409_s17 + $0x19c] sm:$0xf] }
 0x13a   : > { %vm2427_vm1 = vcmp.ge.f32.partialorder %v2268_v59, 0.0  ;;  %v2491_v7 = vmul.f32 0.2, %v2268_v59 }
 0x13b   : > { %v1931_v1 = vpop.f32.mrf.mxu2 }
 0x13c   : > { %v2555_v46 = vsel %vm2427_vm1, %v2268_v59, %v2491_v7  ;;  %v1932_v55 = vadd.f32 %v1931_v1, %v1763_v16  ;;  %v2100_v12 = vpop.f32.mrf.mxu3  ;;  %v1599_v59 = vadd.f32 %v4773_v31, %v4606_v41  ;;  %v3307_v7 = vld [vmem:[%s4409_s17 + $0x1ac] sm:$0xf0]  ;;  %v3313_v16 = vld [vmem:[%s4409_s17 + $0x1a0] sm:$0xf] }
 0x13d   : > { %v2619_v4 = vpack.c.bf16 %v2555_v46, %v2555_v46  ;;  %v1765_v21 = vpop.f32.mrf.mxu1 }
 0x13e   : > { %v2101_v48 = vadd.f32 %v2100_v12, %v1932_v55  ;;  %v1766_v1 = vadd.f32 %v1765_v21, %v1597_v63  ;;  %v3982_v21 = vld [vmem:[%s4409_s17 + $0x1b0] sm:$0xf0] }
 0x13f   : > { %v2272_v35 = vpop.f32.mrf.mxu0  ;;  %2684 = vst.msk [vmem:[%s4789_s12] sm:$0xf] %vm2683_vm2, %v2619_v4 }
 0x140   : > { %v2270_v51 = vadd.f32 %v2269_v17, %v2101_v48  ;;  %1804 = vmatmul.bf16.gmra.mxu1 %v3282_v62  ;;  %1973 = vmatmul.bf16.gmra.mxu2 %v3286_v26 }
 0x141   : > { %2142 = vmatmul.bf16.gmra.mxu3 %v3290_v19 }
 0x142   : > { %3888 = vmatmul.msk.bf16.gmra.mxu0 %vm1485_vm0, %v3294_v56  ;;  %vm2428_vm3 = vcmp.ge.f32.partialorder %v2270_v51, 0.0  ;;  %v2492_v12 = vmul.f32 0.2, %v2270_v51 }
 0x143   : > { %v1934_v24 = vpop.f32.mrf.mxu2 }
 0x144   : > { %v2556_v4 = vsel %vm2428_vm3, %v2270_v51, %v2492_v12  ;;  %v1935_v37 = vadd.f32 %v1934_v24, %v1766_v1  ;;  %v2103_v48 = vpop.f32.mrf.mxu3  ;;  %v3302_v12 = vor.u32 %v3978_v0, %v3299_v39  ;;  %v3306_v1 = vor.u32 %v3981_v3, %v3305_v49 }
 0x145   : > { %v2620_v5 = vpack.c.bf16 %v2556_v4, %v2556_v4  ;;  %v1767_v62 = vpop.f32.mrf.mxu1  ;;  %v3314_v4 = vor.u32 %v3982_v21, %v3313_v16  ;;  %v1604_v16 = vadd.f32 %v4773_v31, %v4631_v61  ;;  %v3325_v21 = vld [vmem:[%s4409_s17 + $0x1c0] sm:$0xf] }
 0x146   : > { %v2104_v26 = vadd.f32 %v2103_v48, %v1935_v37  ;;  %v1768_v55 = vadd.f32 %v1767_v62, %v1599_v59 }
 0x147   : > { %v2274_v17 = vpop.f32.mrf.mxu0  ;;  %2685 = vst.msk [vmem:[%s4789_s12 + $0x4] sm:$0xf] %vm2683_vm2, %v2620_v5  ;;  %v1602_v5 = vadd.f32 %v4773_v31, %v4622_v57 }
 0x148   : > { %v2273_v8 = vadd.f32 %v2272_v35, %v2104_v26  ;;  %v3310_v35 = vor.u32 %v3979_v42, %v3307_v7  ;;  %v3983_v7 = vld [vmem:[%s4409_s17 + $0x1bc] sm:$0xf] }
 0x14a   : > { %vm2429_vm4 = vcmp.ge.f32.partialorder %v2273_v8, 0.0  ;;  %v2493_v46 = vmul.f32 0.2, %v2273_v8 }
 0x14b   : > { %v1936_v19 = vpop.f32.mrf.mxu2 }
 0x14c   : > { %v2557_v56 = vsel %vm2429_vm4, %v2273_v8, %v2493_v46  ;;  %v1937_v63 = vadd.f32 %v1936_v19, %v1768_v55  ;;  %v2105_v51 = vpop.f32.mrf.mxu3  ;;  %v3319_v55 = vld [vmem:[%s4409_s17 + $0x1cc] sm:$0xf0]  ;;  %v3986_v19 = vld [vmem:[%s4409_s17 + $0x1d0] sm:$0xf0] }
 0x14d   : > { %v2621_v24 = vpack.c.bf16 %v2557_v56, %v2557_v56  ;;  %v1770_v41 = vpop.f32.mrf.mxu1  ;;  %v3984_v56 = vld [vmem:[%s4409_s17 + $0x1c4] sm:$0xf] }
 0x14e   : > { %v2106_v37 = vadd.f32 %v2105_v51, %v1937_v63  ;;  %v1771_v0 = vadd.f32 %v1770_v41, %v1602_v5  ;;  %v3327_v63 = vld [vmem:[%s4409_s17 + $0x1d4] sm:$0xf0]  ;;  %v3333_v51 = vld [vmem:[%s4409_s17 + $0x1c8] sm:$0xf]  ;;  %v3322_v5 = vor.u32 %v3983_v7, %v3319_v55 }
 0x14f   : > { %v2277_v48 = vpop.f32.mrf.mxu0  ;;  %2686 = vst.msk [vmem:[%s4789_s12 + $0x8] sm:$0xf] %vm2683_vm2, %v2621_v24  ;;  %v3987_v24 = vld [vmem:[%s4409_s17 + $0x1d8] sm:$0xf0] }
 0x150   : > { %v2275_v26 = vadd.f32 %v2274_v17, %v2106_v37  ;;  %1809 = vmatmul.bf16.gmra.mxu1 %v3302_v12  ;;  %1978 = vmatmul.bf16.gmra.mxu2 %v3306_v1 }
 0x151   : > { %2147 = vmatmul.bf16.gmra.mxu3 %v3310_v35 }
 0x152   : > { %3889 = vmatmul.msk.bf16.gmra.mxu0 %vm1485_vm0, %v3314_v4  ;;  %vm2430_vm5 = vcmp.ge.f32.partialorder %v2275_v26, 0.0  ;;  %v2494_v62 = vmul.f32 0.2, %v2275_v26 }
 0x153   : > { %v1939_v59 = vpop.f32.mrf.mxu2 }
 0x154   : > { %v2558_v8 = vsel %vm2430_vm5, %v2275_v26, %v2494_v62  ;;  %v1940_v57 = vadd.f32 %v1939_v59, %v1771_v0  ;;  %v2108_v17 = vpop.f32.mrf.mxu3  ;;  %v3326_v26 = vor.u32 %v3986_v19, %v3325_v21  ;;  %v3334_v0 = vor.u32 %v3987_v24, %v3333_v51  ;;  %v3988_v19 = vld [vmem:[%s4409_s17 + $0x1e4] sm:$0xf]  ;;  %v3339_v51 = vld [vmem:[%s4409_s17 + $0x1f4] sm:$0xf0]  ;;  %v3989_v24 = vld [vmem:[%s4409_s17 + $0x1ec] sm:$0xf] }
 0x155   : > { %v2622_v39 = vpack.c.bf16 %v2558_v8, %v2558_v8  ;;  %v1772_v49 = vpop.f32.mrf.mxu1 }
 0x156   : > { %v2109_v3 = vadd.f32 %v2108_v17, %v1940_v57  ;;  %v1773_v1 = vadd.f32 %v1772_v49, %v1604_v16  ;;  %v1607_v57 = vadd.f32 %v4773_v31, %v4647_v13 }
 0x157   : > { %v2279_v42 = vpop.f32.mrf.mxu0  ;;  %2687 = vst.msk [vmem:[%s4789_s12 + $0xc] sm:$0xf] %vm2683_vm2, %v2622_v39 }
 0x158   : > { %v2278_v46 = vadd.f32 %v2277_v48, %v2109_v3  ;;  %v3330_v48 = vor.u32 %v3984_v56, %v3327_v63  ;;  %v1609_v56 = vadd.f32 %v4773_v31, %v4656_v23 }
 0x15a   : > { %vm2431_vm6 = vcmp.ge.f32.partialorder %v2278_v46, 0.0  ;;  %v2495_v12 = vmul.f32 0.2, %v2278_v46 }
 0x15b   : > { %v1941_v41 = vpop.f32.mrf.mxu2 }
 0x15c   : > { %v2559_v35 = vsel %vm2431_vm6, %v2278_v46, %v2495_v12  ;;  %v1942_v4 = vadd.f32 %v1941_v41, %v1773_v1  ;;  %v2110_v37 = vpop.f32.mrf.mxu3  ;;  %v3345_v12 = vld [vmem:[%s4409_s17 + $0x1e8] sm:$0xf]  ;;  %v3991_v1 = vld [vmem:[%s4409_s17 + $0x1f8] sm:$0xf0]  ;;  %v3347_v41 = vld [vmem:[%s4409_s17 + $0x1fc] sm:$0xf0] }
 0x15d   : > { %v2623_v62 = vpack.c.bf16 %v2559_v35, %v2559_v35  ;;  %v1775_v61 = vpop.f32.mrf.mxu1  ;;  %v3353_v35 = vld [vmem:[%s4409_s17 + $0x1f0] sm:$0xf] }
 0x15e   : > { %v2111_v59 = vadd.f32 %v2110_v37, %v1942_v4  ;;  %v1776_v49 = vadd.f32 %v1775_v61, %v1607_v57 }
 0x15f   : > { %v2282_v8 = vpop.f32.mrf.mxu0  ;;  %2688 = vst.msk [vmem:[%s4789_s12 + $0x10] sm:$0xf] %vm2683_vm2, %v2623_v62 }
 0x160   : > { %v2280_v17 = vadd.f32 %v2279_v42, %v2111_v59  ;;  %1814 = vmatmul.bf16.gmra.mxu1 %v3322_v5  ;;  %1983 = vmatmul.bf16.gmra.mxu2 %v3326_v26  ;;  %v3992_v5 = vld [vmem:[%s4409_s17 + $0x200] sm:$0xf0]  ;;  %v3346_v59 = vor.u32 %v3991_v1, %v3345_v12  ;;  %v1614_v12 = vadd.f32 %v4773_v31, %v4681_v53 }
 0x161   : > { %2152 = vmatmul.bf16.gmra.mxu3 %v3330_v48 }
 0x162   : > { %3890 = vmatmul.msk.bf16.gmra.mxu0 %vm1485_vm0, %v3334_v0  ;;  %vm2432_vm7 = vcmp.ge.f32.partialorder %v2280_v17, 0.0  ;;  %v2496_v39 = vmul.f32 0.2, %v2280_v17  ;;  %v3342_v0 = vor.u32 %v3988_v19, %v3339_v51  ;;  %v3993_v51 = vld [vmem:[%s4409_s17 + $0x20c] sm:$0xf] }
 0x163   : > { %v1944_v3 = vpop.f32.mrf.mxu2 }
 0x164   : > { %v2560_v7 = vsel %vm2432_vm7, %v2280_v17, %v2496_v39  ;;  %v1945_v13 = vadd.f32 %v1944_v3, %v1776_v49  ;;  %v2113_v42 = vpop.f32.mrf.mxu3  ;;  %v3354_v17 = vor.u32 %v3992_v5, %v3353_v35  ;;  %v1612_v3 = vadd.f32 %v4773_v31, %v4672_v47  ;;  %v3996_v35 = vld [vmem:[%s4409_s17 + $0x220] sm:$0xf0]  ;;  %v3373_v5 = vld [vmem:[%s4409_s17 + $0x218] sm:$0xf] }
 0x165   : > { %v2624_v16 = vpack.c.bf16 %v2560_v7, %v2560_v7  ;;  %v1777_v46 = vpop.f32.mrf.mxu1 }
 0x166   : > { %v2114_v55 = vadd.f32 %v2113_v42, %v1945_v13  ;;  %v1778_v37 = vadd.f32 %v1777_v46, %v1609_v56 }
 0x167   : > { %v2284_v21 = vpop.f32.mrf.mxu0  ;;  %2689 = vst.msk [vmem:[%s4789_s12 + $0x14] sm:$0xf] %vm2683_vm2, %v2624_v16 }
 0x168   : > { %v2283_v63 = vadd.f32 %v2282_v8, %v2114_v55  ;;  %v3350_v8 = vor.u32 %v3989_v24, %v3347_v41  ;;  %v3359_v24 = vld [vmem:[%s4409_s17 + $0x21c] sm:$0xf0]  ;;  %v3365_v41 = vld [vmem:[%s4409_s17 + $0x210] sm:$0xf] }
 0x16a   : > { %vm2433_vm8 = vcmp.ge.f32.partialorder %v2283_v63, 0.0  ;;  %v2497_v4 = vmul.f32 0.2, %v2283_v63 }
 0x16b   : > { %v1946_v26 = vpop.f32.mrf.mxu2 }
 0x16c   : > { %v2561_v62 = vsel %vm2433_vm8, %v2283_v63, %v2497_v4  ;;  %v1947_v61 = vadd.f32 %v1946_v26, %v1778_v37  ;;  %v2115_v48 = vpop.f32.mrf.mxu3  ;;  %v3994_v4 = vld [vmem:[%s4409_s17 + $0x214] sm:$0xf]  ;;  %v3367_v37 = vld [vmem:[%s4409_s17 + $0x224] sm:$0xf0] }
 0x16d   : > { %v2625_v57 = vpack.c.bf16 %v2561_v62, %v2561_v62  ;;  %v1780_v23 = vpop.f32.mrf.mxu1 }
 0x16e   : > { %v2116_v39 = vadd.f32 %v2115_v48, %v1947_v61  ;;  %v1781_v42 = vadd.f32 %v1780_v23, %v1612_v3  ;;  %v3997_v61 = vld [vmem:[%s4409_s17 + $0x228] sm:$0xf0]  ;;  %v3362_v23 = vor.u32 %v3993_v51, %v3359_v24 }
 0x16f   : > { %v2287_v49 = vpop.f32.mrf.mxu0  ;;  %2690 = vst.msk [vmem:[%s4789_s12 + $0x18] sm:$0xf] %vm2683_vm2, %v2625_v57 }
 0x170   : > { %v2285_v7 = vadd.f32 %v2284_v21, %v2116_v39  ;;  %1819 = vmatmul.bf16.gmra.mxu1 %v3342_v0  ;;  %1988 = vmatmul.bf16.gmra.mxu2 %v3346_v59  ;;  %v3370_v39 = vor.u32 %v3994_v4, %v3367_v37  ;;  %v4001_v4 = vld [vmem:[%s4409_s17 + $0x248] sm:$0xf0]  ;;  %v3999_v37 = vld [vmem:[%s4409_s17 + $0x23c] sm:$0xf] }
 0x171   : > { %2157 = vmatmul.bf16.gmra.mxu3 %v3350_v8  ;;  %v3366_v8 = vor.u32 %v3996_v35, %v3365_v41  ;;  %v3379_v41 = vld [vmem:[%s4409_s17 + $0x244] sm:$0xf0]  ;;  %v3385_v35 = vld [vmem:[%s4409_s17 + $0x238] sm:$0xf] }
 0x172   : > { %3891 = vmatmul.msk.bf16.gmra.mxu0 %vm1485_vm0, %v3354_v17  ;;  %vm2434_vm9 = vcmp.ge.f32.partialorder %v2285_v7, 0.0  ;;  %v2498_v13 = vmul.f32 0.2, %v2285_v7 }
 0x173   : > { %v1949_v16 = vpop.f32.mrf.mxu2 }
 0x174   : > { %v2562_v46 = vsel %vm2434_vm9, %v2285_v7, %v2498_v13  ;;  %v1950_v47 = vadd.f32 %v1949_v16, %v1781_v42  ;;  %v2118_v55 = vpop.f32.mrf.mxu3  ;;  %v1617_v13 = vadd.f32 %v4773_v31, %v4697_v25 }
 0x175   : > { %v2626_v21 = vpack.c.bf16 %v2562_v46, %v2562_v46  ;;  %v1782_v19 = vpop.f32.mrf.mxu1 }
 0x176   : > { %v2119_v56 = vadd.f32 %v2118_v55, %v1950_v47  ;;  %v1783_v62 = vadd.f32 %v1782_v19, %v1614_v12  ;;  %v3998_v12 = vld [vmem:[%s4409_s17 + $0x234] sm:$0xf] }
 0x177   : > { %v2289_v63 = vpop.f32.mrf.mxu0  ;;  %2691 = vst.msk [vmem:[%s4789_s12 + $0x1c] sm:$0xf] %vm2683_vm2, %v2626_v21 }
 0x178   : > { %v2288_v1 = vadd.f32 %v2287_v49, %v2119_v56  ;;  %v3374_v49 = vor.u32 %v3997_v61, %v3373_v5  ;;  %v3387_v5 = vld [vmem:[%s4409_s17 + $0x24c] sm:$0xf0] }
 0x17a   : > { %vm2435_vm10 = vcmp.ge.f32.partialorder %v2288_v1, 0.0  ;;  %v2499_v26 = vmul.f32 0.2, %v2288_v1 }
 0x17b   : > { %v1951_v48 = vpop.f32.mrf.mxu2 }
 0x17c   : > { %v2563_v0 = vsel %vm2435_vm10, %v2288_v1, %v2499_v26  ;;  %v1952_v59 = vadd.f32 %v1951_v48, %v1783_v62  ;;  %v2120_v57 = vpop.f32.mrf.mxu3  ;;  %v1619_v1 = vadd.f32 %v4773_v31, %v4706_v29  ;;  %v3393_v26 = vld [vmem:[%s4409_s17 + $0x240] sm:$0xf]  ;;  %v4002_v48 = vld [vmem:[%s4409_s17 + $0x250] sm:$0xf0] }
 0x17d   : > { %v2627_v17 = vpack.c.bf16 %v2563_v0, %v2563_v0  ;;  %v1785_v53 = vpop.f32.mrf.mxu1 }
 0x17e   : > { %v2121_v3 = vadd.f32 %v2120_v57, %v1952_v59  ;;  %v1786_v46 = vadd.f32 %v1785_v53, %v1617_v13  ;;  %v1622_v13 = vadd.f32 %v4773_v31, %v4722_v9 }
 0x17f   : > { %v2292_v7 = vpop.f32.mrf.mxu0  ;;  %2692 = vst.msk [vmem:[%s4789_s12 + $0x20] sm:$0xf] %vm2683_vm2, %v2627_v17  ;;  %v3386_v17 = vor.u32 %v4001_v4, %v3385_v35  ;;  %v4006_v35 = vld [vmem:[%s4409_s17 + $0x270] sm:$0xf0]  ;;  %v4004_v4 = vld [vmem:[%s4409_s17 + $0x264] sm:$0xf] }
 0x180   : > { %v2290_v42 = vadd.f32 %v2289_v63, %v2121_v3  ;;  %1824 = vmatmul.bf16.gmra.mxu1 %v3362_v23  ;;  %1993 = vmatmul.bf16.gmra.mxu2 %v3366_v8  ;;  %v3382_v8 = vor.u32 %v3998_v12, %v3379_v41  ;;  %v1624_v12 = vadd.f32 %v4773_v31, %v4731_v33  ;;  %v3405_v41 = vld [vmem:[%s4409_s17 + $0x260] sm:$0xf] }
 0x181   : > { %2162 = vmatmul.bf16.gmra.mxu3 %v3370_v39  ;;  %v3390_v39 = vor.u32 %v3999_v37, %v3387_v5  ;;  %v3407_v37 = vld [vmem:[%s4409_s17 + $0x274] sm:$0xf0]  ;;  %v3413_v5 = vld [vmem:[%s4409_s17 + $0x268] sm:$0xf] }
 0x182   : > { %3892 = vmatmul.msk.bf16.gmra.mxu0 %vm1485_vm0, %v3374_v49  ;;  %vm2436_vm11 = vcmp.ge.f32.partialorder %v2290_v42, 0.0  ;;  %v2500_v16 = vmul.f32 0.2, %v2290_v42  ;;  %v3394_v49 = vor.u32 %v4002_v48, %v3393_v26 }
 0x183   : > { %v1954_v47 = vpop.f32.mrf.mxu2 }
 0x184   : > { %v2564_v55 = vsel %vm2436_vm11, %v2290_v42, %v2500_v16  ;;  %v1955_v25 = vadd.f32 %v1954_v47, %v1786_v46  ;;  %v2123_v21 = vpop.f32.mrf.mxu3 }
 0x185   : > { %v2628_v19 = vpack.c.bf16 %v2564_v55, %v2564_v55  ;;  %v1787_v56 = vpop.f32.mrf.mxu1 }
 0x186   : > { %v2124_v63 = vadd.f32 %v2123_v21, %v1955_v25  ;;  %v1788_v61 = vadd.f32 %v1787_v56, %v1619_v1 }
 0x187   : > { %v2294_v51 = vpop.f32.mrf.mxu0  ;;  %2693 = vst.msk [vmem:[%s4789_s12 + $0x24] sm:$0xf] %vm2683_vm2, %v2628_v19 }
 0x188   : > { %v2293_v24 = vadd.f32 %v2292_v7, %v2124_v63 }
 0x18a   : > { %vm2437_vm12 = vcmp.ge.f32.partialorder %v2293_v24, 0.0  ;;  %v2501_v62 = vmul.f32 0.2, %v2293_v24 }
 0x18b   : > { %v1956_v0 = vpop.f32.mrf.mxu2 }
 0x18c   : > { %v2565_v59 = vsel %vm2437_vm12, %v2293_v24, %v2501_v62  ;;  %v1957_v57 = vadd.f32 %v1956_v0, %v1788_v61  ;;  %v2125_v23 = vpop.f32.mrf.mxu3  ;;  %v3399_v24 = vld [vmem:[%s4409_s17 + $0x26c] sm:$0xf0]  ;;  %v4007_v61 = vld [vmem:[%s4409_s17 + $0x278] sm:$0xf0] }
 0x18d   : > { %v2629_v53 = vpack.c.bf16 %v2565_v59, %v2565_v59  ;;  %v1790_v29 = vpop.f32.mrf.mxu1 }
 0x18e   : > { %v2126_v3 = vadd.f32 %v2125_v23, %v1957_v57  ;;  %v1791_v46 = vadd.f32 %v1790_v29, %v1622_v13  ;;  %v3414_v29 = vor.u32 %v4007_v61, %v3413_v5  ;;  %v4012_v5 = vld [vmem:[%s4409_s17 + $0x2a0] sm:$0xf0] }
 0x18f   : > { %v2297_v7 = vpop.f32.mrf.mxu0  ;;  %2694 = vst.msk [vmem:[%s4789_s12 + $0x28] sm:$0xf] %vm2683_vm2, %v2629_v53  ;;  %v3410_v53 = vor.u32 %v4004_v4, %v3407_v37 }
 0x190   : > { %v2295_v42 = vadd.f32 %v2294_v51, %v2126_v3  ;;  %1829 = vmatmul.bf16.gmra.mxu1 %v3382_v8  ;;  %1998 = vmatmul.bf16.gmra.mxu2 %v3386_v17  ;;  %v4003_v51 = vld [vmem:[%s4409_s17 + $0x25c] sm:$0xf]  ;;  %v3406_v8 = vor.u32 %v4006_v35, %v3405_v41  ;;  %v1627_v3 = vadd.f32 %v4773_v31, %v4747_v36  ;;  %v3427_v41 = vld [vmem:[%s4409_s17 + $0x29c] sm:$0xf0]  ;;  %v3433_v35 = vld [vmem:[%s4409_s17 + $0x290] sm:$0xf] }
 0x191   : > { %2167 = vmatmul.bf16.gmra.mxu3 %v3390_v39  ;;  %v3402_v23 = vor.u32 %v4003_v51, %v3399_v24  ;;  %v3419_v51 = vld [vmem:[%s4409_s17 + $0x294] sm:$0xf0]  ;;  %v4009_v24 = vld [vmem:[%s4409_s17 + $0x28c] sm:$0xf] }
 0x192   : > { %3893 = vmatmul.msk.bf16.gmra.mxu0 %vm1485_vm0, %v3394_v49  ;;  %vm2438_vm13 = vcmp.ge.f32.partialorder %v2295_v42, 0.0  ;;  %v2502_v16 = vmul.f32 0.2, %v2295_v42 }
 0x193   : > { %v1959_v47 = vpop.f32.mrf.mxu2 }
 0x194   : > { %v2566_v55 = vsel %vm2438_vm13, %v2295_v42, %v2502_v16  ;;  %v1960_v9 = vadd.f32 %v1959_v47, %v1791_v46  ;;  %v2128_v25 = vpop.f32.mrf.mxu3 }
 0x195   : > { %v2630_v21 = vpack.c.bf16 %v2566_v55, %v2566_v55  ;;  %v1792_v19 = vpop.f32.mrf.mxu1 }
 0x196   : > { %v2129_v56 = vadd.f32 %v2128_v25, %v1960_v9  ;;  %v1793_v62 = vadd.f32 %v1792_v19, %v1624_v12  ;;  %v4008_v19 = vld [vmem:[%s4409_s17 + $0x284] sm:$0xf]  ;;  %v3425_v12 = vld [vmem:[%s4409_s17 + $0x288] sm:$0xf] }
 0x197   : > { %v2299_v63 = vpop.f32.mrf.mxu0  ;;  %2695 = vst.msk [vmem:[%s4789_s12 + $0x2c] sm:$0xf] %vm2683_vm2, %v2630_v21 }
 0x198   : > { %v2298_v1 = vadd.f32 %v2297_v7, %v2129_v56  ;;  %v1629_v56 = vadd.f32 %v4773_v31, %v4756_v45 }
 0x19a   : > { %vm2439_vm14 = vcmp.ge.f32.partialorder %v2298_v1, 0.0  ;;  %v2503_v26 = vmul.f32 0.2, %v2298_v1 }
 0x19b   : > { %v1961_v48 = vpop.f32.mrf.mxu2 }
 0x19c   : > { %v2567_v0 = vsel %vm2439_vm14, %v2298_v1, %v2503_v26  ;;  %v1962_v59 = vadd.f32 %v1961_v48, %v1793_v62  ;;  %v2130_v57 = vpop.f32.mrf.mxu3  ;;  %v4011_v1 = vld [vmem:[%s4409_s17 + $0x298] sm:$0xf0] }
 0x19d   : > { %v2631_v17 = vpack.c.bf16 %v2567_v0, %v2567_v0  ;;  %v1795_v33 = vpop.f32.mrf.mxu1  ;;  %v3422_v0 = vor.u32 %v4008_v19, %v3419_v51  ;;  %v4016_v19 = vld [vmem:[%s4409_s17 + $0x2c0] sm:$0xf0]  ;;  %v3453_v51 = vld [vmem:[%s4409_s17 + $0x2b8] sm:$0xf] }
 0x19e   : > { %v2131_v39 = vadd.f32 %v2130_v57, %v1962_v59  ;;  %v1796_v42 = vadd.f32 %v1795_v33, %v1627_v3  ;;  %v3426_v59 = vor.u32 %v4011_v1, %v3425_v12 }
 0x19f   : > { %v2302_v49 = vpop.f32.mrf.mxu0  ;;  %2696 = vst.msk [vmem:[%s4789_s12 + $0x30] sm:$0xf] %vm2683_vm2, %v2631_v17 }
 0x1a0   : > { %v2300_v7 = vadd.f32 %v2299_v63, %v2131_v39  ;;  %1834 = vmatmul.bf16.gmra.mxu1 %v3402_v23  ;;  %2003 = vmatmul.bf16.gmra.mxu2 %v3406_v8  ;;  %v3430_v23 = vor.u32 %v4009_v24, %v3427_v41  ;;  %v3434_v8 = vor.u32 %v4012_v5, %v3433_v35  ;;  %v4017_v24 = vld [vmem:[%s4409_s17 + $0x2c8] sm:$0xf0] }
 0x1a1   : > { %2172 = vmatmul.bf16.gmra.mxu3 %v3410_v53  ;;  %v1632_v53 = vadd.f32 %v4773_v31, %v4570_v14 }
 0x1a2   : > { %3894 = vmatmul.msk.bf16.gmra.mxu0 %vm1485_vm0, %v3414_v29  ;;  %vm2440_vm15 = vcmp.ge.f32.partialorder %v2300_v7, 0.0  ;;  %v2504_v13 = vmul.f32 0.2, %v2300_v7 }
 0x1a3   : > { %v1964_v16 = vpop.f32.mrf.mxu2 }
 0x1a4   : > { %v2568_v46 = vsel %vm2440_vm15, %v2300_v7, %v2504_v13  ;;  %v1965_v36 = vadd.f32 %v1964_v16, %v1796_v42  ;;  %v2133_v47 = vpop.f32.mrf.mxu3 }
 0x1a5   : > { %v2632_v55 = vpack.c.bf16 %v2568_v46, %v2568_v46  ;;  %v1797_v9 = vpop.f32.mrf.mxu1 }
 0x1a6   : > { %v2134_v25 = vadd.f32 %v2133_v47, %v1965_v36  ;;  %v1798_v37 = vadd.f32 %v1797_v9, %v1629_v56  ;;  %v4013_v47 = vld [vmem:[%s4409_s17 + $0x2ac] sm:$0xf]  ;;  %v4014_v56 = vld [vmem:[%s4409_s17 + $0x2b4] sm:$0xf] }
 0x1a7   : > { %v2304_v21 = vpop.f32.mrf.mxu0  ;;  %2697 = vst.msk [vmem:[%s4789_s12 + $0x34] sm:$0xf] %vm2683_vm2, %v2632_v55  ;;  %v1634_v55 = vadd.f32 %v4773_v31, %v4579_v20 }
 0x1a8   : > { %v2303_v63 = vadd.f32 %v2302_v49, %v2134_v25  ;;  %v3439_v25 = vld [vmem:[%s4409_s17 + $0x2bc] sm:$0xf0] }
 0x1a9   : > { %v3442_v5 = vor.u32 %v4013_v47, %v3439_v25  ;;  %v3467_v47 = vld [vmem:[%s4409_s17 + $0x2ec] sm:$0xf0] }
 0x1aa   : > { %vm2441_vm1 = vcmp.ge.f32.partialorder %v2303_v63, 0.0  ;;  %v2505_v4 = vmul.f32 0.2, %v2303_v63 }
 0x1ab   : > { %v1966_v26 = vpop.f32.mrf.mxu2 }
 0x1ac   : > { %v2569_v62 = vsel %vm2441_vm1, %v2303_v63, %v2505_v4  ;;  %v1967_v61 = vadd.f32 %v1966_v26, %v1798_v37  ;;  %v2135_v48 = vpop.f32.mrf.mxu3  ;;  %v3447_v63 = vld [vmem:[%s4409_s17 + $0x2c4] sm:$0xf0] }
 0x1ad   : > { %v2633_v57 = vpack.c.bf16 %v2569_v62, %v2569_v62  ;;  %v1800_v45 = vpop.f32.mrf.mxu1 }
 0x1ae   : > { %v2136_v17 = vadd.f32 %v2135_v48, %v1967_v61  ;;  %v1801_v49 = vadd.f32 %v1800_v45, %v1632_v53  ;;  %v3450_v61 = vor.u32 %v4014_v56, %v3447_v63  ;;  %v3454_v48 = vor.u32 %v4017_v24, %v3453_v51 }
 0x1af   : > { %v2307_v33 = vpop.f32.mrf.mxu0  ;;  %2698 = vst.msk [vmem:[%s4789_s12 + $0x38] sm:$0xf] %vm2683_vm2, %v2633_v57  ;;  %v1637_v57 = vadd.f32 %v4773_v31, %v4595_v34 }
 0x1b0   : > { %v2305_v29 = vadd.f32 %v2304_v21, %v2136_v17  ;;  %1839 = vmatmul.bf16.gmra.mxu1 %v3422_v0  ;;  %2008 = vmatmul.bf16.gmra.mxu2 %v3426_v59  ;;  %v3445_v21 = vld [vmem:[%s4409_s17 + $0x2b0] sm:$0xf] }
 0x1b1   : > { %2177 = vmatmul.bf16.gmra.mxu3 %v3430_v23  ;;  %v3446_v26 = vor.u32 %v4016_v19, %v3445_v21  ;;  %v4022_v21 = vld [vmem:[%s4409_s17 + $0x2f0] sm:$0xf0] }
 0x1b2   : > { %3895 = vmatmul.msk.bf16.gmra.mxu0 %vm1485_vm0, %v3434_v8  ;;  %vm2442_vm3 = vcmp.ge.f32.partialorder %v2305_v29, 0.0  ;;  %v2506_v39 = vmul.f32 0.2, %v2305_v29 }
 0x1b3   : > { %v1969_v3 = vpop.f32.mrf.mxu2 }
 0x1b4   : > { %v2570_v7 = vsel %vm2442_vm3, %v2305_v29, %v2506_v39  ;;  %v1970_v14 = vadd.f32 %v1969_v3, %v1801_v49  ;;  %v2138_v13 = vpop.f32.mrf.mxu3 }
 0x1b5   : > { %v2634_v42 = vpack.c.bf16 %v2570_v7, %v2570_v7  ;;  %v1802_v16 = vpop.f32.mrf.mxu1  ;;  %v4018_v7 = vld [vmem:[%s4409_s17 + $0x2d4] sm:$0xf] }
 0x1b6   : > { %v2139_v46 = vadd.f32 %v2138_v13, %v1970_v14  ;;  %v1803_v1 = vadd.f32 %v1802_v16, %v1634_v55  ;;  %v1639_v14 = vadd.f32 %v4773_v31, %v4604_v40  ;;  %v3465_v16 = vld [vmem:[%s4409_s17 + $0x2d8] sm:$0xf]  ;;  %v3473_v55 = vld [vmem:[%s4409_s17 + $0x2e0] sm:$0xf] }
 0x1b7   : > { %v2309_v36 = vpop.f32.mrf.mxu0  ;;  %2699 = vst.msk [vmem:[%s4789_s12 + $0x3c] sm:$0xf] %vm2683_vm2, %v2634_v42  ;;  %v3459_v42 = vld [vmem:[%s4409_s17 + $0x2e4] sm:$0xf0] }
 0x1b8   : > { %v2308_v9 = vadd.f32 %v2307_v33, %v2139_v46  ;;  %v4021_v46 = vld [vmem:[%s4409_s17 + $0x2e8] sm:$0xf0] }
 0x1ba   : > { %vm2443_vm4 = vcmp.ge.f32.partialorder %v2308_v9, 0.0  ;;  %v2507_v12 = vmul.f32 0.2, %v2308_v9 }
 0x1bb   : > { %v1971_v41 = vpop.f32.mrf.mxu2 }
 0x1bc   : > { %v2571_v35 = vsel %vm2443_vm4, %v2308_v9, %v2507_v12  ;;  %v1972_v4 = vadd.f32 %v1971_v41, %v1803_v1  ;;  %v2140_v37 = vpop.f32.mrf.mxu3  ;;  %v3462_v12 = vor.u32 %v4018_v7, %v3459_v42  ;;  %v3466_v1 = vor.u32 %v4021_v46, %v3465_v16 }
 0x1bd   : > { %v2635_v62 = vpack.c.bf16 %v2571_v35, %v2571_v35  ;;  %v1805_v20 = vpop.f32.mrf.mxu1  ;;  %v3474_v35 = vor.u32 %v4022_v21, %v3473_v55 }
 0x1be   : > { %v2141_v0 = vadd.f32 %v2140_v37, %v1972_v4  ;;  %v1806_v8 = vadd.f32 %v1805_v20, %v1637_v57 }
 0x1bf   : > { %v2312_v59 = vpop.f32.mrf.mxu0  ;;  %2700 = vst.msk [vmem:[%s4789_s12 + $0x40] sm:$0xf] %vm2683_vm2, %v2635_v62 }
 0x1c0   : > { %v2310_v45 = vadd.f32 %v2309_v36, %v2141_v0  ;;  %1844 = vmatmul.bf16.gmra.mxu1 %v3442_v5  ;;  %2013 = vmatmul.bf16.gmra.mxu2 %v3446_v26  ;;  %v4019_v36 = vld [vmem:[%s4409_s17 + $0x2dc] sm:$0xf]  ;;  %v1642_v5 = vadd.f32 %v4773_v31, %v4620_v54 }
 0x1c1   : > { %2182 = vmatmul.bf16.gmra.mxu3 %v3450_v61  ;;  %v3470_v41 = vor.u32 %v4019_v36, %v3467_v47 }
 0x1c2   : > { %3896 = vmatmul.msk.bf16.gmra.mxu0 %vm1485_vm0, %v3454_v48  ;;  %vm2444_vm5 = vcmp.ge.f32.partialorder %v2310_v45, 0.0  ;;  %v2508_v23 = vmul.f32 0.2, %v2310_v45 }
 0x1c3   : > { %v1974_v17 = vpop.f32.mrf.mxu2 }
 0x1c4   : > { %v2572_v33 = vsel %vm2444_vm5, %v2310_v45, %v2508_v23  ;;  %v1975_v34 = vadd.f32 %v1974_v17, %v1806_v8  ;;  %v2143_v53 = vpop.f32.mrf.mxu3  ;;  %v4023_v8 = vld [vmem:[%s4409_s17 + $0x2fc] sm:$0xf]  ;;  %v1644_v17 = vadd.f32 %v4773_v31, %v4629_v60 }
 0x1c5   : > { %v2636_v29 = vpack.c.bf16 %v2572_v33, %v2572_v33  ;;  %v1807_v39 = vpop.f32.mrf.mxu1 }
 0x1c6   : > { %v2144_v49 = vadd.f32 %v2143_v53, %v1975_v34  ;;  %v1808_v25 = vadd.f32 %v1807_v39, %v1639_v14  ;;  %v3479_v34 = vld [vmem:[%s4409_s17 + $0x30c] sm:$0xf0]  ;;  %v3485_v53 = vld [vmem:[%s4409_s17 + $0x300] sm:$0xf]  ;;  %v4024_v39 = vld [vmem:[%s4409_s17 + $0x304] sm:$0xf] }
 0x1c7   : > { %v2314_v3 = vpop.f32.mrf.mxu0  ;;  %2701 = vst.msk [vmem:[%s4789_s12 + $0x44] sm:$0xf] %vm2683_vm2, %v2636_v29  ;;  %v4026_v29 = vld [vmem:[%s4409_s17 + $0x310] sm:$0xf0]  ;;  %v3482_v47 = vor.u32 %v4023_v8, %v3479_v34  ;;  %v4032_v8 = vld [vmem:[%s4409_s17 + $0x340] sm:$0xf0] }
 0x1c8   : > { %v2313_v13 = vadd.f32 %v2312_v59, %v2144_v49  ;;  %v3487_v49 = vld [vmem:[%s4409_s17 + $0x314] sm:$0xf0]  ;;  %v3486_v55 = vor.u32 %v4026_v29, %v3485_v53 }
 0x1ca   : > { %vm2445_vm6 = vcmp.ge.f32.partialorder %v2313_v13, 0.0  ;;  %v2509_v9 = vmul.f32 0.2, %v2313_v13 }
 0x1cb   : > { %v1976_v19 = vpop.f32.mrf.mxu2 }
 0x1cc   : > { %v2573_v56 = vsel %vm2445_vm6, %v2313_v13, %v2509_v9  ;;  %v1977_v63 = vadd.f32 %v1976_v19, %v1808_v25  ;;  %v2145_v51 = vpop.f32.mrf.mxu3  ;;  %v4027_v13 = vld [vmem:[%s4409_s17 + $0x318] sm:$0xf0]  ;;  %v3490_v25 = vor.u32 %v4024_v39, %v3487_v49 }
 0x1cd   : > { %v2637_v24 = vpack.c.bf16 %v2573_v56, %v2573_v56  ;;  %v1810_v40 = vpop.f32.mrf.mxu1 }
 0x1ce   : > { %v2146_v4 = vadd.f32 %v2145_v51, %v1977_v63  ;;  %v1811_v20 = vadd.f32 %v1810_v40, %v1642_v5  ;;  %v1647_v63 = vadd.f32 %v4773_v31, %v4645_v10 }
 0x1cf   : > { %v2317_v37 = vpop.f32.mrf.mxu0  ;;  %2702 = vst.msk [vmem:[%s4789_s12 + $0x48] sm:$0xf] %vm2683_vm2, %v2637_v24 }
 0x1d0   : > { %v2315_v26 = vadd.f32 %v2314_v3, %v2146_v4  ;;  %1849 = vmatmul.bf16.gmra.mxu1 %v3462_v12  ;;  %2018 = vmatmul.bf16.gmra.mxu2 %v3466_v1  ;;  %v3493_v3 = vld [vmem:[%s4409_s17 + $0x308] sm:$0xf] }
 0x1d1   : > { %2187 = vmatmul.bf16.gmra.mxu3 %v3470_v41  ;;  %v3494_v21 = vor.u32 %v4027_v13, %v3493_v3  ;;  %v4983_v13 = vld [vmem:[%s5396_s2] ss:$0 sm:$0xff] }
 0x1d2   : > { %3897 = vmatmul.msk.bf16.gmra.mxu0 %vm1485_vm0, %v3474_v35  ;;  %vm2446_vm7 = vcmp.ge.f32.partialorder %v2315_v26, 0.0  ;;  %v2510_v62 = vmul.f32 0.2, %v2315_v26 }
 0x1d3   : > { %v1979_v61 = vpop.f32.mrf.mxu2 }
 0x1d4   : > { %v2574_v48 = vsel %vm2446_vm7, %v2315_v26, %v2510_v62  ;;  %v1980_v54 = vadd.f32 %v1979_v61, %v1811_v20  ;;  %v2148_v0 = vpop.f32.mrf.mxu3  ;;  %v4028_v26 = vld [vmem:[%s4409_s17 + $0x324] sm:$0xf]  ;;  %v1649_v62 = vadd.f32 %v4773_v31, %v4654_v22  ;;  %v3499_v61 = vld [vmem:[%s4409_s17 + $0x334] sm:$0xf0] }
 0x1d5   : > { %v2638_v59 = vpack.c.bf16 %v2574_v48, %v2574_v48  ;;  %v1812_v57 = vpop.f32.mrf.mxu1  ;;  %v3505_v48 = vld [vmem:[%s4409_s17 + $0x328] sm:$0xf]  ;;  %v3502_v29 = vor.u32 %v4028_v26, %v3499_v61 }
 0x1d6   : > { %v2149_v45 = vadd.f32 %v2148_v0, %v1980_v54  ;;  %v1813_v14 = vadd.f32 %v1812_v57, %v1644_v17  ;;  %v4031_v54 = vld [vmem:[%s4409_s17 + $0x338] sm:$0xf0]  ;;  %v4029_v0 = vld [vmem:[%s4409_s17 + $0x32c] sm:$0xf]  ;;  %v3513_v57 = vld [vmem:[%s4409_s17 + $0x330] sm:$0xf] }
 0x1d7   : > { %v2319_v23 = vpop.f32.mrf.mxu0  ;;  %2703 = vst.msk [vmem:[%s4789_s12 + $0x4c] sm:$0xf] %vm2683_vm2, %v2638_v59  ;;  %v3507_v59 = vld [vmem:[%s4409_s17 + $0x33c] sm:$0xf0]  ;;  %v3506_v39 = vor.u32 %v4031_v54, %v3505_v48  ;;  %v3514_v3 = vor.u32 %v4032_v8, %v3513_v57 }
 0x1d8   : > { %v2318_v33 = vadd.f32 %v2317_v37, %v2149_v45  ;;  %v3510_v22 = vor.u32 %v4029_v0, %v3507_v59 }
 0x1da   : > { %vm2447_vm8 = vcmp.ge.f32.partialorder %v2318_v33, 0.0  ;;  %v2511_v7 = vmul.f32 0.2, %v2318_v33 }
 0x1db   : > { %v1981_v42 = vpop.f32.mrf.mxu2 }
 0x1dc   : > { %v2575_v16 = vsel %vm2447_vm8, %v2318_v33, %v2511_v7  ;;  %v1982_v46 = vadd.f32 %v1981_v42, %v1813_v14  ;;  %v2150_v36 = vpop.f32.mrf.mxu3  ;;  %v1652_v42 = vadd.f32 %v4983_v13, %v4670_v44 }
 0x1dd   : > { %v2639_v9 = vpack.c.bf16 %v2575_v16, %v2575_v16  ;;  %v1815_v60 = vpop.f32.mrf.mxu1 }
 0x1de   : > { %v2151_v19 = vadd.f32 %v2150_v36, %v1982_v46  ;;  %v1816_v1 = vadd.f32 %v1815_v60, %v1647_v63  ;;  %v1654_v63 = vadd.f32 %v4983_v13, %v4679_v52 }
 0x1df   : > { %v2322_v56 = vpop.f32.mrf.mxu0  ;;  %2704 = vst.msk [vmem:[%s4789_s12 + $0x50] sm:$0xf] %vm2683_vm2, %v2639_v9 }
 0x1e0   : > { %v2320_v51 = vadd.f32 %v2319_v23, %v2151_v19  ;;  %1854 = vmatmul.bf16.gmra.mxu1 %v3482_v47  ;;  %2023 = vmatmul.bf16.gmra.mxu2 %v3486_v55 }
 0x1e1   : > { %2192 = vmatmul.bf16.gmra.mxu3 %v3490_v25 }
 0x1e2   : > { %3898 = vmatmul.msk.bf16.gmra.mxu0 %vm1485_vm0, %v3494_v21  ;;  %vm2448_vm9 = vcmp.ge.f32.partialorder %v2320_v51, 0.0  ;;  %v2512_v12 = vmul.f32 0.2, %v2320_v51 }
 0x1e3   : > { %v1984_v24 = vpop.f32.mrf.mxu2 }
 0x1e4   : > { %v2576_v40 = vsel %vm2448_vm9, %v2320_v51, %v2512_v12  ;;  %v1985_v10 = vadd.f32 %v1984_v24, %v1816_v1  ;;  %v2153_v41 = vpop.f32.mrf.mxu3  ;;  %v3519_v12 = vld [vmem:[%s4409_s17 + $0x35c] sm:$0xf0]  ;;  %v3525_v1 = vld [vmem:[%s4409_s17 + $0x350] sm:$0xf]  ;;  %v4036_v24 = vld [vmem:[%s4409_s17 + $0x360] sm:$0xf0] }
 0x1e5   : > { %v2640_v35 = vpack.c.bf16 %v2576_v40, %v2576_v40  ;;  %v1817_v4 = vpop.f32.mrf.mxu1  ;;  %v4034_v40 = vld [vmem:[%s4409_s17 + $0x354] sm:$0xf]  ;;  %v3526_v48 = vor.u32 %v4036_v24, %v3525_v1 }
 0x1e6   : > { %v2154_v37 = vadd.f32 %v2153_v41, %v1985_v10  ;;  %v1818_v23 = vadd.f32 %v1817_v4, %v1649_v62  ;;  %v3527_v10 = vld [vmem:[%s4409_s17 + $0x364] sm:$0xf0]  ;;  %v3533_v41 = vld [vmem:[%s4409_s17 + $0x358] sm:$0xf] }
 0x1e7   : > { %v2324_v5 = vpop.f32.mrf.mxu0  ;;  %2705 = vst.msk [vmem:[%s4789_s12 + $0x54] sm:$0xf] %vm2683_vm2, %v2640_v35  ;;  %v3530_v0 = vor.u32 %v4034_v40, %v3527_v10 }
 0x1e8   : > { %v2323_v20 = vadd.f32 %v2322_v56, %v2154_v37  ;;  %v4033_v56 = vld [vmem:[%s4409_s17 + $0x34c] sm:$0xf] }
 0x1e9   : > { %v4037_v37 = vld [vmem:[%s4409_s17 + $0x368] sm:$0xf0]  ;;  %v3522_v61 = vor.u32 %v4033_v56, %v3519_v12 }
 0x1ea   : > { %vm2449_vm10 = vcmp.ge.f32.partialorder %v2323_v20, 0.0  ;;  %v2513_v45 = vmul.f32 0.2, %v2323_v20  ;;  %v3534_v59 = vor.u32 %v4037_v37, %v3533_v41  ;;  %v1662_v41 = vadd.f32 %v4983_v13, %v4720_v2 }
 0x1eb   : > { %v1986_v17 = vpop.f32.mrf.mxu2 }
 0x1ec   : > { %v2577_v33 = vsel %vm2449_vm10, %v2323_v20, %v2513_v45  ;;  %v1987_v34 = vadd.f32 %v1986_v17, %v1818_v23  ;;  %v2155_v53 = vpop.f32.mrf.mxu3  ;;  %v1657_v23 = vadd.f32 %v4983_v13, %v4695_v11 }
 0x1ed   : > { %v2641_v49 = vpack.c.bf16 %v2577_v33, %v2577_v33  ;;  %v1820_v31 = vpop.f32.mrf.mxu1 }
 0x1ee   : > { %v2156_v7 = vadd.f32 %v2155_v53, %v1987_v34  ;;  %v1821_v36 = vadd.f32 %v1820_v31, %v1652_v42  ;;  %v3539_v42 = vld [vmem:[%s4409_s17 + $0x384] sm:$0xf0] }
 0x1ef   : > { %v2327_v14 = vpop.f32.mrf.mxu0  ;;  %2706 = vst.msk [vmem:[%s4789_s12 + $0x58] sm:$0xf] %vm2683_vm2, %v2641_v49 }
 0x1f0   : > { %v2325_v16 = vadd.f32 %v2324_v5, %v2156_v7  ;;  %1859 = vmatmul.bf16.gmra.mxu1 %v3502_v29  ;;  %2028 = vmatmul.bf16.gmra.mxu2 %v3506_v39  ;;  %v1659_v7 = vadd.f32 %v4983_v13, %v4704_v28 }
 0x1f1   : > { %2197 = vmatmul.bf16.gmra.mxu3 %v3510_v22 }
 0x1f2   : > { %3899 = vmatmul.msk.bf16.gmra.mxu0 %vm1485_vm0, %v3514_v3  ;;  %vm2450_vm11 = vcmp.ge.f32.partialorder %v2325_v16, 0.0  ;;  %v2514_v46 = vmul.f32 0.2, %v2325_v16  ;;  %v4038_v3 = vld [vmem:[%s4409_s17 + $0x374] sm:$0xf] }
 0x1f3   : > { %v1989_v47 = vpop.f32.mrf.mxu2 }
 0x1f4   : > { %v2578_v55 = vsel %vm2450_vm11, %v2325_v16, %v2514_v46  ;;  %v1990_v44 = vadd.f32 %v1989_v47, %v1821_v36  ;;  %v2158_v9 = vpop.f32.mrf.mxu3  ;;  %v3545_v16 = vld [vmem:[%s4409_s17 + $0x378] sm:$0xf]  ;;  %v4041_v46 = vld [vmem:[%s4409_s17 + $0x388] sm:$0xf0]  ;;  %v4039_v36 = vld [vmem:[%s4409_s17 + $0x37c] sm:$0xf] }
 0x1f5   : > { %v2642_v60 = vpack.c.bf16 %v2578_v55, %v2578_v55  ;;  %v1822_v25 = vpop.f32.mrf.mxu1  ;;  %v3547_v47 = vld [vmem:[%s4409_s17 + $0x38c] sm:$0xf0]  ;;  %v3553_v55 = vld [vmem:[%s4409_s17 + $0x380] sm:$0xf] }
 0x1f6   : > { %v2159_v21 = vadd.f32 %v2158_v9, %v1990_v44  ;;  %v1823_v4 = vadd.f32 %v1822_v25, %v1654_v63  ;;  %v3542_v63 = vor.u32 %v4038_v3, %v3539_v42  ;;  %v3550_v1 = vor.u32 %v4039_v36, %v3547_v47 }
 0x1f7   : > { %v2329_v19 = vpop.f32.mrf.mxu0  ;;  %2707 = vst.msk [vmem:[%s4789_s12 + $0x5c] sm:$0xf] %vm2683_vm2, %v2642_v60  ;;  %v4042_v60 = vld [vmem:[%s4409_s17 + $0x390] sm:$0xf0]  ;;  %v1667_v36 = vadd.f32 %v4983_v13, %v4745_v27 }
 0x1f8   : > { %v2328_v51 = vadd.f32 %v2327_v14, %v2159_v21  ;;  %v3554_v24 = vor.u32 %v4042_v60, %v3553_v55 }
 0x1fa   : > { %vm2451_vm12 = vcmp.ge.f32.partialorder %v2328_v51, 0.0  ;;  %v2515_v35 = vmul.f32 0.2, %v2328_v51 }
 0x1fb   : > { %v1991_v5 = vpop.f32.mrf.mxu2 }
 0x1fc   : > { %v2579_v26 = vsel %vm2451_vm12, %v2328_v51, %v2515_v35  ;;  %v1992_v62 = vadd.f32 %v1991_v5, %v1823_v4  ;;  %v2160_v20 = vpop.f32.mrf.mxu3  ;;  %v3546_v51 = vor.u32 %v4041_v46, %v3545_v16 }
 0x1fd   : > { %v2643_v54 = vpack.c.bf16 %v2579_v26, %v2579_v26  ;;  %v1825_v52 = vpop.f32.mrf.mxu1 }
 0x1fe   : > { %v2161_v57 = vadd.f32 %v2160_v20, %v1992_v62  ;;  %v1826_v33 = vadd.f32 %v1825_v52, %v1657_v23  ;;  %v4043_v52 = vld [vmem:[%s4409_s17 + $0x39c] sm:$0xf]  ;;  %v4046_v23 = vld [vmem:[%s4409_s17 + $0x3b0] sm:$0xf0] }
 0x1ff   : > { %v2332_v45 = vpop.f32.mrf.mxu0  ;;  %2708 = vst.msk [vmem:[%s4789_s12 + $0x60] sm:$0xf] %vm2683_vm2, %v2643_v54 }
 0x200   : > { %v2330_v8 = vadd.f32 %v2329_v19, %v2161_v57  ;;  %1864 = vmatmul.bf16.gmra.mxu1 %v3522_v61  ;;  %2033 = vmatmul.bf16.gmra.mxu2 %v3526_v48  ;;  %v3559_v57 = vld [vmem:[%s4409_s17 + $0x3ac] sm:$0xf0] }
 0x201   : > { %2202 = vmatmul.bf16.gmra.mxu3 %v3530_v0  ;;  %v1664_v0 = vadd.f32 %v4983_v13, %v4729_v32 }
 0x202   : > { %3900 = vmatmul.msk.bf16.gmra.mxu0 %vm1485_vm0, %v3534_v59  ;;  %vm2452_vm13 = vcmp.ge.f32.partialorder %v2330_v8, 0.0  ;;  %v2516_v17 = vmul.f32 0.2, %v2330_v8 }
 0x203   : > { %v1994_v34 = vpop.f32.mrf.mxu2 }
 0x204   : > { %v2580_v53 = vsel %vm2452_vm13, %v2330_v8, %v2516_v17  ;;  %v1995_v11 = vadd.f32 %v1994_v34, %v1826_v33  ;;  %v2163_v29 = vpop.f32.mrf.mxu3  ;;  %v4044_v8 = vld [vmem:[%s4409_s17 + $0x3a4] sm:$0xf]  ;;  %v3567_v17 = vld [vmem:[%s4409_s17 + $0x3b4] sm:$0xf0]  ;;  %v3573_v33 = vld [vmem:[%s4409_s17 + $0x3a8] sm:$0xf] }
 0x205   : > { %v2644_v39 = vpack.c.bf16 %v2580_v53, %v2580_v53  ;;  %v1827_v49 = vpop.f32.mrf.mxu1 }
 0x206   : > { %v2164_v31 = vadd.f32 %v2163_v29, %v1995_v11  ;;  %v1828_v9 = vadd.f32 %v1827_v49, %v1659_v7  ;;  %v4047_v11 = vld [vmem:[%s4409_s17 + $0x3b8] sm:$0xf0] }
 0x207   : > { %v2334_v22 = vpop.f32.mrf.mxu0  ;;  %2709 = vst.msk [vmem:[%s4789_s12 + $0x64] sm:$0xf] %vm2683_vm2, %v2644_v39  ;;  %v3574_v42 = vor.u32 %v4047_v11, %v3573_v33 }
 0x208   : > { %v2333_v14 = vadd.f32 %v2332_v45, %v2164_v31  ;;  %v3565_v45 = vld [vmem:[%s4409_s17 + $0x3a0] sm:$0xf] }
 0x209   : > { %v3566_v3 = vor.u32 %v4046_v23, %v3565_v45  ;;  %v1672_v45 = vadd.f32 %v4983_v13, %v4575_v18 }
 0x20a   : > { %vm2453_vm14 = vcmp.ge.f32.partialorder %v2333_v14, 0.0  ;;  %v2517_v44 = vmul.f32 0.2, %v2333_v14 }
 0x20b   : > { %v1996_v25 = vpop.f32.mrf.mxu2 }
 0x20c   : > { %v2581_v21 = vsel %vm2453_vm14, %v2333_v14, %v2517_v44  ;;  %v1997_v19 = vadd.f32 %v1996_v25, %v1828_v9  ;;  %v2165_v56 = vpop.f32.mrf.mxu3  ;;  %v3570_v14 = vor.u32 %v4044_v8, %v3567_v17 }
 0x20d   : > { %v2645_v12 = vpack.c.bf16 %v2581_v21, %v2581_v21  ;;  %v1830_v28 = vpop.f32.mrf.mxu1 }
 0x20e   : > { %v2166_v40 = vadd.f32 %v2165_v56, %v1997_v19  ;;  %v1831_v37 = vadd.f32 %v1830_v28, %v1662_v41  ;;  %v3587_v41 = vld [vmem:[%s4409_s17 + $0x3dc] sm:$0xf0] }
 0x20f   : > { %v2337_v10 = vpop.f32.mrf.mxu0  ;;  %2710 = vst.msk [vmem:[%s4789_s12 + $0x68] sm:$0xf] %vm2683_vm2, %v2645_v12  ;;  %v1669_v12 = vadd.f32 %v4983_v13, %v4754_v43 }
 0x210   : > { %v2335_v35 = vadd.f32 %v2334_v22, %v2166_v40  ;;  %1869 = vmatmul.bf16.gmra.mxu1 %v3542_v63  ;;  %2038 = vmatmul.bf16.gmra.mxu2 %v3546_v51  ;;  %v3562_v22 = vor.u32 %v4043_v52, %v3559_v57  ;;  %v4048_v51 = vld [vmem:[%s4409_s17 + $0x3c4] sm:$0xf]  ;;  %v4051_v40 = vld [vmem:[%s4409_s17 + $0x3d8] sm:$0xf0] }
 0x211   : > { %2207 = vmatmul.bf16.gmra.mxu3 %v3550_v1  ;;  %v3579_v1 = vld [vmem:[%s4409_s17 + $0x3d4] sm:$0xf0] }
 0x212   : > { %3901 = vmatmul.msk.bf16.gmra.mxu0 %vm1485_vm0, %v3554_v24  ;;  %vm2454_vm15 = vcmp.ge.f32.partialorder %v2335_v35, 0.0  ;;  %v2518_v4 = vmul.f32 0.2, %v2335_v35  ;;  %v3585_v24 = vld [vmem:[%s4409_s17 + $0x3c8] sm:$0xf] }
 0x213   : > { %v1999_v5 = vpop.f32.mrf.mxu2 }
 0x214   : > { %v2582_v26 = vsel %vm2454_vm15, %v2335_v35, %v2518_v4  ;;  %v2000_v2 = vadd.f32 %v1999_v5, %v1831_v37  ;;  %v2168_v62 = vpop.f32.mrf.mxu3  ;;  %v3593_v35 = vld [vmem:[%s4409_s17 + $0x3d0] sm:$0xf]  ;;  %v4052_v5 = vld [vmem:[%s4409_s17 + $0x3e0] sm:$0xf0] }
 0x215   : > { %v2646_v20 = vpack.c.bf16 %v2582_v26, %v2582_v26  ;;  %v1832_v61 = vpop.f32.mrf.mxu1 }
 0x216   : > { %v2169_v48 = vadd.f32 %v2168_v62, %v2000_v2  ;;  %v1833_v53 = vadd.f32 %v1832_v61, %v1664_v0  ;;  %v3582_v61 = vor.u32 %v4048_v51, %v3579_v1  ;;  %v3594_v0 = vor.u32 %v4052_v5, %v3593_v35 }
 0x217   : > { %v2339_v54 = vpop.f32.mrf.mxu0  ;;  %2711 = vst.msk [vmem:[%s4789_s12 + $0x6c] sm:$0xf] %vm2683_vm2, %v2646_v20 }
 0x218   : > { %v2338_v59 = vadd.f32 %v2337_v10, %v2169_v48  ;;  %v4049_v10 = vld [vmem:[%s4409_s17 + $0x3cc] sm:$0xf]  ;;  %v3586_v48 = vor.u32 %v4051_v40, %v3585_v24 }
 0x219   : > { %v3590_v52 = vor.u32 %v4049_v10, %v3587_v41 }
 0x21a   : > { %vm2455_vm1 = vcmp.ge.f32.partialorder %v2338_v59, 0.0  ;;  %v2519_v34 = vmul.f32 0.2, %v2338_v59 }
 0x21b   : > { %v2001_v29 = vpop.f32.mrf.mxu2 }
 0x21c   : > { %v2583_v39 = vsel %vm2455_vm1, %v2338_v59, %v2519_v34  ;;  %v2002_v49 = vadd.f32 %v2001_v29, %v1833_v53  ;;  %v2170_v31 = vpop.f32.mrf.mxu3 }
 0x21d   : > { %v2647_v7 = vpack.c.bf16 %v2583_v39, %v2583_v39  ;;  %v1835_v32 = vpop.f32.mrf.mxu1 }
 0x21e   : > { %v2171_v16 = vadd.f32 %v2170_v31, %v2002_v49  ;;  %v1836_v44 = vadd.f32 %v1835_v32, %v1667_v36  ;;  %v4053_v31 = vld [vmem:[%s4409_s17 + $0x3ec] sm:$0xf]  ;;  %v3605_v32 = vld [vmem:[%s4409_s17 + $0x3f0] sm:$0xf] }
 0x21f   : > { %v2342_v46 = vpop.f32.mrf.mxu0  ;;  %2712 = vst.msk [vmem:[%s4789_s12 + $0x70] sm:$0xf] %vm2683_vm2, %v2647_v7  ;;  %v3599_v7 = vld [vmem:[%s4409_s17 + $0x3fc] sm:$0xf0] }
 0x220   : > { %v2340_v47 = vadd.f32 %v2339_v54, %v2171_v16  ;;  %1874 = vmatmul.bf16.gmra.mxu1 %v3562_v22  ;;  %2043 = vmatmul.bf16.gmra.mxu2 %v3566_v3  ;;  %v1674_v22 = vadd.f32 %v4983_v13, %v4591_v30  ;;  %v3607_v16 = vld [vmem:[%s4409_s17 + $0x404] sm:$0xf0] }
 0x221   : > { %2212 = vmatmul.bf16.gmra.mxu3 %v3570_v14  ;;  %v4056_v14 = vld [vmem:[%s4409_s17 + $0x400] sm:$0xf0] }
 0x222   : > { %3902 = vmatmul.msk.bf16.gmra.mxu0 %vm1485_vm0, %v3574_v42  ;;  %vm2456_vm3 = vcmp.ge.f32.partialorder %v2340_v47, 0.0  ;;  %v2520_v55 = vmul.f32 0.2, %v2340_v47  ;;  %v4054_v42 = vld [vmem:[%s4409_s17 + $0x3f4] sm:$0xf] }
 0x223   : > { %v2004_v9 = vpop.f32.mrf.mxu2 }
 0x224   : > { %v2584_v60 = vsel %vm2456_vm3, %v2340_v47, %v2520_v55  ;;  %v2005_v27 = vadd.f32 %v2004_v9, %v1836_v44  ;;  %v2173_v25 = vpop.f32.mrf.mxu3  ;;  %v4057_v55 = vld [vmem:[%s4409_s17 + $0x408] sm:$0xf0] }
 0x225   : > { %v2648_v21 = vpack.c.bf16 %v2584_v60, %v2584_v60  ;;  %v1837_v19 = vpop.f32.mrf.mxu1 }
 0x226   : > { %v2174_v56 = vadd.f32 %v2173_v25, %v2005_v27  ;;  %v1838_v37 = vadd.f32 %v1837_v19, %v1669_v12  ;;  %v3602_v25 = vor.u32 %v4053_v31, %v3599_v7  ;;  %v1682_v31 = vadd.f32 %v4983_v13, %v4625_v58 }
 0x227   : > { %v2344_v63 = vpop.f32.mrf.mxu0  ;;  %2713 = vst.msk [vmem:[%s4789_s12 + $0x74] sm:$0xf] %vm2683_vm2, %v2648_v21  ;;  %v3606_v21 = vor.u32 %v4056_v14, %v3605_v32 }
 0x228   : > { %v2343_v28 = vadd.f32 %v2342_v46, %v2174_v56  ;;  %v3613_v46 = vld [vmem:[%s4409_s17 + $0x3f8] sm:$0xf]  ;;  %v3610_v56 = vor.u32 %v4054_v42, %v3607_v16 }
 0x22a   : > { %vm2457_vm4 = vcmp.ge.f32.partialorder %v2343_v28, 0.0  ;;  %v2521_v4 = vmul.f32 0.2, %v2343_v28 }
 0x22b   : > { %v2006_v26 = vpop.f32.mrf.mxu2 }
 0x22c   : > { %v2585_v2 = vsel %vm2457_vm4, %v2343_v28, %v2521_v4  ;;  %v2007_v62 = vadd.f32 %v2006_v26, %v1838_v37  ;;  %v2175_v20 = vpop.f32.mrf.mxu3  ;;  %v1677_v28 = vadd.f32 %v4983_v13, %v4600_v38 }
 0x22d   : > { %v2649_v54 = vpack.c.bf16 %v2585_v2, %v2585_v2  ;;  %v1840_v43 = vpop.f32.mrf.mxu1  ;;  %v4058_v2 = vld [vmem:[%s4409_s17 + $0x414] sm:$0xf] }
 0x22e   : > { %v2176_v59 = vadd.f32 %v2175_v20, %v2007_v62  ;;  %v1841_v17 = vadd.f32 %v1840_v43, %v1672_v45  ;;  %v1679_v62 = vadd.f32 %v4983_v13, %v4616_v50  ;;  %v4059_v43 = vld [vmem:[%s4409_s17 + $0x41c] sm:$0xf]  ;;  %v4062_v45 = vld [vmem:[%s4409_s17 + $0x430] sm:$0xf0] }
 0x22f   : > { %v2347_v57 = vpop.f32.mrf.mxu0  ;;  %2714 = vst.msk [vmem:[%s4789_s12 + $0x78] sm:$0xf] %vm2683_vm2, %v2649_v54  ;;  %v4061_v54 = vld [vmem:[%s4409_s17 + $0x428] sm:$0xf0] }
 0x230   : > { %v2345_v23 = vadd.f32 %v2344_v63, %v2176_v59  ;;  %1879 = vmatmul.bf16.gmra.mxu1 %v3582_v61  ;;  %2048 = vmatmul.bf16.gmra.mxu2 %v3586_v48  ;;  %v3614_v63 = vor.u32 %v4057_v55, %v3613_v46  ;;  %v3619_v61 = vld [vmem:[%s4409_s17 + $0x424] sm:$0xf0]  ;;  %v3625_v48 = vld [vmem:[%s4409_s17 + $0x418] sm:$0xf]  ;;  %v4063_v55 = vld [vmem:[%s4409_s17 + $0x43c] sm:$0xf] }
 0x231   : > { %2217 = vmatmul.bf16.gmra.mxu3 %v3590_v52  ;;  %v3627_v52 = vld [vmem:[%s4409_s17 + $0x42c] sm:$0xf0] }
 0x232   : > { %3903 = vmatmul.msk.bf16.gmra.mxu0 %vm1485_vm0, %v3594_v0  ;;  %vm2458_vm5 = vcmp.ge.f32.partialorder %v2345_v23, 0.0  ;;  %v2522_v8 = vmul.f32 0.2, %v2345_v23  ;;  %v3633_v0 = vld [vmem:[%s4409_s17 + $0x420] sm:$0xf] }
 0x233   : > { %v2009_v33 = vpop.f32.mrf.mxu2 }
 0x234   : > { %v2586_v34 = vsel %vm2458_vm5, %v2345_v23, %v2522_v8  ;;  %v2010_v18 = vadd.f32 %v2009_v33, %v1841_v17  ;;  %v2178_v53 = vpop.f32.mrf.mxu3 }
 0x235   : > { %v2650_v11 = vpack.c.bf16 %v2586_v34, %v2586_v34  ;;  %v1842_v29 = vpop.f32.mrf.mxu1  ;;  %v3622_v34 = vor.u32 %v4058_v2, %v3619_v61 }
 0x236   : > { %v2179_v39 = vadd.f32 %v2178_v53, %v2010_v18  ;;  %v1843_v47 = vadd.f32 %v1842_v29, %v1674_v22  ;;  %v3626_v18 = vor.u32 %v4061_v54, %v3625_v48  ;;  %v3634_v29 = vor.u32 %v4062_v45, %v3633_v0 }
 0x237   : > { %v2349_v49 = vpop.f32.mrf.mxu0  ;;  %2715 = vst.msk [vmem:[%s4789_s12 + $0x7c] sm:$0xf] %vm2683_vm2, %v2650_v11  ;;  %v3630_v11 = vor.u32 %v4059_v43, %v3627_v52 }
 0x238   : > { %v2348_v3 = vadd.f32 %v2347_v57, %v2179_v39 }
 0x23a   : > { %vm2459_vm6 = vcmp.ge.f32.partialorder %v2348_v3, 0.0  ;;  %v2523_v36 = vmul.f32 0.2, %v2348_v3 }
 0x23b   : > { %v2011_v44 = vpop.f32.mrf.mxu2 }
 0x23c   : > { %v2587_v9 = vsel %vm2459_vm6, %v2348_v3, %v2523_v36  ;;  %v2012_v60 = vadd.f32 %v2011_v44, %v1843_v47  ;;  %v2180_v27 = vpop.f32.mrf.mxu3  ;;  %v1684_v44 = vadd.f32 %v4983_v13, %v4641_v6 }
 0x23d   : > { %v2651_v19 = vpack.c.bf16 %v2587_v9, %v2587_v9  ;;  %v1845_v30 = vpop.f32.mrf.mxu1 }
 0x23e   : > { %v2181_v51 = vadd.f32 %v2180_v27, %v2012_v60  ;;  %v1846_v40 = vadd.f32 %v1845_v30, %v1677_v28  ;;  %v3639_v60 = vld [vmem:[%s4409_s17 + $0x44c] sm:$0xf0]  ;;  %v3645_v27 = vld [vmem:[%s4409_s17 + $0x440] sm:$0xf]  ;;  %v3653_v30 = vld [vmem:[%s4409_s17 + $0x448] sm:$0xf] }
 0x23f   : > { %v2352_v12 = vpop.f32.mrf.mxu0  ;;  %2716 = vst.msk [vmem:[%s4789_s12 + $0x80] sm:$0xf] %vm2683_vm2, %v2651_v19  ;;  %v3647_v19 = vld [vmem:[%s4409_s17 + $0x454] sm:$0xf0] }
 0x240   : > { %v2350_v1 = vadd.f32 %v2349_v49, %v2181_v51  ;;  %1884 = vmatmul.bf16.gmra.mxu1 %v3602_v25  ;;  %2053 = vmatmul.bf16.gmra.mxu2 %v3606_v21  ;;  %v4066_v25 = vld [vmem:[%s4409_s17 + $0x450] sm:$0xf0]  ;;  %v4064_v21 = vld [vmem:[%s4409_s17 + $0x444] sm:$0xf]  ;;  %v4067_v51 = vld [vmem:[%s4409_s17 + $0x458] sm:$0xf0] }
 0x241   : > { %2222 = vmatmul.bf16.gmra.mxu3 %v3610_v56 }
 0x242   : > { %3904 = vmatmul.msk.bf16.gmra.mxu0 %vm1485_vm0, %v3614_v63  ;;  %vm2460_vm7 = vcmp.ge.f32.partialorder %v2350_v1, 0.0  ;;  %v2524_v24 = vmul.f32 0.2, %v2350_v1 }
 0x243   : > { %v2014_v10 = vpop.f32.mrf.mxu2 }
 0x244   : > { %v2588_v41 = vsel %vm2460_vm7, %v2350_v1, %v2524_v24  ;;  %v2015_v38 = vadd.f32 %v2014_v10, %v1846_v40  ;;  %v2183_v35 = vpop.f32.mrf.mxu3  ;;  %v3642_v40 = vor.u32 %v4063_v55, %v3639_v60  ;;  %v3646_v10 = vor.u32 %v4066_v25, %v3645_v27 }
 0x245   : > { %v2652_v4 = vpack.c.bf16 %v2588_v41, %v2588_v41  ;;  %v1847_v37 = vpop.f32.mrf.mxu1 }
 0x246   : > { %v2184_v5 = vadd.f32 %v2183_v35, %v2015_v38  ;;  %v1848_v57 = vadd.f32 %v1847_v37, %v1679_v62  ;;  %v3650_v38 = vor.u32 %v4064_v21, %v3647_v19  ;;  %v3654_v35 = vor.u32 %v4067_v51, %v3653_v30  ;;  %v4073_v51 = vld [vmem:[%s4409_s17 + $0x48c] sm:$0xf] }
 0x247   : > { %v2354_v26 = vpop.f32.mrf.mxu0  ;;  %2717 = vst.msk [vmem:[%s4789_s12 + $0x84] sm:$0xf] %vm2683_vm2, %v2652_v4 }
 0x248   : > { %v2353_v20 = vadd.f32 %v2352_v12, %v2184_v5  ;;  %v1687_v5 = vadd.f32 %v4983_v13, %v4650_v15 }
 0x24a   : > { %vm2461_vm8 = vcmp.ge.f32.partialorder %v2353_v20, 0.0  ;;  %v2525_v59 = vmul.f32 0.2, %v2353_v20 }
 0x24b   : > { %v2016_v23 = vpop.f32.mrf.mxu2 }
 0x24c   : > { %v2589_v8 = vsel %vm2461_vm8, %v2353_v20, %v2525_v59  ;;  %v2017_v17 = vadd.f32 %v2016_v23, %v1848_v57  ;;  %v2185_v33 = vpop.f32.mrf.mxu3  ;;  %v4068_v59 = vld [vmem:[%s4409_s17 + $0x464] sm:$0xf]  ;;  %v5424_v57 = vld [vmem:[#allocation10_spill] sm:$0xff] }
 0x24d   : > { %v2653_v53 = vpack.c.bf16 %v2589_v8, %v2589_v8  ;;  %v1850_v50 = vpop.f32.mrf.mxu1  ;;  %v1689_v45 = vadd.f32 %v4983_v13, %v5424_v57  ;;  %v3659_v8 = vld [vmem:[%s4409_s17 + $0x474] sm:$0xf0] }
 0x24e   : > { %v2186_v39 = vadd.f32 %v2185_v33, %v2017_v17  ;;  %v1851_v7 = vadd.f32 %v1850_v50, %v1682_v31  ;;  %v3665_v17 = vld [vmem:[%s4409_s17 + $0x468] sm:$0xf]  ;;  %v4071_v33 = vld [vmem:[%s4409_s17 + $0x478] sm:$0xf0] }
 0x24f   : > { %v2357_v49 = vpop.f32.mrf.mxu0  ;;  %2718 = vst.msk [vmem:[%s4789_s12 + $0x88] sm:$0xf] %vm2683_vm2, %v2653_v53  ;;  %v3673_v53 = vld [vmem:[%s4409_s17 + $0x470] sm:$0xf] }
 0x250   : > { %v2355_v22 = vadd.f32 %v2354_v26, %v2186_v39  ;;  %1889 = vmatmul.bf16.gmra.mxu1 %v3622_v34  ;;  %2058 = vmatmul.bf16.gmra.mxu2 %v3626_v18  ;;  %v4069_v34 = vld [vmem:[%s4409_s17 + $0x46c] sm:$0xf]  ;;  %v3667_v18 = vld [vmem:[%s4409_s17 + $0x47c] sm:$0xf0] }
 0x251   : > { %2227 = vmatmul.bf16.gmra.mxu3 %v3630_v11 }
 0x252   : > { %3905 = vmatmul.msk.bf16.gmra.mxu0 %vm1485_vm0, %v3634_v29  ;;  %vm2462_vm9 = vcmp.ge.f32.partialorder %v2355_v22, 0.0  ;;  %v2526_v3 = vmul.f32 0.2, %v2355_v22  ;;  %v4072_v29 = vld [vmem:[%s4409_s17 + $0x480] sm:$0xf0] }
 0x253   : > { %v2019_v32 = vpop.f32.mrf.mxu2 }
 0x254   : > { %v2590_v14 = vsel %vm2462_vm9, %v2355_v22, %v2526_v3  ;;  %v2020_v58 = vadd.f32 %v2019_v32, %v1851_v7  ;;  %v2188_v42 = vpop.f32.mrf.mxu3  ;;  %v3662_v3 = vor.u32 %v4068_v59, %v3659_v8  ;;  %v3666_v7 = vor.u32 %v4071_v33, %v3665_v17  ;;  %v5427_v59 = vld [vmem:[#allocation16_spill] sm:$0xff] }
 0x255   : > { %v2654_v16 = vpack.c.bf16 %v2590_v14, %v2590_v14  ;;  %v1852_v46 = vpop.f32.mrf.mxu1  ;;  %v1697_v57 = vadd.f32 %v4983_v13, %v5427_v59  ;;  %v4087_v59 = vld [vmem:[%s4409_s17 + $0x4f8] sm:$0xf0] }
 0x256   : > { %v2189_v36 = vadd.f32 %v2188_v42, %v2020_v58  ;;  %v1853_v63 = vadd.f32 %v1852_v46, %v1684_v44  ;;  %v3670_v58 = vor.u32 %v4069_v34, %v3667_v18  ;;  %v3674_v42 = vor.u32 %v4072_v29, %v3673_v53 }
 0x257   : > { %v2359_v47 = vpop.f32.mrf.mxu0  ;;  %2719 = vst.msk [vmem:[%s4789_s12 + $0x8c] sm:$0xf] %vm2683_vm2, %v2654_v16 }
 0x258   : > { %v2358_v9 = vadd.f32 %v2357_v49, %v2189_v36  ;;  %v5425_v36 = vld [vmem:[#allocation12_spill] sm:$0xff] }
 0x25a   : > { %vm2463_vm10 = vcmp.ge.f32.partialorder %v2358_v9, 0.0  ;;  %v2527_v56 = vmul.f32 0.2, %v2358_v9 }
 0x25b   : > { %v2021_v12 = vpop.f32.mrf.mxu2 }
 0x25c   : > { %v2591_v28 = vsel %vm2463_vm10, %v2358_v9, %v2527_v56  ;;  %v2022_v1 = vadd.f32 %v2021_v12, %v1853_v63  ;;  %v2190_v24 = vpop.f32.mrf.mxu3  ;;  %v5426_v12 = vld [vmem:[#allocation14_spill] sm:$0xff] }
 0x25d   : > { %v2655_v41 = vpack.c.bf16 %v2591_v28, %v2591_v28  ;;  %v1855_v6 = vpop.f32.mrf.mxu1  ;;  %v1694_v28 = vadd.f32 %v4983_v13, %v5426_v12 }
 0x25e   : > { %v2191_v4 = vadd.f32 %v2190_v24, %v2022_v1  ;;  %v1856_v62 = vadd.f32 %v1855_v6, %v1687_v5  ;;  %v3679_v24 = vld [vmem:[%s4409_s17 + $0x49c] sm:$0xf0]  ;;  %v3687_v6 = vld [vmem:[%s4409_s17 + $0x4a4] sm:$0xf0] }
 0x25f   : > { %v2362_v37 = vpop.f32.mrf.mxu0  ;;  %2720 = vst.msk [vmem:[%s4789_s12 + $0x90] sm:$0xf] %vm2683_vm2, %v2655_v41  ;;  %v4074_v41 = vld [vmem:[%s4409_s17 + $0x494] sm:$0xf] }
 0x260   : > { %v2360_v26 = vadd.f32 %v2359_v47, %v2191_v4  ;;  %1894 = vmatmul.bf16.gmra.mxu1 %v3642_v40  ;;  %2063 = vmatmul.bf16.gmra.mxu2 %v3646_v10  ;;  %v1692_v47 = vadd.f32 %v4983_v13, %v5425_v36  ;;  %v3685_v40 = vld [vmem:[%s4409_s17 + $0x490] sm:$0xf]  ;;  %v4076_v10 = vld [vmem:[%s4409_s17 + $0x4a0] sm:$0xf0]  ;;  %v4082_v36 = vld [vmem:[%s4409_s17 + $0x4d0] sm:$0xf0] }
 0x261   : > { %2232 = vmatmul.bf16.gmra.mxu3 %v3650_v38  ;;  %v3693_v38 = vld [vmem:[%s4409_s17 + $0x498] sm:$0xf] }
 0x262   : > { %3906 = vmatmul.msk.bf16.gmra.mxu0 %vm1485_vm0, %v3654_v35  ;;  %vm2464_vm11 = vcmp.ge.f32.partialorder %v2360_v26, 0.0  ;;  %v2528_v2 = vmul.f32 0.2, %v2360_v26 }
 0x263   : > { %v2024_v20 = vpop.f32.mrf.mxu2 }
 0x264   : > { %v2592_v61 = vsel %vm2464_vm11, %v2360_v26, %v2528_v2  ;;  %v2025_v15 = vadd.f32 %v2024_v20, %v1856_v62  ;;  %v2193_v48 = vpop.f32.mrf.mxu3  ;;  %v3682_v20 = vor.u32 %v4073_v51, %v3679_v24  ;;  %v5429_v51 = vld [vmem:[#allocation20_spill] sm:$0xff] }
 0x265   : > { %v2656_v54 = vpack.c.bf16 %v2592_v61, %v2592_v61  ;;  %v1857_v43 = vpop.f32.mrf.mxu1  ;;  %v3686_v61 = vor.u32 %v4076_v10, %v3685_v40  ;;  %v1702_v12 = vadd.f32 %v4983_v13, %v5429_v51 }
 0x266   : > { %v2194_v52 = vadd.f32 %v2193_v48, %v2025_v15  ;;  %v1858_v11 = vadd.f32 %v1857_v43, %v1689_v45 }
 0x267   : > { %v2364_v0 = vpop.f32.mrf.mxu0  ;;  %2721 = vst.msk [vmem:[%s4789_s12 + $0x94] sm:$0xf] %vm2683_vm2, %v2656_v54  ;;  %v3690_v54 = vor.u32 %v4074_v41, %v3687_v6 }
 0x268   : > { %v2363_v23 = vadd.f32 %v2362_v37, %v2194_v52  ;;  %v4077_v37 = vld [vmem:[%s4409_s17 + $0x4a8] sm:$0xf0] }
 0x269   : > { %v3694_v43 = vor.u32 %v4077_v37, %v3693_v38 }
 0x26a   : > { %vm2465_vm12 = vcmp.ge.f32.partialorder %v2363_v23, 0.0  ;;  %v2529_v50 = vmul.f32 0.2, %v2363_v23 }
 0x26b   : > { %v2026_v39 = vpop.f32.mrf.mxu2 }
 0x26c   : > { %v2593_v49 = vsel %vm2465_vm12, %v2363_v23, %v2529_v50  ;;  %v2027_v31 = vadd.f32 %v2026_v39, %v1858_v11  ;;  %v2195_v22 = vpop.f32.mrf.mxu3  ;;  %v4078_v39 = vld [vmem:[%s4409_s17 + $0x4b4] sm:$0xf] }
 0x26d   : > { %v2657_v32 = vpack.c.bf16 %v2593_v49, %v2593_v49  ;;  %v1860_v14 = vpop.f32.mrf.mxu1  ;;  %v5428_v49 = vld [vmem:[#allocation18_spill] sm:$0xff] }
 0x26e   : > { %v2196_v16 = vadd.f32 %v2195_v22, %v2027_v31  ;;  %v1861_v9 = vadd.f32 %v1860_v14, %v1692_v47  ;;  %v1699_v31 = vadd.f32 %v4983_v13, %v5428_v49  ;;  %v4079_v14 = vld [vmem:[%s4409_s17 + $0x4bc] sm:$0xf] }
 0x26f   : > { %v2367_v46 = vpop.f32.mrf.mxu0  ;;  %2722 = vst.msk [vmem:[%s4789_s12 + $0x98] sm:$0xf] %vm2683_vm2, %v2657_v32  ;;  %v4081_v32 = vld [vmem:[%s4409_s17 + $0x4c8] sm:$0xf0] }
 0x270   : > { %v2365_v55 = vadd.f32 %v2364_v0, %v2196_v16  ;;  %1899 = vmatmul.bf16.gmra.mxu1 %v3662_v3  ;;  %2068 = vmatmul.bf16.gmra.mxu2 %v3666_v7  ;;  %v3699_v3 = vld [vmem:[%s4409_s17 + $0x4c4] sm:$0xf0]  ;;  %v3705_v7 = vld [vmem:[%s4409_s17 + $0x4b8] sm:$0xf] }
 0x271   : > { %2237 = vmatmul.bf16.gmra.mxu3 %v3670_v58  ;;  %v3707_v58 = vld [vmem:[%s4409_s17 + $0x4cc] sm:$0xf0] }
 0x272   : > { %3907 = vmatmul.msk.bf16.gmra.mxu0 %vm1485_vm0, %v3674_v42  ;;  %vm2466_vm13 = vcmp.ge.f32.partialorder %v2365_v55, 0.0  ;;  %v2530_v44 = vmul.f32 0.2, %v2365_v55  ;;  %v3713_v42 = vld [vmem:[%s4409_s17 + $0x4c0] sm:$0xf] }
 0x273   : > { %v2029_v60 = vpop.f32.mrf.mxu2 }
 0x274   : > { %v2594_v27 = vsel %vm2466_vm13, %v2365_v55, %v2530_v44  ;;  %v2030_v25 = vadd.f32 %v2029_v60, %v1861_v9  ;;  %v2198_v21 = vpop.f32.mrf.mxu3  ;;  %v3702_v60 = vor.u32 %v4078_v39, %v3699_v3  ;;  %v5431_v39 = vld [vmem:[#allocation24_spill] sm:$0xff] }
 0x275   : > { %v2658_v19 = vpack.c.bf16 %v2594_v27, %v2594_v27  ;;  %v1862_v30 = vpop.f32.mrf.mxu1  ;;  %v3706_v27 = vor.u32 %v4081_v32, %v3705_v7  ;;  %v1707_v49 = vadd.f32 %v4983_v13, %v5431_v39 }
 0x276   : > { %v2199_v56 = vadd.f32 %v2198_v21, %v2030_v25  ;;  %v1863_v4 = vadd.f32 %v1862_v30, %v1694_v28  ;;  %v3714_v30 = vor.u32 %v4082_v36, %v3713_v42 }
 0x277   : > { %v2369_v63 = vpop.f32.mrf.mxu0  ;;  %2723 = vst.msk [vmem:[%s4789_s12 + $0x9c] sm:$0xf] %vm2683_vm2, %v2658_v19  ;;  %v3710_v19 = vor.u32 %v4079_v14, %v3707_v58 }
 0x278   : > { %v2368_v1 = vadd.f32 %v2367_v46, %v2199_v56 }
 0x27a   : > { %vm2467_vm14 = vcmp.ge.f32.partialorder %v2368_v1, 0.0  ;;  %v2531_v35 = vmul.f32 0.2, %v2368_v1 }
 0x27b   : > { %v2031_v5 = vpop.f32.mrf.mxu2 }
 0x27c   : > { %v2595_v26 = vsel %vm2467_vm14, %v2368_v1, %v2531_v35  ;;  %v2032_v2 = vadd.f32 %v2031_v5, %v1863_v4  ;;  %v2200_v62 = vpop.f32.mrf.mxu3  ;;  %v4083_v5 = vld [vmem:[%s4409_s17 + $0x4dc] sm:$0xf] }
 0x27d   : > { %v2659_v15 = vpack.c.bf16 %v2595_v26, %v2595_v26  ;;  %v1865_v48 = vpop.f32.mrf.mxu1  ;;  %v5430_v26 = vld [vmem:[#allocation22_spill] sm:$0xff] }
 0x27e   : > { %v2201_v52 = vadd.f32 %v2200_v62, %v2032_v2  ;;  %v1866_v8 = vadd.f32 %v1865_v48, %v1697_v57  ;;  %v1704_v2 = vadd.f32 %v4983_v13, %v5430_v26  ;;  %v4084_v48 = vld [vmem:[%s4409_s17 + $0x4e4] sm:$0xf]  ;;  %v5434_v26 = vld [vmem:[#allocation4_spill] sm:$0xff] }
 0x27f   : > { %v2372_v0 = vpop.f32.mrf.mxu0  ;;  %2724 = vst.msk [vmem:[%s4789_s12 + $0xa0] sm:$0xf] %vm2683_vm2, %v2659_v15  ;;  %v4086_v15 = vld [vmem:[%s4409_s17 + $0x4f0] sm:$0xf0] }
 0x280   : > { %v2370_v45 = vadd.f32 %v2369_v63, %v2201_v52  ;;  %1904 = vmatmul.bf16.gmra.mxu1 %v3682_v20  ;;  %2073 = vmatmul.bf16.gmra.mxu2 %v3686_v61  ;;  %v3719_v20 = vld [vmem:[%s4409_s17 + $0x4ec] sm:$0xf0]  ;;  %v3725_v61 = vld [vmem:[%s4409_s17 + $0x4e0] sm:$0xf] }
 0x281   : > { %2242 = vmatmul.bf16.gmra.mxu3 %v3690_v54  ;;  %v3727_v54 = vld [vmem:[%s4409_s17 + $0x4f4] sm:$0xf0] }
 0x282   : > { %3908 = vmatmul.msk.bf16.gmra.mxu0 %vm1485_vm0, %v3694_v43  ;;  %vm2468_vm15 = vcmp.ge.f32.partialorder %v2370_v45, 0.0  ;;  %v2532_v23 = vmul.f32 0.2, %v2370_v45  ;;  %v3733_v43 = vld [vmem:[%s4409_s17 + $0x4e8] sm:$0xf] }
 0x283   : > { %v2034_v17 = vpop.f32.mrf.mxu2 }
 0x284   : > { %v2596_v33 = vsel %vm2468_vm15, %v2370_v45, %v2532_v23  ;;  %v2035_v34 = vadd.f32 %v2034_v17, %v1866_v8  ;;  %v2203_v18 = vpop.f32.mrf.mxu3  ;;  %v3722_v17 = vor.u32 %v4083_v5, %v3719_v20 }
 0x285   : > { %v2660_v53 = vpack.c.bf16 %v2596_v33, %v2596_v33  ;;  %v1867_v50 = vpop.f32.mrf.mxu1  ;;  %v3726_v33 = vor.u32 %v4086_v15, %v3725_v61 }
 0x286   : > { %v2204_v11 = vadd.f32 %v2203_v18, %v2035_v34  ;;  %v1868_v46 = vadd.f32 %v1867_v50, %v1699_v31  ;;  %v3734_v50 = vor.u32 %v4087_v59, %v3733_v43 }
 0x287   : > { %v2374_v29 = vpop.f32.mrf.mxu0  ;;  %2725 = vst.msk [vmem:[%s4789_s12 + $0xa4] sm:$0xf] %vm2683_vm2, %v2660_v53  ;;  %v3730_v53 = vor.u32 %v4084_v48, %v3727_v54 }
 0x288   : > { %v2373_v22 = vadd.f32 %v2372_v0, %v2204_v11 }
 0x28a   : > { %vm2469_vm1 = vcmp.ge.f32.partialorder %v2373_v22, 0.0  ;;  %v2533_v16 = vmul.f32 0.2, %v2373_v22 }
 0x28b   : > { %v2036_v47 = vpop.f32.mrf.mxu2 }
 0x28c   : > { %v2597_v55 = vsel %vm2469_vm1, %v2373_v22, %v2533_v16  ;;  %v2037_v44 = vadd.f32 %v2036_v47, %v1868_v46  ;;  %v2205_v9 = vpop.f32.mrf.mxu3  ;;  %v5432_v47 = vld [vmem:[#allocation26_spill] sm:$0xff] }
 0x28d   : > { %v2661_v25 = vpack.c.bf16 %v2597_v55, %v2597_v55  ;;  %v1870_v21 = vpop.f32.mrf.mxu1  ;;  %v1709_v55 = vadd.f32 %v4983_v13, %v5432_v47  ;;  %v5433_v13 = vld [vmem:[#allocation3_spill] sm:$0xff] }
 0x28e   : > { %v2206_v56 = vadd.f32 %v2205_v9, %v2037_v44  ;;  %v1871_v24 = vadd.f32 %v1870_v21, %v1702_v12  ;;  %v5184_v12 = vld [vmem:[%s5396_s2] ss:$0 sm:$0xff] }
 0x28f   : > { %v2377_v63 = vpop.f32.mrf.mxu0  ;;  %2726 = vst.msk [vmem:[%s4789_s12 + $0xa8] sm:$0xf] %vm2683_vm2, %v2661_v25 }
 0x290   : > { %v2375_v28 = vadd.f32 %v2374_v29, %v2206_v56  ;;  %1909 = vmatmul.bf16.gmra.mxu1 %v3702_v60  ;;  %2078 = vmatmul.bf16.gmra.mxu2 %v3706_v27 }
 0x291   : > { %2247 = vmatmul.bf16.gmra.mxu3 %v3710_v19 }
 0x292   : > { %3909 = vmatmul.msk.bf16.gmra.mxu0 %vm1485_vm0, %v3714_v30  ;;  %vm2470_vm3 = vcmp.ge.f32.partialorder %v2375_v28, 0.0  ;;  %v2534_v1 = vmul.f32 0.2, %v2375_v28 }
 0x293   : > { %v2039_v40 = vpop.f32.mrf.mxu2 }
 0x294   : > { %v2598_v10 = vsel %vm2470_vm3, %v2375_v28, %v2534_v1  ;;  %v2040_v41 = vadd.f32 %v2039_v40, %v1871_v24  ;;  %v2208_v6 = vpop.f32.mrf.mxu3  ;;  %v1712_v28 = vadd.f32 %v5184_v12, %v5433_v13 }
 0x295   : > { %v2662_v38 = vpack.c.bf16 %v2598_v10, %v2598_v10  ;;  %v1872_v35 = vpop.f32.mrf.mxu1 }
 0x296   : > { %v2209_v4 = vadd.f32 %v2208_v6, %v2040_v41  ;;  %v1873_v0 = vadd.f32 %v1872_v35, %v1704_v2  ;;  %v1714_v2 = vadd.f32 %v5184_v12, %v5434_v26 }
 0x297   : > { %v2379_v37 = vpop.f32.mrf.mxu0  ;;  %2727 = vst.msk [vmem:[%s4789_s12 + $0xac] sm:$0xf] %vm2683_vm2, %v2662_v38 }
 0x298   : > { %v2378_v62 = vadd.f32 %v2377_v63, %v2209_v4 }
 0x29a   : > { %vm2471_vm4 = vcmp.ge.f32.partialorder %v2378_v62, 0.0  ;;  %v2535_v52 = vmul.f32 0.2, %v2378_v62 }
 0x29b   : > { %v2041_v57 = vpop.f32.mrf.mxu2 }
 0x29c   : > { %v2599_v45 = vsel %vm2471_vm4, %v2378_v62, %v2535_v52  ;;  %v2042_v23 = vadd.f32 %v2041_v57, %v1873_v0  ;;  %v2210_v8 = vpop.f32.mrf.mxu3 }
 0x29d   : > { %v2663_v34 = vpack.c.bf16 %v2599_v45, %v2599_v45  ;;  %v1875_v18 = vpop.f32.mrf.mxu1  ;;  %v5435_v45 = vld [vmem:[#allocation5_spill] sm:$0xff] }
 0x29e   : > { %v2211_v11 = vadd.f32 %v2210_v8, %v2042_v23  ;;  %v1876_v3 = vadd.f32 %v1875_v18, %v1707_v49  ;;  %v1717_v23 = vadd.f32 %v5184_v12, %v5435_v45 }
 0x29f   : > { %v2382_v29 = vpop.f32.mrf.mxu0  ;;  %2728 = vst.msk [vmem:[%s4789_s12 + $0xb0] sm:$0xf] %vm2683_vm2, %v2663_v34 }
 0x2a0   : > { %v2380_v31 = vadd.f32 %v2379_v37, %v2211_v11  ;;  %1914 = vmatmul.bf16.gmra.mxu1 %v3722_v17  ;;  %2083 = vmatmul.bf16.gmra.mxu2 %v3726_v33 }
 0x2a1   : > { %2252 = vmatmul.bf16.gmra.mxu3 %v3730_v53 }
 0x2a2   : > { %3910 = vmatmul.msk.bf16.gmra.mxu0 %vm1485_vm0, %v3734_v50  ;;  %vm2472_vm5 = vcmp.ge.f32.partialorder %v2380_v31, 0.0  ;;  %v2536_v22 = vmul.f32 0.2, %v2380_v31 }
 0x2a3   : > { %v2044_v7 = vpop.f32.mrf.mxu2 }
 0x2a4   : > { %v2600_v32 = vsel %vm2472_vm5, %v2380_v31, %v2536_v22  ;;  %v2045_v14 = vadd.f32 %v2044_v7, %v1876_v3  ;;  %v2213_v58 = vpop.f32.mrf.mxu3  ;;  %v5436_v31 = vld [vmem:[#allocation6_spill] sm:$0xff] }
 0x2a5   : > { %v2664_v42 = vpack.c.bf16 %v2600_v32, %v2600_v32  ;;  %v1877_v16 = vpop.f32.mrf.mxu1  ;;  %v1719_v22 = vadd.f32 %v5184_v12, %v5436_v31 }
 0x2a6   : > { %v2214_v46 = vadd.f32 %v2213_v58, %v2045_v14  ;;  %v1878_v60 = vadd.f32 %v1877_v16, %v1709_v55 }
 0x2a7   : > { %v2384_v36 = vpop.f32.mrf.mxu0  ;;  %2729 = vst.msk [vmem:[%s4789_s12 + $0xb4] sm:$0xf] %vm2683_vm2, %v2664_v42 }
 0x2a8   : > { %v2383_v44 = vadd.f32 %v2382_v29, %v2214_v46 }
 0x2aa   : > { %vm2473_vm6 = vcmp.ge.f32.partialorder %v2383_v44, 0.0  ;;  %v2537_v9 = vmul.f32 0.2, %v2383_v44 }
 0x2ab   : > { %v2046_v27 = vpop.f32.mrf.mxu2 }
 0x2ac   : > { %v2601_v25 = vsel %vm2473_vm6, %v2383_v44, %v2537_v9  ;;  %v2047_v21 = vadd.f32 %v2046_v27, %v1878_v60  ;;  %v2215_v19 = vpop.f32.mrf.mxu3  ;;  %v5437_v44 = vld [vmem:[#allocation7_spill] sm:$0xff] }
 0x2ad   : > { %v2665_v30 = vpack.c.bf16 %v2601_v25, %v2601_v25  ;;  %v1880_v56 = vpop.f32.mrf.mxu1  ;;  %v1722_v9 = vadd.f32 %v5184_v12, %v5437_v44 }
 0x2ae   : > { %v2216_v63 = vadd.f32 %v2215_v19, %v2047_v21  ;;  %v1881_v40 = vadd.f32 %v1880_v56, %v1712_v28 }
 0x2af   : > { %v2387_v51 = vpop.f32.mrf.mxu0  ;;  %2730 = vst.msk [vmem:[%s4789_s12 + $0xb8] sm:$0xf] %vm2683_vm2, %v2665_v30 }
 0x2b0   : > { %v2385_v1 = vadd.f32 %v2384_v36, %v2216_v63 }
 0x2b2   : > { %vm2474_vm0 = vcmp.ge.f32.partialorder %v2385_v1, 0.0  ;;  %v2538_v24 = vmul.f32 0.2, %v2385_v1 }
 0x2b3   : > { %v2049_v10 = vpop.f32.mrf.mxu2 }
 0x2b4   : > { %v2602_v41 = vsel %vm2474_vm0, %v2385_v1, %v2538_v24  ;;  %v2050_v6 = vadd.f32 %v2049_v10, %v1881_v40  ;;  %v2218_v38 = vpop.f32.mrf.mxu3  ;;  %v5438_v1 = vld [vmem:[#allocation8_spill] sm:$0xff] }
 0x2b5   : > { %v2666_v35 = vpack.c.bf16 %v2602_v41, %v2602_v41  ;;  %v1882_v4 = vpop.f32.mrf.mxu1  ;;  %v1724_v24 = vadd.f32 %v5184_v12, %v5438_v1 }
 0x2b6   : > { %v2219_v37 = vadd.f32 %v2218_v38, %v2050_v6  ;;  %v1883_v61 = vadd.f32 %v1882_v4, %v1714_v2 }
 0x2b7   : > { %v2389_v5 = vpop.f32.mrf.mxu0  ;;  %2731 = vst.msk [vmem:[%s4789_s12 + $0xbc] sm:$0xf] %vm2683_vm2, %v2666_v35 }
 0x2b8   : > { %v2388_v62 = vadd.f32 %v2387_v51, %v2219_v37 }
 0x2ba   : > { %vm2475_vm7 = vcmp.ge.f32.partialorder %v2388_v62, 0.0  ;;  %v2539_v20 = vmul.f32 0.2, %v2388_v62 }
 0x2bb   : > { %v2051_v15 = vpop.f32.mrf.mxu2 }
 0x2bc   : > { %v2603_v48 = vsel %vm2475_vm7, %v2388_v62, %v2539_v20  ;;  %v2052_v54 = vadd.f32 %v2051_v15, %v1883_v61  ;;  %v2220_v43 = vpop.f32.mrf.mxu3  ;;  %v5439_v62 = vld [vmem:[#allocation9_spill] sm:$0xff] }
 0x2bd   : > { %v2667_v52 = vpack.c.bf16 %v2603_v48, %v2603_v48  ;;  %v1885_v0 = vpop.f32.mrf.mxu1  ;;  %v1727_v20 = vadd.f32 %v5184_v12, %v5439_v62 }
 0x2be   : > { %v2221_v59 = vadd.f32 %v2220_v43, %v2052_v54  ;;  %v1886_v33 = vadd.f32 %v1885_v0, %v1717_v23 }
 0x2bf   : > { %v2392_v57 = vpop.f32.mrf.mxu0  ;;  %2732 = vst.msk [vmem:[%s4789_s12 + $0xc0] sm:$0xf] %vm2683_vm2, %v2667_v52 }
 0x2c0   : > { %v2390_v8 = vadd.f32 %v2389_v5, %v2221_v59 }
 0x2c2   : > { %vm2476_vm8 = vcmp.ge.f32.partialorder %v2390_v8, 0.0  ;;  %v2540_v17 = vmul.f32 0.2, %v2390_v8 }
 0x2c3   : > { %v2054_v34 = vpop.f32.mrf.mxu2 }
 0x2c4   : > { %v2604_v18 = vsel %vm2476_vm8, %v2390_v8, %v2540_v17  ;;  %v2055_v53 = vadd.f32 %v2054_v34, %v1886_v33  ;;  %v2223_v50 = vpop.f32.mrf.mxu3  ;;  %v5440_v8 = vld [vmem:[#allocation11_spill] sm:$0xff] }
 0x2c5   : > { %v2668_v11 = vpack.c.bf16 %v2604_v18, %v2604_v18  ;;  %v1887_v29 = vpop.f32.mrf.mxu1  ;;  %v1729_v17 = vadd.f32 %v5184_v12, %v5440_v8 }
 0x2c6   : > { %v2224_v39 = vadd.f32 %v2223_v50, %v2055_v53  ;;  %v1888_v32 = vadd.f32 %v1887_v29, %v1719_v22 }
 0x2c7   : > { %v2394_v49 = vpop.f32.mrf.mxu0  ;;  %2733 = vst.msk [vmem:[%s4789_s12 + $0xc4] sm:$0xf] %vm2683_vm2, %v2668_v11 }
 0x2c8   : > { %v2393_v3 = vadd.f32 %v2392_v57, %v2224_v39 }
 0x2ca   : > { %vm2477_vm9 = vcmp.ge.f32.partialorder %v2393_v3, 0.0  ;;  %v2541_v7 = vmul.f32 0.2, %v2393_v3 }
 0x2cb   : > { %v2056_v14 = vpop.f32.mrf.mxu2 }
 0x2cc   : > { %v2605_v58 = vsel %vm2477_vm9, %v2393_v3, %v2541_v7  ;;  %v2057_v42 = vadd.f32 %v2056_v14, %v1888_v32  ;;  %v2225_v16 = vpop.f32.mrf.mxu3  ;;  %v5441_v3 = vld [vmem:[#allocation13_spill] sm:$0xff] }
 0x2cd   : > { %v2669_v46 = vpack.c.bf16 %v2605_v58, %v2605_v58  ;;  %v1890_v36 = vpop.f32.mrf.mxu1  ;;  %v1732_v7 = vadd.f32 %v5184_v12, %v5441_v3 }
 0x2ce   : > { %v2226_v47 = vadd.f32 %v2225_v16, %v2057_v42  ;;  %v1891_v25 = vadd.f32 %v1890_v36, %v1722_v9 }
 0x2cf   : > { %v2397_v55 = vpop.f32.mrf.mxu0  ;;  %2734 = vst.msk [vmem:[%s4789_s12 + $0xc8] sm:$0xf] %vm2683_vm2, %v2669_v46 }
 0x2d0   : > { %v2395_v60 = vadd.f32 %v2394_v49, %v2226_v47 }
 0x2d2   : > { %vm2478_vm10 = vcmp.ge.f32.partialorder %v2395_v60, 0.0  ;;  %v2542_v27 = vmul.f32 0.2, %v2395_v60 }
 0x2d3   : > { %v2059_v21 = vpop.f32.mrf.mxu2 }
 0x2d4   : > { %v2606_v19 = vsel %vm2478_vm10, %v2395_v60, %v2542_v27  ;;  %v2060_v30 = vadd.f32 %v2059_v21, %v1891_v25  ;;  %v2228_v56 = vpop.f32.mrf.mxu3  ;;  %v5442_v60 = vld [vmem:[#allocation15_spill] sm:$0xff] }
 0x2d5   : > { %v2670_v63 = vpack.c.bf16 %v2606_v19, %v2606_v19  ;;  %v1892_v51 = vpop.f32.mrf.mxu1  ;;  %v1734_v27 = vadd.f32 %v5184_v12, %v5442_v60 }
 0x2d6   : > { %v2229_v13 = vadd.f32 %v2228_v56, %v2060_v30  ;;  %v1893_v41 = vadd.f32 %v1892_v51, %v1724_v24 }
 0x2d7   : > { %v2399_v28 = vpop.f32.mrf.mxu0  ;;  %2735 = vst.msk [vmem:[%s4789_s12 + $0xcc] sm:$0xf] %vm2683_vm2, %v2670_v63 }
 0x2d8   : > { %v2398_v40 = vadd.f32 %v2397_v55, %v2229_v13 }
 0x2da   : > { %vm2479_vm11 = vcmp.ge.f32.partialorder %v2398_v40, 0.0  ;;  %v2543_v10 = vmul.f32 0.2, %v2398_v40 }
 0x2db   : > { %v2061_v6 = vpop.f32.mrf.mxu2 }
 0x2dc   : > { %v2607_v38 = vsel %vm2479_vm11, %v2398_v40, %v2543_v10  ;;  %v2062_v35 = vadd.f32 %v2061_v6, %v1893_v41  ;;  %v2230_v4 = vpop.f32.mrf.mxu3  ;;  %v5443_v40 = vld [vmem:[#allocation17_spill] sm:$0xff] }
 0x2dd   : > { %v2671_v37 = vpack.c.bf16 %v2607_v38, %v2607_v38  ;;  %v1895_v5 = vpop.f32.mrf.mxu1  ;;  %v1737_v10 = vadd.f32 %v5184_v12, %v5443_v40 }
 0x2de   : > { %v2231_v26 = vadd.f32 %v2230_v4, %v2062_v35  ;;  %v1896_v48 = vadd.f32 %v1895_v5, %v1727_v20 }
 0x2df   : > { %v2402_v2 = vpop.f32.mrf.mxu0  ;;  %2736 = vst.msk [vmem:[%s4789_s12 + $0xd0] sm:$0xf] %vm2683_vm2, %v2671_v37 }
 0x2e0   : > { %v2400_v61 = vadd.f32 %v2399_v28, %v2231_v26 }
 0x2e2   : > { %vm2480_vm12 = vcmp.ge.f32.partialorder %v2400_v61, 0.0  ;;  %v2544_v15 = vmul.f32 0.2, %v2400_v61 }
 0x2e3   : > { %v2064_v54 = vpop.f32.mrf.mxu2 }
 0x2e4   : > { %v2608_v43 = vsel %vm2480_vm12, %v2400_v61, %v2544_v15  ;;  %v2065_v52 = vadd.f32 %v2064_v54, %v1896_v48  ;;  %v2233_v0 = vpop.f32.mrf.mxu3  ;;  %v5444_v61 = vld [vmem:[#allocation19_spill] sm:$0xff] }
 0x2e5   : > { %v2672_v59 = vpack.c.bf16 %v2608_v43, %v2608_v43  ;;  %v1897_v57 = vpop.f32.mrf.mxu1  ;;  %v1739_v15 = vadd.f32 %v5184_v12, %v5444_v61 }
 0x2e6   : > { %v2234_v45 = vadd.f32 %v2233_v0, %v2065_v52  ;;  %v1898_v18 = vadd.f32 %v1897_v57, %v1729_v17  ;;  %v5445_v17 = vld [vmem:[#allocation21_spill] sm:$0xff] }
 0x2e7   : > { %v2404_v23 = vpop.f32.mrf.mxu0  ;;  %2737 = vst.msk [vmem:[%s4789_s12 + $0xd4] sm:$0xf] %vm2683_vm2, %v2672_v59 }
 0x2e8   : > { %v2403_v33 = vadd.f32 %v2402_v2, %v2234_v45 }
 0x2ea   : > { %vm2481_vm13 = vcmp.ge.f32.partialorder %v2403_v33, 0.0  ;;  %v2545_v34 = vmul.f32 0.2, %v2403_v33 }
 0x2eb   : > { %v2066_v53 = vpop.f32.mrf.mxu2 }
 0x2ec   : > { %v2609_v50 = vsel %vm2481_vm13, %v2403_v33, %v2545_v34  ;;  %v2067_v11 = vadd.f32 %v2066_v53, %v1898_v18  ;;  %v2235_v29 = vpop.f32.mrf.mxu3  ;;  %v1742_v33 = vadd.f32 %v5184_v12, %v5445_v17 }
 0x2ed   : > { %v2673_v39 = vpack.c.bf16 %v2609_v50, %v2609_v50  ;;  %v1900_v49 = vpop.f32.mrf.mxu1 }
 0x2ee   : > { %v2236_v31 = vadd.f32 %v2235_v29, %v2067_v11  ;;  %v1901_v58 = vadd.f32 %v1900_v49, %v1732_v7  ;;  %v5446_v7 = vld [vmem:[#allocation23_spill] sm:$0xff] }
 0x2ef   : > { %v2407_v22 = vpop.f32.mrf.mxu0  ;;  %2738 = vst.msk [vmem:[%s4789_s12 + $0xd8] sm:$0xf] %vm2683_vm2, %v2673_v39 }
 0x2f0   : > { %v2405_v32 = vadd.f32 %v2404_v23, %v2236_v31 }
 0x2f2   : > { %vm2482_vm14 = vcmp.ge.f32.partialorder %v2405_v32, 0.0  ;;  %v2546_v14 = vmul.f32 0.2, %v2405_v32 }
 0x2f3   : > { %v2069_v42 = vpop.f32.mrf.mxu2 }
 0x2f4   : > { %v2610_v16 = vsel %vm2482_vm14, %v2405_v32, %v2546_v14  ;;  %v2070_v46 = vadd.f32 %v2069_v42, %v1901_v58  ;;  %v2238_v36 = vpop.f32.mrf.mxu3  ;;  %v1744_v32 = vadd.f32 %v5184_v12, %v5446_v7 }
 0x2f5   : > { %v2674_v47 = vpack.c.bf16 %v2610_v16, %v2610_v16  ;;  %v1902_v55 = vpop.f32.mrf.mxu1 }
 0x2f6   : > { %v2239_v44 = vadd.f32 %v2238_v36, %v2070_v46  ;;  %v1903_v19 = vadd.f32 %v1902_v55, %v1734_v27  ;;  %v5447_v27 = vld [vmem:[#allocation25_spill] sm:$0xff] }
 0x2f7   : > { %v2409_v9 = vpop.f32.mrf.mxu0  ;;  %2739 = vst.msk [vmem:[%s4789_s12 + $0xdc] sm:$0xf] %vm2683_vm2, %v2674_v47 }
 0x2f8   : > { %v2408_v25 = vadd.f32 %v2407_v22, %v2239_v44 }
 0x2fa   : > { %vm2483_vm15 = vcmp.ge.f32.partialorder %v2408_v25, 0.0  ;;  %v2547_v21 = vmul.f32 0.2, %v2408_v25 }
 0x2fb   : > { %v2071_v30 = vpop.f32.mrf.mxu2 }
 0x2fc   : > { %v2611_v56 = vsel %vm2483_vm15, %v2408_v25, %v2547_v21  ;;  %v2072_v63 = vadd.f32 %v2071_v30, %v1903_v19  ;;  %v2240_v51 = vpop.f32.mrf.mxu3  ;;  %v1747_v25 = vadd.f32 %v5184_v12, %v5447_v27 }
 0x2fd   : > { %v2675_v13 = vpack.c.bf16 %v2611_v56, %v2611_v56  ;;  %v1905_v28 = vpop.f32.mrf.mxu1 }
 0x2fe   : > { %v2241_v1 = vadd.f32 %v2240_v51, %v2072_v63  ;;  %v1906_v38 = vadd.f32 %v1905_v28, %v1737_v10  ;;  %v5448_v10 = vld [vmem:[#allocation27_spill] sm:$0xff] }
 0x2ff   : > { %v2412_v24 = vpop.f32.mrf.mxu0  ;;  %2740 = vst.msk [vmem:[%s4789_s12 + $0xe0] sm:$0xf] %vm2683_vm2, %v2675_v13 }
 0x300   : > { %v2410_v41 = vadd.f32 %v2409_v9, %v2241_v1 }
 0x302   : > { %vm2484_vm1 = vcmp.ge.f32.partialorder %v2410_v41, 0.0  ;;  %v2548_v6 = vmul.f32 0.2, %v2410_v41 }
 0x303   : > { %v2074_v35 = vpop.f32.mrf.mxu2 }
 0x304   : > { %v2612_v4 = vsel %vm2484_vm1, %v2410_v41, %v2548_v6  ;;  %v2075_v37 = vadd.f32 %v2074_v35, %v1906_v38  ;;  %v2243_v5 = vpop.f32.mrf.mxu3  ;;  %v1749_v41 = vadd.f32 %v5184_v12, %v5448_v10 }
 0x305   : > { %v2676_v26 = vpack.c.bf16 %v2612_v4, %v2612_v4  ;;  %v1907_v2 = vpop.f32.mrf.mxu1 }
 0x306   : > { %v2244_v62 = vadd.f32 %v2243_v5, %v2075_v37  ;;  %v1908_v43 = vadd.f32 %v1907_v2, %v1739_v15 }
 0x307   : > { %2741 = vst.msk [vmem:[%s4789_s12 + $0xe4] sm:$0xf] %vm2683_vm2, %v2676_v26  ;;  %v2414_v20 = vpop.f32.mrf.mxu0 }
 0x308   : > { %v2413_v48 = vadd.f32 %v2412_v24, %v2244_v62 }
 0x30a   : > { %vm2485_vm3 = vcmp.ge.f32.partialorder %v2413_v48, 0.0  ;;  %v2549_v54 = vmul.f32 0.2, %v2413_v48 }
 0x30b   : > { %v2076_v52 = vpop.f32.mrf.mxu2 }
 0x30c   : > { %v2613_v0 = vsel %vm2485_vm3, %v2413_v48, %v2549_v54  ;;  %v2077_v59 = vadd.f32 %v2076_v52, %v1908_v43  ;;  %v2245_v57 = vpop.f32.mrf.mxu3 }
 0x30d   : > { %v2677_v45 = vpack.c.bf16 %v2613_v0, %v2613_v0  ;;  %v1910_v23 = vpop.f32.mrf.mxu1 }
 0x30e   : > { %v2246_v8 = vadd.f32 %v2245_v57, %v2077_v59  ;;  %v1911_v50 = vadd.f32 %v1910_v23, %v1742_v33 }
 0x30f   : > { %2742 = vst.msk [vmem:[%s4789_s12 + $0xe8] sm:$0xf] %vm2683_vm2, %v2677_v45  ;;  %v2417_v18 = vpop.f32.mrf.mxu0 }
 0x310   : > { %v2415_v34 = vadd.f32 %v2414_v20, %v2246_v8 }
 0x312   : > { %vm2486_vm4 = vcmp.ge.f32.partialorder %v2415_v34, 0.0  ;;  %v2550_v53 = vmul.f32 0.2, %v2415_v34 }
 0x313   : > { %v2079_v11 = vpop.f32.mrf.mxu2 }
 0x314   : > { %v2614_v29 = vsel %vm2486_vm4, %v2415_v34, %v2550_v53  ;;  %v2080_v39 = vadd.f32 %v2079_v11, %v1911_v50  ;;  %v2248_v49 = vpop.f32.mrf.mxu3 }
 0x315   : > { %v2678_v31 = vpack.c.bf16 %v2614_v29, %v2614_v29  ;;  %v1912_v22 = vpop.f32.mrf.mxu1 }
 0x316   : > { %v2249_v3 = vadd.f32 %v2248_v49, %v2080_v39  ;;  %v1913_v42 = vadd.f32 %v1912_v22, %v1744_v32 }
 0x317   : > { %2743 = vst.msk [vmem:[%s4789_s12 + $0xec] sm:$0xf] %vm2683_vm2, %v2678_v31  ;;  %v2419_v16 = vpop.f32.mrf.mxu0 }
 0x318   : > { %v2418_v14 = vadd.f32 %v2417_v18, %v2249_v3 }
 0x31a   : > { %vm2487_vm5 = vcmp.ge.f32.partialorder %v2418_v14, 0.0  ;;  %v2551_v58 = vmul.f32 0.2, %v2418_v14 }
 0x31b   : > { %v2081_v46 = vpop.f32.mrf.mxu2 }
 0x31c   : > { %v2615_v36 = vsel %vm2487_vm5, %v2418_v14, %v2551_v58  ;;  %v2082_v47 = vadd.f32 %v2081_v46, %v1913_v42  ;;  %v2250_v55 = vpop.f32.mrf.mxu3 }
 0x31d   : > { %v2679_v44 = vpack.c.bf16 %v2615_v36, %v2615_v36  ;;  %v1915_v9 = vpop.f32.mrf.mxu1 }
 0x31e   : > { %v2251_v60 = vadd.f32 %v2250_v55, %v2082_v47  ;;  %v1916_v30 = vadd.f32 %v1915_v9, %v1747_v25 }
 0x31f   : > { %2744 = vst.msk [vmem:[%s4789_s12 + $0xf0] sm:$0xf] %vm2683_vm2, %v2679_v44  ;;  %v2422_v1 = vpop.f32.mrf.mxu0 }
 0x320   : > { %v2420_v21 = vadd.f32 %v2419_v16, %v2251_v60 }
 0x322   : > { %vm2488_vm6 = vcmp.ge.f32.partialorder %v2420_v21, 0.0  ;;  %v2552_v19 = vmul.f32 0.2, %v2420_v21 }
 0x323   : > { %v2084_v56 = vpop.f32.mrf.mxu2 }
 0x324   : > { %v2616_v63 = vsel %vm2488_vm6, %v2420_v21, %v2552_v19  ;;  %v2085_v51 = vadd.f32 %v2084_v56, %v1916_v30  ;;  %v2253_v13 = vpop.f32.mrf.mxu3 }
 0x325   : > { %v2680_v28 = vpack.c.bf16 %v2616_v63, %v2616_v63  ;;  %v1917_v40 = vpop.f32.mrf.mxu1 }
 0x326   : > { %v2254_v24 = vadd.f32 %v2253_v13, %v2085_v51  ;;  %v1918_v35 = vadd.f32 %v1917_v40, %v1749_v41 }
 0x327   : > { %2745 = vst.msk [vmem:[%s4789_s12 + $0xf4] sm:$0xf] %vm2683_vm2, %v2680_v28  ;;  %v2424_v20 = vpop.f32.mrf.mxu0 }
 0x328   : > { %v2423_v6 = vadd.f32 %v2422_v1, %v2254_v24 }
 0x32a   : > { %vm2489_vm0 = vcmp.ge.f32.partialorder %v2423_v6, 0.0  ;;  %v2553_v38 = vmul.f32 0.2, %v2423_v6 }
 0x32b   : > { %v2086_v4 = vpop.f32.mrf.mxu2 }
 0x32c   : > { %v2617_v37 = vsel %vm2489_vm0, %v2423_v6, %v2553_v38  ;;  %v2087_v5 = vadd.f32 %v2086_v4, %v1918_v35  ;;  %v2255_v2 = vpop.f32.mrf.mxu3 }
 0x32d   : > { %v2681_v26 = vpack.c.bf16 %v2617_v37, %v2617_v37 }
 0x32e   : > { %v2256_v62 = vadd.f32 %v2255_v2, %v2087_v5 }
 0x32f   : > { %2746 = vst.msk [vmem:[%s4789_s12 + $0xf8] sm:$0xf] %vm2683_vm2, %v2681_v26 }
 0x330   : > { %v2425_v61 = vadd.f32 %v2424_v20, %v2256_v62 }
 0x332   : > { %vm2490_vm7 = vcmp.ge.f32.partialorder %v2425_v61, 0.0  ;;  %v2554_v15 = vmul.f32 0.2, %v2425_v61 }
 0x333   : > { %2754 = sbr.rel (!%p4376_p4) target bundleno = 888 (0x378), region = 36 }
 0x334   : > { %v2618_v48 = vsel %vm2490_vm7, %v2425_v61, %v2554_v15 }
 0x335   : > { %v2682_v54 = vpack.c.bf16 %v2618_v48, %v2618_v48 }
 0x337   : > { %2747 = vst.msk [vmem:[%s4789_s12 + $0xfc] sm:$0xf] %vm2683_vm2, %v2682_v54 }
 0x338   : > { %s5458_s29 = smov (!%p2757_p8, %s2756_s29), 64 }
 0x339   : > { %s3913_s7 = sshll.u32 %s5458_s29, 2 }
 0x33a   : > { %p3916_p9 = scmp.eq.s32.totalorder %s3913_s7, 0 }
 0x33b   : > { %s5265_s8 = sshrl.u32 (!%p3916_p9), %s5458_s29, 5 }
 0x33c   : > { %2765 = sbr.rel (%p3916_p9) target bundleno = 888 (0x378), region = 40  ;;  %p3917_p10 = scmp.le.s32.totalorder (!%p3916_p9), %s5265_s8, 0 }
 0x341   : > { %3044 = sbr.rel (%p3917_p10) target bundleno = 871 (0x367), region = 112  ;;  %s5449_s15 = smov (!%p3917_p10), %s5259_s6 }
 0x342   : > { %s5450_s20 = smov (!%p3917_p10), %s4789_s12  ;;  %s5274_s27 = smov (!%p3917_p10), 0  }
 0x343   : > { %s5276_s9 = smov (!%p3917_p10), 0  }
 0x346 LB: >> { %v2782_v12 = vld [vmem:[%s4305_s20] sm:$0xf]  ;;  %v2784_v43 = vld [vmem:[%s4305_s20 + $0x4] sm:$0xf]  ;;  %v2786_v52 = vld [vmem:[%s4305_s20 + $0x8] sm:$0xf]  ;;  %s4313_s9 = sphi %s5276_s9, %s2776_s9   ;;  %s4309_s27 = sphi %s5274_s27, %s5453_s27   ;;  %s4305_s20 = sphi %s5450_s20, %s5452_s20   ;;  %s4301_s15 = sphi %s5449_s15, %s5451_s15  }
 0x347   : >> { %2783 = vst [vmem:[%s4301_s15] sm:$0xf] %v2782_v12  ;;  %v2788_v0 = vld [vmem:[%s4305_s20 + $0xc] sm:$0xf]  ;;  %v2790_v59 = vld [vmem:[%s4305_s20 + $0x10] sm:$0xf]  ;;  %s2846_s10 = sadd.s32 1, %s4309_s27 }
 0x348   : >> { %2785 = vst [vmem:[%s4301_s15 + $0x4] sm:$0xf] %v2784_v43  ;;  %v2792_v57 = vld [vmem:[%s4305_s20 + $0x14] sm:$0xf]  ;;  %v2794_v45 = vld [vmem:[%s4305_s20 + $0x18] sm:$0xf]  ;;  %p2847_p11 = scmp.ge.s32.totalorder %s2846_s10, %s5265_s8 }
 0x349   : >> { %2787 = vst [vmem:[%s4301_s15 + $0x8] sm:$0xf] %v2786_v52  ;;  %v2796_v23 = vld [vmem:[%s4305_s20 + $0x1c] sm:$0xf]  ;;  %v2798_v8 = vld [vmem:[%s4305_s20 + $0x20] sm:$0xf] }
 0x34a   : >> { %2789 = vst [vmem:[%s4301_s15 + $0xc] sm:$0xf] %v2788_v0  ;;  %v2800_v17 = vld [vmem:[%s4305_s20 + $0x24] sm:$0xf]  ;;  %v2802_v33 = vld [vmem:[%s4305_s20 + $0x28] sm:$0xf] }
 0x34b   : >> { %2791 = vst [vmem:[%s4301_s15 + $0x10] sm:$0xf] %v2790_v59  ;;  %v2804_v34 = vld [vmem:[%s4305_s20 + $0x2c] sm:$0xf]  ;;  %v2806_v18 = vld [vmem:[%s4305_s20 + $0x30] sm:$0xf] }
 0x34c   : >> { %2793 = vst [vmem:[%s4301_s15 + $0x14] sm:$0xf] %v2792_v57  ;;  %v2808_v53 = vld [vmem:[%s4305_s20 + $0x34] sm:$0xf]  ;;  %v2810_v50 = vld [vmem:[%s4305_s20 + $0x38] sm:$0xf] }
 0x34d   : >> { %2795 = vst [vmem:[%s4301_s15 + $0x18] sm:$0xf] %v2794_v45  ;;  %v2812_v11 = vld [vmem:[%s4305_s20 + $0x3c] sm:$0xf]  ;;  %v2814_v29 = vld [vmem:[%s4305_s20 + $0x40] sm:$0xf] }
 0x34e   : >> { %2797 = vst [vmem:[%s4301_s15 + $0x1c] sm:$0xf] %v2796_v23  ;;  %v2816_v39 = vld [vmem:[%s4305_s20 + $0x44] sm:$0xf]  ;;  %s5460_s10 = smov (%p2847_p11, %s2846_s10), 0  ;;  %s2776_s9 = sadd.s32 1, %s4313_s9  }
 0x34f   : >> { %2799 = vst [vmem:[%s4301_s15 + $0x20] sm:$0xf] %v2798_v8  ;;  %v2818_v49 = vld [vmem:[%s4305_s20 + $0x48] sm:$0xf]  ;;  %v2820_v31 = vld [vmem:[%s4305_s20 + $0x4c] sm:$0xf]  ;;  %p2775_p12 = scmp.ge.s32.totalorder %s2776_s9, %s5265_s8  ;;  %s5453_s27 = smov %s5460_s10 }
 0x350   : >> { %2801 = vst [vmem:[%s4301_s15 + $0x24] sm:$0xf] %v2800_v17  ;;  %s3918_s11 = sshll.u32 %s5460_s10, 7  ;;  %v2822_v22 = vld [vmem:[%s4305_s20 + $0x50] sm:$0xf] }
 0x351   : >> { %2803 = vst [vmem:[%s4301_s15 + $0x28] sm:$0xf] %v2802_v33  ;;  %s5335_s14 = scalar_lea.vmem %s4789_s12, %s3918_s11 [#allocation2]   ;;  %s2852_s18 = scalar_lea.vmem %s5259_s6, %s3918_s11   ;;  %v2824_v3 = vld [vmem:[%s4305_s20 + $0x54] sm:$0xf]  ;;  %v2826_v7 = vld [vmem:[%s4305_s20 + $0x58] sm:$0xf] }
 0x352   : >> { %2805 = vst [vmem:[%s4301_s15 + $0x2c] sm:$0xf] %v2804_v34  ;;  %v2828_v32 = vld [vmem:[%s4305_s20 + $0x5c] sm:$0xf]  ;;  %v2830_v14 = vld [vmem:[%s4305_s20 + $0x60] sm:$0xf] }
 0x353   : >> { %2807 = vst [vmem:[%s4301_s15 + $0x30] sm:$0xf] %v2806_v18  ;;  %v2832_v58 = vld [vmem:[%s4305_s20 + $0x64] sm:$0xf]  ;;  %v2834_v42 = vld [vmem:[%s4305_s20 + $0x68] sm:$0xf] }
 0x354   : >> { %2809 = vst [vmem:[%s4301_s15 + $0x34] sm:$0xf] %v2808_v53  ;;  %v2836_v16 = vld [vmem:[%s4305_s20 + $0x6c] sm:$0xf]  ;;  %v2838_v46 = vld [vmem:[%s4305_s20 + $0x70] sm:$0xf] }
 0x355   : >> { %2811 = vst [vmem:[%s4301_s15 + $0x38] sm:$0xf] %v2810_v50  ;;  %v2840_v36 = vld [vmem:[%s4305_s20 + $0x74] sm:$0xf]  ;;  %v2842_v47 = vld [vmem:[%s4305_s20 + $0x78] sm:$0xf] }
 0x356   : >> { %2813 = vst [vmem:[%s4301_s15 + $0x3c] sm:$0xf] %v2812_v11  ;;  %v2844_v55 = vld [vmem:[%s4305_s20 + $0x7c] sm:$0xf]  ;;  %s5452_s20 = smov %s5335_s14 }
 0x357   : >> { %2815 = vst [vmem:[%s4301_s15 + $0x40] sm:$0xf] %v2814_v29 }
 0x358   : >> { %2817 = vst [vmem:[%s4301_s15 + $0x44] sm:$0xf] %v2816_v39 }
 0x359   : >> { %2819 = vst [vmem:[%s4301_s15 + $0x48] sm:$0xf] %v2818_v49 }
 0x35a   : >> { %2821 = vst [vmem:[%s4301_s15 + $0x4c] sm:$0xf] %v2820_v31 }
 0x35b   : >> { %2823 = vst [vmem:[%s4301_s15 + $0x50] sm:$0xf] %v2822_v22 }
 0x35c   : >> { %2825 = vst [vmem:[%s4301_s15 + $0x54] sm:$0xf] %v2824_v3 }
 0x35d   : >> { %2827 = vst [vmem:[%s4301_s15 + $0x58] sm:$0xf] %v2826_v7 }
 0x35e   : >> { %2829 = vst [vmem:[%s4301_s15 + $0x5c] sm:$0xf] %v2828_v32 }
 0x35f   : >> { %2831 = vst [vmem:[%s4301_s15 + $0x60] sm:$0xf] %v2830_v14 }
 0x360   : >> { %2833 = vst [vmem:[%s4301_s15 + $0x64] sm:$0xf] %v2832_v58 }
 0x361   : >> { %2835 = vst [vmem:[%s4301_s15 + $0x68] sm:$0xf] %v2834_v42 }
 0x362   : >> { %2837 = vst [vmem:[%s4301_s15 + $0x6c] sm:$0xf] %v2836_v16  ;;  %2778 = sbr.rel (!%p2775_p12) target bundleno = 838 (0x346), region = 118 }
 0x363   : >> { %2839 = vst [vmem:[%s4301_s15 + $0x70] sm:$0xf] %v2838_v46 }
 0x364   : >> { %2841 = vst [vmem:[%s4301_s15 + $0x74] sm:$0xf] %v2840_v36 }
 0x365   : >> { %2843 = vst [vmem:[%s4301_s15 + $0x78] sm:$0xf] %v2842_v47 }
 0x366   : >> { %2845 = vst [vmem:[%s4301_s15 + $0x7c] sm:$0xf] %v2844_v55  ;;  %s5451_s15 = smov %s2852_s18 }
 0x367 PF: > { %s5376_s21 = sand.u32 31, %s5458_s29   ;;  %s4125_s22 = sshll.u32 %s5265_s8, 7 }
 0x368   : > { %s2857_s23 = scalar_lea.vmem %s4789_s12, %s4125_s22 [#allocation2]   ;;  %s2859_s24 = scalar_lea.vmem %s5259_s6, %s4125_s22  }
 0x369   : > { %p3923_p13 = scmp.le.s32.totalorder %s5376_s21, 0 }
 0x36a   : > { %s4315_s25 = smov (!%p3923_p13), %s2859_s24   ;;  %s4319_s26 = smov (!%p3923_p13), %s2857_s23  }
 0x36b   : > { %3058 = sbr.rel (%p3923_p13) target bundleno = 888 (0x378), region = 123  ;;  %s4323_s17 = smov (!%p3923_p13), 0  }
 0x36c   : > { %s4327_s28 = smov (!%p3923_p13), 0  }
 0x370 LB: >> { %v2869_v44 = vld [vmem:[%s4321_s26] sm:$0xf]  ;;  %s2871_s29 = sadd.s32 1, %s4325_s17  ;;  %s2863_s28 = sadd.s32 1, %s4329_s28   ;;  %s4329_s28 = sphi %s4327_s28, %s2863_s28   ;;  %s4325_s17 = sphi %s4323_s17, %s4324_s17   ;;  %s4321_s26 = sphi %s4319_s26, %s2876_s26   ;;  %s4317_s25 = sphi %s4315_s25, %s2877_s25  }
 0x371   : >> { %2870 = vst [vmem:[%s4317_s25] sm:$0xf] %v2869_v44  ;;  %p2872_p0 = scmp.ge.s32.totalorder %s2871_s29, %s5376_s21  ;;  %p2862_p1 = scmp.ge.s32.totalorder %s2863_s28, %s5376_s21 }
 0x373   : >> { %s5462_s29 = smov (%p2872_p0, %s2871_s29), 0  ;;  %2865 = sbr.rel (!%p2862_p1) target bundleno = 880 (0x370), region = 129 }
 0x374   : >> { %s3924_s12 = sshll.u32 %s5462_s29, 2  ;;  %s4324_s17 = smov %s5462_s29  }
 0x375   : >> { %s2876_s26 = scalar_lea.vmem %s2857_s23, %s3924_s12 [#allocation2]   ;;  %s2877_s25 = scalar_lea.vmem %s2859_s24, %s3924_s12  }
 0x378 PF: > { %p10_p2 = scmp.ge.s32.totalorder %s4366_s16, 6   ;;  %s5454_s12 = smov %s4293_s13 }
 0x379   : > { %s5455_s13 = smov %s4374_s19  ;;  %s5456_s14 = smov %s4366_s16 }
 0x37a   :  { %12 = sbr.rel (!%p10_p2) target bundleno = 2 (0x2), region = 140 }

// kernel: model_forward.9
= control target key start
LH: loop header
LB: loop body
LE: loop exit
PB: predicated region body
PF: predicated region fallthrough
CT: control target
= control target key end

     0   :  { %vm1195_vm0 = vcmask 523264   ;;  %vm2276_vm2 = vcmask 519168   ;;  %s4920_s1 = inlined_call_operand.vmem [shape: bf16[576,64], index: 1, kind: input, shape index: {}]   ;;  %s4921_s2 = inlined_call_operand.vmem [shape: f32[1,64], index: 2, kind: input, shape index: {}]   ;;  %s4922_s0 = inlined_call_operand.vmem [shape: bf16[450,576], index: 0, kind: input, shape index: {}]   ;;  %s4923_s3 = inlined_call_operand.vmem [shape: bf16[450,64], index: 3, kind: output, shape index: {}]  }
   0x1   :  { %v3218_v0 = vld [vmem:[%s4920_s1 + $0x38] sm:$0xff]  ;;  %v3217_v1 = vld [vmem:[%s4920_s1 + $0x30] sm:$0xff]  ;;  %v3216_v2 = vld [vmem:[%s4920_s1 + $0x28] sm:$0xff] }
   0x2   :  { %3247 = vmatpush.bf16.msra.mxu1 %v3218_v0  ;;  %3248 = vmatpush.bf16.msra.mxu2 %v3218_v0  ;;  %v3215_v3 = vld [vmem:[%s4920_s1 + $0x20] sm:$0xff]  ;;  %v3214_v4 = vld [vmem:[%s4920_s1 + $0x18] sm:$0xff]  ;;  %v3213_v5 = vld [vmem:[%s4920_s1 + $0x10] sm:$0xff] }
   0x3   :  { %1283 = vmatpush.bf16.msra.mxu0 %v3218_v0  ;;  %3249 = vmatpush.bf16.msra.mxu3 %v3218_v0  ;;  %v3212_v6 = vld [vmem:[%s4920_s1 + $0x8] sm:$0xff]  ;;  %v3211_v7 = vld [vmem:[%s4920_s1] sm:$0xff]  ;;  %v3113_v9 = vld [vmem:[%s4922_s0 + $0x150] sm:$0xf0] }
   0x4   :  { %v2500_v8 = vld [vmem:[%s4922_s0 + $0x140] sm:$0xf]  ;;  %v3153_v11 = vld [vmem:[%s4922_s0 + $0x290] sm:$0xf0]  ;;  %v3234_v12 = vld [vmem:[%s4920_s1 + $0xb8] sm:$0xff] }
   0x5   :  { %v2660_v10 = vld [vmem:[%s4922_s0 + $0x280] sm:$0xf]  ;;  %v3073_v14 = vld [vmem:[%s4922_s0 + $0x10] sm:$0xf0]  ;;  %v3226_v15 = vld [vmem:[%s4920_s1 + $0x78] sm:$0xff]  ;;  %v2501_v17 = vor.u32 %v3113_v9, %v2500_v8 }
   0x6   :  { %3250 = vmatpush.bf16.msra.mxu1 %v3217_v1  ;;  %3251 = vmatpush.bf16.msra.mxu2 %v3217_v1  ;;  %v2340_v13 = vld [vmem:[%s4922_s0] sm:$0xf]  ;;  %v3246_v16 = vld [vmem:[%s4920_s1 + $0x118] sm:$0xff]  ;;  %v2661_v18 = vor.u32 %v3153_v11, %v2660_v10  ;;  %v3233_v20 = vld [vmem:[%s4920_s1 + $0xb0] sm:$0xff] }
   0x7   :  { %1284 = vmatpush.bf16.msra.mxu0 %v3217_v1  ;;  %3252 = vmatpush.bf16.msra.mxu3 %v3217_v1  ;;  %v2341_v19 = vor.u32 %v3073_v14, %v2340_v13  ;;  %v3225_v21 = vld [vmem:[%s4920_s1 + $0x70] sm:$0xff]  ;;  %v2820_v22 = vld [vmem:[%s4922_s0 + $0x3c0] sm:$0xf]  ;;  %v3232_v24 = vld [vmem:[%s4920_s1 + $0xa8] sm:$0xff] }
   0x8   :  { %v3193_v23 = vld [vmem:[%s4922_s0 + $0x3d0] sm:$0xf0]  ;;  %v3224_v27 = vld [vmem:[%s4920_s1 + $0x68] sm:$0xff]  ;;  %v3118_v29 = vld [vmem:[%s4922_s0 + $0x178] sm:$0xf0] }
   0x9   :  { %v2821_v25 = vor.u32 %v3193_v23, %v2820_v22  ;;  %v3245_v26 = vld [vmem:[%s4920_s1 + $0x110] sm:$0xff]  ;;  %v2520_v28 = vld [vmem:[%s4922_s0 + $0x168] sm:$0xf]  ;;  %v3158_v31 = vld [vmem:[%s4922_s0 + $0x2b8] sm:$0xf0] }
   0xa   :  { %3253 = vmatpush.bf16.msra.mxu1 %v3216_v2  ;;  %3254 = vmatpush.bf16.msra.mxu2 %v3216_v2  ;;  %v2680_v30 = vld [vmem:[%s4922_s0 + $0x2a8] sm:$0xf]  ;;  %v3078_v33 = vld [vmem:[%s4922_s0 + $0x38] sm:$0xf0]  ;;  %v2521_v34 = vor.u32 %v3118_v29, %v2520_v28  ;;  %v3231_v37 = vld [vmem:[%s4920_s1 + $0xa0] sm:$0xff] }
   0xb   :  { %1285 = vmatpush.bf16.msra.mxu0 %v3216_v2  ;;  %3255 = vmatpush.bf16.msra.mxu3 %v3216_v2  ;;  %v2360_v32 = vld [vmem:[%s4922_s0 + $0x28] sm:$0xf]  ;;  %v2681_v35 = vor.u32 %v3158_v31, %v2680_v30  ;;  %v3242_v38 = vld [vmem:[%s4920_s1 + $0xf8] sm:$0xff]  ;;  %v3223_v39 = vld [vmem:[%s4920_s1 + $0x60] sm:$0xff] }
   0xc   :  { %v2361_v36 = vor.u32 %v3078_v33, %v2360_v32  ;;  %v2840_v40 = vld [vmem:[%s4922_s0 + $0x3e8] sm:$0xf]  ;;  %v3198_v41 = vld [vmem:[%s4922_s0 + $0x3f8] sm:$0xf0]  ;;  %v3241_v43 = vld [vmem:[%s4920_s1 + $0xf0] sm:$0xff] }
   0xd   :  { %v2841_v42 = vor.u32 %v3198_v41, %v2840_v40  ;;  %v2540_v44 = vld [vmem:[%s4922_s0 + $0x190] sm:$0xf]  ;;  %v3123_v45 = vld [vmem:[%s4922_s0 + $0x1a0] sm:$0xf0]  ;;  %v3230_v53 = vld [vmem:[%s4920_s1 + $0x98] sm:$0xff] }
   0xe   :  { %3256 = vmatpush.bf16.msra.mxu1 %v3215_v3  ;;  %3257 = vmatpush.bf16.msra.mxu2 %v3215_v3  ;;  %v2700_v46 = vld [vmem:[%s4922_s0 + $0x2d0] sm:$0xf]  ;;  %v3163_v47 = vld [vmem:[%s4922_s0 + $0x2e0] sm:$0xf0]  ;;  %v2541_v50 = vor.u32 %v3123_v45, %v2540_v44  ;;  %v3222_v54 = vld [vmem:[%s4920_s1 + $0x58] sm:$0xff] }
   0xf   :  { %1286 = vmatpush.bf16.msra.mxu0 %v3215_v3  ;;  %3258 = vmatpush.bf16.msra.mxu3 %v3215_v3  ;;  %v2380_v48 = vld [vmem:[%s4922_s0 + $0x50] sm:$0xf]  ;;  %v3083_v49 = vld [vmem:[%s4922_s0 + $0x60] sm:$0xf0]  ;;  %v2701_v51 = vor.u32 %v3163_v47, %v2700_v46  ;;  %v3240_v55 = vld [vmem:[%s4920_s1 + $0xe8] sm:$0xff] }
  0x10   :  { %v2381_v52 = vor.u32 %v3083_v49, %v2380_v48  ;;  %v2860_v56 = vld [vmem:[%s4922_s0 + $0x410] sm:$0xf]  ;;  %v3203_v57 = vld [vmem:[%s4922_s0 + $0x420] sm:$0xf0]  ;;  %v3244_v58 = vld [vmem:[%s4920_s1 + $0x108] sm:$0xff] }
  0x11   :  { %v2861_v59 = vor.u32 %v3203_v57, %v2860_v56  ;;  %v2560_v60 = vld [vmem:[%s4922_s0 + $0x1b8] sm:$0xf]  ;;  %v3128_v61 = vld [vmem:[%s4922_s0 + $0x1c8] sm:$0xf0]  ;;  %v3133_v13 = vld [vmem:[%s4922_s0 + $0x1f0] sm:$0xf0] }
  0x12   :  { %3259 = vmatpush.bf16.msra.mxu1 %v3214_v4  ;;  %3260 = vmatpush.bf16.msra.mxu2 %v3214_v4  ;;  %v2720_v62 = vld [vmem:[%s4922_s0 + $0x2f8] sm:$0xf]  ;;  %v3168_v63 = vld [vmem:[%s4922_s0 + $0x308] sm:$0xf0]  ;;  %v2561_v2 = vor.u32 %v3128_v61, %v2560_v60  ;;  %v2740_v14 = vld [vmem:[%s4922_s0 + $0x320] sm:$0xf] }
  0x13   :  { %1287 = vmatpush.bf16.msra.mxu0 %v3214_v4  ;;  %3261 = vmatpush.bf16.msra.mxu3 %v3214_v4  ;;  %v2400_v0 = vld [vmem:[%s4922_s0 + $0x78] sm:$0xf]  ;;  %v3088_v1 = vld [vmem:[%s4922_s0 + $0x88] sm:$0xf0]  ;;  %v2721_v3 = vor.u32 %v3168_v63, %v2720_v62  ;;  %v3237_v23 = vld [vmem:[%s4920_s1 + $0xd0] sm:$0xff] }
  0x14   :  { %v2401_v4 = vor.u32 %v3088_v1, %v2400_v0  ;;  %v2880_v8 = vld [vmem:[%s4922_s0 + $0x438] sm:$0xf]  ;;  %v3208_v9 = vld [vmem:[%s4922_s0 + $0x448] sm:$0xf0]  ;;  %v2600_v29 = vld [vmem:[%s4922_s0 + $0x208] sm:$0xf] }
  0x15   :  { %v2881_v10 = vor.u32 %v3208_v9, %v2880_v8  ;;  %v3238_v11 = vld [vmem:[%s4920_s1 + $0xd8] sm:$0xff]  ;;  %v3220_v22 = vld [vmem:[%s4920_s1 + $0x48] sm:$0xff]  ;;  %v3235_v40 = vld [vmem:[%s4920_s1 + $0xc0] sm:$0xff] }
  0x16   :  { %3262 = vmatpush.bf16.msra.mxu1 %v3213_v5  ;;  %3263 = vmatpush.bf16.msra.mxu2 %v3213_v5  ;;  %v3138_v30 = vld [vmem:[%s4922_s0 + $0x218] sm:$0xf0]  ;;  %v2760_v31 = vld [vmem:[%s4922_s0 + $0x348] sm:$0xf]  ;;  %v3072_v41 = vld [vmem:[%s4922_s0 + $0xc] sm:$0xf] }
  0x17   :  { %1288 = vmatpush.bf16.msra.mxu0 %v3213_v5  ;;  %3264 = vmatpush.bf16.msra.mxu3 %v3213_v5  ;;  %v3229_v5 = vld [vmem:[%s4920_s1 + $0x90] sm:$0xff]  ;;  %v3178_v32 = vld [vmem:[%s4922_s0 + $0x358] sm:$0xf0]  ;;  %v2440_v33 = vld [vmem:[%s4922_s0 + $0xc8] sm:$0xf] }
  0x18   :  { %v2620_v44 = vld [vmem:[%s4922_s0 + $0x230] sm:$0xf]  ;;  %v3143_v45 = vld [vmem:[%s4922_s0 + $0x240] sm:$0xf0]  ;;  %v3148_v57 = vld [vmem:[%s4922_s0 + $0x268] sm:$0xf0] }
  0x19   :  { %v2780_v46 = vld [vmem:[%s4922_s0 + $0x370] sm:$0xf]  ;;  %v3183_v47 = vld [vmem:[%s4922_s0 + $0x380] sm:$0xf0]  ;;  %v2480_v60 = vld [vmem:[%s4922_s0 + $0x118] sm:$0xf] }
  0x1a   :  { %3265 = vmatpush.bf16.msra.mxu1 %v3212_v6  ;;  %3266 = vmatpush.bf16.msra.mxu2 %v3212_v6  ;;  %v2460_v48 = vld [vmem:[%s4922_s0 + $0xf0] sm:$0xf]  ;;  %v3103_v49 = vld [vmem:[%s4922_s0 + $0x100] sm:$0xf0]  ;;  %v3108_v61 = vld [vmem:[%s4922_s0 + $0x128] sm:$0xf0] }
  0x1b   :  { %1289 = vmatpush.bf16.msra.mxu0 %v3212_v6  ;;  %3267 = vmatpush.bf16.msra.mxu3 %v3212_v6  ;;  %v3239_v6 = vld [vmem:[%s4920_s1 + $0xe0] sm:$0xff]  ;;  %v2481_v0 = vor.u32 %v3108_v61, %v2480_v60  ;;  %v3082_v1 = vld [vmem:[%s4922_s0 + $0x5c] sm:$0xf]  ;;  %v2356_v8 = vld [vmem:[%s4922_s0 + $0x10] sm:$0xf] }
  0x1c   :  { %v3075_v9 = vld [vmem:[%s4922_s0 + $0x20] sm:$0xf0]  ;;  %v3086_v60 = vld [vmem:[%s4922_s0 + $0x7c] sm:$0xf] }
  0x1e   :  { %3268 = vmatpush.bf16.msra.mxu1 %v3211_v7  ;;  %3269 = vmatpush.bf16.msra.mxu2 %v3211_v7 }
  0x1f   :  { %1290 = vmatpush.bf16.msra.mxu0 %v3211_v7  ;;  %3270 = vmatpush.bf16.msra.mxu3 %v3211_v7  ;;  %v3221_v7 = vld [vmem:[%s4920_s1 + $0x50] sm:$0xff] }
  0x21   :  { %1331 = vmatmul.bf16.vlgmr.msra.gmra.mxu1 %v2501_v17  ;;  %1371 = vmatmul.bf16.vlgmr.msra.gmra.mxu2 %v2661_v18  ;;  %v3093_v17 = vld [vmem:[%s4922_s0 + $0xb0] sm:$0xf0] }
  0x22   :  { %1589 = vmatpush.bf16.msrb.mxu2 %v3234_v12  ;;  %1436 = vmatpush.bf16.msrb.mxu1 %v3226_v15  ;;  %v2580_v12 = vld [vmem:[%s4922_s0 + $0x1e0] sm:$0xf]  ;;  %v3173_v15 = vld [vmem:[%s4922_s0 + $0x330] sm:$0xf0] }
  0x23   :  { %1899 = vmatpush.bf16.msrb.mxu0 %v3246_v16  ;;  %1411 = vmatmul.bf16.vlgmr.msra.gmra.mxu3 %v2821_v25  ;;  %v2420_v16 = vld [vmem:[%s4922_s0 + $0xa0] sm:$0xf]  ;;  %v2581_v18 = vor.u32 %v3133_v13, %v2580_v12  ;;  %v2357_v13 = vor.u32 %v3075_v9, %v2356_v8 }
  0x24   :  { %1291 = vmatmul.bf16.vlgmr.msra.gmra.mxu0 %v2341_v19  ;;  %1742 = vmatpush.bf16.msrb.mxu3 %v3242_v38  ;;  %v2741_v19 = vor.u32 %v3173_v15, %v2740_v14  ;;  %v3227_v38 = vld [vmem:[%s4920_s1 + $0x80] sm:$0xff] }
  0x26   :  { %1590 = vmatpush.bf16.msrb.mxu2 %v3233_v20  ;;  %1437 = vmatpush.bf16.msrb.mxu1 %v3225_v21  ;;  %v2421_v20 = vor.u32 %v3093_v17, %v2420_v16  ;;  %v3228_v21 = vld [vmem:[%s4920_s1 + $0x88] sm:$0xff] }
  0x27   :  { %1900 = vmatpush.bf16.msrb.mxu0 %v3245_v26  ;;  %v3243_v26 = vld [vmem:[%s4920_s1 + $0x100] sm:$0xff] }
  0x28   :  { %1743 = vmatpush.bf16.msrb.mxu3 %v3241_v43 }
  0x2a   :  { %1591 = vmatpush.bf16.msrb.mxu2 %v3232_v24  ;;  %1438 = vmatpush.bf16.msrb.mxu1 %v3224_v27  ;;  %v183_v24 = vld [vmem:[%s4922_s0 + $0x460] sm:$0xff]  ;;  %v3236_v27 = vld [vmem:[%s4920_s1 + $0xc8] sm:$0xff] }
  0x2b   :  { %1901 = vmatpush.bf16.msrb.mxu0 %v3244_v58  ;;  %v713_v25 = vunpack.c.l.b16 %v183_v24  ;;  %v2800_v58 = vld [vmem:[%s4922_s0 + $0x398] sm:$0xf]  ;;  %v3079_v24 = vld [vmem:[%s4922_s0 + $0x40] sm:$0xf0] }
  0x2c   :  { %1744 = vmatpush.bf16.msrb.mxu3 %v3240_v55  ;;  %v2640_v55 = vld [vmem:[%s4922_s0 + $0x258] sm:$0xf] }
  0x2d   :  { %v858_v28 = vpack.c.b16 %v713_v25, %v713_v25  ;;  %v2641_v62 = vor.u32 %v3148_v57, %v2640_v55  ;;  %v2376_v25 = vld [vmem:[%s4922_s0 + $0x38] sm:$0xf] }
  0x2e   :  { %1592 = vmatpush.bf16.msrb.mxu2 %v3231_v37  ;;  %1439 = vmatpush.bf16.msrb.mxu1 %v3223_v39  ;;  %v3219_v39 = vld [vmem:[%s4920_s1 + $0x40] sm:$0xff] }
  0x2f   :  { %1902 = vmatpush.bf16.msrb.mxu0 %v3243_v26  ;;  %v3080_v26 = vld [vmem:[%s4922_s0 + $0x48] sm:$0xf0] }
  0x30   :  { %1745 = vmatpush.bf16.msrb.mxu3 %v3239_v6  ;;  %v2348_v6 = vld [vmem:[%s4922_s0 + $0x8] sm:$0xf] }
  0x31   :  { %1336 = vmatmul.bf16.gmra.mxu1 %v2521_v34  ;;  %1376 = vmatmul.bf16.gmra.mxu2 %v2681_v35  ;;  %v3098_v34 = vld [vmem:[%s4922_s0 + $0xd8] sm:$0xf0]  ;;  %v2601_v35 = vor.u32 %v3138_v30, %v2600_v29 }
  0x32   :  { %1593 = vmatpush.bf16.msrb.mxu2 %v3230_v53  ;;  %1440 = vmatpush.bf16.msrb.mxu1 %v3222_v54  ;;  %v2441_v37 = vor.u32 %v3098_v34, %v2440_v33  ;;  %v3077_v53 = vld [vmem:[%s4922_s0 + $0x34] sm:$0xf]  ;;  %v2370_v54 = vld [vmem:[%s4922_s0 + $0x44] sm:$0xf0] }
  0x33   :  { %1416 = vmatmul.bf16.gmra.mxu3 %v2841_v42  ;;  %v2350_v42 = vld [vmem:[%s4922_s0 + $0x1c] sm:$0xf0]  ;;  %v2373_v56 = vor.u32 %v3077_v53, %v2370_v54 }
  0x34   :  { %1296 = vmatmul.bf16.gmra.mxu0 %v2361_v36  ;;  %1746 = vmatpush.bf16.msrb.mxu3 %v3238_v11  ;;  %v2761_v36 = vor.u32 %v3178_v32, %v2760_v31  ;;  %v2353_v43 = vor.u32 %v3072_v41, %v2350_v42  ;;  %v2377_v31 = vor.u32 %v3080_v26, %v2376_v25  ;;  %v2382_v42 = vld [vmem:[%s4922_s0 + $0x64] sm:$0xf0]  ;;  %v3094_v25 = vld [vmem:[%s4922_s0 + $0xb8] sm:$0xf0]  ;;  %v2436_v26 = vld [vmem:[%s4922_s0 + $0xb0] sm:$0xf] }
  0x36   :  { %1594 = vmatpush.bf16.msrb.mxu2 %v3229_v5  ;;  %1441 = vmatpush.bf16.msrb.mxu1 %v3221_v7  ;;  %v2342_v5 = vld [vmem:[%s4922_s0 + $0x14] sm:$0xf0]  ;;  %v3074_v7 = vld [vmem:[%s4922_s0 + $0x18] sm:$0xf0] }
  0x37   :  { %v2349_v11 = vor.u32 %v3074_v7, %v2348_v6 }
  0x38   :  { %1747 = vmatpush.bf16.msrb.mxu3 %v3237_v23  ;;  %v2368_v23 = vld [vmem:[%s4922_s0 + $0x30] sm:$0xf] }
  0x39   :  { %v2369_v29 = vor.u32 %v3079_v24, %v2368_v23  ;;  %v2422_v23 = vld [vmem:[%s4922_s0 + $0xb4] sm:$0xf0]  ;;  %v2428_v24 = vld [vmem:[%s4922_s0 + $0xa8] sm:$0xf] }
  0x3a   :  { %1595 = vmatpush.bf16.msrb.mxu2 %v3228_v21  ;;  %1442 = vmatpush.bf16.msrb.mxu1 %v3220_v22  ;;  %v2362_v22 = vld [vmem:[%s4922_s0 + $0x3c] sm:$0xf0] }
  0x3c   :  { %1748 = vmatpush.bf16.msrb.mxu3 %v3236_v27 }
  0x3e   :  { %1596 = vmatpush.bf16.msrb.mxu2 %v3227_v38  ;;  %1443 = vmatpush.bf16.msrb.mxu1 %v3219_v39  ;;  %v3092_v38 = vld [vmem:[%s4922_s0 + $0xac] sm:$0xf]  ;;  %v2430_v39 = vld [vmem:[%s4922_s0 + $0xbc] sm:$0xf0] }
  0x3f   :  { %v2433_v41 = vor.u32 %v3092_v38, %v2430_v39  ;;  %v2429_v38 = vor.u32 %v3094_v25, %v2428_v24  ;;  %v3112_v24 = vld [vmem:[%s4922_s0 + $0x14c] sm:$0xf]  ;;  %v2510_v25 = vld [vmem:[%s4922_s0 + $0x15c] sm:$0xf0] }
  0x40   :  { %1749 = vmatpush.bf16.msrb.mxu3 %v3235_v40  ;;  %v3081_v40 = vld [vmem:[%s4922_s0 + $0x54] sm:$0xf] }
  0x41   :  { %1341 = vmatmul.bf16.gmra.mxu1 %v2541_v50  ;;  %1381 = vmatmul.bf16.gmra.mxu2 %v2701_v51  ;;  %v2621_v50 = vor.u32 %v3143_v45, %v2620_v44  ;;  %v2781_v51 = vor.u32 %v3183_v47, %v2780_v46  ;;  %v3084_v44 = vld [vmem:[%s4922_s0 + $0x68] sm:$0xf0]  ;;  %v2396_v45 = vld [vmem:[%s4922_s0 + $0x60] sm:$0xf]  ;;  %v3085_v46 = vld [vmem:[%s4922_s0 + $0x70] sm:$0xf0] }
  0x43   :  { %1421 = vmatmul.bf16.gmra.mxu3 %v2861_v59  ;;  %v3188_v59 = vld [vmem:[%s4922_s0 + $0x3a8] sm:$0xf0] }
  0x44   :  { %1301 = vmatmul.bf16.gmra.mxu0 %v2381_v52  ;;  %v2461_v52 = vor.u32 %v3103_v49, %v2460_v48  ;;  %v2801_v63 = vor.u32 %v3188_v59, %v2800_v58  ;;  %v2385_v48 = vor.u32 %v3081_v40, %v2382_v42  ;;  %v3097_v58 = vld [vmem:[%s4922_s0 + $0xd4] sm:$0xf]  ;;  %v2450_v59 = vld [vmem:[%s4922_s0 + $0xe4] sm:$0xf0] }
  0x45   :  { %v2453_v61 = vor.u32 %v3097_v58, %v2450_v59  ;;  %v2442_v59 = vld [vmem:[%s4922_s0 + $0xdc] sm:$0xf0] }
  0x51   :  { %1346 = vmatmul.bf16.gmra.mxu1 %v2561_v2  ;;  %1386 = vmatmul.bf16.gmra.mxu2 %v2721_v3  ;;  %v2390_v2 = vld [vmem:[%s4922_s0 + $0x6c] sm:$0xf0]  ;;  %v3071_v3 = vld [vmem:[%s4922_s0 + $0x4] sm:$0xf] }
  0x53   :  { %1426 = vmatmul.bf16.gmra.mxu3 %v2881_v10  ;;  %v2345_v10 = vor.u32 %v3071_v3, %v2342_v5 }
  0x54   :  { %1306 = vmatmul.bf16.gmra.mxu0 %v2401_v4  ;;  %v2393_v4 = vor.u32 %v3082_v1, %v2390_v2  ;;  %v2416_v1 = vld [vmem:[%s4922_s0 + $0x88] sm:$0xf]  ;;  %v3090_v2 = vld [vmem:[%s4922_s0 + $0x98] sm:$0xf0] }
  0x55   :  { %v2417_v7 = vor.u32 %v3090_v2, %v2416_v1 }
  0x61   :  { %1351 = vmatmul.bf16.gmra.mxu1 %v2581_v18  ;;  %1391 = vmatmul.bf16.gmra.mxu2 %v2741_v19  ;;  %v3087_v18 = vld [vmem:[%s4922_s0 + $0x84] sm:$0xf]  ;;  %v2410_v19 = vld [vmem:[%s4922_s0 + $0x94] sm:$0xf0] }
  0x62   :  { %v2413_v21 = vor.u32 %v3087_v18, %v2410_v19  ;;  %v3102_v19 = vld [vmem:[%s4922_s0 + $0xfc] sm:$0xf] }
  0x63   :  { %1431 = vmatmul.bf16.gmra.mxu3 %v858_v28 }
  0x64   :  { %1311 = vmatmul.bf16.gmra.mxu0 %v2421_v20  ;;  %v3076_v20 = vld [vmem:[%s4922_s0 + $0x2c] sm:$0xf] }
  0x65   :  { %v2365_v28 = vor.u32 %v3076_v20, %v2362_v22  ;;  %v2470_v20 = vld [vmem:[%s4922_s0 + $0x10c] sm:$0xf0] }
  0x66   :  { %v2473_v22 = vor.u32 %v3102_v19, %v2470_v20 }
  0x71   :  { %1356 = vmatmul.bf16.gmra.mxu1 %v2601_v35  ;;  %1396 = vmatmul.bf16.gmra.mxu2 %v2761_v36 }
  0x73   :  { %1750 = vmatmul.bf16.vlgmr.msrb.gmra.mxu3 %v2353_v43  ;;  %v2388_v43 = vld [vmem:[%s4922_s0 + $0x58] sm:$0xf] }
  0x74   :  { %1316 = vmatmul.bf16.gmra.mxu0 %v2441_v37  ;;  %v2389_v49 = vor.u32 %v3084_v44, %v2388_v43 }
  0x81   :  { %1361 = vmatmul.bf16.gmra.mxu1 %v2621_v50  ;;  %1401 = vmatmul.bf16.gmra.mxu2 %v2781_v51  ;;  %v2397_v51 = vor.u32 %v3085_v46, %v2396_v45 }
  0x83   :  { %1755 = vmatmul.bf16.gmra.mxu3 %v2373_v56 }
  0x84   :  { %1321 = vmatmul.bf16.gmra.mxu0 %v2461_v52 }
  0x91   :  { %1366 = vmatmul.bf16.gmra.mxu1 %v2641_v62  ;;  %1406 = vmatmul.bf16.gmra.mxu2 %v2801_v63  ;;  %v2402_v62 = vld [vmem:[%s4922_s0 + $0x8c] sm:$0xf0]  ;;  %v2408_v63 = vld [vmem:[%s4922_s0 + $0x80] sm:$0xf] }
  0x93   :  { %1760 = vmatmul.bf16.gmra.mxu3 %v2393_v4  ;;  %v2405_v4 = vor.u32 %v3086_v60, %v2402_v62  ;;  %v2448_v60 = vld [vmem:[%s4922_s0 + $0xd0] sm:$0xf]  ;;  %v2456_v62 = vld [vmem:[%s4922_s0 + $0xd8] sm:$0xf] }
  0x94   :  { %1326 = vmatmul.bf16.gmra.mxu0 %v2481_v0  ;;  %v3089_v0 = vld [vmem:[%s4922_s0 + $0x90] sm:$0xf0] }
  0x95   :  { %v2409_v5 = vor.u32 %v3089_v0, %v2408_v63  ;;  %v3100_v63 = vld [vmem:[%s4922_s0 + $0xe8] sm:$0xf0] }
  0x9e   :  { %v3610_v12 = vpop.f32.mrf.mxu1 }
  0xa1   :  { %v3612_v14 = vpop.f32.mrf.mxu0  ;;  %1444 = vmatmul.bf16.vlgmr.msrb.gmra.mxu1 %v2345_v10  ;;  %1597 = vmatmul.bf16.vlgmr.msrb.gmra.mxu2 %v2349_v11 }
  0xa3   :  { %1765 = vmatmul.bf16.gmra.mxu3 %v2413_v21  ;;  %v3091_v21 = vld [vmem:[%s4922_s0 + $0xa4] sm:$0xf] }
  0xa4   :  { %3042 = vmatmul.msk.bf16.vlgmr.msrb.gmra.mxu0 %vm1195_vm0, %v2357_v13  ;;  %v3615_v15 = vpop.f32.mrf.mxu2 }
  0xa6   :  { %v3617_v16 = vpop.f32.mrf.mxu1  ;;  %v3649_v32 = vpop.f32.mrf.mxu3 }
  0xa7   :  { %4924 = vst [vmem:[#allocation2_spill] sm:$0xff] %v3649_v32 }
  0xa9   :  { %v3619_v17 = vpop.f32.mrf.mxu0 }
  0xac   :  { %v3645_v27 = vpop.f32.mrf.mxu2 }
  0xae   :  { %v3647_v30 = vpop.f32.mrf.mxu1  ;;  %v3658_v36 = vpop.f32.mrf.mxu3 }
  0xaf   :  { %4925 = vst [vmem:[#allocation3_spill] sm:$0xff] %v3658_v36 }
  0xb1   :  { %v3651_v33 = vpop.f32.mrf.mxu0  ;;  %1449 = vmatmul.bf16.gmra.mxu1 %v2365_v28  ;;  %1602 = vmatmul.bf16.gmra.mxu2 %v2369_v29  ;;  %v3095_v28 = vld [vmem:[%s4922_s0 + $0xc0] sm:$0xf0] }
  0xb2   :  { %v2437_v40 = vor.u32 %v3095_v28, %v2436_v26  ;;  %v3101_v26 = vld [vmem:[%s4922_s0 + $0xf4] sm:$0xf]  ;;  %v2513_v28 = vor.u32 %v3112_v24, %v2510_v25  ;;  %v2530_v25 = vld [vmem:[%s4922_s0 + $0x184] sm:$0xf0] }
  0xb3   :  { %1770 = vmatmul.bf16.gmra.mxu3 %v2433_v41  ;;  %v3117_v24 = vld [vmem:[%s4922_s0 + $0x174] sm:$0xf] }
  0xb4   :  { %3043 = vmatmul.msk.bf16.gmra.mxu0 %vm1195_vm0, %v2377_v31  ;;  %v3654_v34 = vpop.f32.mrf.mxu2  ;;  %v2425_v31 = vor.u32 %v3091_v21, %v2422_v23 }
  0xb6   :  { %v3656_v35 = vpop.f32.mrf.mxu1  ;;  %v3690_v52 = vpop.f32.mrf.mxu3 }
  0xb7   :  { %4926 = vst [vmem:[#allocation4_spill] sm:$0xff] %v3690_v52 }
  0xb9   :  { %v3660_v37 = vpop.f32.mrf.mxu0 }
  0xbc   :  { %v3686_v47 = vpop.f32.mrf.mxu2 }
  0xbe   :  { %v3688_v50 = vpop.f32.mrf.mxu1  ;;  %v3699_v56 = vpop.f32.mrf.mxu3 }
  0xbf   :  { %4928 = vst [vmem:[#allocation6_spill] sm:$0xff] %v3699_v56 }
  0xc1   :  { %v3692_v53 = vpop.f32.mrf.mxu0  ;;  %1454 = vmatmul.bf16.gmra.mxu1 %v2385_v48  ;;  %1607 = vmatmul.bf16.gmra.mxu2 %v2389_v49  ;;  %v3107_v48 = vld [vmem:[%s4922_s0 + $0x124] sm:$0xf]  ;;  %v2490_v49 = vld [vmem:[%s4922_s0 + $0x134] sm:$0xf0] }
  0xc2   :  { %v2493_v58 = vor.u32 %v3107_v48, %v2490_v49  ;;  %v2476_v48 = vld [vmem:[%s4922_s0 + $0x100] sm:$0xf]  ;;  %v3105_v49 = vld [vmem:[%s4922_s0 + $0x110] sm:$0xf0] }
  0xc3   :  { %1775 = vmatmul.bf16.gmra.mxu3 %v2453_v61  ;;  %v3099_v61 = vld [vmem:[%s4922_s0 + $0xe0] sm:$0xf0] }
  0xc4   :  { %3044 = vmatmul.msk.bf16.gmra.mxu0 %vm1195_vm0, %v2397_v51  ;;  %v3695_v54 = vpop.f32.mrf.mxu2  ;;  %v3096_v51 = vld [vmem:[%s4922_s0 + $0xcc] sm:$0xf]  ;;  %v2449_v2 = vor.u32 %v3099_v61, %v2448_v60  ;;  %v2477_v61 = vor.u32 %v3105_v49, %v2476_v48  ;;  %v2496_v48 = vld [vmem:[%s4922_s0 + $0x128] sm:$0xf]  ;;  %v3110_v49 = vld [vmem:[%s4922_s0 + $0x138] sm:$0xf0] }
  0xc5   :  { %4927 = vst [vmem:[#allocation5_spill] sm:$0xff] %v3695_v54  ;;  %v2445_v1 = vor.u32 %v3096_v51, %v2442_v59 }
  0xc6   :  { %v3697_v55 = vpop.f32.mrf.mxu1  ;;  %v3731_v8 = vpop.f32.mrf.mxu3 }
  0xc7   :  { %4930 = vst [vmem:[#allocation8_spill] sm:$0xff] %v3731_v8 }
  0xc9   :  { %v3701_v57 = vpop.f32.mrf.mxu0 }
  0xcc   :  { %v3727_v3 = vpop.f32.mrf.mxu2 }
  0xcd   :  { %4929 = vst [vmem:[#allocation7_spill] sm:$0xff] %v3727_v3 }
  0xce   :  { %v3729_v6 = vpop.f32.mrf.mxu1  ;;  %v3740_v13 = vpop.f32.mrf.mxu3 }
  0xcf   :  { %4932 = vst [vmem:[#allocation10_spill] sm:$0xff] %v3740_v13 }
  0xd1   :  { %v3733_v9 = vpop.f32.mrf.mxu0  ;;  %1459 = vmatmul.bf16.gmra.mxu1 %v2405_v4  ;;  %1612 = vmatmul.bf16.gmra.mxu2 %v2409_v5  ;;  %v2457_v5 = vor.u32 %v3100_v63, %v2456_v62 }
  0xd3   :  { %1780 = vmatmul.bf16.gmra.mxu3 %v2473_v22 }
  0xd4   :  { %3045 = vmatmul.msk.bf16.gmra.mxu0 %vm1195_vm0, %v2417_v7  ;;  %v3736_v10 = vpop.f32.mrf.mxu2 }
  0xd5   :  { %4931 = vst [vmem:[#allocation9_spill] sm:$0xff] %v3736_v10 }
  0xd6   :  { %v3738_v11 = vpop.f32.mrf.mxu1  ;;  %v3772_v41 = vpop.f32.mrf.mxu3 }
  0xd7   :  { %4934 = vst [vmem:[#allocation12_spill] sm:$0xff] %v3772_v41 }
  0xd9   :  { %v3742_v18 = vpop.f32.mrf.mxu0 }
  0xdc   :  { %v3768_v29 = vpop.f32.mrf.mxu2 }
  0xdd   :  { %4933 = vst [vmem:[#allocation11_spill] sm:$0xff] %v3768_v29 }
  0xde   :  { %v3770_v39 = vpop.f32.mrf.mxu1  ;;  %v3781_v45 = vpop.f32.mrf.mxu3 }
  0xdf   :  { %4936 = vst [vmem:[#allocation14_spill] sm:$0xff] %v3781_v45 }
  0xe1   :  { %v3774_v42 = vpop.f32.mrf.mxu0  ;;  %1464 = vmatmul.bf16.gmra.mxu1 %v2425_v31  ;;  %1617 = vmatmul.bf16.gmra.mxu2 %v2429_v38  ;;  %v2462_v31 = vld [vmem:[%s4922_s0 + $0x104] sm:$0xf0]  ;;  %v2468_v38 = vld [vmem:[%s4922_s0 + $0xf8] sm:$0xf] }
  0xe3   :  { %1785 = vmatmul.bf16.gmra.mxu3 %v2493_v58  ;;  %v2465_v58 = vor.u32 %v3101_v26, %v2462_v31  ;;  %v3106_v26 = vld [vmem:[%s4922_s0 + $0x11c] sm:$0xf]  ;;  %v2482_v31 = vld [vmem:[%s4922_s0 + $0x12c] sm:$0xf0] }
  0xe4   :  { %3046 = vmatmul.msk.bf16.gmra.mxu0 %vm1195_vm0, %v2437_v40  ;;  %v3777_v43 = vpop.f32.mrf.mxu2  ;;  %v3104_v40 = vld [vmem:[%s4922_s0 + $0x108] sm:$0xf0] }
  0xe5   :  { %4935 = vst [vmem:[#allocation13_spill] sm:$0xff] %v3777_v43  ;;  %v2469_v59 = vor.u32 %v3104_v40, %v2468_v38  ;;  %v2488_v38 = vld [vmem:[%s4922_s0 + $0x120] sm:$0xf]  ;;  %v3109_v40 = vld [vmem:[%s4922_s0 + $0x130] sm:$0xf0] }
  0xe6   :  { %v3779_v44 = vpop.f32.mrf.mxu1  ;;  %v3813_v7 = vpop.f32.mrf.mxu3 }
  0xe7   :  { %4938 = vst [vmem:[#allocation16_spill] sm:$0xff] %v3813_v7 }
  0xe9   :  { %v3783_v46 = vpop.f32.mrf.mxu0 }
  0xec   :  { %v3809_v0 = vpop.f32.mrf.mxu2 }
  0xed   :  { %4937 = vst [vmem:[#allocation15_spill] sm:$0xff] %v3809_v0 }
  0xee   :  { %v3811_v4 = vpop.f32.mrf.mxu1  ;;  %v1434_v22 = vpop.f32.mrf.mxu3 }
  0xf1   :  { %v3815_v19 = vpop.f32.mrf.mxu0  ;;  %1469 = vmatmul.bf16.gmra.mxu1 %v2445_v1  ;;  %1622 = vmatmul.bf16.gmra.mxu2 %v2449_v2 }
  0xf3   :  { %1790 = vmatmul.bf16.gmra.mxu3 %v2513_v28  ;;  %v2533_v28 = vor.u32 %v3117_v24, %v2530_v25  ;;  %v2497_v25 = vor.u32 %v3110_v49, %v2496_v48  ;;  %v2502_v48 = vld [vmem:[%s4922_s0 + $0x154] sm:$0xf0]  ;;  %v2508_v49 = vld [vmem:[%s4922_s0 + $0x148] sm:$0xf] }
  0xf4   :  { %3047 = vmatmul.msk.bf16.gmra.mxu0 %vm1195_vm0, %v2457_v5  ;;  %v3818_v20 = vpop.f32.mrf.mxu2 }
  0xf5   :  { %4939 = vst [vmem:[#allocation17_spill] sm:$0xff] %v3818_v20 }
  0xf6   :  { %v3820_v21 = vpop.f32.mrf.mxu1  ;;  %v1751_v62 = vpop.f32.mrf.mxu3 }
  0xf9   :  { %v3822_v23 = vpop.f32.mrf.mxu0 }
  0xfc   :  { %v3848_v51 = vpop.f32.mrf.mxu2 }
  0xfd   :  { %4940 = vst [vmem:[#allocation18_spill] sm:$0xff] %v3848_v51 }
  0xfe   :  { %v3850_v60 = vpop.f32.mrf.mxu1  ;;  %v3859_v5 = vpop.f32.mrf.mxu3 }
 0x101   :  { %v3852_v63 = vpop.f32.mrf.mxu0  ;;  %1474 = vmatmul.bf16.gmra.mxu1 %v2465_v58  ;;  %1627 = vmatmul.bf16.gmra.mxu2 %v2469_v59  ;;  %v2485_v59 = vor.u32 %v3106_v26, %v2482_v31  ;;  %v3122_v26 = vld [vmem:[%s4922_s0 + $0x19c] sm:$0xf]  ;;  %v2550_v31 = vld [vmem:[%s4922_s0 + $0x1ac] sm:$0xf0] }
 0x103   :  { %1795 = vmatmul.bf16.gmra.mxu3 %v2533_v28 }
 0x104   :  { %3048 = vmatmul.msk.bf16.gmra.mxu0 %vm1195_vm0, %v2477_v61  ;;  %v3855_v1 = vpop.f32.mrf.mxu2  ;;  %v2489_v61 = vor.u32 %v3109_v40, %v2488_v38  ;;  %v3111_v38 = vld [vmem:[%s4922_s0 + $0x144] sm:$0xf]  ;;  %v2553_v40 = vor.u32 %v3122_v26, %v2550_v31 }
 0x105   :  { %4941 = vst [vmem:[#allocation19_spill] sm:$0xff] %v3855_v1  ;;  %v2505_v31 = vor.u32 %v3111_v38, %v2502_v48 }
 0x106   :  { %v3857_v2 = vpop.f32.mrf.mxu1  ;;  %v3891_v7 = vpop.f32.mrf.mxu3 }
 0x109   :  { %v3861_v22 = vpop.f32.mrf.mxu0 }
 0x10c   :  { %v3887_v58 = vpop.f32.mrf.mxu2 }
 0x10d   :  { %4942 = vst [vmem:[#allocation20_spill] sm:$0xff] %v3887_v58 }
 0x10e   :  { %v3889_v24 = vpop.f32.mrf.mxu1  ;;  %v3900_v28 = vpop.f32.mrf.mxu3 }
 0x111   :  { %v3893_v45 = vpop.f32.mrf.mxu0  ;;  %1479 = vmatmul.bf16.gmra.mxu1 %v2485_v59  ;;  %1632 = vmatmul.bf16.gmra.mxu2 %v2489_v61  ;;  %v3114_v59 = vld [vmem:[%s4922_s0 + $0x158] sm:$0xf0]  ;;  %v2516_v61 = vld [vmem:[%s4922_s0 + $0x150] sm:$0xf] }
 0x112   :  { %v2509_v56 = vor.u32 %v3114_v59, %v2508_v49 }
 0x113   :  { %1800 = vmatmul.bf16.gmra.mxu3 %v2553_v40 }
 0x114   :  { %3049 = vmatmul.msk.bf16.gmra.mxu0 %vm1195_vm0, %v2497_v25  ;;  %v3896_v41 = vpop.f32.mrf.mxu2  ;;  %v3115_v25 = vld [vmem:[%s4922_s0 + $0x160] sm:$0xf0] }
 0x115   :  { %4943 = vst [vmem:[#allocation21_spill] sm:$0xff] %v3896_v41  ;;  %v2517_v36 = vor.u32 %v3115_v25, %v2516_v61  ;;  %v3935_v41 = vld [vmem:[%s4921_s2] ss:$0 sm:$0xff] }
 0x116   :  { %v3898_v13 = vpop.f32.mrf.mxu1  ;;  %v3930_v32 = vpop.f32.mrf.mxu3  ;;  %v1293_v1 = vadd.f32 %v3935_v41, %v3612_v14  ;;  %v2570_v14 = vld [vmem:[%s4922_s0 + $0x1d4] sm:$0xf0] }
 0x119   :  { %v3902_v8 = vpop.f32.mrf.mxu0 }
 0x11c   :  { %v3928_v26 = vpop.f32.mrf.mxu2 }
 0x11d   :  { %4944 = vst [vmem:[#allocation22_spill] sm:$0xff] %v3928_v26  ;;  %v3127_v26 = vld [vmem:[%s4922_s0 + $0x1c4] sm:$0xf] }
 0x11e   :  { %v1445_v52 = vpop.f32.mrf.mxu1  ;;  %v3940_v59 = vpop.f32.mrf.mxu3 }
 0x11f   :  { %v1446_v40 = vadd.f32 %v1445_v52, %v1293_v1  ;;  %v3116_v52 = vld [vmem:[%s4922_s0 + $0x16c] sm:$0xf]  ;;  %v2573_v1 = vor.u32 %v3127_v26, %v2570_v14 }
 0x121   :  { %v1904_v58 = vpop.f32.mrf.mxu0  ;;  %1484 = vmatmul.bf16.gmra.mxu1 %v2505_v31  ;;  %1637 = vmatmul.bf16.gmra.mxu2 %v2509_v56  ;;  %v1295_v56 = vadd.f32 %v3935_v41, %v3619_v17  ;;  %v2528_v31 = vld [vmem:[%s4922_s0 + $0x170] sm:$0xf]  ;;  %v2536_v17 = vld [vmem:[%s4922_s0 + $0x178] sm:$0xf] }
 0x123   :  { %1805 = vmatmul.bf16.gmra.mxu3 %v2573_v1 }
 0x124   :  { %3050 = vmatmul.msk.bf16.gmra.mxu0 %vm1195_vm0, %v2517_v36  ;;  %v1598_v38 = vpop.f32.mrf.mxu2 }
 0x125   :  { %v1599_v48 = vadd.f32 %v1598_v38, %v1446_v40  ;;  %v3119_v40 = vld [vmem:[%s4922_s0 + $0x180] sm:$0xf0] }
 0x126   :  { %v1447_v49 = vpop.f32.mrf.mxu1  ;;  %v2529_v20 = vor.u32 %v3119_v40, %v2528_v31  ;;  %v3968_v10 = vpop.f32.mrf.mxu3 }
 0x127   :  { %v1752_v61 = vadd.f32 %v1751_v62, %v1599_v48  ;;  %v2522_v62 = vld [vmem:[%s4922_s0 + $0x17c] sm:$0xf0]  ;;  %v1448_v38 = vadd.f32 %v1447_v49, %v1295_v56  ;;  %v3120_v48 = vld [vmem:[%s4922_s0 + $0x188] sm:$0xf0]  ;;  %v1298_v49 = vadd.f32 %v3935_v41, %v3651_v33 }
 0x128   :  { %v2525_v51 = vor.u32 %v3116_v52, %v2522_v62  ;;  %v2537_v29 = vor.u32 %v3120_v48, %v2536_v17  ;;  %v3132_v33 = vld [vmem:[%s4922_s0 + $0x1ec] sm:$0xf] }
 0x129   :  { %v1906_v25 = vpop.f32.mrf.mxu0  ;;  %v1905_v36 = vadd.f32 %v1904_v58, %v1752_v61 }
 0x12b   :  { %vm2048_vm1 = vcmp.ge.f32.partialorder %v1905_v36, 0.0  ;;  %v2105_v58 = vmul.f32 0.2, %v1905_v36 }
 0x12c   :  { %v1600_v26 = vpop.f32.mrf.mxu2 }
 0x12d   :  { %v2162_v61 = vsel %vm2048_vm1, %v1905_v36, %v2105_v58  ;;  %v1601_v14 = vadd.f32 %v1600_v26, %v1448_v38  ;;  %v3124_v38 = vld [vmem:[%s4922_s0 + $0x1a8] sm:$0xf0]  ;;  %v3125_v26 = vld [vmem:[%s4922_s0 + $0x1b0] sm:$0xf0] }
 0x12e   :  { %v2219_v0 = vpack.c.bf16 %v2162_v61, %v2162_v61  ;;  %v1450_v43 = vpop.f32.mrf.mxu1  ;;  %v3978_v17 = vpop.f32.mrf.mxu3 }
 0x12f   :  { %v1754_v3 = vadd.f32 %v3859_v5, %v1601_v14  ;;  %v1451_v52 = vadd.f32 %v1450_v43, %v1298_v49 }
 0x130   :  { %2277 = vst.msk [vmem:[%s4923_s3] sm:$0xf] %vm2276_vm2, %v2219_v0 }
 0x131   :  { %v1909_v54 = vpop.f32.mrf.mxu0  ;;  %v1907_v56 = vadd.f32 %v1906_v25, %v1754_v3  ;;  %1489 = vmatmul.bf16.gmra.mxu1 %v2525_v51  ;;  %1642 = vmatmul.bf16.gmra.mxu2 %v2529_v20  ;;  %v2590_v3 = vld [vmem:[%s4922_s0 + $0x1fc] sm:$0xf0]  ;;  %v2542_v20 = vld [vmem:[%s4922_s0 + $0x1a4] sm:$0xf0]  ;;  %v2548_v25 = vld [vmem:[%s4922_s0 + $0x198] sm:$0xf] }
 0x132   :  { %v2593_v51 = vor.u32 %v3132_v33, %v2590_v3 }
 0x133   :  { %vm2049_vm3 = vcmp.ge.f32.partialorder %v1907_v56, 0.0  ;;  %v2106_v36 = vmul.f32 0.2, %v1907_v56 }
 0x134   :  { %3051 = vmatmul.msk.bf16.gmra.mxu0 %vm1195_vm0, %v2537_v29  ;;  %v1603_v62 = vpop.f32.mrf.mxu2  ;;  %v1300_v29 = vadd.f32 %v3935_v41, %v3660_v37  ;;  %v2556_v37 = vld [vmem:[%s4922_s0 + $0x1a0] sm:$0xf]  ;;  %1810 = vmatmul.bf16.gmra.mxu3 %v2593_v51 }
 0x135   :  { %v2163_v1 = vsel %vm2049_vm3, %v1907_v56, %v2106_v36  ;;  %v1604_v5 = vadd.f32 %v1603_v62, %v1451_v52  ;;  %v2549_v36 = vor.u32 %v3124_v38, %v2548_v25 }
 0x136   :  { %v2220_v31 = vpack.c.bf16 %v2163_v1, %v2163_v1  ;;  %v1452_v40 = vpop.f32.mrf.mxu1  ;;  %v2557_v1 = vor.u32 %v3125_v26, %v2556_v37  ;;  %v2562_v26 = vld [vmem:[%s4922_s0 + $0x1cc] sm:$0xf0] }
 0x137   :  { %v1757_v0 = vadd.f32 %v3891_v7, %v1604_v5  ;;  %v3121_v7 = vld [vmem:[%s4922_s0 + $0x194] sm:$0xf]  ;;  %v1453_v48 = vadd.f32 %v1452_v40, %v1300_v29  ;;  %v4011_v5 = vpop.f32.mrf.mxu3  ;;  %v1303_v40 = vadd.f32 %v3935_v41, %v3692_v53 }
 0x138   :  { %2278 = vst.msk [vmem:[%s4923_s3 + $0x4] sm:$0xf] %vm2276_vm2, %v2220_v31  ;;  %v2545_v56 = vor.u32 %v3121_v7, %v2542_v20  ;;  %v3137_v53 = vld [vmem:[%s4922_s0 + $0x214] sm:$0xf] }
 0x139   :  { %v1911_v58 = vpop.f32.mrf.mxu0  ;;  %v1910_v43 = vadd.f32 %v1909_v54, %v1757_v0 }
 0x13b   :  { %vm2050_vm4 = vcmp.ge.f32.partialorder %v1910_v43, 0.0  ;;  %v2107_v54 = vmul.f32 0.2, %v1910_v43 }
 0x13c   :  { %v1605_v61 = vpop.f32.mrf.mxu2 }
 0x13d   :  { %v2164_v14 = vsel %vm2050_vm4, %v1910_v43, %v2107_v54  ;;  %v1606_v49 = vadd.f32 %v1605_v61, %v1453_v48  ;;  %v1305_v54 = vadd.f32 %v3935_v41, %v3701_v57  ;;  %v2576_v57 = vld [vmem:[%s4922_s0 + $0x1c8] sm:$0xf] }
 0x13e   :  { %v2221_v52 = vpack.c.bf16 %v2164_v14, %v2164_v14  ;;  %v1455_v62 = vpop.f32.mrf.mxu1  ;;  %v2568_v14 = vld [vmem:[%s4922_s0 + $0x1c0] sm:$0xf] }
 0x13f   :  { %v1759_v31 = vadd.f32 %v3900_v28, %v1606_v49  ;;  %v1456_v29 = vadd.f32 %v1455_v62, %v1303_v40  ;;  %v4021_v25 = vpop.f32.mrf.mxu3  ;;  %v3129_v49 = vld [vmem:[%s4922_s0 + $0x1d0] sm:$0xf0] }
 0x140   :  { %2279 = vst.msk [vmem:[%s4923_s3 + $0x8] sm:$0xf] %vm2276_vm2, %v2221_v52  ;;  %v3130_v52 = vld [vmem:[%s4922_s0 + $0x1d8] sm:$0xf0]  ;;  %v2569_v40 = vor.u32 %v3129_v49, %v2568_v14  ;;  %v1310_v49 = vadd.f32 %v3935_v41, %v3742_v18  ;;  %v2596_v18 = vld [vmem:[%s4922_s0 + $0x1f0] sm:$0xf] }
 0x141   :  { %v1914_v0 = vpop.f32.mrf.mxu0  ;;  %v1912_v33 = vadd.f32 %v1911_v58, %v1759_v31  ;;  %1494 = vmatmul.bf16.gmra.mxu1 %v2545_v56  ;;  %1647 = vmatmul.bf16.gmra.mxu2 %v2549_v36  ;;  %v2610_v58 = vld [vmem:[%s4922_s0 + $0x224] sm:$0xf0] }
 0x142   :  { %v2613_v61 = vor.u32 %v3137_v53, %v2610_v58 }
 0x143   :  { %vm2051_vm5 = vcmp.ge.f32.partialorder %v1912_v33, 0.0  ;;  %v2108_v3 = vmul.f32 0.2, %v1912_v33 }
 0x144   :  { %3052 = vmatmul.msk.bf16.gmra.mxu0 %vm1195_vm0, %v2557_v1  ;;  %v1608_v43 = vpop.f32.mrf.mxu2  ;;  %1815 = vmatmul.bf16.gmra.mxu3 %v2613_v61 }
 0x145   :  { %v2165_v7 = vsel %vm2051_vm5, %v1912_v33, %v2108_v3  ;;  %v1609_v28 = vadd.f32 %v1608_v43, %v1456_v29  ;;  %v2577_v29 = vor.u32 %v3130_v52, %v2576_v57  ;;  %v2588_v52 = vld [vmem:[%s4922_s0 + $0x1e8] sm:$0xf] }
 0x146   :  { %v2222_v20 = vpack.c.bf16 %v2165_v7, %v2165_v7  ;;  %v1457_v51 = vpop.f32.mrf.mxu1 }
 0x147   :  { %v1762_v38 = vadd.f32 %v3930_v32, %v1609_v28  ;;  %v3126_v32 = vld [vmem:[%s4922_s0 + $0x1bc] sm:$0xf]  ;;  %v1458_v36 = vadd.f32 %v1457_v51, %v1305_v54  ;;  %v4054_v43 = vpop.f32.mrf.mxu3 }
 0x148   :  { %2280 = vst.msk [vmem:[%s4923_s3 + $0xc] sm:$0xf] %vm2276_vm2, %v2222_v20  ;;  %v1308_v20 = vadd.f32 %v3935_v41, %v3733_v9  ;;  %v3142_v9 = vld [vmem:[%s4922_s0 + $0x23c] sm:$0xf] }
 0x149   :  { %v1916_v37 = vpop.f32.mrf.mxu0  ;;  %v1915_v48 = vadd.f32 %v1914_v0, %v1762_v38  ;;  %v2565_v0 = vor.u32 %v3126_v32, %v2562_v26 }
 0x14b   :  { %vm2052_vm6 = vcmp.ge.f32.partialorder %v1915_v48, 0.0  ;;  %v2109_v56 = vmul.f32 0.2, %v1915_v48 }
 0x14c   :  { %v1610_v62 = vpop.f32.mrf.mxu2 }
 0x14d   :  { %v2166_v1 = vsel %vm2052_vm6, %v1915_v48, %v2109_v56  ;;  %v1611_v31 = vadd.f32 %v1610_v62, %v1458_v36  ;;  %v2582_v56 = vld [vmem:[%s4922_s0 + $0x1f4] sm:$0xf0]  ;;  %v3134_v62 = vld [vmem:[%s4922_s0 + $0x1f8] sm:$0xf0] }
 0x14e   :  { %v2223_v33 = vpack.c.bf16 %v2166_v1, %v2166_v1  ;;  %v1460_v3 = vpop.f32.mrf.mxu1 }
 0x14f   :  { %v1764_v7 = vadd.f32 %v3940_v59, %v1611_v31  ;;  %v1461_v53 = vadd.f32 %v1460_v3, %v1308_v20  ;;  %v4064_v26 = vpop.f32.mrf.mxu3 }
 0x150   :  { %2281 = vst.msk [vmem:[%s4923_s3 + $0x10] sm:$0xf] %vm2276_vm2, %v2223_v33 }
 0x151   :  { %v1919_v28 = vpop.f32.mrf.mxu0  ;;  %v1917_v51 = vadd.f32 %v1916_v37, %v1764_v7  ;;  %1499 = vmatmul.bf16.gmra.mxu1 %v2565_v0  ;;  %1652 = vmatmul.bf16.gmra.mxu2 %v2569_v40  ;;  %v2630_v37 = vld [vmem:[%s4922_s0 + $0x24c] sm:$0xf0]  ;;  %v3135_v0 = vld [vmem:[%s4922_s0 + $0x200] sm:$0xf0]  ;;  %v2589_v7 = vor.u32 %v3134_v62, %v2588_v52  ;;  %v2602_v62 = vld [vmem:[%s4922_s0 + $0x21c] sm:$0xf0] }
 0x152   :  { %v2633_v36 = vor.u32 %v3142_v9, %v2630_v37 }
 0x153   :  { %vm2053_vm7 = vcmp.ge.f32.partialorder %v1917_v51, 0.0  ;;  %v2110_v38 = vmul.f32 0.2, %v1917_v51 }
 0x154   :  { %3053 = vmatmul.msk.bf16.gmra.mxu0 %vm1195_vm0, %v2577_v29  ;;  %v1613_v58 = vpop.f32.mrf.mxu2  ;;  %1820 = vmatmul.bf16.gmra.mxu3 %v2633_v36  ;;  %v1315_v36 = vadd.f32 %v3935_v41, %v3783_v46  ;;  %v2616_v46 = vld [vmem:[%s4922_s0 + $0x218] sm:$0xf] }
 0x155   :  { %v2167_v54 = vsel %vm2053_vm7, %v1917_v51, %v2110_v38  ;;  %v1614_v59 = vadd.f32 %v1613_v58, %v1461_v53  ;;  %v2597_v51 = vor.u32 %v3135_v0, %v2596_v18 }
 0x156   :  { %v2224_v48 = vpack.c.bf16 %v2167_v54, %v2167_v54  ;;  %v1462_v32 = vpop.f32.mrf.mxu1  ;;  %v1313_v54 = vadd.f32 %v3935_v41, %v3774_v42  ;;  %v3147_v42 = vld [vmem:[%s4922_s0 + $0x264] sm:$0xf] }
 0x157   :  { %v1767_v61 = vadd.f32 %v3968_v10, %v1614_v59  ;;  %v3131_v10 = vld [vmem:[%s4922_s0 + $0x1e4] sm:$0xf]  ;;  %v1463_v31 = vadd.f32 %v1462_v32, %v1310_v49  ;;  %v4097_v38 = vpop.f32.mrf.mxu3 }
 0x158   :  { %2282 = vst.msk [vmem:[%s4923_s3 + $0x14] sm:$0xf] %vm2276_vm2, %v2224_v48  ;;  %v2585_v29 = vor.u32 %v3131_v10, %v2582_v56 }
 0x159   :  { %v1921_v14 = vpop.f32.mrf.mxu0  ;;  %v1920_v57 = vadd.f32 %v1919_v28, %v1767_v61 }
 0x15b   :  { %vm2054_vm8 = vcmp.ge.f32.partialorder %v1920_v57, 0.0  ;;  %v2111_v1 = vmul.f32 0.2, %v1920_v57 }
 0x15c   :  { %v1615_v40 = vpop.f32.mrf.mxu2 }
 0x15d   :  { %v2168_v33 = vsel %vm2054_vm8, %v1920_v57, %v2111_v1  ;;  %v1616_v3 = vadd.f32 %v1615_v40, %v1463_v31  ;;  %v2608_v1 = vld [vmem:[%s4922_s0 + $0x210] sm:$0xf]  ;;  %v3139_v31 = vld [vmem:[%s4922_s0 + $0x220] sm:$0xf0] }
 0x15e   :  { %v2225_v28 = vpack.c.bf16 %v2168_v33, %v2168_v33  ;;  %v1465_v20 = vpop.f32.mrf.mxu1  ;;  %v3140_v33 = vld [vmem:[%s4922_s0 + $0x228] sm:$0xf0] }
 0x15f   :  { %v1769_v53 = vadd.f32 %v3978_v17, %v1616_v3  ;;  %v1466_v32 = vadd.f32 %v1465_v20, %v1313_v54  ;;  %v4107_v57 = vpop.f32.mrf.mxu3  ;;  %v2609_v20 = vor.u32 %v3139_v31, %v2608_v1  ;;  %v2628_v31 = vld [vmem:[%s4922_s0 + $0x238] sm:$0xf] }
 0x160   :  { %2283 = vst.msk [vmem:[%s4923_s3 + $0x18] sm:$0xf] %vm2276_vm2, %v2225_v28 }
 0x161   :  { %v1924_v58 = vpop.f32.mrf.mxu0  ;;  %v1922_v59 = vadd.f32 %v1921_v14, %v1769_v53  ;;  %1504 = vmatmul.bf16.gmra.mxu1 %v2585_v29  ;;  %1657 = vmatmul.bf16.gmra.mxu2 %v2589_v7  ;;  %v2650_v14 = vld [vmem:[%s4922_s0 + $0x274] sm:$0xf0] }
 0x162   :  { %v2653_v18 = vor.u32 %v3147_v42, %v2650_v14 }
 0x163   :  { %vm2055_vm9 = vcmp.ge.f32.partialorder %v1922_v59, 0.0  ;;  %v2112_v48 = vmul.f32 0.2, %v1922_v59 }
 0x164   :  { %3054 = vmatmul.msk.bf16.gmra.mxu0 %vm1195_vm0, %v2597_v51  ;;  %v1618_v61 = vpop.f32.mrf.mxu2  ;;  %1825 = vmatmul.bf16.gmra.mxu3 %v2653_v18  ;;  %v2622_v18 = vld [vmem:[%s4922_s0 + $0x244] sm:$0xf0] }
 0x165   :  { %v2169_v9 = vsel %vm2055_vm9, %v1922_v59, %v2112_v48  ;;  %v1619_v17 = vadd.f32 %v1618_v61, %v1466_v32  ;;  %v1318_v32 = vadd.f32 %v3935_v41, %v3815_v19  ;;  %v3152_v19 = vld [vmem:[%s4922_s0 + $0x28c] sm:$0xf] }
 0x166   :  { %v2226_v37 = vpack.c.bf16 %v2169_v9, %v2169_v9  ;;  %v1467_v49 = vpop.f32.mrf.mxu1 }
 0x167   :  { %v1772_v10 = vadd.f32 %v4011_v5, %v1619_v17  ;;  %v3136_v5 = vld [vmem:[%s4922_s0 + $0x20c] sm:$0xf]  ;;  %v1468_v40 = vadd.f32 %v1467_v49, %v1315_v36  ;;  %v4140_v54 = vpop.f32.mrf.mxu3 }
 0x168   :  { %2284 = vst.msk [vmem:[%s4923_s3 + $0x1c] sm:$0xf] %vm2276_vm2, %v2226_v37  ;;  %v2605_v28 = vor.u32 %v3136_v5, %v2602_v62  ;;  %v1320_v5 = vadd.f32 %v3935_v41, %v3822_v23  ;;  %v2636_v23 = vld [vmem:[%s4922_s0 + $0x240] sm:$0xf] }
 0x169   :  { %v1926_v56 = vpop.f32.mrf.mxu0  ;;  %v1925_v52 = vadd.f32 %v1924_v58, %v1772_v10  ;;  %v2617_v58 = vor.u32 %v3140_v33, %v2616_v46  ;;  %v3144_v46 = vld [vmem:[%s4922_s0 + $0x248] sm:$0xf0]  ;;  %v3145_v33 = vld [vmem:[%s4922_s0 + $0x250] sm:$0xf0] }
 0x16b   :  { %vm2056_vm10 = vcmp.ge.f32.partialorder %v1925_v52, 0.0  ;;  %v2113_v0 = vmul.f32 0.2, %v1925_v52 }
 0x16c   :  { %v1620_v3 = vpop.f32.mrf.mxu2 }
 0x16d   :  { %v2170_v29 = vsel %vm2056_vm10, %v1925_v52, %v2113_v0  ;;  %v1621_v7 = vadd.f32 %v1620_v3, %v1468_v40 }
 0x16e   :  { %v2227_v51 = vpack.c.bf16 %v2170_v29, %v2170_v29  ;;  %v1470_v53 = vpop.f32.mrf.mxu1 }
 0x16f   :  { %v1774_v59 = vadd.f32 %v4021_v25, %v1621_v7  ;;  %v1471_v17 = vadd.f32 %v1470_v53, %v1318_v32  ;;  %v4150_v14 = vpop.f32.mrf.mxu3 }
 0x170   :  { %2285 = vst.msk [vmem:[%s4923_s3 + $0x20] sm:$0xf] %vm2276_vm2, %v2227_v51 }
 0x171   :  { %v1929_v48 = vpop.f32.mrf.mxu0  ;;  %v1927_v61 = vadd.f32 %v1926_v56, %v1774_v59  ;;  %1509 = vmatmul.bf16.gmra.mxu1 %v2605_v28  ;;  %1662 = vmatmul.bf16.gmra.mxu2 %v2609_v20  ;;  %v2670_v56 = vld [vmem:[%s4922_s0 + $0x29c] sm:$0xf0]  ;;  %v2629_v20 = vor.u32 %v3144_v46, %v2628_v31  ;;  %v3149_v31 = vld [vmem:[%s4922_s0 + $0x270] sm:$0xf0] }
 0x172   :  { %v2673_v1 = vor.u32 %v3152_v19, %v2670_v56 }
 0x173   :  { %vm2057_vm11 = vcmp.ge.f32.partialorder %v1927_v61, 0.0  ;;  %v2114_v9 = vmul.f32 0.2, %v1927_v61 }
 0x174   :  { %3055 = vmatmul.msk.bf16.gmra.mxu0 %vm1195_vm0, %v2617_v58  ;;  %v1623_v37 = vpop.f32.mrf.mxu2  ;;  %1830 = vmatmul.bf16.gmra.mxu3 %v2673_v1  ;;  %v2637_v58 = vor.u32 %v3145_v33, %v2636_v23  ;;  %v2648_v1 = vld [vmem:[%s4922_s0 + $0x260] sm:$0xf] }
 0x175   :  { %v2171_v49 = vsel %vm2057_vm11, %v1927_v61, %v2114_v9  ;;  %v1624_v25 = vadd.f32 %v1623_v37, %v1471_v17  ;;  %v1323_v61 = vadd.f32 %v3935_v41, %v3852_v63  ;;  %v3157_v63 = vld [vmem:[%s4922_s0 + $0x2b4] sm:$0xf] }
 0x176   :  { %v2228_v10 = vpack.c.bf16 %v2171_v49, %v2171_v49  ;;  %v1472_v42 = vpop.f32.mrf.mxu1 }
 0x177   :  { %v1777_v36 = vadd.f32 %v4054_v43, %v1624_v25  ;;  %v3141_v43 = vld [vmem:[%s4922_s0 + $0x234] sm:$0xf]  ;;  %v1473_v40 = vadd.f32 %v1472_v42, %v1320_v5  ;;  %v4183_v59 = vpop.f32.mrf.mxu3  ;;  %v1325_v5 = vadd.f32 %v3935_v41, %v3861_v22  ;;  %v2656_v22 = vld [vmem:[%s4922_s0 + $0x268] sm:$0xf] }
 0x178   :  { %2286 = vst.msk [vmem:[%s4923_s3 + $0x24] sm:$0xf] %vm2276_vm2, %v2228_v10  ;;  %v2625_v28 = vor.u32 %v3141_v43, %v2622_v18  ;;  %v2642_v43 = vld [vmem:[%s4922_s0 + $0x26c] sm:$0xf0] }
 0x179   :  { %v1931_v52 = vpop.f32.mrf.mxu0  ;;  %v1930_v62 = vadd.f32 %v1929_v48, %v1777_v36 }
 0x17b   :  { %vm2058_vm12 = vcmp.ge.f32.partialorder %v1930_v62, 0.0  ;;  %v2115_v0 = vmul.f32 0.2, %v1930_v62 }
 0x17c   :  { %v1625_v3 = vpop.f32.mrf.mxu2 }
 0x17d   :  { %v2172_v29 = vsel %vm2058_vm12, %v1930_v62, %v2115_v0  ;;  %v1626_v7 = vadd.f32 %v1625_v3, %v1473_v40  ;;  %v3150_v0 = vld [vmem:[%s4922_s0 + $0x278] sm:$0xf0] }
 0x17e   :  { %v2229_v51 = vpack.c.bf16 %v2172_v29, %v2172_v29  ;;  %v1475_v53 = vpop.f32.mrf.mxu1 }
 0x17f   :  { %v1779_v48 = vadd.f32 %v4064_v26, %v1626_v7  ;;  %v1476_v37 = vadd.f32 %v1475_v53, %v1323_v61  ;;  %v4193_v36 = vpop.f32.mrf.mxu3  ;;  %v2649_v7 = vor.u32 %v3149_v31, %v2648_v1  ;;  %v3155_v31 = vld [vmem:[%s4922_s0 + $0x2a0] sm:$0xf0] }
 0x180   :  { %2287 = vst.msk [vmem:[%s4923_s3 + $0x28] sm:$0xf] %vm2276_vm2, %v2229_v51  ;;  %v2657_v51 = vor.u32 %v3150_v0, %v2656_v22 }
 0x181   :  { %v1934_v32 = vpop.f32.mrf.mxu0  ;;  %v1932_v9 = vadd.f32 %v1931_v52, %v1779_v48  ;;  %1514 = vmatmul.bf16.gmra.mxu1 %v2625_v28  ;;  %1667 = vmatmul.bf16.gmra.mxu2 %v2629_v20  ;;  %v2690_v52 = vld [vmem:[%s4922_s0 + $0x2c4] sm:$0xf0] }
 0x182   :  { %v2693_v18 = vor.u32 %v3157_v63, %v2690_v52  ;;  %v1330_v63 = vadd.f32 %v3935_v41, %v3902_v8  ;;  %v2676_v8 = vld [vmem:[%s4922_s0 + $0x290] sm:$0xf] }
 0x183   :  { %vm2059_vm13 = vcmp.ge.f32.partialorder %v1932_v9, 0.0  ;;  %v2116_v17 = vmul.f32 0.2, %v1932_v9 }
 0x184   :  { %3056 = vmatmul.msk.bf16.gmra.mxu0 %vm1195_vm0, %v2637_v58  ;;  %v1628_v49 = vpop.f32.mrf.mxu2  ;;  %1835 = vmatmul.bf16.gmra.mxu3 %v2693_v18 }
 0x185   :  { %v2173_v25 = vsel %vm2059_vm13, %v1932_v9, %v2116_v17  ;;  %v1629_v26 = vadd.f32 %v1628_v49, %v1476_v37 }
 0x186   :  { %v2230_v10 = vpack.c.bf16 %v2173_v25, %v2173_v25  ;;  %v1477_v42 = vpop.f32.mrf.mxu1 }
 0x187   :  { %v1782_v19 = vadd.f32 %v4097_v38, %v1629_v26  ;;  %v3146_v38 = vld [vmem:[%s4922_s0 + $0x25c] sm:$0xf]  ;;  %v1478_v23 = vadd.f32 %v1477_v42, %v1325_v5  ;;  %v4226_v53 = vpop.f32.mrf.mxu3  ;;  %v2662_v5 = vld [vmem:[%s4922_s0 + $0x294] sm:$0xf0] }
 0x188   :  { %2288 = vst.msk [vmem:[%s4923_s3 + $0x2c] sm:$0xf] %vm2276_vm2, %v2230_v10  ;;  %v2645_v29 = vor.u32 %v3146_v38, %v2642_v43  ;;  %v2668_v38 = vld [vmem:[%s4922_s0 + $0x288] sm:$0xf]  ;;  %v3154_v43 = vld [vmem:[%s4922_s0 + $0x298] sm:$0xf0] }
 0x189   :  { %v1936_v56 = vpop.f32.mrf.mxu0  ;;  %v1935_v62 = vadd.f32 %v1934_v32, %v1782_v19  ;;  %v1328_v32 = vadd.f32 %v3935_v41, %v3893_v45  ;;  %v3162_v45 = vld [vmem:[%s4922_s0 + $0x2dc] sm:$0xf] }
 0x18b   :  { %vm2060_vm14 = vcmp.ge.f32.partialorder %v1935_v62, 0.0  ;;  %v2117_v46 = vmul.f32 0.2, %v1935_v62 }
 0x18c   :  { %v1630_v40 = vpop.f32.mrf.mxu2 }
 0x18d   :  { %v2174_v33 = vsel %vm2060_vm14, %v1935_v62, %v2117_v46  ;;  %v1631_v3 = vadd.f32 %v1630_v40, %v1478_v23  ;;  %v2669_v40 = vor.u32 %v3154_v43, %v2668_v38 }
 0x18e   :  { %v2231_v28 = vpack.c.bf16 %v2174_v33, %v2174_v33  ;;  %v1480_v20 = vpop.f32.mrf.mxu1 }
 0x18f   :  { %v1784_v58 = vadd.f32 %v4107_v57, %v1631_v3  ;;  %v1481_v17 = vadd.f32 %v1480_v20, %v1328_v32  ;;  %v4236_v10 = vpop.f32.mrf.mxu3 }
 0x190   :  { %2289 = vst.msk [vmem:[%s4923_s3 + $0x30] sm:$0xf] %vm2276_vm2, %v2231_v28 }
 0x191   :  { %v1939_v48 = vpop.f32.mrf.mxu0  ;;  %v1937_v61 = vadd.f32 %v1936_v56, %v1784_v58  ;;  %1519 = vmatmul.bf16.gmra.mxu1 %v2645_v29  ;;  %1672 = vmatmul.bf16.gmra.mxu2 %v2649_v7  ;;  %v2710_v56 = vld [vmem:[%s4922_s0 + $0x2ec] sm:$0xf0]  ;;  %v2677_v29 = vor.u32 %v3155_v31, %v2676_v8 }
 0x192   :  { %v2713_v62 = vor.u32 %v3162_v45, %v2710_v56  ;;  %v2682_v45 = vld [vmem:[%s4922_s0 + $0x2bc] sm:$0xf0] }
 0x193   :  { %vm2061_vm15 = vcmp.ge.f32.partialorder %v1937_v61, 0.0  ;;  %v2118_v9 = vmul.f32 0.2, %v1937_v61 }
 0x194   :  { %3057 = vmatmul.msk.bf16.gmra.mxu0 %vm1195_vm0, %v2657_v51  ;;  %v1633_v37 = vpop.f32.mrf.mxu2  ;;  %1840 = vmatmul.bf16.gmra.mxu3 %v2713_v62  ;;  %v1333_v51 = vadd.f32 %v3935_v41, %v3610_v12  ;;  %v3167_v12 = vld [vmem:[%s4922_s0 + $0x304] sm:$0xf]  ;;  %v3160_v62 = vld [vmem:[%s4922_s0 + $0x2c8] sm:$0xf0] }
 0x195   :  { %v2175_v49 = vsel %vm2061_vm15, %v1937_v61, %v2118_v9  ;;  %v1634_v57 = vadd.f32 %v1633_v37, %v1481_v17 }
 0x196   :  { %v2232_v25 = vpack.c.bf16 %v2175_v49, %v2175_v49  ;;  %v1482_v26 = vpop.f32.mrf.mxu1 }
 0x197   :  { %v1787_v42 = vadd.f32 %v4140_v54, %v1634_v57  ;;  %v3151_v54 = vld [vmem:[%s4922_s0 + $0x284] sm:$0xf]  ;;  %v1483_v1 = vadd.f32 %v1482_v26, %v1330_v63  ;;  %v4269_v7 = vpop.f32.mrf.mxu3  ;;  %v2730_v26 = vld [vmem:[%s4922_s0 + $0x314] sm:$0xf0]  ;;  %v2688_v63 = vld [vmem:[%s4922_s0 + $0x2b0] sm:$0xf] }
 0x198   :  { %2290 = vst.msk [vmem:[%s4923_s3 + $0x34] sm:$0xf] %vm2276_vm2, %v2232_v25  ;;  %v2665_v0 = vor.u32 %v3151_v54, %v2662_v5  ;;  %v2733_v56 = vor.u32 %v3167_v12, %v2730_v26  ;;  %v2708_v12 = vld [vmem:[%s4922_s0 + $0x2d8] sm:$0xf]  ;;  %v3164_v26 = vld [vmem:[%s4922_s0 + $0x2e8] sm:$0xf0] }
 0x199   :  { %v1941_v19 = vpop.f32.mrf.mxu0  ;;  %v1940_v52 = vadd.f32 %v1939_v48, %v1787_v42  ;;  %v1335_v42 = vadd.f32 %v3935_v41, %v3617_v16  ;;  %v2696_v16 = vld [vmem:[%s4922_s0 + $0x2b8] sm:$0xf] }
 0x19b   :  { %vm2062_vm1 = vcmp.ge.f32.partialorder %v1940_v52, 0.0  ;;  %v2119_v18 = vmul.f32 0.2, %v1940_v52 }
 0x19c   :  { %v1635_v22 = vpop.f32.mrf.mxu2 }
 0x19d   :  { %v2176_v46 = vsel %vm2062_vm1, %v1940_v52, %v2119_v18  ;;  %v1636_v23 = vadd.f32 %v1635_v22, %v1483_v1  ;;  %v3159_v52 = vld [vmem:[%s4922_s0 + $0x2c0] sm:$0xf0] }
 0x19e   :  { %v2233_v33 = vpack.c.bf16 %v2176_v46, %v2176_v46  ;;  %v1485_v3 = vpop.f32.mrf.mxu1  ;;  %v2689_v1 = vor.u32 %v3159_v52, %v2688_v63  ;;  %v2697_v46 = vor.u32 %v3160_v62, %v2696_v16  ;;  %v2709_v16 = vor.u32 %v3164_v26, %v2708_v12 }
 0x19f   :  { %v1789_v28 = vadd.f32 %v4150_v14, %v1636_v23  ;;  %v1486_v32 = vadd.f32 %v1485_v3, %v1333_v51  ;;  %v4279_v49 = vpop.f32.mrf.mxu3 }
 0x1a0   :  { %2291 = vst.msk [vmem:[%s4923_s3 + $0x38] sm:$0xf] %vm2276_vm2, %v2233_v33  ;;  %v1338_v33 = vadd.f32 %v3935_v41, %v3647_v30  ;;  %v3172_v30 = vld [vmem:[%s4922_s0 + $0x32c] sm:$0xf] }
 0x1a1   :  { %v1944_v20 = vpop.f32.mrf.mxu0  ;;  %v1942_v58 = vadd.f32 %v1941_v19, %v1789_v28  ;;  %1524 = vmatmul.bf16.gmra.mxu1 %v2665_v0  ;;  %1677 = vmatmul.bf16.gmra.mxu2 %v2669_v40 }
 0x1a3   :  { %vm2063_vm3 = vcmp.ge.f32.partialorder %v1942_v58, 0.0  ;;  %v2120_v48 = vmul.f32 0.2, %v1942_v58 }
 0x1a4   :  { %3058 = vmatmul.msk.bf16.gmra.mxu0 %vm1195_vm0, %v2677_v29  ;;  %v1638_v61 = vpop.f32.mrf.mxu2  ;;  %1845 = vmatmul.bf16.gmra.mxu3 %v2733_v56 }
 0x1a5   :  { %v2177_v9 = vsel %vm2063_vm3, %v1942_v58, %v2120_v48  ;;  %v1639_v14 = vadd.f32 %v1638_v61, %v1486_v32 }
 0x1a6   :  { %v2234_v17 = vpack.c.bf16 %v2177_v9, %v2177_v9  ;;  %v1487_v37 = vpop.f32.mrf.mxu1 }
 0x1a7   :  { %v1792_v57 = vadd.f32 %v4183_v59, %v1639_v14  ;;  %v3156_v59 = vld [vmem:[%s4922_s0 + $0x2ac] sm:$0xf]  ;;  %v1488_v5 = vadd.f32 %v1487_v37, %v1335_v42  ;;  %v4312_v23 = vpop.f32.mrf.mxu3  ;;  %v2750_v14 = vld [vmem:[%s4922_s0 + $0x33c] sm:$0xf0] }
 0x1a8   :  { %2292 = vst.msk [vmem:[%s4923_s3 + $0x3c] sm:$0xf] %vm2276_vm2, %v2234_v17  ;;  %v2685_v18 = vor.u32 %v3156_v59, %v2682_v45  ;;  %v1340_v17 = vadd.f32 %v3935_v41, %v3656_v35  ;;  %v2716_v35 = vld [vmem:[%s4922_s0 + $0x2e0] sm:$0xf]  ;;  %v3165_v59 = vld [vmem:[%s4922_s0 + $0x2f0] sm:$0xf0] }
 0x1a9   :  { %v1946_v25 = vpop.f32.mrf.mxu0  ;;  %v1945_v19 = vadd.f32 %v1944_v20, %v1792_v57  ;;  %v2702_v57 = vld [vmem:[%s4922_s0 + $0x2e4] sm:$0xf0]  ;;  %v2717_v62 = vor.u32 %v3165_v59, %v2716_v35 }
 0x1ab   :  { %vm2064_vm4 = vcmp.ge.f32.partialorder %v1945_v19, 0.0  ;;  %v2121_v54 = vmul.f32 0.2, %v1945_v19 }
 0x1ac   :  { %v1640_v38 = vpop.f32.mrf.mxu2 }
 0x1ad   :  { %v2178_v43 = vsel %vm2064_vm4, %v1945_v19, %v2121_v54  ;;  %v1641_v8 = vadd.f32 %v1640_v38, %v1488_v5 }
 0x1ae   :  { %v2235_v31 = vpack.c.bf16 %v2178_v43, %v2178_v43  ;;  %v1490_v22 = vpop.f32.mrf.mxu1 }
 0x1af   :  { %v1794_v0 = vadd.f32 %v4193_v36, %v1641_v8  ;;  %v1491_v28 = vadd.f32 %v1490_v22, %v1338_v33  ;;  %v4322_v32 = vpop.f32.mrf.mxu3 }
 0x1b0   :  { %2293 = vst.msk [vmem:[%s4923_s3 + $0x40] sm:$0xf] %vm2276_vm2, %v2235_v31 }
 0x1b1   :  { %v1949_v40 = vpop.f32.mrf.mxu0  ;;  %v1947_v3 = vadd.f32 %v1946_v25, %v1794_v0  ;;  %1529 = vmatmul.bf16.gmra.mxu1 %v2685_v18  ;;  %1682 = vmatmul.bf16.gmra.mxu2 %v2689_v1  ;;  %v2753_v25 = vor.u32 %v3172_v30, %v2750_v14  ;;  %v1343_v18 = vadd.f32 %v3935_v41, %v3688_v50  ;;  %v3177_v50 = vld [vmem:[%s4922_s0 + $0x354] sm:$0xf] }
 0x1b3   :  { %vm2065_vm5 = vcmp.ge.f32.partialorder %v1947_v3, 0.0  ;;  %v2122_v29 = vmul.f32 0.2, %v1947_v3 }
 0x1b4   :  { %3059 = vmatmul.msk.bf16.gmra.mxu0 %vm1195_vm0, %v2697_v46  ;;  %v1643_v20 = vpop.f32.mrf.mxu2  ;;  %1850 = vmatmul.bf16.gmra.mxu3 %v2753_v25 }
 0x1b5   :  { %v2179_v51 = vsel %vm2065_vm5, %v1947_v3, %v2122_v29  ;;  %v1644_v36 = vadd.f32 %v1643_v20, %v1491_v28  ;;  %v2770_v20 = vld [vmem:[%s4922_s0 + $0x364] sm:$0xf0] }
 0x1b6   :  { %v2236_v58 = vpack.c.bf16 %v2179_v51, %v2179_v51  ;;  %v1492_v48 = vpop.f32.mrf.mxu1  ;;  %v1345_v51 = vadd.f32 %v3935_v41, %v3697_v55  ;;  %v2736_v55 = vld [vmem:[%s4922_s0 + $0x308] sm:$0xf] }
 0x1b7   :  { %v1797_v61 = vadd.f32 %v4226_v53, %v1644_v36  ;;  %v3161_v53 = vld [vmem:[%s4922_s0 + $0x2d4] sm:$0xf]  ;;  %v1493_v19 = vadd.f32 %v1492_v48, %v1340_v17  ;;  %v4355_v38 = vpop.f32.mrf.mxu3  ;;  %v2773_v48 = vor.u32 %v3177_v50, %v2770_v20  ;;  %v3170_v17 = vld [vmem:[%s4922_s0 + $0x318] sm:$0xf0] }
 0x1b8   :  { %2294 = vst.msk [vmem:[%s4923_s3 + $0x44] sm:$0xf] %vm2276_vm2, %v2236_v58  ;;  %v2705_v52 = vor.u32 %v3161_v53, %v2702_v57  ;;  %v2722_v58 = vld [vmem:[%s4922_s0 + $0x30c] sm:$0xf0] }
 0x1b9   :  { %v1951_v9 = vpop.f32.mrf.mxu0  ;;  %v1950_v37 = vadd.f32 %v1949_v40, %v1797_v61  ;;  %v2728_v61 = vld [vmem:[%s4922_s0 + $0x300] sm:$0xf] }
 0x1bb   :  { %vm2066_vm6 = vcmp.ge.f32.partialorder %v1950_v37, 0.0  ;;  %v2123_v42 = vmul.f32 0.2, %v1950_v37 }
 0x1bc   :  { %v1645_v45 = vpop.f32.mrf.mxu2 }
 0x1bd   :  { %v2180_v56 = vsel %vm2066_vm6, %v1950_v37, %v2123_v42  ;;  %v1646_v63 = vadd.f32 %v1645_v45, %v1493_v19  ;;  %v2737_v42 = vor.u32 %v3170_v17, %v2736_v55 }
 0x1be   :  { %v2237_v54 = vpack.c.bf16 %v2180_v56, %v2180_v56  ;;  %v1495_v5 = vpop.f32.mrf.mxu1  ;;  %v1348_v56 = vadd.f32 %v3935_v41, %v3729_v6  ;;  %v3182_v6 = vld [vmem:[%s4922_s0 + $0x37c] sm:$0xf] }
 0x1bf   :  { %v1799_v43 = vadd.f32 %v4236_v10, %v1646_v63  ;;  %v1496_v22 = vadd.f32 %v1495_v5, %v1343_v18  ;;  %v4365_v3 = vpop.f32.mrf.mxu3 }
 0x1c0   :  { %2295 = vst.msk [vmem:[%s4923_s3 + $0x48] sm:$0xf] %vm2276_vm2, %v2237_v54 }
 0x1c1   :  { %v1954_v8 = vpop.f32.mrf.mxu0  ;;  %v1952_v1 = vadd.f32 %v1951_v9, %v1799_v43  ;;  %1534 = vmatmul.bf16.gmra.mxu1 %v2705_v52  ;;  %1687 = vmatmul.bf16.gmra.mxu2 %v2709_v16  ;;  %v3169_v9 = vld [vmem:[%s4922_s0 + $0x310] sm:$0xf0] }
 0x1c2   :  { %v2729_v12 = vor.u32 %v3169_v9, %v2728_v61 }
 0x1c3   :  { %vm2067_vm7 = vcmp.ge.f32.partialorder %v1952_v1, 0.0  ;;  %v2124_v31 = vmul.f32 0.2, %v1952_v1 }
 0x1c4   :  { %3060 = vmatmul.msk.bf16.gmra.mxu0 %vm1195_vm0, %v2717_v62  ;;  %v1648_v46 = vpop.f32.mrf.mxu2  ;;  %1855 = vmatmul.bf16.gmra.mxu3 %v2773_v48 }
 0x1c5   :  { %v2181_v0 = vsel %vm2067_vm7, %v1952_v1, %v2124_v31  ;;  %v1649_v10 = vadd.f32 %v1648_v46, %v1496_v22  ;;  %v2790_v31 = vld [vmem:[%s4922_s0 + $0x38c] sm:$0xf0]  ;;  %v1350_v22 = vadd.f32 %v3935_v41, %v3738_v11 }
 0x1c6   :  { %v2238_v40 = vpack.c.bf16 %v2181_v0, %v2181_v0  ;;  %v1497_v33 = vpop.f32.mrf.mxu1  ;;  %v2742_v0 = vld [vmem:[%s4922_s0 + $0x334] sm:$0xf0]  ;;  %v2756_v11 = vld [vmem:[%s4922_s0 + $0x330] sm:$0xf] }
 0x1c7   :  { %v1802_v29 = vadd.f32 %v4269_v7, %v1649_v10  ;;  %v3166_v7 = vld [vmem:[%s4922_s0 + $0x2fc] sm:$0xf]  ;;  %v1498_v14 = vadd.f32 %v1497_v33, %v1345_v51  ;;  %v4398_v19 = vpop.f32.mrf.mxu3  ;;  %v2793_v10 = vor.u32 %v3182_v6, %v2790_v31 }
 0x1c8   :  { %2296 = vst.msk [vmem:[%s4923_s3 + $0x4c] sm:$0xf] %vm2276_vm2, %v2238_v40  ;;  %v2725_v25 = vor.u32 %v3166_v7, %v2722_v58  ;;  %v2748_v40 = vld [vmem:[%s4922_s0 + $0x328] sm:$0xf]  ;;  %v3174_v33 = vld [vmem:[%s4922_s0 + $0x338] sm:$0xf0] }
 0x1c9   :  { %v1956_v28 = vpop.f32.mrf.mxu0  ;;  %v1955_v36 = vadd.f32 %v1954_v8, %v1802_v29  ;;  %v2749_v7 = vor.u32 %v3174_v33, %v2748_v40 }
 0x1cb   :  { %vm2068_vm8 = vcmp.ge.f32.partialorder %v1955_v36, 0.0  ;;  %v2125_v30 = vmul.f32 0.2, %v1955_v36 }
 0x1cc   :  { %v1650_v37 = vpop.f32.mrf.mxu2 }
 0x1cd   :  { %v2182_v53 = vsel %vm2068_vm8, %v1955_v36, %v2125_v30  ;;  %v1651_v57 = vadd.f32 %v1650_v37, %v1498_v14  ;;  %v4451_v14 = vld [vmem:[%s4921_s2] ss:$0 sm:$0xff] }
 0x1ce   :  { %v2239_v26 = vpack.c.bf16 %v2182_v53, %v2182_v53  ;;  %v1500_v35 = vpop.f32.mrf.mxu1  ;;  %v1353_v17 = vadd.f32 %v4451_v14, %v3770_v39  ;;  %v3187_v39 = vld [vmem:[%s4922_s0 + $0x3a4] sm:$0xf] }
 0x1cf   :  { %v1804_v59 = vadd.f32 %v4279_v49, %v1651_v57  ;;  %v1501_v16 = vadd.f32 %v1500_v35, %v1348_v56  ;;  %v4408_v8 = vpop.f32.mrf.mxu3  ;;  %v2810_v56 = vld [vmem:[%s4922_s0 + $0x3b4] sm:$0xf0] }
 0x1d0   :  { %2297 = vst.msk [vmem:[%s4923_s3 + $0x50] sm:$0xf] %vm2276_vm2, %v2239_v26 }
 0x1d1   :  { %v1959_v45 = vpop.f32.mrf.mxu0  ;;  %v1957_v63 = vadd.f32 %v1956_v28, %v1804_v59  ;;  %1539 = vmatmul.bf16.gmra.mxu1 %v2725_v25  ;;  %1692 = vmatmul.bf16.gmra.mxu2 %v2729_v12  ;;  %v3175_v28 = vld [vmem:[%s4922_s0 + $0x340] sm:$0xf0] }
 0x1d2   :  { %v2757_v61 = vor.u32 %v3175_v28, %v2756_v11 }
 0x1d3   :  { %vm2069_vm9 = vcmp.ge.f32.partialorder %v1957_v63, 0.0  ;;  %v2126_v52 = vmul.f32 0.2, %v1957_v63 }
 0x1d4   :  { %3061 = vmatmul.msk.bf16.gmra.mxu0 %vm1195_vm0, %v2737_v42  ;;  %v1653_v54 = vpop.f32.mrf.mxu2  ;;  %1860 = vmatmul.bf16.gmra.mxu3 %v2793_v10 }
 0x1d5   :  { %v2183_v5 = vsel %vm2069_vm9, %v1957_v63, %v2126_v52  ;;  %v1654_v49 = vadd.f32 %v1653_v54, %v1501_v16  ;;  %v1355_v63 = vadd.f32 %v4451_v14, %v3779_v44  ;;  %v2762_v16 = vld [vmem:[%s4922_s0 + $0x35c] sm:$0xf0]  ;;  %v2813_v54 = vor.u32 %v3187_v39, %v2810_v56  ;;  %v2776_v44 = vld [vmem:[%s4922_s0 + $0x358] sm:$0xf] }
 0x1d6   :  { %v2240_v62 = vpack.c.bf16 %v2183_v5, %v2183_v5  ;;  %v1502_v43 = vpop.f32.mrf.mxu1  ;;  %v2768_v5 = vld [vmem:[%s4922_s0 + $0x350] sm:$0xf] }
 0x1d7   :  { %v1807_v18 = vadd.f32 %v4312_v23, %v1654_v49  ;;  %v3171_v23 = vld [vmem:[%s4922_s0 + $0x324] sm:$0xf]  ;;  %v1503_v29 = vadd.f32 %v1502_v43, %v1350_v22  ;;  %v4441_v9 = vpop.f32.mrf.mxu3 }
 0x1d8   :  { %2298 = vst.msk [vmem:[%s4923_s3 + $0x54] sm:$0xf] %vm2276_vm2, %v2240_v62  ;;  %v2745_v36 = vor.u32 %v3171_v23, %v2742_v0  ;;  %v3179_v49 = vld [vmem:[%s4922_s0 + $0x360] sm:$0xf0] }
 0x1d9   :  { %v1961_v1 = vpop.f32.mrf.mxu0  ;;  %v1960_v46 = vadd.f32 %v1959_v45, %v1807_v18  ;;  %v3180_v18 = vld [vmem:[%s4922_s0 + $0x368] sm:$0xf0] }
 0x1da   :  { %v2777_v10 = vor.u32 %v3180_v18, %v2776_v44 }
 0x1db   :  { %vm2070_vm10 = vcmp.ge.f32.partialorder %v1960_v46, 0.0  ;;  %v2127_v41 = vmul.f32 0.2, %v1960_v46 }
 0x1dc   :  { %v1655_v50 = vpop.f32.mrf.mxu2 }
 0x1dd   :  { %v2184_v20 = vsel %vm2070_vm10, %v1960_v46, %v2127_v41  ;;  %v1656_v51 = vadd.f32 %v1655_v50, %v1503_v29  ;;  %v2769_v46 = vor.u32 %v3179_v49, %v2768_v5  ;;  %v1358_v41 = vadd.f32 %v4451_v14, %v3811_v4  ;;  %v3192_v4 = vld [vmem:[%s4922_s0 + $0x3cc] sm:$0xf] }
 0x1de   :  { %v2241_v58 = vpack.c.bf16 %v2184_v20, %v2184_v20  ;;  %v1505_v48 = vpop.f32.mrf.mxu1  ;;  %v1363_v49 = vadd.f32 %v4451_v14, %v3850_v60  ;;  %v3197_v60 = vld [vmem:[%s4922_s0 + $0x3f4] sm:$0xf] }
 0x1df   :  { %v1809_v55 = vadd.f32 %v4322_v32, %v1656_v51  ;;  %v1506_v53 = vadd.f32 %v1505_v48, %v1353_v17  ;;  %v4456_v42 = vpop.f32.mrf.mxu3 }
 0x1e0   :  { %2299 = vst.msk [vmem:[%s4923_s3 + $0x58] sm:$0xf] %vm2276_vm2, %v2241_v58 }
 0x1e1   :  { %v1964_v30 = vpop.f32.mrf.mxu0  ;;  %v1962_v37 = vadd.f32 %v1961_v1, %v1809_v55  ;;  %1544 = vmatmul.bf16.gmra.mxu1 %v2745_v36  ;;  %1697 = vmatmul.bf16.gmra.mxu2 %v2749_v7  ;;  %v2830_v55 = vld [vmem:[%s4922_s0 + $0x3dc] sm:$0xf0] }
 0x1e3   :  { %vm2071_vm11 = vcmp.ge.f32.partialorder %v1962_v37, 0.0  ;;  %v2128_v32 = vmul.f32 0.2, %v1962_v37 }
 0x1e4   :  { %3062 = vmatmul.msk.bf16.gmra.mxu0 %vm1195_vm0, %v2757_v61  ;;  %v1658_v57 = vpop.f32.mrf.mxu2  ;;  %1865 = vmatmul.bf16.gmra.mxu3 %v2813_v54 }
 0x1e5   :  { %v2185_v25 = vsel %vm2071_vm11, %v1962_v37, %v2128_v32  ;;  %v1659_v12 = vadd.f32 %v1658_v57, %v1506_v53  ;;  %v2782_v37 = vld [vmem:[%s4922_s0 + $0x384] sm:$0xf0]  ;;  %v2833_v32 = vor.u32 %v3192_v4, %v2830_v55  ;;  %v2788_v53 = vld [vmem:[%s4922_s0 + $0x378] sm:$0xf]  ;;  %v3184_v57 = vld [vmem:[%s4922_s0 + $0x388] sm:$0xf0] }
 0x1e6   :  { %v2242_v26 = vpack.c.bf16 %v2185_v25, %v2185_v25  ;;  %v1507_v35 = vpop.f32.mrf.mxu1  ;;  %v2789_v56 = vor.u32 %v3184_v57, %v2788_v53 }
 0x1e7   :  { %v1812_v59 = vadd.f32 %v4355_v38, %v1659_v12  ;;  %v3176_v38 = vld [vmem:[%s4922_s0 + $0x34c] sm:$0xf]  ;;  %v1508_v43 = vadd.f32 %v1507_v35, %v1355_v63  ;;  %v4489_v40 = vpop.f32.mrf.mxu3 }
 0x1e8   :  { %2300 = vst.msk [vmem:[%s4923_s3 + $0x5c] sm:$0xf] %vm2276_vm2, %v2242_v26  ;;  %v2765_v22 = vor.u32 %v3176_v38, %v2762_v16  ;;  %v3185_v26 = vld [vmem:[%s4922_s0 + $0x390] sm:$0xf0] }
 0x1e9   :  { %v1966_v45 = vpop.f32.mrf.mxu0  ;;  %v1965_v52 = vadd.f32 %v1964_v30, %v1812_v59  ;;  %v1360_v30 = vadd.f32 %v4451_v14, %v3820_v21  ;;  %v2796_v21 = vld [vmem:[%s4922_s0 + $0x380] sm:$0xf] }
 0x1ea   :  { %v2797_v38 = vor.u32 %v3185_v26, %v2796_v21 }
 0x1eb   :  { %vm2072_vm12 = vcmp.ge.f32.partialorder %v1965_v52, 0.0  ;;  %v2129_v62 = vmul.f32 0.2, %v1965_v52 }
 0x1ec   :  { %v1660_v1 = vpop.f32.mrf.mxu2 }
 0x1ed   :  { %v2186_v6 = vsel %vm2072_vm12, %v1965_v52, %v2129_v62  ;;  %v1661_v31 = vadd.f32 %v1660_v1, %v1508_v43 }
 0x1ee   :  { %v2243_v23 = vpack.c.bf16 %v2186_v6, %v2186_v6  ;;  %v1510_v0 = vpop.f32.mrf.mxu1 }
 0x1ef   :  { %v1814_v33 = vadd.f32 %v4365_v3, %v1661_v31  ;;  %v1511_v50 = vadd.f32 %v1510_v0, %v1358_v41  ;;  %v4499_v58 = vpop.f32.mrf.mxu3  ;;  %v2850_v0 = vld [vmem:[%s4922_s0 + $0x404] sm:$0xf0] }
 0x1f0   :  { %2301 = vst.msk [vmem:[%s4923_s3 + $0x60] sm:$0xf] %vm2276_vm2, %v2243_v23  ;;  %v2853_v41 = vor.u32 %v3197_v60, %v2850_v0 }
 0x1f1   :  { %v1969_v11 = vpop.f32.mrf.mxu0  ;;  %v1967_v29 = vadd.f32 %v1966_v45, %v1814_v33  ;;  %1549 = vmatmul.bf16.gmra.mxu1 %v2765_v22  ;;  %1702 = vmatmul.bf16.gmra.mxu2 %v2769_v46 }
 0x1f3   :  { %vm2073_vm13 = vcmp.ge.f32.partialorder %v1967_v29, 0.0  ;;  %v2130_v28 = vmul.f32 0.2, %v1967_v29 }
 0x1f4   :  { %3063 = vmatmul.msk.bf16.gmra.mxu0 %vm1195_vm0, %v2777_v10  ;;  %v1663_v20 = vpop.f32.mrf.mxu2  ;;  %1870 = vmatmul.bf16.gmra.mxu3 %v2833_v32  ;;  %v1365_v10 = vadd.f32 %v4451_v14, %v3857_v2  ;;  %v2816_v2 = vld [vmem:[%s4922_s0 + $0x3a8] sm:$0xf]  ;;  %v1368_v32 = vadd.f32 %v4451_v14, %v3889_v24  ;;  %v3202_v24 = vld [vmem:[%s4922_s0 + $0x41c] sm:$0xf] }
 0x1f5   :  { %v2187_v51 = vsel %vm2073_vm13, %v1967_v29, %v2130_v28  ;;  %v1664_v3 = vadd.f32 %v1663_v20, %v1511_v50  ;;  %v2808_v29 = vld [vmem:[%s4922_s0 + $0x3a0] sm:$0xf]  ;;  %v3189_v28 = vld [vmem:[%s4922_s0 + $0x3b0] sm:$0xf0] }
 0x1f6   :  { %v2244_v36 = vpack.c.bf16 %v2187_v51, %v2187_v51  ;;  %v1512_v7 = vpop.f32.mrf.mxu1  ;;  %v3190_v51 = vld [vmem:[%s4922_s0 + $0x3b8] sm:$0xf0] }
 0x1f7   :  { %v1817_v48 = vadd.f32 %v4398_v19, %v1664_v3  ;;  %v3181_v19 = vld [vmem:[%s4922_s0 + $0x374] sm:$0xf]  ;;  %v1513_v12 = vadd.f32 %v1512_v7, %v1360_v30  ;;  %v4532_v16 = vpop.f32.mrf.mxu3  ;;  %v2817_v30 = vor.u32 %v3190_v51, %v2816_v2 }
 0x1f8   :  { %2302 = vst.msk [vmem:[%s4923_s3 + $0x64] sm:$0xf] %vm2276_vm2, %v2244_v36  ;;  %v2785_v39 = vor.u32 %v3181_v19, %v2782_v37 }
 0x1f9   :  { %v1971_v61 = vpop.f32.mrf.mxu0  ;;  %v1970_v17 = vadd.f32 %v1969_v11, %v1817_v48  ;;  %v2802_v11 = vld [vmem:[%s4922_s0 + $0x3ac] sm:$0xf0] }
 0x1fb   :  { %vm2074_vm14 = vcmp.ge.f32.partialorder %v1970_v17, 0.0  ;;  %v2131_v25 = vmul.f32 0.2, %v1970_v17 }
 0x1fc   :  { %v1665_v35 = vpop.f32.mrf.mxu2 }
 0x1fd   :  { %v2188_v59 = vsel %vm2074_vm14, %v1970_v17, %v2131_v25  ;;  %v1666_v45 = vadd.f32 %v1665_v35, %v1513_v12 }
 0x1fe   :  { %v2245_v63 = vpack.c.bf16 %v2188_v59, %v2188_v59  ;;  %v1515_v52 = vpop.f32.mrf.mxu1 }
 0x1ff   :  { %v1819_v54 = vadd.f32 %v4408_v8, %v1666_v45  ;;  %v1516_v43 = vadd.f32 %v1515_v52, %v1363_v49  ;;  %v4542_v22 = vpop.f32.mrf.mxu3  ;;  %v3194_v49 = vld [vmem:[%s4922_s0 + $0x3d8] sm:$0xf0] }
 0x200   :  { %2303 = vst.msk [vmem:[%s4923_s3 + $0x68] sm:$0xf] %vm2276_vm2, %v2245_v63  ;;  %v1370_v63 = vadd.f32 %v4451_v14, %v3898_v13  ;;  %v2836_v13 = vld [vmem:[%s4922_s0 + $0x3d0] sm:$0xf] }
 0x201   :  { %v1974_v5 = vpop.f32.mrf.mxu0  ;;  %v1972_v44 = vadd.f32 %v1971_v61, %v1819_v54  ;;  %1554 = vmatmul.bf16.gmra.mxu1 %v2785_v39  ;;  %1707 = vmatmul.bf16.gmra.mxu2 %v2789_v56  ;;  %v2809_v61 = vor.u32 %v3189_v28, %v2808_v29  ;;  %v2870_v56 = vld [vmem:[%s4922_s0 + $0x42c] sm:$0xf0] }
 0x202   :  { %v2873_v54 = vor.u32 %v3202_v24, %v2870_v56 }
 0x203   :  { %vm2075_vm15 = vcmp.ge.f32.partialorder %v1972_v44, 0.0  ;;  %v2132_v62 = vmul.f32 0.2, %v1972_v44 }
 0x204   :  { %3064 = vmatmul.msk.bf16.gmra.mxu0 %vm1195_vm0, %v2797_v38  ;;  %v1668_v18 = vpop.f32.mrf.mxu2  ;;  %1875 = vmatmul.bf16.gmra.mxu3 %v2853_v41  ;;  %v2822_v38 = vld [vmem:[%s4922_s0 + $0x3d4] sm:$0xf0] }
 0x205   :  { %v2189_v1 = vsel %vm2075_vm15, %v1972_v44, %v2132_v62  ;;  %v1669_v8 = vadd.f32 %v1668_v18, %v1516_v43  ;;  %v3195_v43 = vld [vmem:[%s4922_s0 + $0x3e0] sm:$0xf0] }
 0x206   :  { %v2246_v6 = vpack.c.bf16 %v2189_v1, %v2189_v1  ;;  %v1517_v31 = vpop.f32.mrf.mxu1  ;;  %v2837_v60 = vor.u32 %v3195_v43, %v2836_v13 }
 0x207   :  { %v1822_v46 = vadd.f32 %v4441_v9, %v1669_v8  ;;  %v3186_v9 = vld [vmem:[%s4922_s0 + $0x39c] sm:$0xf]  ;;  %v1518_v20 = vadd.f32 %v1517_v31, %v1365_v10  ;;  %v4575_v17 = vpop.f32.mrf.mxu3 }
 0x208   :  { %2304 = vst.msk [vmem:[%s4923_s3 + $0x6c] sm:$0xf] %vm2276_vm2, %v2246_v6  ;;  %v2805_v48 = vor.u32 %v3186_v9, %v2802_v11  ;;  %v1373_v9 = vadd.f32 %v4451_v14, %v3615_v15  ;;  %v3207_v15 = vld [vmem:[%s4922_s0 + $0x444] sm:$0xf] }
 0x209   :  { %v1976_v23 = vpop.f32.mrf.mxu0  ;;  %v1975_v33 = vadd.f32 %v1974_v5, %v1822_v46  ;;  %v2828_v5 = vld [vmem:[%s4922_s0 + $0x3c8] sm:$0xf] }
 0x20a   :  { %v2829_v31 = vor.u32 %v3194_v49, %v2828_v5 }
 0x20b   :  { %vm2076_vm1 = vcmp.ge.f32.partialorder %v1975_v33, 0.0  ;;  %v2133_v50 = vmul.f32 0.2, %v1975_v33 }
 0x20c   :  { %v1670_v3 = vpop.f32.mrf.mxu2 }
 0x20d   :  { %v2190_v36 = vsel %vm2076_vm1, %v1975_v33, %v2133_v50  ;;  %v1671_v7 = vadd.f32 %v1670_v3, %v1518_v20 }
 0x20e   :  { %v2247_v4 = vpack.c.bf16 %v2190_v36, %v2190_v36  ;;  %v1520_v55 = vpop.f32.mrf.mxu1 }
 0x20f   :  { %v1824_v19 = vadd.f32 %v4456_v42, %v1671_v7  ;;  %v1521_v21 = vadd.f32 %v1520_v55, %v1368_v32  ;;  %v4585_v59 = vpop.f32.mrf.mxu3  ;;  %v2890_v7 = vld [vmem:[%s4922_s0 + $0x454] sm:$0xf0] }
 0x210   :  { %2305 = vst.msk [vmem:[%s4923_s3 + $0x70] sm:$0xf] %vm2276_vm2, %v2247_v4  ;;  %v2842_v4 = vld [vmem:[%s4922_s0 + $0x3fc] sm:$0xf0]  ;;  %v2893_v55 = vor.u32 %v3207_v15, %v2890_v7  ;;  %v4945_v15 = vld [vmem:[#allocation5_spill] sm:$0xff] }
 0x211   :  { %v1979_v37 = vpop.f32.mrf.mxu0  ;;  %v1977_v53 = vadd.f32 %v1976_v23, %v1824_v19  ;;  %1559 = vmatmul.bf16.gmra.mxu1 %v2805_v48  ;;  %1712 = vmatmul.bf16.gmra.mxu2 %v2809_v61  ;;  %v1375_v48 = vadd.f32 %v4451_v14, %v3645_v27  ;;  %v3199_v19 = vld [vmem:[%s4922_s0 + $0x400] sm:$0xf0]  ;;  %v2856_v27 = vld [vmem:[%s4922_s0 + $0x3f8] sm:$0xf]  ;;  %v1383_v7 = vadd.f32 %v4451_v14, %v4945_v15 }
 0x213   :  { %vm2077_vm3 = vcmp.ge.f32.partialorder %v1977_v53, 0.0  ;;  %v2134_v57 = vmul.f32 0.2, %v1977_v53 }
 0x214   :  { %3065 = vmatmul.msk.bf16.gmra.mxu0 %vm1195_vm0, %v2817_v30  ;;  %v1673_v25 = vpop.f32.mrf.mxu2  ;;  %1880 = vmatmul.bf16.gmra.mxu3 %v2873_v54  ;;  %v2848_v30 = vld [vmem:[%s4922_s0 + $0x3f0] sm:$0xf] }
 0x215   :  { %v2191_v12 = vsel %vm2077_vm3, %v1977_v53, %v2134_v57  ;;  %v1674_v42 = vadd.f32 %v1673_v25, %v1521_v21  ;;  %v3200_v53 = vld [vmem:[%s4922_s0 + $0x408] sm:$0xf0] }
 0x216   :  { %v2248_v26 = vpack.c.bf16 %v2191_v12, %v2191_v12  ;;  %v1522_v35 = vpop.f32.mrf.mxu1 }
 0x217   :  { %v1827_v45 = vadd.f32 %v4489_v40, %v1674_v42  ;;  %v3191_v40 = vld [vmem:[%s4922_s0 + $0x3c4] sm:$0xf]  ;;  %v1523_v62 = vadd.f32 %v1522_v35, %v1370_v63  ;;  %v4618_v0 = vpop.f32.mrf.mxu3  ;;  %v2849_v42 = vor.u32 %v3199_v19, %v2848_v30  ;;  %v1378_v63 = vadd.f32 %v4451_v14, %v3654_v34 }
 0x218   :  { %2306 = vst.msk [vmem:[%s4923_s3 + $0x74] sm:$0xf] %vm2276_vm2, %v2248_v26  ;;  %v2825_v6 = vor.u32 %v3191_v40, %v2822_v38 }
 0x219   :  { %v1981_v39 = vpop.f32.mrf.mxu0  ;;  %v1980_v52 = vadd.f32 %v1979_v37, %v1827_v45  ;;  %v2857_v45 = vor.u32 %v3200_v53, %v2856_v27  ;;  %v4946_v53 = vld [vmem:[#allocation7_spill] sm:$0xff] }
 0x21b   :  { %vm2078_vm4 = vcmp.ge.f32.partialorder %v1980_v52, 0.0  ;;  %v2135_v44 = vmul.f32 0.2, %v1980_v52 }
 0x21c   :  { %v1675_v18 = vpop.f32.mrf.mxu2 }
 0x21d   :  { %v2192_v1 = vsel %vm2078_vm4, %v1980_v52, %v2135_v44  ;;  %v1676_v8 = vadd.f32 %v1675_v18, %v1523_v62  ;;  %v4676_v62 = vld [vmem:[%s4922_s0 + $0x468] sm:$0xff] }
 0x21e   :  { %v2249_v46 = vpack.c.bf16 %v2192_v1, %v2192_v1  ;;  %v1525_v23 = vpop.f32.mrf.mxu1  ;;  %v716_v18 = vunpack.c.h.b16 %v4676_v62  ;;  %v1380_v1 = vadd.f32 %v4451_v14, %v3686_v47  ;;  %v2876_v47 = vld [vmem:[%s4922_s0 + $0x420] sm:$0xf] }
 0x21f   :  { %v1829_v10 = vadd.f32 %v4499_v58, %v1676_v8  ;;  %v1526_v29 = vadd.f32 %v1525_v23, %v1373_v9  ;;  %v4628_v51 = vpop.f32.mrf.mxu3  ;;  %v3204_v23 = vld [vmem:[%s4922_s0 + $0x428] sm:$0xf0] }
 0x220   :  { %2307 = vst.msk [vmem:[%s4923_s3 + $0x78] sm:$0xf] %vm2276_vm2, %v2249_v46  ;;  %v2868_v46 = vld [vmem:[%s4922_s0 + $0x418] sm:$0xf] }
 0x221   :  { %v1984_v33 = vpop.f32.mrf.mxu0  ;;  %v1982_v11 = vadd.f32 %v1981_v39, %v1829_v10  ;;  %1564 = vmatmul.bf16.gmra.mxu1 %v2825_v6  ;;  %1717 = vmatmul.bf16.gmra.mxu2 %v2829_v31  ;;  %v3201_v6 = vld [vmem:[%s4922_s0 + $0x414] sm:$0xf]  ;;  %v861_v31 = vpack.c.b16 %v716_v18, %v716_v18 }
 0x223   :  { %vm2079_vm5 = vcmp.ge.f32.partialorder %v1982_v11, 0.0  ;;  %v2136_v41 = vmul.f32 0.2, %v1982_v11 }
 0x224   :  { %3066 = vmatmul.msk.bf16.gmra.mxu0 %vm1195_vm0, %v2837_v60  ;;  %v1678_v28 = vpop.f32.mrf.mxu2  ;;  %1885 = vmatmul.bf16.gmra.mxu3 %v2893_v55 }
 0x225   :  { %v2193_v2 = vsel %vm2079_vm5, %v1982_v11, %v2136_v41  ;;  %v1679_v58 = vadd.f32 %v1678_v28, %v1526_v29  ;;  %v2869_v28 = vor.u32 %v3204_v23, %v2868_v46 }
 0x226   :  { %v2250_v50 = vpack.c.bf16 %v2193_v2, %v2193_v2  ;;  %v1527_v20 = vpop.f32.mrf.mxu1 }
 0x227   :  { %v1832_v3 = vadd.f32 %v4532_v16, %v1679_v58  ;;  %v3196_v16 = vld [vmem:[%s4922_s0 + $0x3ec] sm:$0xf]  ;;  %v1528_v32 = vadd.f32 %v1527_v20, %v1375_v48  ;;  %v4661_v39 = vpop.f32.mrf.mxu3 }
 0x228   :  { %2308 = vst.msk [vmem:[%s4923_s3 + $0x7c] sm:$0xf] %vm2276_vm2, %v2250_v50  ;;  %v2845_v12 = vor.u32 %v3196_v16, %v2842_v4 }
 0x229   :  { %v1986_v36 = vpop.f32.mrf.mxu0  ;;  %v1985_v61 = vadd.f32 %v1984_v33, %v1832_v3  ;;  %v3205_v33 = vld [vmem:[%s4922_s0 + $0x430] sm:$0xf0] }
 0x22a   :  { %v2877_v50 = vor.u32 %v3205_v33, %v2876_v47  ;;  %v185_v33 = vld [vmem:[%s4922_s0 + $0x470] sm:$0xf] }
 0x22b   :  { %vm2080_vm6 = vcmp.ge.f32.partialorder %v1985_v61, 0.0  ;;  %v2137_v37 = vmul.f32 0.2, %v1985_v61 }
 0x22c   :  { %v1680_v57 = vpop.f32.mrf.mxu2 }
 0x22d   :  { %v2194_v21 = vsel %vm2080_vm6, %v1985_v61, %v2137_v37  ;;  %v1681_v25 = vadd.f32 %v1680_v57, %v1528_v32  ;;  %v1385_v57 = vadd.f32 %v4451_v14, %v4946_v53 }
 0x22e   :  { %v2251_v26 = vpack.c.bf16 %v2194_v21, %v2194_v21  ;;  %v1530_v35 = vpop.f32.mrf.mxu1 }
 0x22f   :  { %v1834_v24 = vadd.f32 %v4542_v22, %v1681_v25  ;;  %v1531_v38 = vadd.f32 %v1530_v35, %v1378_v63  ;;  %v4671_v44 = vpop.f32.mrf.mxu3  ;;  %v3206_v25 = vld [vmem:[%s4922_s0 + $0x43c] sm:$0xf] }
 0x230   :  { %2309 = vst.msk [vmem:[%s4923_s3 + $0x80] sm:$0xf] %vm2276_vm2, %v2251_v26  ;;  %v2896_v26 = vld [vmem:[%s4922_s0 + $0x448] sm:$0xf] }
 0x231   :  { %v1989_v56 = vpop.f32.mrf.mxu0  ;;  %v1987_v52 = vadd.f32 %v1986_v36, %v1834_v24  ;;  %1569 = vmatmul.bf16.gmra.mxu1 %v2845_v12  ;;  %1722 = vmatmul.bf16.gmra.mxu2 %v2849_v42  ;;  %v2882_v12 = vld [vmem:[%s4922_s0 + $0x44c] sm:$0xf0]  ;;  %v3209_v42 = vld [vmem:[%s4922_s0 + $0x450] sm:$0xf0]  ;;  %v3210_v24 = vld [vmem:[%s4922_s0 + $0x458] sm:$0xf0] }
 0x233   :  { %vm2081_vm7 = vcmp.ge.f32.partialorder %v1987_v52, 0.0  ;;  %v2138_v40 = vmul.f32 0.2, %v1987_v52 }
 0x234   :  { %3067 = vmatmul.msk.bf16.gmra.mxu0 %vm1195_vm0, %v2857_v45  ;;  %v1683_v54 = vpop.f32.mrf.mxu2  ;;  %1890 = vmatmul.bf16.gmra.mxu3 %v861_v31 }
 0x235   :  { %v2195_v5 = vsel %vm2081_vm7, %v1987_v52, %v2138_v40  ;;  %v1684_v22 = vadd.f32 %v1683_v54, %v1531_v38  ;;  %v2885_v40 = vor.u32 %v3206_v25, %v2882_v12 }
 0x236   :  { %v2252_v49 = vpack.c.bf16 %v2195_v5, %v2195_v5  ;;  %v1532_v13 = vpop.f32.mrf.mxu1 }
 0x237   :  { %v1837_v34 = vadd.f32 %v4575_v17, %v1684_v22  ;;  %v2862_v17 = vld [vmem:[%s4922_s0 + $0x424] sm:$0xf0]  ;;  %v1533_v10 = vadd.f32 %v1532_v13, %v1380_v1  ;;  %v4704_v20 = vpop.f32.mrf.mxu3  ;;  %v2897_v22 = vor.u32 %v3210_v24, %v2896_v26 }
 0x238   :  { %2310 = vst.msk [vmem:[%s4923_s3 + $0x84] sm:$0xf] %vm2276_vm2, %v2252_v49  ;;  %v2865_v29 = vor.u32 %v3201_v6, %v2862_v17 }
 0x239   :  { %v1991_v43 = vpop.f32.mrf.mxu0  ;;  %v1990_v8 = vadd.f32 %v1989_v56, %v1837_v34 }
 0x23b   :  { %vm2082_vm8 = vcmp.ge.f32.partialorder %v1990_v8, 0.0  ;;  %v2139_v60 = vmul.f32 0.2, %v1990_v8 }
 0x23c   :  { %v1685_v9 = vpop.f32.mrf.mxu2 }
 0x23d   :  { %v2196_v11 = vsel %vm2082_vm8, %v1990_v8, %v2139_v60  ;;  %v1686_v41 = vadd.f32 %v1685_v9, %v1533_v10  ;;  %v3273_v9 = vld [vmem:[%s4922_s0 + $0x460] sm:$0xff] }
 0x23e   :  { %v2253_v2 = vpack.c.bf16 %v2196_v11, %v2196_v11  ;;  %v1535_v58 = vpop.f32.mrf.mxu1  ;;  %v714_v11 = vunpack.c.h.b16 %v3273_v9 }
 0x23f   :  { %v1839_v3 = vadd.f32 %v4585_v59, %v1686_v41  ;;  %v1536_v16 = vadd.f32 %v1535_v58, %v1383_v7  ;;  %v4714_v27 = vpop.f32.mrf.mxu3  ;;  %v4948_v41 = vld [vmem:[#allocation11_spill] sm:$0xff] }
 0x240   :  { %2311 = vst.msk [vmem:[%s4923_s3 + $0x88] sm:$0xf] %vm2276_vm2, %v2253_v2  ;;  %v717_v2 = vunpack.c.l.b16 %v185_v33  ;;  %v859_v7 = vpack.c.b16 %v714_v11, %v714_v11 }
 0x241   :  { %v1994_v36 = vpop.f32.mrf.mxu0  ;;  %v1992_v48 = vadd.f32 %v1991_v43, %v1839_v3  ;;  %1574 = vmatmul.bf16.gmra.mxu1 %v2865_v29  ;;  %1727 = vmatmul.bf16.gmra.mxu2 %v2869_v28  ;;  %v4947_v43 = vld [vmem:[#allocation9_spill] sm:$0xff]  ;;  %v1390_v29 = vadd.f32 %v4451_v14, %v4948_v41 }
 0x242   :  { %v1388_v18 = vadd.f32 %v4451_v14, %v4947_v43 }
 0x243   :  { %vm2083_vm9 = vcmp.ge.f32.partialorder %v1992_v48, 0.0  ;;  %v2140_v61 = vmul.f32 0.2, %v1992_v48 }
 0x244   :  { %3068 = vmatmul.msk.bf16.gmra.mxu0 %vm1195_vm0, %v2877_v50  ;;  %v1688_v4 = vpop.f32.mrf.mxu2 }
 0x245   :  { %v2197_v55 = vsel %vm2083_vm9, %v1992_v48, %v2140_v61  ;;  %v1689_v59 = vadd.f32 %v1688_v4, %v1536_v16  ;;  %v862_v4 = vpack.c.b16 %v717_v2, %v717_v2 }
 0x246   :  { %v2254_v30 = vpack.c.bf16 %v2197_v55, %v2197_v55  ;;  %v1537_v19 = vpop.f32.mrf.mxu1 }
 0x247   :  { %v1842_v37 = vadd.f32 %v4618_v0, %v1689_v59  ;;  %v2888_v0 = vld [vmem:[%s4922_s0 + $0x440] sm:$0xf]  ;;  %v1538_v45 = vadd.f32 %v1537_v19, %v1385_v57  ;;  %v4741_v49 = vpop.f32.mrf.mxu3 }
 0x248   :  { %2312 = vst.msk [vmem:[%s4923_s3 + $0x8c] sm:$0xf] %vm2276_vm2, %v2254_v30  ;;  %v2889_v38 = vor.u32 %v3209_v42, %v2888_v0 }
 0x249   :  { %v1996_v32 = vpop.f32.mrf.mxu0  ;;  %v1995_v21 = vadd.f32 %v1994_v36, %v1842_v37 }
 0x24b   :  { %vm2084_vm10 = vcmp.ge.f32.partialorder %v1995_v21, 0.0  ;;  %v2141_v35 = vmul.f32 0.2, %v1995_v21 }
 0x24c   :  { %v1690_v56 = vpop.f32.mrf.mxu2 }
 0x24d   :  { %v2198_v63 = vsel %vm2084_vm10, %v1995_v21, %v2141_v35  ;;  %v1691_v52 = vadd.f32 %v1690_v56, %v1538_v45  ;;  %v4950_v35 = vld [vmem:[#allocation15_spill] sm:$0xff] }
 0x24e   :  { %v2255_v54 = vpack.c.bf16 %v2198_v63, %v2198_v63  ;;  %v1540_v5 = vpop.f32.mrf.mxu1  ;;  %v1395_v45 = vadd.f32 %v4451_v14, %v4950_v35 }
 0x24f   :  { %v1844_v13 = vadd.f32 %v4628_v51, %v1691_v52  ;;  %v1541_v6 = vadd.f32 %v1540_v5, %v1388_v18  ;;  %v4751_v47 = vpop.f32.mrf.mxu3 }
 0x250   :  { %2313 = vst.msk [vmem:[%s4923_s3 + $0x90] sm:$0xf] %vm2276_vm2, %v2255_v54 }
 0x251   :  { %v1999_v34 = vpop.f32.mrf.mxu0  ;;  %v1997_v1 = vadd.f32 %v1996_v32, %v1844_v13  ;;  %1579 = vmatmul.bf16.gmra.mxu1 %v2885_v40  ;;  %1732 = vmatmul.bf16.gmra.mxu2 %v2889_v38 }
 0x253   :  { %vm2085_vm11 = vcmp.ge.f32.partialorder %v1997_v1, 0.0  ;;  %v2142_v8 = vmul.f32 0.2, %v1997_v1 }
 0x254   :  { %3069 = vmatmul.msk.bf16.gmra.mxu0 %vm1195_vm0, %v2897_v22  ;;  %v1693_v17 = vpop.f32.mrf.mxu2 }
 0x255   :  { %v2199_v31 = vsel %vm2085_vm11, %v1997_v1, %v2142_v8  ;;  %v1694_v51 = vadd.f32 %v1693_v17, %v1541_v6 }
 0x256   :  { %v2256_v46 = vpack.c.bf16 %v2199_v31, %v2199_v31  ;;  %v1542_v23 = vpop.f32.mrf.mxu1 }
 0x257   :  { %v1847_v60 = vadd.f32 %v4661_v39, %v1694_v51  ;;  %v715_v39 = vunpack.c.l.b16 %v4676_v62  ;;  %v1543_v50 = vadd.f32 %v1542_v23, %v1390_v29  ;;  %v4767_v55 = vpop.f32.mrf.mxu3  ;;  %v4949_v62 = vld [vmem:[#allocation13_spill] sm:$0xff] }
 0x258   :  { %2314 = vst.msk [vmem:[%s4923_s3 + $0x94] sm:$0xf] %vm2276_vm2, %v2256_v46  ;;  %v1393_v19 = vadd.f32 %v4451_v14, %v4949_v62 }
 0x259   :  { %v2001_v10 = vpop.f32.mrf.mxu0  ;;  %v2000_v28 = vadd.f32 %v1999_v34, %v1847_v60  ;;  %v860_v48 = vpack.c.b16 %v715_v39, %v715_v39  ;;  %v4951_v34 = vld [vmem:[#allocation17_spill] sm:$0xff] }
 0x25a   :  { %v1398_v43 = vadd.f32 %v4451_v14, %v4951_v34 }
 0x25b   :  { %vm2086_vm12 = vcmp.ge.f32.partialorder %v2000_v28, 0.0  ;;  %v2143_v58 = vmul.f32 0.2, %v2000_v28 }
 0x25c   :  { %v1695_v3 = vpop.f32.mrf.mxu2 }
 0x25d   :  { %v2200_v36 = vsel %vm2086_vm12, %v2000_v28, %v2143_v58  ;;  %v1696_v15 = vadd.f32 %v1695_v3, %v1543_v50 }
 0x25e   :  { %v2257_v61 = vpack.c.bf16 %v2200_v36, %v2200_v36  ;;  %v1545_v16 = vpop.f32.mrf.mxu1  ;;  %v4953_v36 = vld [vmem:[#allocation19_spill] sm:$0xff] }
 0x25f   :  { %v1849_v59 = vadd.f32 %v4671_v44, %v1696_v15  ;;  %v1546_v53 = vadd.f32 %v1545_v16, %v1393_v19  ;;  %v4777_v0 = vpop.f32.mrf.mxu3  ;;  %v1403_v15 = vadd.f32 %v4451_v14, %v4953_v36 }
 0x260   :  { %2315 = vst.msk [vmem:[%s4923_s3 + $0x98] sm:$0xf] %vm2276_vm2, %v2257_v61 }
 0x261   :  { %v2004_v30 = vpop.f32.mrf.mxu0  ;;  %v2002_v37 = vadd.f32 %v2001_v10, %v1849_v59  ;;  %1584 = vmatmul.bf16.gmra.mxu1 %v859_v7  ;;  %1737 = vmatmul.bf16.gmra.mxu2 %v860_v48  ;;  %v4952_v10 = vld [vmem:[#allocation18_spill] sm:$0xff] }
 0x262   :  { %v1400_v33 = vadd.f32 %v4451_v14, %v4952_v10 }
 0x263   :  { %vm2087_vm13 = vcmp.ge.f32.partialorder %v2002_v37, 0.0  ;;  %v2144_v32 = vmul.f32 0.2, %v2002_v37 }
 0x264   :  { %3070 = vmatmul.msk.bf16.gmra.mxu0 %vm1195_vm0, %v862_v4  ;;  %v1698_v57 = vpop.f32.mrf.mxu2 }
 0x265   :  { %v2201_v21 = vsel %vm2087_vm13, %v2002_v37, %v2144_v32  ;;  %v1699_v44 = vadd.f32 %v1698_v57, %v1546_v53  ;;  %v4954_v32 = vld [vmem:[#allocation20_spill] sm:$0xff] }
 0x266   :  { %v2258_v25 = vpack.c.bf16 %v2201_v21, %v2201_v21  ;;  %v1547_v12 = vpop.f32.mrf.mxu1  ;;  %v1405_v53 = vadd.f32 %v4451_v14, %v4954_v32 }
 0x267   :  { %v1852_v42 = vadd.f32 %v4704_v20, %v1699_v44  ;;  %v1548_v63 = vadd.f32 %v1547_v12, %v1395_v45  ;;  %v4786_v22 = vpop.f32.mrf.mxu3 }
 0x268   :  { %2316 = vst.msk [vmem:[%s4923_s3 + $0x9c] sm:$0xf] %vm2276_vm2, %v2258_v25 }
 0x269   :  { %v2006_v26 = vpop.f32.mrf.mxu0  ;;  %v2005_v24 = vadd.f32 %v2004_v30, %v1852_v42 }
 0x26b   :  { %vm2088_vm0 = vcmp.ge.f32.partialorder %v2005_v24, 0.0  ;;  %v2145_v56 = vmul.f32 0.2, %v2005_v24 }
 0x26c   :  { %v1700_v52 = vpop.f32.mrf.mxu2 }
 0x26d   :  { %v2202_v40 = vsel %vm2088_vm0, %v2005_v24, %v2145_v56  ;;  %v1701_v38 = vadd.f32 %v1700_v52, %v1548_v63  ;;  %v4955_v56 = vld [vmem:[#allocation21_spill] sm:$0xff] }
 0x26e   :  { %v2259_v54 = vpack.c.bf16 %v2202_v40, %v2202_v40  ;;  %v1550_v5 = vpop.f32.mrf.mxu1  ;;  %v1408_v63 = vadd.f32 %v4451_v14, %v4955_v56 }
 0x26f   :  { %v1854_v20 = vadd.f32 %v4714_v27, %v1701_v38  ;;  %v1551_v8 = vadd.f32 %v1550_v5, %v1398_v43  ;;  %v4795_v23 = vpop.f32.mrf.mxu3 }
 0x270   :  { %2317 = vst.msk [vmem:[%s4923_s3 + $0xa0] sm:$0xf] %vm2276_vm2, %v2259_v54 }
 0x271   :  { %v2009_v13 = vpop.f32.mrf.mxu0  ;;  %v2007_v18 = vadd.f32 %v2006_v26, %v1854_v20 }
 0x273   :  { %vm2089_vm14 = vcmp.ge.f32.partialorder %v2007_v18, 0.0  ;;  %v2146_v1 = vmul.f32 0.2, %v2007_v18 }
 0x274   :  { %v1703_v6 = vpop.f32.mrf.mxu2 }
 0x275   :  { %v2203_v17 = vsel %vm2089_vm14, %v2007_v18, %v2146_v1  ;;  %v1704_v31 = vadd.f32 %v1703_v6, %v1551_v8  ;;  %v4956_v1 = vld [vmem:[#allocation22_spill] sm:$0xff] }
 0x276   :  { %v2260_v51 = vpack.c.bf16 %v2203_v17, %v2203_v17  ;;  %v1552_v46 = vpop.f32.mrf.mxu1  ;;  %v1410_v8 = vadd.f32 %v4451_v14, %v4956_v1 }
 0x277   :  { %v1857_v27 = vadd.f32 %v4741_v49, %v1704_v31  ;;  %v1553_v41 = vadd.f32 %v1552_v46, %v1400_v33  ;;  %v4804_v50 = vpop.f32.mrf.mxu3 }
 0x278   :  { %2318 = vst.msk [vmem:[%s4923_s3 + $0xa4] sm:$0xf] %vm2276_vm2, %v2260_v51 }
 0x279   :  { %v2011_v60 = vpop.f32.mrf.mxu0  ;;  %v2010_v9 = vadd.f32 %v2009_v13, %v1857_v27 }
 0x27b   :  { %vm2090_vm15 = vcmp.ge.f32.partialorder %v2010_v9, 0.0  ;;  %v2147_v11 = vmul.f32 0.2, %v2010_v9 }
 0x27c   :  { %v1705_v29 = vpop.f32.mrf.mxu2 }
 0x27d   :  { %v2204_v28 = vsel %vm2090_vm15, %v2010_v9, %v2147_v11  ;;  %v1706_v39 = vadd.f32 %v1705_v29, %v1553_v41  ;;  %v4957_v11 = vld [vmem:[#allocation2_spill] sm:$0xff] }
 0x27e   :  { %v2261_v2 = vpack.c.bf16 %v2204_v28, %v2204_v28  ;;  %v1555_v58 = vpop.f32.mrf.mxu1  ;;  %v1413_v41 = vadd.f32 %v4451_v14, %v4957_v11 }
 0x27f   :  { %v1859_v49 = vadd.f32 %v4751_v47, %v1706_v39  ;;  %v1556_v61 = vadd.f32 %v1555_v58, %v1403_v15  ;;  %v4813_v19 = vpop.f32.mrf.mxu3 }
 0x280   :  { %2319 = vst.msk [vmem:[%s4923_s3 + $0xa8] sm:$0xf] %vm2276_vm2, %v2261_v2 }
 0x281   :  { %v2014_v3 = vpop.f32.mrf.mxu0  ;;  %v2012_v7 = vadd.f32 %v2011_v60, %v1859_v49 }
 0x283   :  { %vm2091_vm1 = vcmp.ge.f32.partialorder %v2012_v7, 0.0  ;;  %v2148_v48 = vmul.f32 0.2, %v2012_v7 }
 0x284   :  { %v1708_v16 = vpop.f32.mrf.mxu2 }
 0x285   :  { %v2205_v4 = vsel %vm2091_vm1, %v2012_v7, %v2148_v48  ;;  %v1709_v59 = vadd.f32 %v1708_v16, %v1556_v61  ;;  %v4958_v48 = vld [vmem:[#allocation3_spill] sm:$0xff] }
 0x286   :  { %v2262_v30 = vpack.c.bf16 %v2205_v4, %v2205_v4  ;;  %v1557_v62 = vpop.f32.mrf.mxu1  ;;  %v1415_v61 = vadd.f32 %v4451_v14, %v4958_v48 }
 0x287   :  { %v1862_v47 = vadd.f32 %v4767_v55, %v1709_v59  ;;  %v1558_v44 = vadd.f32 %v1557_v62, %v1405_v53  ;;  %v4822_v45 = vpop.f32.mrf.mxu3 }
 0x288   :  { %2320 = vst.msk [vmem:[%s4923_s3 + $0xac] sm:$0xf] %vm2276_vm2, %v2262_v30 }
 0x289   :  { %v2016_v37 = vpop.f32.mrf.mxu0  ;;  %v2015_v57 = vadd.f32 %v2014_v3, %v1862_v47 }
 0x28b   :  { %vm2092_vm3 = vcmp.ge.f32.partialorder %v2015_v57, 0.0  ;;  %v2149_v21 = vmul.f32 0.2, %v2015_v57 }
 0x28c   :  { %v1710_v25 = vpop.f32.mrf.mxu2 }
 0x28d   :  { %v2206_v12 = vsel %vm2092_vm3, %v2015_v57, %v2149_v21  ;;  %v1711_v42 = vadd.f32 %v1710_v25, %v1558_v44  ;;  %v4959_v21 = vld [vmem:[#allocation4_spill] sm:$0xff] }
 0x28e   :  { %v2263_v26 = vpack.c.bf16 %v2206_v12, %v2206_v12  ;;  %v1560_v35 = vpop.f32.mrf.mxu1  ;;  %v1418_v44 = vadd.f32 %v4451_v14, %v4959_v21 }
 0x28f   :  { %v1864_v55 = vadd.f32 %v4777_v0, %v1711_v42  ;;  %v1561_v38 = vadd.f32 %v1560_v35, %v1408_v63  ;;  %v4831_v43 = vpop.f32.mrf.mxu3 }
 0x290   :  { %2321 = vst.msk [vmem:[%s4923_s3 + $0xb0] sm:$0xf] %vm2276_vm2, %v2263_v26 }
 0x291   :  { %v2019_v24 = vpop.f32.mrf.mxu0  ;;  %v2017_v52 = vadd.f32 %v2016_v37, %v1864_v55 }
 0x293   :  { %vm2093_vm4 = vcmp.ge.f32.partialorder %v2017_v52, 0.0  ;;  %v2150_v40 = vmul.f32 0.2, %v2017_v52 }
 0x294   :  { %v1713_v54 = vpop.f32.mrf.mxu2 }
 0x295   :  { %v2207_v5 = vsel %vm2093_vm4, %v2017_v52, %v2150_v40  ;;  %v1714_v20 = vadd.f32 %v1713_v54, %v1561_v38  ;;  %v4960_v40 = vld [vmem:[#allocation6_spill] sm:$0xff] }
 0x296   :  { %v2264_v13 = vpack.c.bf16 %v2207_v5, %v2207_v5  ;;  %v1562_v34 = vpop.f32.mrf.mxu1  ;;  %v1420_v38 = vadd.f32 %v4451_v14, %v4960_v40  ;;  %v3274_v14 = vld [vmem:[%s4921_s2] ss:$0 sm:$0xff]  ;;  %v4965_v40 = vld [vmem:[#allocation16_spill] sm:$0xff] }
 0x297   :  { %v1867_v0 = vadd.f32 %v4786_v22, %v1714_v20  ;;  %v1563_v31 = vadd.f32 %v1562_v34, %v1410_v8  ;;  %v4840_v33 = vpop.f32.mrf.mxu3 }
 0x298   :  { %2322 = vst.msk [vmem:[%s4923_s3 + $0xb4] sm:$0xf] %vm2276_vm2, %v2264_v13 }
 0x299   :  { %v2021_v18 = vpop.f32.mrf.mxu0  ;;  %v2020_v6 = vadd.f32 %v2019_v24, %v1867_v0 }
 0x29b   :  { %vm2094_vm5 = vcmp.ge.f32.partialorder %v2020_v6, 0.0  ;;  %v2151_v17 = vmul.f32 0.2, %v2020_v6 }
 0x29c   :  { %v1715_v51 = vpop.f32.mrf.mxu2 }
 0x29d   :  { %v2208_v46 = vsel %vm2094_vm5, %v2020_v6, %v2151_v17  ;;  %v1716_v27 = vadd.f32 %v1715_v51, %v1563_v31  ;;  %v4961_v17 = vld [vmem:[#allocation8_spill] sm:$0xff] }
 0x29e   :  { %v2265_v60 = vpack.c.bf16 %v2208_v46, %v2208_v46  ;;  %v1565_v10 = vpop.f32.mrf.mxu1  ;;  %v1423_v31 = vadd.f32 %v3274_v14, %v4961_v17 }
 0x29f   :  { %v1869_v22 = vadd.f32 %v4795_v23, %v1716_v27  ;;  %v1566_v39 = vadd.f32 %v1565_v10, %v1413_v41  ;;  %v4849_v15 = vpop.f32.mrf.mxu3 }
 0x2a0   :  { %2323 = vst.msk [vmem:[%s4923_s3 + $0xb8] sm:$0xf] %vm2276_vm2, %v2265_v60 }
 0x2a1   :  { %v2024_v9 = vpop.f32.mrf.mxu0  ;;  %v2022_v29 = vadd.f32 %v2021_v18, %v1869_v22 }
 0x2a3   :  { %vm2095_vm6 = vcmp.ge.f32.partialorder %v2022_v29, 0.0  ;;  %v2152_v28 = vmul.f32 0.2, %v2022_v29 }
 0x2a4   :  { %v1718_v2 = vpop.f32.mrf.mxu2 }
 0x2a5   :  { %v2209_v58 = vsel %vm2095_vm6, %v2022_v29, %v2152_v28  ;;  %v1719_v49 = vadd.f32 %v1718_v2, %v1566_v39  ;;  %v4962_v28 = vld [vmem:[#allocation10_spill] sm:$0xff] }
 0x2a6   :  { %v2266_v3 = vpack.c.bf16 %v2209_v58, %v2209_v58  ;;  %v1567_v36 = vpop.f32.mrf.mxu1  ;;  %v1425_v39 = vadd.f32 %v3274_v14, %v4962_v28 }
 0x2a7   :  { %v1872_v23 = vadd.f32 %v4804_v50, %v1719_v49  ;;  %v1568_v59 = vadd.f32 %v1567_v36, %v1415_v61  ;;  %v4858_v53 = vpop.f32.mrf.mxu3 }
 0x2a8   :  { %2324 = vst.msk [vmem:[%s4923_s3 + $0xbc] sm:$0xf] %vm2276_vm2, %v2266_v3 }
 0x2a9   :  { %v2026_v7 = vpop.f32.mrf.mxu0  ;;  %v2025_v16 = vadd.f32 %v2024_v9, %v1872_v23 }
 0x2ab   :  { %vm2096_vm7 = vcmp.ge.f32.partialorder %v2025_v16, 0.0  ;;  %v2153_v4 = vmul.f32 0.2, %v2025_v16 }
 0x2ac   :  { %v1720_v30 = vpop.f32.mrf.mxu2 }
 0x2ad   :  { %v2210_v62 = vsel %vm2096_vm7, %v2025_v16, %v2153_v4  ;;  %v1721_v47 = vadd.f32 %v1720_v30, %v1568_v59  ;;  %v4963_v16 = vld [vmem:[#allocation12_spill] sm:$0xff] }
 0x2ae   :  { %v2267_v37 = vpack.c.bf16 %v2210_v62, %v2210_v62  ;;  %v1570_v32 = vpop.f32.mrf.mxu1  ;;  %v1428_v4 = vadd.f32 %v3274_v14, %v4963_v16 }
 0x2af   :  { %v1874_v50 = vadd.f32 %v4813_v19, %v1721_v47  ;;  %v1571_v42 = vadd.f32 %v1570_v32, %v1418_v44  ;;  %v4867_v63 = vpop.f32.mrf.mxu3  ;;  %v4964_v44 = vld [vmem:[#allocation14_spill] sm:$0xff] }
 0x2b0   :  { %2325 = vst.msk [vmem:[%s4923_s3 + $0xc0] sm:$0xf] %vm2276_vm2, %v2267_v37 }
 0x2b1   :  { %v2029_v57 = vpop.f32.mrf.mxu0  ;;  %v2027_v25 = vadd.f32 %v2026_v7, %v1874_v50 }
 0x2b3   :  { %vm2097_vm8 = vcmp.ge.f32.partialorder %v2027_v25, 0.0  ;;  %v2154_v12 = vmul.f32 0.2, %v2027_v25 }
 0x2b4   :  { %v1723_v26 = vpop.f32.mrf.mxu2 }
 0x2b5   :  { %v2211_v35 = vsel %vm2097_vm8, %v2027_v25, %v2154_v12  ;;  %v1724_v55 = vadd.f32 %v1723_v26, %v1571_v42  ;;  %v1430_v25 = vadd.f32 %v3274_v14, %v4964_v44 }
 0x2b6   :  { %v2268_v24 = vpack.c.bf16 %v2211_v35, %v2211_v35  ;;  %v1572_v56 = vpop.f32.mrf.mxu1 }
 0x2b7   :  { %v1877_v19 = vadd.f32 %v4822_v45, %v1724_v55  ;;  %v1573_v20 = vadd.f32 %v1572_v56, %v1420_v38  ;;  %v4876_v8 = vpop.f32.mrf.mxu3  ;;  %v1433_v38 = vadd.f32 %v3274_v14, %v4965_v40 }
 0x2b8   :  { %2326 = vst.msk [vmem:[%s4923_s3 + $0xc4] sm:$0xf] %vm2276_vm2, %v2268_v24 }
 0x2b9   :  { %v2031_v52 = vpop.f32.mrf.mxu0  ;;  %v2030_v54 = vadd.f32 %v2029_v57, %v1877_v19 }
 0x2bb   :  { %vm2098_vm9 = vcmp.ge.f32.partialorder %v2030_v54, 0.0  ;;  %v2155_v5 = vmul.f32 0.2, %v2030_v54 }
 0x2bc   :  { %v1725_v13 = vpop.f32.mrf.mxu2 }
 0x2bd   :  { %v2212_v34 = vsel %vm2098_vm9, %v2030_v54, %v2155_v5  ;;  %v1726_v0 = vadd.f32 %v1725_v13, %v1573_v20 }
 0x2be   :  { %v2269_v18 = vpack.c.bf16 %v2212_v34, %v2212_v34  ;;  %v1575_v1 = vpop.f32.mrf.mxu1 }
 0x2bf   :  { %v1879_v45 = vadd.f32 %v4831_v43, %v1726_v0  ;;  %v1576_v27 = vadd.f32 %v1575_v1, %v1423_v31  ;;  %v1893_v11 = vpop.f32.mrf.mxu3 }
 0x2c0   :  { %2327 = vst.msk [vmem:[%s4923_s3 + $0xc8] sm:$0xf] %vm2276_vm2, %v2269_v18 }
 0x2c1   :  { %v2034_v6 = vpop.f32.mrf.mxu0  ;;  %v2032_v51 = vadd.f32 %v2031_v52, %v1879_v45 }
 0x2c3   :  { %vm2099_vm10 = vcmp.ge.f32.partialorder %v2032_v51, 0.0  ;;  %v2156_v46 = vmul.f32 0.2, %v2032_v51 }
 0x2c4   :  { %v1728_v60 = vpop.f32.mrf.mxu2 }
 0x2c5   :  { %v2213_v10 = vsel %vm2099_vm10, %v2032_v51, %v2156_v46  ;;  %v1729_v22 = vadd.f32 %v1728_v60, %v1576_v27 }
 0x2c6   :  { %v2270_v43 = vpack.c.bf16 %v2213_v10, %v2213_v10  ;;  %v1577_v9 = vpop.f32.mrf.mxu1 }
 0x2c7   :  { %v1882_v41 = vadd.f32 %v4840_v33, %v1729_v22  ;;  %v1578_v49 = vadd.f32 %v1577_v9, %v1425_v39 }
 0x2c8   :  { %2328 = vst.msk [vmem:[%s4923_s3 + $0xcc] sm:$0xf] %vm2276_vm2, %v2270_v43 }
 0x2c9   :  { %v2036_v29 = vpop.f32.mrf.mxu0  ;;  %v2035_v2 = vadd.f32 %v2034_v6, %v1882_v41 }
 0x2cb   :  { %vm2100_vm11 = vcmp.ge.f32.partialorder %v2035_v2, 0.0  ;;  %v2157_v58 = vmul.f32 0.2, %v2035_v2 }
 0x2cc   :  { %v1730_v3 = vpop.f32.mrf.mxu2 }
 0x2cd   :  { %v2214_v36 = vsel %vm2100_vm11, %v2035_v2, %v2157_v58  ;;  %v1731_v23 = vadd.f32 %v1730_v3, %v1578_v49 }
 0x2ce   :  { %v2271_v7 = vpack.c.bf16 %v2214_v36, %v2214_v36  ;;  %v1580_v48 = vpop.f32.mrf.mxu1 }
 0x2cf   :  { %v1884_v61 = vadd.f32 %v4849_v15, %v1731_v23  ;;  %v1581_v62 = vadd.f32 %v1580_v48, %v1428_v4 }
 0x2d0   :  { %2329 = vst.msk [vmem:[%s4923_s3 + $0xd0] sm:$0xf] %vm2276_vm2, %v2271_v7 }
 0x2d1   :  { %v2039_v33 = vpop.f32.mrf.mxu0  ;;  %v2037_v59 = vadd.f32 %v2036_v29, %v1884_v61 }
 0x2d3   :  { %vm2101_vm12 = vcmp.ge.f32.partialorder %v2037_v59, 0.0  ;;  %v2158_v30 = vmul.f32 0.2, %v2037_v59 }
 0x2d4   :  { %v1733_v47 = vpop.f32.mrf.mxu2 }
 0x2d5   :  { %v2215_v37 = vsel %vm2101_vm12, %v2037_v59, %v2158_v30  ;;  %v1734_v32 = vadd.f32 %v1733_v47, %v1581_v62 }
 0x2d6   :  { %v2272_v50 = vpack.c.bf16 %v2215_v37, %v2215_v37  ;;  %v1582_v57 = vpop.f32.mrf.mxu1 }
 0x2d7   :  { %v1887_v21 = vadd.f32 %v4858_v53, %v1734_v32  ;;  %v1583_v26 = vadd.f32 %v1582_v57, %v1430_v25 }
 0x2d8   :  { %2330 = vst.msk [vmem:[%s4923_s3 + $0xd4] sm:$0xf] %vm2276_vm2, %v2272_v50 }
 0x2d9   :  { %v2041_v15 = vpop.f32.mrf.mxu0  ;;  %v2040_v12 = vadd.f32 %v2039_v33, %v1887_v21 }
 0x2db   :  { %vm2102_vm13 = vcmp.ge.f32.partialorder %v2040_v12, 0.0  ;;  %v2159_v42 = vmul.f32 0.2, %v2040_v12 }
 0x2dc   :  { %v1735_v35 = vpop.f32.mrf.mxu2 }
 0x2dd   :  { %v2216_v55 = vsel %vm2102_vm13, %v2040_v12, %v2159_v42  ;;  %v1736_v24 = vadd.f32 %v1735_v35, %v1583_v26 }
 0x2de   :  { %v2273_v56 = vpack.c.bf16 %v2216_v55, %v2216_v55  ;;  %v1585_v19 = vpop.f32.mrf.mxu1 }
 0x2df   :  { %v1889_v52 = vadd.f32 %v4867_v63, %v1736_v24  ;;  %v1586_v20 = vadd.f32 %v1585_v19, %v1433_v38 }
 0x2e0   :  { %2331 = vst.msk [vmem:[%s4923_s3 + $0xd8] sm:$0xf] %vm2276_vm2, %v2273_v56 }
 0x2e1   :  { %v2044_v53 = vpop.f32.mrf.mxu0  ;;  %v2042_v54 = vadd.f32 %v2041_v15, %v1889_v52 }
 0x2e3   :  { %vm2103_vm0 = vcmp.ge.f32.partialorder %v2042_v54, 0.0  ;;  %v2160_v5 = vmul.f32 0.2, %v2042_v54 }
 0x2e4   :  { %v1738_v13 = vpop.f32.mrf.mxu2 }
 0x2e5   :  { %v2217_v34 = vsel %vm2103_vm0, %v2042_v54, %v2160_v5  ;;  %v1739_v0 = vadd.f32 %v1738_v13, %v1586_v20 }
 0x2e6   :  { %v2274_v18 = vpack.c.bf16 %v2217_v34, %v2217_v34  ;;  %v1587_v1 = vpop.f32.mrf.mxu1 }
 0x2e7   :  { %v1892_v45 = vadd.f32 %v4876_v8, %v1739_v0 }
 0x2e8   :  { %2332 = vst.msk [vmem:[%s4923_s3 + $0xdc] sm:$0xf] %vm2276_vm2, %v2274_v18 }
 0x2e9   :  { %v2046_v63 = vpop.f32.mrf.mxu0  ;;  %v2045_v6 = vadd.f32 %v2044_v53, %v1892_v45 }
 0x2eb   :  { %vm2104_vm14 = vcmp.ge.f32.partialorder %v2045_v6, 0.0  ;;  %v2161_v14 = vmul.f32 0.2, %v2045_v6 }
 0x2ec   :  { %v1740_v17 = vpop.f32.mrf.mxu2 }
 0x2ed   :  { %v2218_v31 = vsel %vm2104_vm14, %v2045_v6, %v2161_v14 }
 0x2ee   :  { %v2275_v51 = vpack.c.bf16 %v2218_v31, %v2218_v31 }
 0x2f0   :  { %2333 = vst.msk [vmem:[%s4923_s3 + $0xe0] sm:$0xf] %vm2276_vm2, %v2275_v51 }

// kernel: model_forward.10
= control target key start
LH: loop header
LB: loop body
LE: loop exit
PB: predicated region body
PF: predicated region fallthrough
CT: control target
= control target key end

     0   :  { %vm513_vm0 = vcmask 523264   ;;  %vm802_vm2 = vcmask 519168   ;;  %s1607_s1 = inlined_call_operand.vmem [shape: bf16[576,64], index: 1, kind: input, shape index: {}]   ;;  %s1608_s2 = inlined_call_operand.vmem [shape: f32[1,64], index: 2, kind: input, shape index: {}]   ;;  %s1609_s0 = inlined_call_operand.vmem [shape: bf16[98,576], index: 0, kind: input, shape index: {}]   ;;  %s1610_s3 = inlined_call_operand.vmem [shape: bf16[98,64], index: 3, kind: output, shape index: {}]  }
   0x1   :  { %v1128_v0 = vld [vmem:[%s1607_s1 + $0x38] sm:$0xff]  ;;  %v1127_v1 = vld [vmem:[%s1607_s1 + $0x30] sm:$0xff]  ;;  %v1126_v2 = vld [vmem:[%s1607_s1 + $0x28] sm:$0xff] }
   0x2   :  { %1157 = vmatpush.bf16.msra.mxu1 %v1128_v0  ;;  %1158 = vmatpush.bf16.msra.mxu2 %v1128_v0  ;;  %v1125_v3 = vld [vmem:[%s1607_s1 + $0x20] sm:$0xff]  ;;  %v1124_v4 = vld [vmem:[%s1607_s1 + $0x18] sm:$0xff]  ;;  %v1123_v5 = vld [vmem:[%s1607_s1 + $0x10] sm:$0xff] }
   0x3   :  { %1159 = vmatpush.bf16.msra.mxu3 %v1128_v0  ;;  %535 = vmatpush.bf16.msra.mxu0 %v1128_v0  ;;  %v1122_v6 = vld [vmem:[%s1607_s1 + $0x8] sm:$0xff]  ;;  %v1226_v7 = vld [vmem:[%s1609_s0 + $0xf0] sm:$0xff]  ;;  %v1121_v8 = vld [vmem:[%s1607_s1] sm:$0xff] }
   0x4   :  { %v862_v9 = vld [vmem:[%s1609_s0 + $0x50] sm:$0xf]  ;;  %v1103_v10 = vld [vmem:[%s1609_s0 + $0x60] sm:$0xf0]  ;;  %v902_v11 = vld [vmem:[%s1609_s0 + $0xa0] sm:$0xf]  ;;  %v229_v15 = vunpack.c.l.b16 %v1226_v7 }
   0x5   :  { %v1113_v12 = vld [vmem:[%s1609_s0 + $0xb0] sm:$0xf0]  ;;  %v822_v13 = vld [vmem:[%s1609_s0] sm:$0xf]  ;;  %v1152_v16 = vld [vmem:[%s1607_s1 + $0xf8] sm:$0xff]  ;;  %v863_v18 = vor.u32 %v1103_v10, %v862_v9 }
   0x6   :  { %1160 = vmatpush.bf16.msra.mxu1 %v1127_v1  ;;  %1161 = vmatpush.bf16.msra.mxu2 %v1127_v1  ;;  %v1093_v14 = vld [vmem:[%s1609_s0 + $0x10] sm:$0xf0]  ;;  %v1144_v17 = vld [vmem:[%s1607_s1 + $0xb8] sm:$0xff]  ;;  %v903_v19 = vor.u32 %v1113_v12, %v902_v11  ;;  %v264_v22 = vpack.c.b16 %v229_v15, %v229_v15  ;;  %v1150_v28 = vld [vmem:[%s1607_s1 + $0xe8] sm:$0xff] }
   0x7   :  { %1162 = vmatpush.bf16.msra.mxu3 %v1127_v1  ;;  %536 = vmatpush.bf16.msra.mxu0 %v1127_v1  ;;  %v1136_v20 = vld [vmem:[%s1607_s1 + $0x78] sm:$0xff]  ;;  %v823_v21 = vor.u32 %v1093_v14, %v822_v13  ;;  %v1151_v24 = vld [vmem:[%s1607_s1 + $0xf0] sm:$0xff]  ;;  %v1142_v29 = vld [vmem:[%s1607_s1 + $0xa8] sm:$0xff] }
   0x8   :  { %v1156_v23 = vld [vmem:[%s1607_s1 + $0x118] sm:$0xff]  ;;  %v1143_v25 = vld [vmem:[%s1607_s1 + $0xb0] sm:$0xff]  ;;  %v1134_v30 = vld [vmem:[%s1607_s1 + $0x68] sm:$0xff] }
   0x9   :  { %v1135_v26 = vld [vmem:[%s1607_s1 + $0x70] sm:$0xff]  ;;  %v1154_v31 = vld [vmem:[%s1607_s1 + $0x108] sm:$0xff]  ;;  %v1149_v32 = vld [vmem:[%s1607_s1 + $0xe0] sm:$0xff] }
   0xa   :  { %1163 = vmatpush.bf16.msra.mxu1 %v1126_v2  ;;  %1164 = vmatpush.bf16.msra.mxu2 %v1126_v2  ;;  %v1155_v27 = vld [vmem:[%s1607_s1 + $0x110] sm:$0xff]  ;;  %v1141_v33 = vld [vmem:[%s1607_s1 + $0xa0] sm:$0xff]  ;;  %v882_v35 = vld [vmem:[%s1609_s0 + $0x78] sm:$0xf] }
   0xb   :  { %1165 = vmatpush.bf16.msra.mxu3 %v1126_v2  ;;  %537 = vmatpush.bf16.msra.mxu0 %v1126_v2  ;;  %v1133_v34 = vld [vmem:[%s1607_s1 + $0x60] sm:$0xff]  ;;  %v1108_v36 = vld [vmem:[%s1609_s0 + $0x88] sm:$0xf0]  ;;  %v922_v37 = vld [vmem:[%s1609_s0 + $0xc8] sm:$0xf] }
   0xc   :  { %v1118_v38 = vld [vmem:[%s1609_s0 + $0xd8] sm:$0xf0]  ;;  %v842_v39 = vld [vmem:[%s1609_s0 + $0x28] sm:$0xf]  ;;  %v1153_v41 = vld [vmem:[%s1607_s1 + $0x100] sm:$0xff]  ;;  %v883_v44 = vor.u32 %v1108_v36, %v882_v35 }
   0xd   :  { %v1098_v40 = vld [vmem:[%s1609_s0 + $0x38] sm:$0xf0]  ;;  %v923_v45 = vor.u32 %v1118_v38, %v922_v37  ;;  %v1147_v48 = vld [vmem:[%s1607_s1 + $0xd0] sm:$0xff]  ;;  %v1146_v51 = vld [vmem:[%s1607_s1 + $0xc8] sm:$0xff] }
   0xe   :  { %1166 = vmatpush.bf16.msra.mxu1 %v1125_v3  ;;  %1167 = vmatpush.bf16.msra.mxu2 %v1125_v3  ;;  %v1148_v42 = vld [vmem:[%s1607_s1 + $0xd8] sm:$0xff]  ;;  %v843_v47 = vor.u32 %v1098_v40, %v842_v39  ;;  %v1139_v49 = vld [vmem:[%s1607_s1 + $0x90] sm:$0xff]  ;;  %v1138_v52 = vld [vmem:[%s1607_s1 + $0x88] sm:$0xff] }
   0xf   :  { %1168 = vmatpush.bf16.msra.mxu3 %v1125_v3  ;;  %538 = vmatpush.bf16.msra.mxu0 %v1125_v3  ;;  %v1140_v43 = vld [vmem:[%s1607_s1 + $0x98] sm:$0xff]  ;;  %v1131_v50 = vld [vmem:[%s1607_s1 + $0x50] sm:$0xff]  ;;  %v1130_v53 = vld [vmem:[%s1607_s1 + $0x48] sm:$0xff] }
  0x10   :  { %v1132_v46 = vld [vmem:[%s1607_s1 + $0x58] sm:$0xff]  ;;  %v1145_v54 = vld [vmem:[%s1607_s1 + $0xc0] sm:$0xff]  ;;  %v1092_v56 = vld [vmem:[%s1609_s0 + $0xc] sm:$0xf] }
  0x11   :  { %v1137_v55 = vld [vmem:[%s1607_s1 + $0x80] sm:$0xff]  ;;  %v824_v60 = vld [vmem:[%s1609_s0 + $0x14] sm:$0xf0]  ;;  %v830_v61 = vld [vmem:[%s1609_s0 + $0x8] sm:$0xf] }
  0x12   :  { %1169 = vmatpush.bf16.msra.mxu1 %v1124_v4  ;;  %1170 = vmatpush.bf16.msra.mxu2 %v1124_v4  ;;  %v832_v57 = vld [vmem:[%s1609_s0 + $0x1c] sm:$0xf0]  ;;  %v1091_v59 = vld [vmem:[%s1609_s0 + $0x4] sm:$0xf]  ;;  %v1094_v62 = vld [vmem:[%s1609_s0 + $0x18] sm:$0xf0] }
  0x13   :  { %1171 = vmatpush.bf16.msra.mxu3 %v1124_v4  ;;  %539 = vmatpush.bf16.msra.mxu0 %v1124_v4  ;;  %v1129_v58 = vld [vmem:[%s1607_s1 + $0x40] sm:$0xff]  ;;  %v835_v63 = vor.u32 %v1092_v56, %v832_v57  ;;  %v838_v0 = vld [vmem:[%s1609_s0 + $0x10] sm:$0xf]  ;;  %v827_v2 = vor.u32 %v1091_v59, %v824_v60  ;;  %v831_v3 = vor.u32 %v1094_v62, %v830_v61  ;;  %v858_v13 = vld [vmem:[%s1609_s0 + $0x38] sm:$0xf] }
  0x14   :  { %v1095_v1 = vld [vmem:[%s1609_s0 + $0x20] sm:$0xf0]  ;;  %v844_v9 = vld [vmem:[%s1609_s0 + $0x3c] sm:$0xf0]  ;;  %v850_v10 = vld [vmem:[%s1609_s0 + $0x30] sm:$0xf] }
  0x15   :  { %v839_v4 = vor.u32 %v1095_v1, %v838_v0  ;;  %v1099_v11 = vld [vmem:[%s1609_s0 + $0x40] sm:$0xf0]  ;;  %v1100_v14 = vld [vmem:[%s1609_s0 + $0x48] sm:$0xf0]  ;;  %v1109_v35 = vld [vmem:[%s1609_s0 + $0x90] sm:$0xf0] }
  0x16   :  { %1172 = vmatpush.bf16.msra.mxu1 %v1123_v5  ;;  %1173 = vmatpush.bf16.msra.mxu2 %v1123_v5  ;;  %v898_v37 = vld [vmem:[%s1609_s0 + $0x88] sm:$0xf]  ;;  %v1110_v38 = vld [vmem:[%s1609_s0 + $0x98] sm:$0xf0]  ;;  %v1116_v56 = vld [vmem:[%s1609_s0 + $0xcc] sm:$0xf] }
  0x17   :  { %1174 = vmatpush.bf16.msra.mxu3 %v1123_v5  ;;  %540 = vmatpush.bf16.msra.mxu0 %v1123_v5  ;;  %v1097_v5 = vld [vmem:[%s1609_s0 + $0x34] sm:$0xf]  ;;  %v924_v57 = vld [vmem:[%s1609_s0 + $0xdc] sm:$0xf0]  ;;  %v1119_v59 = vld [vmem:[%s1609_s0 + $0xe0] sm:$0xf0] }
  0x18   :  { %v938_v61 = vld [vmem:[%s1609_s0 + $0xd8] sm:$0xf]  ;;  %v1120_v62 = vld [vmem:[%s1609_s0 + $0xe8] sm:$0xf0] }
  0x19   :  { %v939_v1 = vor.u32 %v1120_v62, %v938_v61 }
  0x1a   :  { %1175 = vmatpush.bf16.msra.mxu1 %v1122_v6  ;;  %1176 = vmatpush.bf16.msra.mxu2 %v1122_v6 }
  0x1b   :  { %1177 = vmatpush.bf16.msra.mxu3 %v1122_v6  ;;  %541 = vmatpush.bf16.msra.mxu0 %v1122_v6  ;;  %v852_v6 = vld [vmem:[%s1609_s0 + $0x44] sm:$0xf0] }
  0x1c   :  { %v855_v12 = vor.u32 %v1097_v5, %v852_v6  ;;  %v230_v5 = vunpack.c.h.b16 %v1226_v7 }
  0x1e   :  { %1178 = vmatpush.bf16.msra.mxu1 %v1121_v8  ;;  %1179 = vmatpush.bf16.msra.mxu2 %v1121_v8 }
  0x1f   :  { %1180 = vmatpush.bf16.msra.mxu3 %v1121_v8  ;;  %542 = vmatpush.bf16.msra.mxu0 %v1121_v8  ;;  %v1096_v8 = vld [vmem:[%s1609_s0 + $0x2c] sm:$0xf] }
  0x20   :  { %v847_v15 = vor.u32 %v1096_v8, %v844_v9 }
  0x21   :  { %553 = vmatmul.bf16.vlgmr.msra.gmra.mxu1 %v863_v18  ;;  %563 = vmatmul.bf16.vlgmr.msra.gmra.mxu2 %v903_v19  ;;  %v1102_v18 = vld [vmem:[%s1609_s0 + $0x5c] sm:$0xf]  ;;  %v872_v19 = vld [vmem:[%s1609_s0 + $0x6c] sm:$0xf0] }
  0x22   :  { %621 = vmatpush.bf16.msrb.mxu2 %v1144_v17  ;;  %578 = vmatpush.bf16.msrb.mxu1 %v1136_v20  ;;  %v859_v17 = vor.u32 %v1100_v14, %v858_v13  ;;  %v1101_v20 = vld [vmem:[%s1609_s0 + $0x54] sm:$0xf] }
  0x23   :  { %664 = vmatpush.bf16.msrb.mxu3 %v1152_v16  ;;  %543 = vmatmul.bf16.vlgmr.msra.gmra.mxu0 %v823_v21  ;;  %v851_v16 = vor.u32 %v1099_v11, %v850_v10  ;;  %v864_v21 = vld [vmem:[%s1609_s0 + $0x64] sm:$0xf0]  ;;  %v265_v10 = vpack.c.b16 %v230_v5, %v230_v5 }
  0x24   :  { %573 = vmatmul.bf16.vlgmr.msra.gmra.mxu3 %v264_v22  ;;  %711 = vmatpush.bf16.msrb.mxu0 %v1156_v23  ;;  %v870_v22 = vld [vmem:[%s1609_s0 + $0x58] sm:$0xf]  ;;  %v1104_v23 = vld [vmem:[%s1609_s0 + $0x68] sm:$0xf0] }
  0x26   :  { %622 = vmatpush.bf16.msrb.mxu2 %v1143_v25  ;;  %579 = vmatpush.bf16.msrb.mxu1 %v1135_v26  ;;  %v878_v25 = vld [vmem:[%s1609_s0 + $0x60] sm:$0xf]  ;;  %v1105_v26 = vld [vmem:[%s1609_s0 + $0x70] sm:$0xf0] }
  0x27   :  { %665 = vmatpush.bf16.msrb.mxu3 %v1151_v24  ;;  %v875_v24 = vor.u32 %v1102_v18, %v872_v19 }
  0x28   :  { %712 = vmatpush.bf16.msrb.mxu0 %v1155_v27  ;;  %v867_v27 = vor.u32 %v1101_v20, %v864_v21 }
  0x2a   :  { %623 = vmatpush.bf16.msrb.mxu2 %v1142_v29  ;;  %580 = vmatpush.bf16.msrb.mxu1 %v1134_v30  ;;  %v879_v29 = vor.u32 %v1105_v26, %v878_v25  ;;  %v1107_v30 = vld [vmem:[%s1609_s0 + $0x84] sm:$0xf] }
  0x2b   :  { %666 = vmatpush.bf16.msrb.mxu3 %v1150_v28  ;;  %v871_v28 = vor.u32 %v1104_v23, %v870_v22 }
  0x2c   :  { %713 = vmatpush.bf16.msrb.mxu0 %v1154_v31  ;;  %v892_v31 = vld [vmem:[%s1609_s0 + $0x94] sm:$0xf0] }
  0x2d   :  { %v895_v36 = vor.u32 %v1107_v30, %v892_v31 }
  0x2e   :  { %624 = vmatpush.bf16.msrb.mxu2 %v1141_v33  ;;  %581 = vmatpush.bf16.msrb.mxu1 %v1133_v34  ;;  %v884_v33 = vld [vmem:[%s1609_s0 + $0x8c] sm:$0xf0]  ;;  %v890_v34 = vld [vmem:[%s1609_s0 + $0x80] sm:$0xf] }
  0x2f   :  { %667 = vmatpush.bf16.msrb.mxu3 %v1149_v32  ;;  %v1106_v32 = vld [vmem:[%s1609_s0 + $0x7c] sm:$0xf]  ;;  %v891_v40 = vor.u32 %v1109_v35, %v890_v34 }
  0x30   :  { %714 = vmatpush.bf16.msrb.mxu0 %v1153_v41  ;;  %v887_v39 = vor.u32 %v1106_v32, %v884_v33  ;;  %v899_v41 = vor.u32 %v1110_v38, %v898_v37 }
  0x31   :  { %558 = vmatmul.bf16.gmra.mxu1 %v883_v44  ;;  %568 = vmatmul.bf16.gmra.mxu2 %v923_v45  ;;  %v1111_v44 = vld [vmem:[%s1609_s0 + $0xa4] sm:$0xf]  ;;  %v904_v45 = vld [vmem:[%s1609_s0 + $0xb4] sm:$0xf0] }
  0x32   :  { %625 = vmatpush.bf16.msrb.mxu2 %v1140_v43  ;;  %582 = vmatpush.bf16.msrb.mxu1 %v1132_v46  ;;  %v912_v43 = vld [vmem:[%s1609_s0 + $0xbc] sm:$0xf0]  ;;  %v910_v46 = vld [vmem:[%s1609_s0 + $0xa8] sm:$0xf] }
  0x33   :  { %668 = vmatpush.bf16.msrb.mxu3 %v1148_v42  ;;  %548 = vmatmul.bf16.gmra.mxu0 %v843_v47  ;;  %v1112_v42 = vld [vmem:[%s1609_s0 + $0xac] sm:$0xf]  ;;  %v1114_v47 = vld [vmem:[%s1609_s0 + $0xb8] sm:$0xf0] }
  0x36   :  { %626 = vmatpush.bf16.msrb.mxu2 %v1139_v49  ;;  %583 = vmatpush.bf16.msrb.mxu1 %v1131_v50  ;;  %v918_v49 = vld [vmem:[%s1609_s0 + $0xb0] sm:$0xf]  ;;  %v1115_v50 = vld [vmem:[%s1609_s0 + $0xc0] sm:$0xf0] }
  0x37   :  { %669 = vmatpush.bf16.msrb.mxu3 %v1147_v48  ;;  %v915_v48 = vor.u32 %v1112_v42, %v912_v43 }
  0x3a   :  { %627 = vmatpush.bf16.msrb.mxu2 %v1138_v52  ;;  %584 = vmatpush.bf16.msrb.mxu1 %v1130_v53  ;;  %v911_v52 = vor.u32 %v1114_v47, %v910_v46  ;;  %v919_v53 = vor.u32 %v1115_v50, %v918_v49 }
  0x3b   :  { %670 = vmatpush.bf16.msrb.mxu3 %v1146_v51  ;;  %v907_v51 = vor.u32 %v1111_v44, %v904_v45 }
  0x3e   :  { %628 = vmatpush.bf16.msrb.mxu2 %v1137_v55  ;;  %585 = vmatpush.bf16.msrb.mxu1 %v1129_v58  ;;  %v932_v55 = vld [vmem:[%s1609_s0 + $0xe4] sm:$0xf0]  ;;  %v930_v58 = vld [vmem:[%s1609_s0 + $0xd0] sm:$0xf] }
  0x3f   :  { %671 = vmatpush.bf16.msrb.mxu3 %v1145_v54  ;;  %v1117_v54 = vld [vmem:[%s1609_s0 + $0xd4] sm:$0xf]  ;;  %v931_v0 = vor.u32 %v1119_v59, %v930_v58 }
  0x40   :  { %v935_v60 = vor.u32 %v1117_v54, %v932_v55 }
  0x41   :  { %586 = vmatmul.bf16.vlgmr.msrb.gmra.mxu1 %v827_v2  ;;  %629 = vmatmul.bf16.vlgmr.msrb.gmra.mxu2 %v831_v3  ;;  %v52_v2 = vld [vmem:[%s1609_s0 + $0xf8] sm:$0xff] }
  0x42   :  { %672 = vmatmul.bf16.vlgmr.msrb.gmra.mxu3 %v835_v63  ;;  %v927_v63 = vor.u32 %v1116_v56, %v924_v57  ;;  %v232_v3 = vunpack.c.h.b16 %v52_v2  ;;  %v231_v6 = vunpack.c.l.b16 %v52_v2 }
  0x43   :  { %1084 = vmatmul.msk.bf16.vlgmr.msrb.gmra.mxu0 %vm513_vm0, %v839_v4  ;;  %v53_v4 = vld [vmem:[%s1609_s0 + $0x100] sm:$0xf] }
  0x44   :  { %v233_v8 = vunpack.c.l.b16 %v53_v4  ;;  %v267_v9 = vpack.c.b16 %v232_v3, %v232_v3  ;;  %v266_v11 = vpack.c.b16 %v231_v6, %v231_v6 }
  0x46   :  { %v268_v13 = vpack.c.b16 %v233_v8, %v233_v8 }
  0x51   :  { %591 = vmatmul.bf16.gmra.mxu1 %v847_v15  ;;  %634 = vmatmul.bf16.gmra.mxu2 %v851_v16  ;;  %v1515_v15 = vld [vmem:[%s1608_s2] ss:$0 sm:$0xff] }
  0x52   :  { %677 = vmatmul.bf16.gmra.mxu3 %v855_v12 }
  0x53   :  { %1085 = vmatmul.msk.bf16.gmra.mxu0 %vm513_vm0, %v859_v17 }
  0x61   :  { %596 = vmatmul.bf16.gmra.mxu1 %v867_v27  ;;  %639 = vmatmul.bf16.gmra.mxu2 %v871_v28 }
  0x62   :  { %682 = vmatmul.bf16.gmra.mxu3 %v875_v24 }
  0x63   :  { %1086 = vmatmul.msk.bf16.gmra.mxu0 %vm513_vm0, %v879_v29 }
  0x71   :  { %601 = vmatmul.bf16.gmra.mxu1 %v887_v39  ;;  %644 = vmatmul.bf16.gmra.mxu2 %v891_v40 }
  0x72   :  { %687 = vmatmul.bf16.gmra.mxu3 %v895_v36 }
  0x73   :  { %1087 = vmatmul.msk.bf16.gmra.mxu0 %vm513_vm0, %v899_v41 }
  0x81   :  { %606 = vmatmul.bf16.gmra.mxu1 %v907_v51  ;;  %649 = vmatmul.bf16.gmra.mxu2 %v911_v52 }
  0x82   :  { %692 = vmatmul.bf16.gmra.mxu3 %v915_v48 }
  0x83   :  { %1088 = vmatmul.msk.bf16.gmra.mxu0 %vm513_vm0, %v919_v53 }
  0x91   :  { %611 = vmatmul.bf16.gmra.mxu1 %v927_v63  ;;  %654 = vmatmul.bf16.gmra.mxu2 %v931_v0 }
  0x92   :  { %697 = vmatmul.bf16.gmra.mxu3 %v935_v60 }
  0x93   :  { %1089 = vmatmul.msk.bf16.gmra.mxu0 %vm513_vm0, %v939_v1 }
  0x9e   :  { %v1509_v12 = vpop.f32.mrf.mxu1 }
  0xa0   :  { %v544_v14 = vpop.f32.mrf.mxu0 }
  0xa1   :  { %616 = vmatmul.bf16.gmra.mxu1 %v265_v10  ;;  %659 = vmatmul.bf16.gmra.mxu2 %v266_v11  ;;  %v545_v34 = vadd.f32 %v1515_v15, %v544_v14 }
  0xa2   :  { %702 = vmatmul.bf16.gmra.mxu3 %v267_v9 }
  0xa3   :  { %1090 = vmatmul.msk.bf16.gmra.mxu0 %vm513_vm0, %v268_v13 }
  0xa4   :  { %v564_v7 = vpop.f32.mrf.mxu2 }
  0xa5   :  { %v1518_v16 = vadd.f32 %v1515_v15, %v564_v7 }
  0xa6   :  { %v1520_v17 = vpop.f32.mrf.mxu1 }
  0xa7   :  { %v574_v18 = vpop.f32.mrf.mxu3 }
  0xa8   :  { %v546_v19 = vpop.f32.mrf.mxu0  ;;  %v1523_v20 = vadd.f32 %v1515_v15, %v574_v18  ;;  %v555_v18 = vadd.f32 %v1515_v15, %v1509_v12  ;;  %v557_v12 = vadd.f32 %v1515_v15, %v1520_v17 }
  0xa9   :  { %v547_v42 = vadd.f32 %v1515_v15, %v546_v19 }
  0xac   :  { %v566_v21 = vpop.f32.mrf.mxu2 }
  0xad   :  { %v1526_v22 = vadd.f32 %v1515_v15, %v566_v21 }
  0xae   :  { %v1528_v23 = vpop.f32.mrf.mxu1 }
  0xaf   :  { %v576_v24 = vpop.f32.mrf.mxu3  ;;  %v560_v17 = vadd.f32 %v1515_v15, %v1528_v23 }
  0xb0   :  { %v549_v25 = vpop.f32.mrf.mxu0 }
  0xb1   :  { %v550_v54 = vadd.f32 %v1515_v15, %v549_v25 }
  0xb4   :  { %v569_v26 = vpop.f32.mrf.mxu2 }
  0xb5   :  { %v1531_v27 = vadd.f32 %v1515_v15, %v569_v26 }
  0xb6   :  { %v1533_v28 = vpop.f32.mrf.mxu1 }
  0xb7   :  { %v562_v23 = vadd.f32 %v1515_v15, %v1533_v28 }
  0xb8   :  { %v551_v29 = vpop.f32.mrf.mxu0 }
  0xb9   :  { %v552_v2 = vadd.f32 %v1515_v15, %v551_v29 }
  0xbc   :  { %v571_v30 = vpop.f32.mrf.mxu2 }
  0xbd   :  { %v1536_v31 = vadd.f32 %v1515_v15, %v571_v30 }
  0xbe   :  { %v587_v32 = vpop.f32.mrf.mxu1 }
  0xbf   :  { %v588_v36 = vadd.f32 %v587_v32, %v545_v34 }
  0xc0   :  { %v716_v33 = vpop.f32.mrf.mxu0 }
  0xc4   :  { %v630_v37 = vpop.f32.mrf.mxu2 }
  0xc5   :  { %v673_v35 = vpop.f32.mrf.mxu3  ;;  %v631_v38 = vadd.f32 %v630_v37, %v588_v36 }
  0xc6   :  { %v589_v39 = vpop.f32.mrf.mxu1 }
  0xc7   :  { %v674_v40 = vadd.f32 %v673_v35, %v631_v38  ;;  %v590_v46 = vadd.f32 %v589_v39, %v547_v42 }
  0xc8   :  { %v718_v41 = vpop.f32.mrf.mxu0 }
  0xc9   :  { %v717_v43 = vadd.f32 %v716_v33, %v674_v40 }
  0xcb   :  { %vm750_vm1 = vcmp.ge.f32.partialorder %v717_v43, 0.0  ;;  %v763_v45 = vmul.f32 0.2, %v717_v43 }
  0xcc   :  { %v632_v47 = vpop.f32.mrf.mxu2 }
  0xcd   :  { %v675_v44 = vpop.f32.mrf.mxu3  ;;  %v776_v48 = vsel %vm750_vm1, %v717_v43, %v763_v45  ;;  %v633_v49 = vadd.f32 %v632_v47, %v590_v46 }
  0xce   :  { %v789_v50 = vpack.c.bf16 %v776_v48, %v776_v48  ;;  %v592_v51 = vpop.f32.mrf.mxu1 }
  0xcf   :  { %v676_v52 = vadd.f32 %v675_v44, %v633_v49  ;;  %v593_v58 = vadd.f32 %v592_v51, %v550_v54 }
  0xd0   :  { %v721_v53 = vpop.f32.mrf.mxu0  ;;  %803 = vst.msk [vmem:[%s1610_s3] sm:$0xf] %vm802_vm2, %v789_v50 }
  0xd1   :  { %v719_v55 = vadd.f32 %v718_v41, %v676_v52 }
  0xd3   :  { %vm751_vm3 = vcmp.ge.f32.partialorder %v719_v55, 0.0  ;;  %v764_v57 = vmul.f32 0.2, %v719_v55 }
  0xd4   :  { %v635_v59 = vpop.f32.mrf.mxu2 }
  0xd5   :  { %v678_v56 = vpop.f32.mrf.mxu3  ;;  %v777_v60 = vsel %vm751_vm3, %v719_v55, %v764_v57  ;;  %v636_v61 = vadd.f32 %v635_v59, %v593_v58 }
  0xd6   :  { %v790_v62 = vpack.c.bf16 %v777_v60, %v777_v60  ;;  %v594_v63 = vpop.f32.mrf.mxu1 }
  0xd7   :  { %v679_v0 = vadd.f32 %v678_v56, %v636_v61  ;;  %v595_v6 = vadd.f32 %v594_v63, %v552_v2 }
  0xd8   :  { %v723_v1 = vpop.f32.mrf.mxu0  ;;  %804 = vst.msk [vmem:[%s1610_s3 + $0x4] sm:$0xf] %vm802_vm2, %v790_v62 }
  0xd9   :  { %v722_v3 = vadd.f32 %v721_v53, %v679_v0 }
  0xdb   :  { %vm752_vm4 = vcmp.ge.f32.partialorder %v722_v3, 0.0  ;;  %v765_v5 = vmul.f32 0.2, %v722_v3 }
  0xdc   :  { %v637_v8 = vpop.f32.mrf.mxu2 }
  0xdd   :  { %v680_v4 = vpop.f32.mrf.mxu3  ;;  %v778_v9 = vsel %vm752_vm4, %v722_v3, %v765_v5  ;;  %v638_v10 = vadd.f32 %v637_v8, %v595_v6 }
  0xde   :  { %v791_v11 = vpack.c.bf16 %v778_v9, %v778_v9  ;;  %v597_v13 = vpop.f32.mrf.mxu1 }
  0xdf   :  { %v681_v14 = vadd.f32 %v680_v4, %v638_v10  ;;  %v598_v25 = vadd.f32 %v597_v13, %v555_v18 }
  0xe0   :  { %v726_v7 = vpop.f32.mrf.mxu0  ;;  %805 = vst.msk [vmem:[%s1610_s3 + $0x8] sm:$0xf] %vm802_vm2, %v791_v11 }
  0xe1   :  { %v724_v19 = vadd.f32 %v723_v1, %v681_v14 }
  0xe3   :  { %vm753_vm5 = vcmp.ge.f32.partialorder %v724_v19, 0.0  ;;  %v766_v24 = vmul.f32 0.2, %v724_v19 }
  0xe4   :  { %v640_v26 = vpop.f32.mrf.mxu2 }
  0xe5   :  { %v683_v21 = vpop.f32.mrf.mxu3  ;;  %v779_v29 = vsel %vm753_vm5, %v724_v19, %v766_v24  ;;  %v641_v30 = vadd.f32 %v640_v26, %v598_v25 }
  0xe6   :  { %v792_v32 = vpack.c.bf16 %v779_v29, %v779_v29  ;;  %v599_v33 = vpop.f32.mrf.mxu1 }
  0xe7   :  { %v684_v34 = vadd.f32 %v683_v21, %v641_v30  ;;  %v600_v39 = vadd.f32 %v599_v33, %v557_v12 }
  0xe8   :  { %v728_v35 = vpop.f32.mrf.mxu0  ;;  %806 = vst.msk [vmem:[%s1610_s3 + $0xc] sm:$0xf] %vm802_vm2, %v792_v32 }
  0xe9   :  { %v727_v36 = vadd.f32 %v726_v7, %v684_v34 }
  0xeb   :  { %vm754_vm6 = vcmp.ge.f32.partialorder %v727_v36, 0.0  ;;  %v767_v38 = vmul.f32 0.2, %v727_v36 }
  0xec   :  { %v642_v40 = vpop.f32.mrf.mxu2 }
  0xed   :  { %v685_v37 = vpop.f32.mrf.mxu3  ;;  %v780_v41 = vsel %vm754_vm6, %v727_v36, %v767_v38  ;;  %v643_v42 = vadd.f32 %v642_v40, %v600_v39 }
  0xee   :  { %v793_v43 = vpack.c.bf16 %v780_v41, %v780_v41  ;;  %v602_v44 = vpop.f32.mrf.mxu1 }
  0xef   :  { %v686_v45 = vadd.f32 %v685_v37, %v643_v42  ;;  %v603_v50 = vadd.f32 %v602_v44, %v560_v17 }
  0xf0   :  { %v731_v46 = vpop.f32.mrf.mxu0  ;;  %807 = vst.msk [vmem:[%s1610_s3 + $0x10] sm:$0xf] %vm802_vm2, %v793_v43 }
  0xf1   :  { %v729_v47 = vadd.f32 %v728_v35, %v686_v45 }
  0xf3   :  { %vm755_vm7 = vcmp.ge.f32.partialorder %v729_v47, 0.0  ;;  %v768_v49 = vmul.f32 0.2, %v729_v47 }
  0xf4   :  { %v645_v51 = vpop.f32.mrf.mxu2 }
  0xf5   :  { %v688_v48 = vpop.f32.mrf.mxu3  ;;  %v781_v52 = vsel %vm755_vm7, %v729_v47, %v768_v49  ;;  %v646_v53 = vadd.f32 %v645_v51, %v603_v50 }
  0xf6   :  { %v794_v54 = vpack.c.bf16 %v781_v52, %v781_v52  ;;  %v604_v55 = vpop.f32.mrf.mxu1 }
  0xf7   :  { %v689_v56 = vadd.f32 %v688_v48, %v646_v53  ;;  %v605_v61 = vadd.f32 %v604_v55, %v562_v23 }
  0xf8   :  { %v733_v57 = vpop.f32.mrf.mxu0  ;;  %808 = vst.msk [vmem:[%s1610_s3 + $0x14] sm:$0xf] %vm802_vm2, %v794_v54 }
  0xf9   :  { %v732_v58 = vadd.f32 %v731_v46, %v689_v56 }
  0xfb   :  { %vm756_vm8 = vcmp.ge.f32.partialorder %v732_v58, 0.0  ;;  %v769_v60 = vmul.f32 0.2, %v732_v58 }
  0xfc   :  { %v647_v62 = vpop.f32.mrf.mxu2 }
  0xfd   :  { %v690_v59 = vpop.f32.mrf.mxu3  ;;  %v782_v63 = vsel %vm756_vm8, %v732_v58, %v769_v60  ;;  %v648_v0 = vadd.f32 %v647_v62, %v605_v61 }
  0xfe   :  { %v795_v1 = vpack.c.bf16 %v782_v63, %v782_v63  ;;  %v607_v2 = vpop.f32.mrf.mxu1 }
  0xff   :  { %v691_v3 = vadd.f32 %v690_v59, %v648_v0  ;;  %v608_v28 = vadd.f32 %v607_v2, %v1518_v16 }
 0x100   :  { %v736_v4 = vpop.f32.mrf.mxu0  ;;  %809 = vst.msk [vmem:[%s1610_s3 + $0x18] sm:$0xf] %vm802_vm2, %v795_v1 }
 0x101   :  { %v734_v5 = vadd.f32 %v733_v57, %v691_v3 }
 0x103   :  { %vm757_vm9 = vcmp.ge.f32.partialorder %v734_v5, 0.0  ;;  %v770_v15 = vmul.f32 0.2, %v734_v5 }
 0x104   :  { %v650_v8 = vpop.f32.mrf.mxu2 }
 0x105   :  { %v693_v6 = vpop.f32.mrf.mxu3  ;;  %v783_v9 = vsel %vm757_vm9, %v734_v5, %v770_v15  ;;  %v651_v10 = vadd.f32 %v650_v8, %v608_v28 }
 0x106   :  { %v796_v11 = vpack.c.bf16 %v783_v9, %v783_v9  ;;  %v609_v13 = vpop.f32.mrf.mxu1 }
 0x107   :  { %v694_v14 = vadd.f32 %v693_v6, %v651_v10  ;;  %v610_v24 = vadd.f32 %v609_v13, %v1526_v22 }
 0x108   :  { %v738_v7 = vpop.f32.mrf.mxu0  ;;  %810 = vst.msk [vmem:[%s1610_s3 + $0x1c] sm:$0xf] %vm802_vm2, %v796_v11 }
 0x109   :  { %v737_v18 = vadd.f32 %v736_v4, %v694_v14 }
 0x10b   :  { %vm758_vm10 = vcmp.ge.f32.partialorder %v737_v18, 0.0  ;;  %v771_v21 = vmul.f32 0.2, %v737_v18 }
 0x10c   :  { %v652_v25 = vpop.f32.mrf.mxu2 }
 0x10d   :  { %v695_v19 = vpop.f32.mrf.mxu3  ;;  %v784_v16 = vsel %vm758_vm10, %v737_v18, %v771_v21  ;;  %v653_v26 = vadd.f32 %v652_v25, %v610_v24 }
 0x10e   :  { %v797_v29 = vpack.c.bf16 %v784_v16, %v784_v16  ;;  %v612_v30 = vpop.f32.mrf.mxu1 }
 0x10f   :  { %v696_v32 = vadd.f32 %v695_v19, %v653_v26  ;;  %v613_v36 = vadd.f32 %v612_v30, %v1531_v27 }
 0x110   :  { %v741_v33 = vpop.f32.mrf.mxu0  ;;  %811 = vst.msk [vmem:[%s1610_s3 + $0x20] sm:$0xf] %vm802_vm2, %v797_v29 }
 0x111   :  { %v739_v34 = vadd.f32 %v738_v7, %v696_v32 }
 0x113   :  { %vm759_vm11 = vcmp.ge.f32.partialorder %v739_v34, 0.0  ;;  %v772_v12 = vmul.f32 0.2, %v739_v34 }
 0x114   :  { %v655_v37 = vpop.f32.mrf.mxu2 }
 0x115   :  { %v698_v35 = vpop.f32.mrf.mxu3  ;;  %v785_v22 = vsel %vm759_vm11, %v739_v34, %v772_v12  ;;  %v656_v38 = vadd.f32 %v655_v37, %v613_v36 }
 0x116   :  { %v798_v39 = vpack.c.bf16 %v785_v22, %v785_v22  ;;  %v614_v40 = vpop.f32.mrf.mxu1 }
 0x117   :  { %v699_v41 = vadd.f32 %v698_v35, %v656_v38  ;;  %v615_v46 = vadd.f32 %v614_v40, %v1536_v31 }
 0x118   :  { %v743_v42 = vpop.f32.mrf.mxu0  ;;  %812 = vst.msk [vmem:[%s1610_s3 + $0x24] sm:$0xf] %vm802_vm2, %v798_v39 }
 0x119   :  { %v742_v43 = vadd.f32 %v741_v33, %v699_v41 }
 0x11b   :  { %vm760_vm12 = vcmp.ge.f32.partialorder %v742_v43, 0.0  ;;  %v773_v45 = vmul.f32 0.2, %v742_v43 }
 0x11c   :  { %v657_v17 = vpop.f32.mrf.mxu2 }
 0x11d   :  { %v700_v44 = vpop.f32.mrf.mxu3  ;;  %v786_v27 = vsel %vm760_vm12, %v742_v43, %v773_v45  ;;  %v658_v47 = vadd.f32 %v657_v17, %v615_v46 }
 0x11e   :  { %v799_v48 = vpack.c.bf16 %v786_v27, %v786_v27  ;;  %v617_v49 = vpop.f32.mrf.mxu1 }
 0x11f   :  { %v701_v50 = vadd.f32 %v700_v44, %v658_v47  ;;  %v618_v55 = vadd.f32 %v617_v49, %v1523_v20 }
 0x120   :  { %v746_v51 = vpop.f32.mrf.mxu0  ;;  %813 = vst.msk [vmem:[%s1610_s3 + $0x28] sm:$0xf] %vm802_vm2, %v799_v48 }
 0x121   :  { %v744_v52 = vadd.f32 %v743_v42, %v701_v50 }
 0x123   :  { %vm761_vm13 = vcmp.ge.f32.partialorder %v744_v52, 0.0  ;;  %v774_v54 = vmul.f32 0.2, %v744_v52 }
 0x124   :  { %v660_v56 = vpop.f32.mrf.mxu2 }
 0x125   :  { %v703_v53 = vpop.f32.mrf.mxu3  ;;  %v787_v31 = vsel %vm761_vm13, %v744_v52, %v774_v54  ;;  %v661_v57 = vadd.f32 %v660_v56, %v618_v55 }
 0x126   :  { %v800_v23 = vpack.c.bf16 %v787_v31, %v787_v31  ;;  %v619_v58 = vpop.f32.mrf.mxu1 }
 0x127   :  { %v704_v59 = vadd.f32 %v703_v53, %v661_v57 }
 0x128   :  { %v748_v60 = vpop.f32.mrf.mxu0  ;;  %814 = vst.msk [vmem:[%s1610_s3 + $0x2c] sm:$0xf] %vm802_vm2, %v800_v23 }
 0x129   :  { %v747_v61 = vadd.f32 %v746_v51, %v704_v59 }
 0x12b   :  { %vm762_vm14 = vcmp.ge.f32.partialorder %v747_v61, 0.0  ;;  %v775_v63 = vmul.f32 0.2, %v747_v61 }
 0x12c   :  { %v662_v0 = vpop.f32.mrf.mxu2 }
 0x12d   :  { %v705_v62 = vpop.f32.mrf.mxu3  ;;  %v788_v1 = vsel %vm762_vm14, %v747_v61, %v775_v63 }
 0x12e   :  { %v801_v2 = vpack.c.bf16 %v788_v1, %v788_v1 }
 0x130   :  { %815 = vst.msk [vmem:[%s1610_s3 + $0x30] sm:$0xf] %vm802_vm2, %v801_v2 }

// kernel: model_forward.11
= control target key start
LH: loop header
LB: loop body
LE: loop exit
PB: predicated region body
PF: predicated region fallthrough
CT: control target
= control target key end

     0   :  { %vm358_vm0 = vcmask 523264   ;;  %vm467_vm3 = vcmask 519168   ;;  %s866_s1 = inlined_call_operand.vmem [shape: bf16[576,64], index: 1, kind: input, shape index: {}]   ;;  %s867_s2 = inlined_call_operand.vmem [shape: f32[1,64], index: 2, kind: input, shape index: {}]   ;;  %s868_s0 = inlined_call_operand.vmem [shape: bf16[18,576], index: 0, kind: input, shape index: {}]   ;;  %s869_s3 = inlined_call_operand.vmem [shape: bf16[18,64], index: 3, kind: output, shape index: {}]  }
   0x1   :  { %v653_v0 = vld [vmem:[%s866_s1 + $0x38] sm:$0xff]  ;;  %v652_v4 = vld [vmem:[%s866_s1 + $0x30] sm:$0xff]  ;;  %v651_v8 = vld [vmem:[%s866_s1 + $0x28] sm:$0xff] }
   0x2   :  { %v661_v1 = vld [vmem:[%s866_s1 + $0x78] sm:$0xff]  ;;  %365 = vmatpush.bf16.msra.mxu0 %v653_v0  ;;  %v660_v5 = vld [vmem:[%s866_s1 + $0x70] sm:$0xff]  ;;  %v659_v9 = vld [vmem:[%s866_s1 + $0x68] sm:$0xff] }
   0x3   :  { %v669_v2 = vld [vmem:[%s866_s1 + $0xb8] sm:$0xff]  ;;  %383 = vmatpush.bf16.msra.mxu1 %v661_v1  ;;  %v668_v6 = vld [vmem:[%s866_s1 + $0xb0] sm:$0xff]  ;;  %v667_v10 = vld [vmem:[%s866_s1 + $0xa8] sm:$0xff] }
   0x4   :  { %v677_v3 = vld [vmem:[%s866_s1 + $0xf8] sm:$0xff]  ;;  %401 = vmatpush.bf16.msra.mxu2 %v669_v2  ;;  %v676_v7 = vld [vmem:[%s866_s1 + $0xf0] sm:$0xff]  ;;  %v675_v11 = vld [vmem:[%s866_s1 + $0xe8] sm:$0xff] }
   0x5   :  { %419 = vmatpush.bf16.msra.mxu3 %v677_v3  ;;  %v650_v12 = vld [vmem:[%s866_s1 + $0x20] sm:$0xff]  ;;  %v649_v16 = vld [vmem:[%s866_s1 + $0x18] sm:$0xff]  ;;  %v648_v20 = vld [vmem:[%s866_s1 + $0x10] sm:$0xff] }
   0x6   :  { %366 = vmatpush.bf16.msra.mxu0 %v652_v4  ;;  %v658_v13 = vld [vmem:[%s866_s1 + $0x60] sm:$0xff]  ;;  %v657_v17 = vld [vmem:[%s866_s1 + $0x58] sm:$0xff]  ;;  %v656_v21 = vld [vmem:[%s866_s1 + $0x50] sm:$0xff] }
   0x7   :  { %384 = vmatpush.bf16.msra.mxu1 %v660_v5  ;;  %v666_v14 = vld [vmem:[%s866_s1 + $0xa0] sm:$0xff]  ;;  %v665_v18 = vld [vmem:[%s866_s1 + $0x98] sm:$0xff]  ;;  %v664_v22 = vld [vmem:[%s866_s1 + $0x90] sm:$0xff] }
   0x8   :  { %402 = vmatpush.bf16.msra.mxu2 %v668_v6  ;;  %v674_v15 = vld [vmem:[%s866_s1 + $0xe0] sm:$0xff]  ;;  %v673_v19 = vld [vmem:[%s866_s1 + $0xd8] sm:$0xff]  ;;  %v672_v23 = vld [vmem:[%s866_s1 + $0xd0] sm:$0xff] }
   0x9   :  { %420 = vmatpush.bf16.msra.mxu3 %v676_v7  ;;  %v647_v24 = vld [vmem:[%s866_s1 + $0x8] sm:$0xff]  ;;  %v646_v28 = vld [vmem:[%s866_s1] sm:$0xff]  ;;  %v643_v33 = vld [vmem:[%s868_s0 + $0x10] sm:$0xf0] }
   0xa   :  { %367 = vmatpush.bf16.msra.mxu0 %v651_v8  ;;  %v655_v25 = vld [vmem:[%s866_s1 + $0x48] sm:$0xff]  ;;  %v654_v29 = vld [vmem:[%s866_s1 + $0x40] sm:$0xff]  ;;  %v479_v35 = vld [vmem:[%s868_s0 + $0x14] sm:$0xf0] }
   0xb   :  { %385 = vmatpush.bf16.msra.mxu1 %v659_v9  ;;  %v663_v26 = vld [vmem:[%s866_s1 + $0x88] sm:$0xff]  ;;  %v662_v30 = vld [vmem:[%s866_s1 + $0x80] sm:$0xff]  ;;  %v644_v37 = vld [vmem:[%s868_s0 + $0x18] sm:$0xf0] }
   0xc   :  { %403 = vmatpush.bf16.msra.mxu2 %v667_v10  ;;  %v671_v27 = vld [vmem:[%s866_s1 + $0xc8] sm:$0xff]  ;;  %v670_v31 = vld [vmem:[%s866_s1 + $0xc0] sm:$0xff]  ;;  %v681_v40 = vld [vmem:[%s866_s1 + $0x118] sm:$0xff] }
   0xd   :  { %421 = vmatpush.bf16.msra.mxu3 %v675_v11  ;;  %v477_v32 = vld [vmem:[%s868_s0] sm:$0xf]  ;;  %v641_v34 = vld [vmem:[%s868_s0 + $0x4] sm:$0xf]  ;;  %v485_v36 = vld [vmem:[%s868_s0 + $0x8] sm:$0xf] }
   0xe   :  { %368 = vmatpush.bf16.msra.mxu0 %v650_v12  ;;  %v642_v38 = vld [vmem:[%s868_s0 + $0xc] sm:$0xf]  ;;  %v487_v39 = vld [vmem:[%s868_s0 + $0x1c] sm:$0xf0]  ;;  %v478_v41 = vor.u32 %v643_v33, %v477_v32  ;;  %v482_v42 = vor.u32 %v641_v34, %v479_v35  ;;  %v486_v43 = vor.u32 %v644_v37, %v485_v36  ;;  %v680_v45 = vld [vmem:[%s866_s1 + $0x110] sm:$0xff] }
   0xf   :  { %386 = vmatpush.bf16.msra.mxu1 %v658_v13  ;;  %v490_v44 = vor.u32 %v642_v38, %v487_v39  ;;  %v679_v46 = vld [vmem:[%s866_s1 + $0x108] sm:$0xff]  ;;  %v22_v48 = vld [vmem:[%s868_s0 + $0x30] sm:$0xff]  ;;  %v678_v49 = vld [vmem:[%s866_s1 + $0x100] sm:$0xff] }
  0x10   :  { %404 = vmatpush.bf16.msra.mxu2 %v666_v14  ;;  %v21_v47 = vld [vmem:[%s868_s0 + $0x28] sm:$0xff]  ;;  %v121_v52 = vunpack.c.l.b16 %v22_v48  ;;  %v122_v53 = vunpack.c.h.b16 %v22_v48  ;;  %v23_v58 = vld [vmem:[%s868_s0 + $0x38] sm:$0xf]  ;;  %v493_v60 = vld [vmem:[%s868_s0 + $0x10] sm:$0xf] }
  0x11   :  { %422 = vmatpush.bf16.msra.mxu3 %v674_v15  ;;  %v119_v50 = vunpack.c.l.b16 %v21_v47  ;;  %v120_v51 = vunpack.c.h.b16 %v21_v47  ;;  %v123_v59 = vunpack.c.l.b16 %v23_v58  ;;  %v645_v61 = vld [vmem:[%s868_s0 + $0x20] sm:$0xf0]  ;;  %v686_v10 = vld [vmem:[%s867_s2] ss:$0 sm:$0xff] }
  0x12   :  { %369 = vmatpush.bf16.msra.mxu0 %v649_v16  ;;  %v131_v56 = vpack.c.b16 %v121_v52, %v121_v52  ;;  %v132_v57 = vpack.c.b16 %v122_v53, %v122_v53  ;;  %v494_v62 = vor.u32 %v645_v61, %v493_v60 }
  0x13   :  { %387 = vmatpush.bf16.msra.mxu1 %v657_v17  ;;  %v129_v54 = vpack.c.b16 %v119_v50, %v119_v50  ;;  %v130_v55 = vpack.c.b16 %v120_v51, %v120_v51  ;;  %v133_v63 = vpack.c.b16 %v123_v59, %v123_v59 }
  0x14   :  { %405 = vmatpush.bf16.msra.mxu2 %v665_v18 }
  0x15   :  { %423 = vmatpush.bf16.msra.mxu3 %v673_v19 }
  0x16   :  { %370 = vmatpush.bf16.msra.mxu0 %v648_v20 }
  0x17   :  { %388 = vmatpush.bf16.msra.mxu1 %v656_v21 }
  0x18   :  { %406 = vmatpush.bf16.msra.mxu2 %v664_v22 }
  0x19   :  { %424 = vmatpush.bf16.msra.mxu3 %v672_v23 }
  0x1a   :  { %371 = vmatpush.bf16.msra.mxu0 %v647_v24 }
  0x1b   :  { %389 = vmatpush.bf16.msra.mxu1 %v655_v25 }
  0x1c   :  { %407 = vmatpush.bf16.msra.mxu2 %v663_v26 }
  0x1d   :  { %425 = vmatpush.bf16.msra.mxu3 %v671_v27 }
  0x1e   :  { %372 = vmatpush.bf16.msra.mxu0 %v646_v28 }
  0x1f   :  { %390 = vmatpush.bf16.msra.mxu1 %v654_v29 }
  0x20   :  { %408 = vmatpush.bf16.msra.mxu2 %v662_v30 }
  0x21   :  { %426 = vmatpush.bf16.msra.mxu3 %v670_v31  ;;  %373 = vmatmul.bf16.vlgmr.msra.gmra.mxu0 %v478_v41 }
  0x22   :  { %441 = vmatpush.bf16.msrb.mxu0 %v681_v40  ;;  %391 = vmatmul.bf16.vlgmr.msra.gmra.mxu1 %v482_v42 }
  0x23   :  { %682 = vmatpush.bf16.msrb.mxu1 %v681_v40  ;;  %409 = vmatmul.bf16.vlgmr.msra.gmra.mxu2 %v486_v43 }
  0x24   :  { %427 = vmatmul.bf16.vlgmr.msra.gmra.mxu3 %v490_v44 }
  0x26   :  { %442 = vmatpush.bf16.msrb.mxu0 %v680_v45 }
  0x27   :  { %683 = vmatpush.bf16.msrb.mxu1 %v680_v45 }
  0x2a   :  { %443 = vmatpush.bf16.msrb.mxu0 %v679_v46 }
  0x2b   :  { %684 = vmatpush.bf16.msrb.mxu1 %v679_v46 }
  0x2e   :  { %444 = vmatpush.bf16.msrb.mxu0 %v678_v49 }
  0x2f   :  { %685 = vmatpush.bf16.msrb.mxu1 %v678_v49 }
  0x31   :  { %378 = vmatmul.bf16.gmra.mxu0 %v129_v54 }
  0x32   :  { %396 = vmatmul.bf16.gmra.mxu1 %v130_v55 }
  0x33   :  { %414 = vmatmul.bf16.gmra.mxu2 %v131_v56 }
  0x34   :  { %432 = vmatmul.bf16.gmra.mxu3 %v132_v57 }
  0x41   :  { %639 = vmatmul.msk.bf16.vlgmr.msrb.gmra.mxu0 %vm358_vm0, %v494_v62 }
  0x42   :  { %640 = vmatmul.msk.bf16.vlgmr.msrb.gmra.mxu1 %vm358_vm0, %v133_v63 }
  0x9e   :  { %v374_v0 = vpop.f32.mrf.mxu0 }
  0x9f   :  { %v392_v1 = vpop.f32.mrf.mxu1  ;;  %v375_v11 = vadd.f32 %v686_v10, %v374_v0 }
  0xa1   :  { %v393_v17 = vadd.f32 %v392_v1, %v375_v11 }
  0xa6   :  { %v410_v2 = vpop.f32.mrf.mxu2  ;;  %v376_v4 = vpop.f32.mrf.mxu0 }
  0xa7   :  { %v428_v3 = vpop.f32.mrf.mxu3  ;;  %v394_v5 = vpop.f32.mrf.mxu1  ;;  %v411_v19 = vadd.f32 %v410_v2, %v393_v17  ;;  %v377_v21 = vadd.f32 %v686_v10, %v376_v4 }
  0xa9   :  { %v429_v22 = vadd.f32 %v428_v3, %v411_v19  ;;  %v395_v26 = vadd.f32 %v394_v5, %v377_v21 }
  0xae   :  { %v412_v6 = vpop.f32.mrf.mxu2  ;;  %v379_v8 = vpop.f32.mrf.mxu0 }
  0xaf   :  { %v430_v7 = vpop.f32.mrf.mxu3  ;;  %v397_v9 = vpop.f32.mrf.mxu1  ;;  %v380_v12 = vadd.f32 %v686_v10, %v379_v8  ;;  %v413_v31 = vadd.f32 %v412_v6, %v395_v26 }
  0xb1   :  { %v398_v18 = vadd.f32 %v397_v9, %v380_v12  ;;  %v431_v38 = vadd.f32 %v430_v7, %v413_v31 }
  0xb6   :  { %v415_v13 = vpop.f32.mrf.mxu2  ;;  %v381_v15 = vpop.f32.mrf.mxu0 }
  0xb7   :  { %v433_v14 = vpop.f32.mrf.mxu3  ;;  %v399_v16 = vpop.f32.mrf.mxu1  ;;  %v416_v20 = vadd.f32 %v415_v13, %v398_v18 }
  0xb9   :  { %v434_v23 = vadd.f32 %v433_v14, %v416_v20 }
  0xbe   :  { %v417_v24 = vpop.f32.mrf.mxu2  ;;  %v446_v27 = vpop.f32.mrf.mxu0 }
  0xbf   :  { %v435_v25 = vpop.f32.mrf.mxu3  ;;  %v451_v28 = vpop.f32.mrf.mxu1  ;;  %v447_v29 = vadd.f32 %v446_v27, %v429_v22 }
  0xc0   :  { %v452_v30 = vadd.f32 %v451_v28, %v434_v23 }
  0xc1   :  { %vm455_vm1 = vcmp.ge.f32.partialorder %v447_v29, 0.0  ;;  %v458_v32 = vmul.f32 0.2, %v447_v29 }
  0xc2   :  { %vm457_vm2 = vcmp.ge.f32.partialorder %v452_v30, 0.0  ;;  %v460_v33 = vmul.f32 0.2, %v452_v30 }
  0xc3   :  { %v461_v34 = vsel %vm455_vm1, %v447_v29, %v458_v32 }
  0xc4   :  { %v463_v35 = vsel %vm457_vm2, %v452_v30, %v460_v33  ;;  %v464_v36 = vpack.c.bf16 %v461_v34, %v461_v34 }
  0xc5   :  { %v466_v37 = vpack.c.bf16 %v463_v35, %v463_v35 }
  0xc6   :  { %468 = vst.msk [vmem:[%s869_s3] sm:$0xf] %vm467_vm3, %v464_v36  ;;  %v448_v39 = vpop.f32.mrf.mxu0 }
  0xc7   :  { %v453_v40 = vpop.f32.mrf.mxu1  ;;  %470 = vst.msk [vmem:[%s869_s3 + $0x8] sm:$0xf] %vm467_vm3, %v466_v37  ;;  %v449_v41 = vadd.f32 %v448_v39, %v431_v38 }
  0xc9   :  { %vm456_vm4 = vcmp.ge.f32.partialorder %v449_v41, 0.0  ;;  %v459_v42 = vmul.f32 0.2, %v449_v41 }
  0xcb   :  { %v462_v43 = vsel %vm456_vm4, %v449_v41, %v459_v42 }
  0xcc   :  { %v465_v44 = vpack.c.bf16 %v462_v43, %v462_v43 }
  0xce   :  { %469 = vst.msk [vmem:[%s869_s3 + $0x4] sm:$0xf] %vm467_vm3, %v465_v44 }

// kernel: model_forward.12
= control target key start
LH: loop header
LB: loop body
LE: loop exit
PB: predicated region body
PF: predicated region fallthrough
CT: control target
= control target key end

     0   :  { %vm331_vm0 = vcmask 523264   ;;  %vm405_vm2 = vcmask 1040384   ;;  %vm425_vm3 = vcmask 516096   ;;  %s799_s0 = inlined_call_operand.vmem [shape: bf16[2,576], index: 0, kind: input, shape index: {}]   ;;  %s800_s1 = inlined_call_operand.vmem [shape: bf16[576,64], index: 1, kind: input, shape index: {}]   ;;  %s801_s2 = inlined_call_operand.vmem [shape: f32[1,64], index: 2, kind: input, shape index: {}]   ;;  %s802_s3 = inlined_call_operand.vmem [shape: bf16[2,64], index: 3, kind: output, shape index: {}]  }
   0x1   :  { %v623_v0 = vld [vmem:[%s800_s1 + $0x38] sm:$0xff]  ;;  %v622_v4 = vld [vmem:[%s800_s1 + $0x30] sm:$0xff]  ;;  %v621_v8 = vld [vmem:[%s800_s1 + $0x28] sm:$0xff] }
   0x2   :  { %v639_v1 = vld [vmem:[%s800_s1 + $0xb8] sm:$0xff]  ;;  %334 = vmatpush.bf16.msra.mxu0 %v623_v0  ;;  %v638_v5 = vld [vmem:[%s800_s1 + $0xb0] sm:$0xff]  ;;  %v637_v9 = vld [vmem:[%s800_s1 + $0xa8] sm:$0xff] }
   0x3   :  { %v647_v2 = vld [vmem:[%s800_s1 + $0xf8] sm:$0xff]  ;;  %360 = vmatpush.bf16.msra.mxu2 %v639_v1  ;;  %v646_v6 = vld [vmem:[%s800_s1 + $0xf0] sm:$0xff]  ;;  %v645_v10 = vld [vmem:[%s800_s1 + $0xe8] sm:$0xff] }
   0x4   :  { %v631_v3 = vld [vmem:[%s800_s1 + $0x78] sm:$0xff]  ;;  %373 = vmatpush.bf16.msra.mxu3 %v647_v2  ;;  %v630_v7 = vld [vmem:[%s800_s1 + $0x70] sm:$0xff]  ;;  %v629_v11 = vld [vmem:[%s800_s1 + $0x68] sm:$0xff] }
   0x5   :  { %347 = vmatpush.bf16.msra.mxu1 %v631_v3  ;;  %v620_v12 = vld [vmem:[%s800_s1 + $0x20] sm:$0xff]  ;;  %v17_v18 = vld [vmem:[%s799_s0 + $0xa] sm:$0x1f]  ;;  %v18_v19 = vld [vmem:[%s799_s0 + $0xf] sm:$0x1f] }
   0x6   :  { %335 = vmatpush.bf16.msra.mxu0 %v622_v4  ;;  %v636_v13 = vld [vmem:[%s800_s1 + $0xa0] sm:$0xff]  ;;  %v619_v20 = vld [vmem:[%s800_s1 + $0x18] sm:$0xff]  ;;  %102 = vst [vmem:[#allocation1 + $0x2] ss:$9 sm:$0xff] %v17_v18  ;;  %v618_v24 = vld [vmem:[%s800_s1 + $0x10] sm:$0xff] }
   0x7   :  { %361 = vmatpush.bf16.msra.mxu2 %v638_v5  ;;  %v644_v14 = vld [vmem:[%s800_s1 + $0xe0] sm:$0xff]  ;;  %v635_v21 = vld [vmem:[%s800_s1 + $0x98] sm:$0xff]  ;;  %105 = vst [vmem:[#allocation1 + $0x3] ss:$9 sm:$0xff] %v18_v19  ;;  %v634_v25 = vld [vmem:[%s800_s1 + $0x90] sm:$0xff] }
   0x8   :  { %374 = vmatpush.bf16.msra.mxu3 %v646_v6  ;;  %v15_v15 = vld [vmem:[%s799_s0] sm:$0x1f]  ;;  %v16_v17 = vld [vmem:[%s799_s0 + $0x5] sm:$0x1f]  ;;  %v643_v22 = vld [vmem:[%s800_s1 + $0xd8] sm:$0xff] }
   0x9   :  { %348 = vmatpush.bf16.msra.mxu1 %v630_v7  ;;  %v628_v16 = vld [vmem:[%s800_s1 + $0x60] sm:$0xff]  ;;  %96 = vst [vmem:[#allocation1] ss:$9 sm:$0xff] %v15_v15  ;;  %v627_v23 = vld [vmem:[%s800_s1 + $0x58] sm:$0xff]  ;;  %v642_v26 = vld [vmem:[%s800_s1 + $0xd0] sm:$0xff] }
   0xa   :  { %336 = vmatpush.bf16.msra.mxu0 %v621_v8  ;;  %99 = vst [vmem:[#allocation1 + $0x1] ss:$9 sm:$0xff] %v16_v17  ;;  %v626_v27 = vld [vmem:[%s800_s1 + $0x50] sm:$0xff]  ;;  %v617_v28 = vld [vmem:[%s800_s1 + $0x8] sm:$0xff]  ;;  %v616_v32 = vld [vmem:[%s800_s1] sm:$0xff] }
   0xb   :  { %362 = vmatpush.bf16.msra.mxu2 %v637_v9  ;;  %v633_v29 = vld [vmem:[%s800_s1 + $0x88] sm:$0xff]  ;;  %v632_v33 = vld [vmem:[%s800_s1 + $0x80] sm:$0xff]  ;;  %v651_v36 = vld [vmem:[%s800_s1 + $0x118] sm:$0xff] }
   0xc   :  { %375 = vmatpush.bf16.msra.mxu3 %v645_v10  ;;  %v641_v30 = vld [vmem:[%s800_s1 + $0xc8] sm:$0xff]  ;;  %v640_v34 = vld [vmem:[%s800_s1 + $0xc0] sm:$0xff]  ;;  %v650_v41 = vld [vmem:[%s800_s1 + $0x110] sm:$0xff] }
   0xd   :  { %349 = vmatpush.bf16.msra.mxu1 %v629_v11  ;;  %v625_v31 = vld [vmem:[%s800_s1 + $0x48] sm:$0xff]  ;;  %v624_v35 = vld [vmem:[%s800_s1 + $0x40] sm:$0xff] }
   0xe   :  { %337 = vmatpush.bf16.msra.mxu0 %v620_v12  ;;  %v649_v42 = vld [vmem:[%s800_s1 + $0x108] sm:$0xff]  ;;  %v648_v43 = vld [vmem:[%s800_s1 + $0x100] sm:$0xff] }
   0xf   :  { %363 = vmatpush.bf16.msra.mxu2 %v636_v13  ;;  %v652_v46 = vld [vmem:[%s801_s2] ss:$0 sm:$0xff] }
  0x10   :  { %376 = vmatpush.bf16.msra.mxu3 %v644_v14 }
  0x11   :  { %350 = vmatpush.bf16.msra.mxu1 %v628_v16  ;;  %v106_v37 = vld [vmem:[#allocation1] sm:$0xff]  ;;  %v108_v38 = vld [vmem:[#allocation1 + $0x12] sm:$0xff]  ;;  %v107_v40 = vld [vmem:[#allocation1 + $0x9] sm:$0xff] }
  0x12   :  { %338 = vmatpush.bf16.msra.mxu0 %v619_v20  ;;  %v109_v39 = vld [vmem:[#allocation1 + $0x1b] sm:$0xff]  ;;  %v110_v44 = vld [vmem:[#allocation1 + $0x24] sm:$0xff] }
  0x13   :  { %364 = vmatpush.bf16.msra.mxu2 %v635_v21 }
  0x14   :  { %377 = vmatpush.bf16.msra.mxu3 %v643_v22 }
  0x15   :  { %351 = vmatpush.bf16.msra.mxu1 %v627_v23 }
  0x16   :  { %339 = vmatpush.bf16.msra.mxu0 %v618_v24 }
  0x17   :  { %365 = vmatpush.bf16.msra.mxu2 %v634_v25 }
  0x18   :  { %378 = vmatpush.bf16.msra.mxu3 %v642_v26 }
  0x19   :  { %352 = vmatpush.bf16.msra.mxu1 %v626_v27 }
  0x1a   :  { %340 = vmatpush.bf16.msra.mxu0 %v617_v28 }
  0x1b   :  { %366 = vmatpush.bf16.msra.mxu2 %v633_v29 }
  0x1c   :  { %379 = vmatpush.bf16.msra.mxu3 %v641_v30 }
  0x1d   :  { %353 = vmatpush.bf16.msra.mxu1 %v625_v31 }
  0x1e   :  { %341 = vmatpush.bf16.msra.mxu0 %v616_v32 }
  0x1f   :  { %367 = vmatpush.bf16.msra.mxu2 %v632_v33 }
  0x20   :  { %380 = vmatpush.bf16.msra.mxu3 %v640_v34 }
  0x21   :  { %354 = vmatpush.bf16.msra.mxu1 %v624_v35  ;;  %342 = vmatmul.bf16.vlgmr.msra.gmra.mxu0 %v106_v37 }
  0x22   :  { %390 = vmatpush.bf16.msrb.mxu0 %v651_v36  ;;  %368 = vmatmul.bf16.vlgmr.msra.gmra.mxu2 %v108_v38 }
  0x23   :  { %381 = vmatmul.bf16.vlgmr.msra.gmra.mxu3 %v109_v39 }
  0x24   :  { %355 = vmatmul.bf16.vlgmr.msra.gmra.mxu1 %v107_v40 }
  0x26   :  { %391 = vmatpush.bf16.msrb.mxu0 %v650_v41 }
  0x2a   :  { %392 = vmatpush.bf16.msrb.mxu0 %v649_v42 }
  0x2e   :  { %393 = vmatpush.bf16.msrb.mxu0 %v648_v43 }
  0x31   :  { %615 = vmatmul.msk.bf16.vlgmr.msrb.gmra.mxu0 %vm331_vm0, %v110_v44 }
  0x9e   :  { %v343_v45 = vpop.f32.mrf.mxu0 }
  0x9f   :  { %v344_v48 = vadd.f32 %v652_v46, %v343_v45 }
  0xa1   :  { %v356_v47 = vpop.f32.mrf.mxu1 }
  0xa2   :  { %v357_v52 = vadd.f32 %v356_v47, %v344_v48 }
  0xa5   :  { %v369_v49 = vpop.f32.mrf.mxu2 }
  0xa6   :  { %v382_v50 = vpop.f32.mrf.mxu3  ;;  %v345_v51 = vpop.f32.mrf.mxu0  ;;  %v370_v54 = vadd.f32 %v369_v49, %v357_v52 }
  0xa8   :  { %v383_v56 = vadd.f32 %v382_v50, %v370_v54 }
  0xa9   :  { %v358_v53 = vpop.f32.mrf.mxu1 }
  0xad   :  { %v371_v55 = vpop.f32.mrf.mxu2 }
  0xae   :  { %v384_v57 = vpop.f32.mrf.mxu3  ;;  %v395_v58 = vpop.f32.mrf.mxu0 }
  0xaf   :  { %v396_v59 = vadd.f32 %v395_v58, %v383_v56 }
  0xb1   :  { %vm399_vm1 = vcmp.ge.f32.partialorder %v396_v59, 0.0  ;;  %v400_v60 = vmul.f32 0.2, %v396_v59 }
  0xb3   :  { %v401_v61 = vsel %vm399_vm1, %v396_v59, %v400_v60 }
  0xb4   :  { %v402_v62 = vpack.c.bf16 %v401_v61, %v401_v61 }
  0xb6   :  { %v404_v63 = vrot.slane %v402_v62, 3  ;;  %v397_v0 = vpop.f32.mrf.mxu0 }
  0xb8   :  { %v408_v1 = vsel %vm405_vm2, %v402_v62, %v404_v63 }
  0xb9   :  { %426 = vst.msk [vmem:[#allocation2] sm:$0x1] %vm425_vm3, %v408_v1 }
  0xc0   :  { %v448_v2 = vld [vmem:[#allocation2] sm:$0x1] }
  0xc1   :  { %449 = vst [vmem:[%s802_s3] sm:$0x1] %v448_v2 }

// kernel: model_forward.13
= control target key start
LH: loop header
LB: loop body
LE: loop exit
PB: predicated region body
PF: predicated region fallthrough
CT: control target
= control target key end

     0   :  { %vm443_vm0 = vcmask 523264   ;;  %s6435_s0 = inlined_call_operand.vmem [shape: bf16[2,64], index: 0, kind: input, shape index: {}]   ;;  %s6436_s1 = inlined_call_operand.vmem [shape: bf16[64,2048], index: 1, kind: input, shape index: {}]   ;;  %s6437_s2 = inlined_call_operand.vmem [shape: f32[1,2048], index: 2, kind: input, shape index: {}]   ;;  %s6438_s3 = inlined_call_operand.vmem [shape: bf16[2048,224], index: 3, kind: input, shape index: {}]   ;;  %s6439_s4 = inlined_call_operand.vmem [shape: f32[1,224], index: 4, kind: input, shape index: {}]   ;;  %s6440_s5 = inlined_call_operand.hbm [shape: f32[2,224], index: 5, kind: output, shape index: {}]  }
   0x1   :  { %v2896_v0 = vld [vmem:[%s6436_s1 + $0x180] sm:$0xf]  ;;  %v4046_v2 = vld [vmem:[%s6436_s1 + $0x184] sm:$0xf]  ;;  %v2904_v5 = vld [vmem:[%s6436_s1 + $0x188] sm:$0xf] }
   0x2   :  { %v4054_v1 = vld [vmem:[%s6436_s1 + $0x1bc] sm:$0xf0]  ;;  %v2898_v4 = vld [vmem:[%s6436_s1 + $0x1c0] sm:$0xf0]  ;;  %v4055_v6 = vld [vmem:[%s6436_s1 + $0x1c4] sm:$0xf0] }
   0x3   :  { %v2897_v3 = vor.u32 %v4054_v1, %v2896_v0  ;;  %v2901_v7 = vor.u32 %v4046_v2, %v2898_v4  ;;  %v2905_v8 = vor.u32 %v4055_v6, %v2904_v5  ;;  %v4047_v9 = vld [vmem:[%s6436_s1 + $0x18c] sm:$0xf]  ;;  %v2832_v11 = vld [vmem:[%s6436_s1 + $0x100] sm:$0xf]  ;;  %v4030_v14 = vld [vmem:[%s6436_s1 + $0x104] sm:$0xf] }
   0x4   :  { %v2906_v10 = vld [vmem:[%s6436_s1 + $0x1c8] sm:$0xf0]  ;;  %v4038_v13 = vld [vmem:[%s6436_s1 + $0x13c] sm:$0xf0]  ;;  %v2834_v15 = vld [vmem:[%s6436_s1 + $0x140] sm:$0xf0] }
   0x5   :  { %451 = vmatpush.bf16.msra.mxu0 %v2897_v3  ;;  %v2909_v12 = vor.u32 %v4047_v9, %v2906_v10  ;;  %464 = vmatpush.bf16.msra.mxu1 %v2901_v7  ;;  %v2833_v16 = vor.u32 %v4038_v13, %v2832_v11  ;;  %v2837_v17 = vor.u32 %v4030_v14, %v2834_v15  ;;  %v2840_v18 = vld [vmem:[%s6436_s1 + $0x108] sm:$0xf]  ;;  %v4031_v20 = vld [vmem:[%s6436_s1 + $0x10c] sm:$0xf]  ;;  %v2768_v23 = vld [vmem:[%s6436_s1 + $0x80] sm:$0xf] }
   0x6   :  { %477 = vmatpush.bf16.msra.mxu2 %v2905_v8  ;;  %v4039_v19 = vld [vmem:[%s6436_s1 + $0x144] sm:$0xf0]  ;;  %v2842_v22 = vld [vmem:[%s6436_s1 + $0x148] sm:$0xf0]  ;;  %v4022_v24 = vld [vmem:[%s6436_s1 + $0xbc] sm:$0xf0] }
   0x7   :  { %490 = vmatpush.bf16.msra.mxu3 %v2909_v12  ;;  %v2841_v21 = vor.u32 %v4039_v19, %v2840_v18  ;;  %v2845_v25 = vor.u32 %v4031_v20, %v2842_v22  ;;  %v4014_v26 = vld [vmem:[%s6436_s1 + $0x84] sm:$0xf]  ;;  %v2776_v28 = vld [vmem:[%s6436_s1 + $0x88] sm:$0xf]  ;;  %v2769_v29 = vor.u32 %v4022_v24, %v2768_v23  ;;  %v4015_v31 = vld [vmem:[%s6436_s1 + $0x8c] sm:$0xf] }
   0x8   :  { %v2770_v27 = vld [vmem:[%s6436_s1 + $0xc0] sm:$0xf0]  ;;  %v4023_v30 = vld [vmem:[%s6436_s1 + $0xc4] sm:$0xf0]  ;;  %v2778_v32 = vld [vmem:[%s6436_s1 + $0xc8] sm:$0xf0] }
   0x9   :  { %452 = vmatpush.bf16.msra.mxu0 %v2833_v16  ;;  %465 = vmatpush.bf16.msra.mxu1 %v2837_v17  ;;  %v2773_v33 = vor.u32 %v4014_v26, %v2770_v27  ;;  %v2777_v34 = vor.u32 %v4023_v30, %v2776_v28  ;;  %v2704_v35 = vld [vmem:[%s6436_s1] sm:$0xf]  ;;  %v3998_v37 = vld [vmem:[%s6436_s1 + $0x4] sm:$0xf]  ;;  %v2781_v38 = vor.u32 %v4015_v31, %v2778_v32  ;;  %v2712_v40 = vld [vmem:[%s6436_s1 + $0x8] sm:$0xf] }
   0xa   :  { %478 = vmatpush.bf16.msra.mxu2 %v2841_v21  ;;  %v4006_v36 = vld [vmem:[%s6436_s1 + $0x3c] sm:$0xf0]  ;;  %v2706_v39 = vld [vmem:[%s6436_s1 + $0x40] sm:$0xf0]  ;;  %v4007_v41 = vld [vmem:[%s6436_s1 + $0x44] sm:$0xf0] }
   0xb   :  { %491 = vmatpush.bf16.msra.mxu3 %v2845_v25  ;;  %v3999_v42 = vld [vmem:[%s6436_s1 + $0xc] sm:$0xf]  ;;  %v2705_v44 = vor.u32 %v4006_v36, %v2704_v35  ;;  %v2912_v45 = vld [vmem:[%s6436_s1 + $0x190] sm:$0xf]  ;;  %v2709_v47 = vor.u32 %v3998_v37, %v2706_v39  ;;  %v2713_v48 = vor.u32 %v4007_v41, %v2712_v40  ;;  %v2920_v49 = vld [vmem:[%s6436_s1 + $0x198] sm:$0xf] }
   0xc   :  { %v2714_v43 = vld [vmem:[%s6436_s1 + $0x48] sm:$0xf0]  ;;  %v4056_v46 = vld [vmem:[%s6436_s1 + $0x1cc] sm:$0xf0]  ;;  %v4057_v50 = vld [vmem:[%s6436_s1 + $0x1d4] sm:$0xf0] }
   0xd   :  { %453 = vmatpush.bf16.msra.mxu0 %v2769_v29  ;;  %466 = vmatpush.bf16.msra.mxu1 %v2773_v33  ;;  %v2717_v51 = vor.u32 %v3999_v42, %v2714_v43  ;;  %v4487_v52 = vld [vmem:[%s6435_s0] sm:$0x1]  ;;  %v2913_v53 = vor.u32 %v4056_v46, %v2912_v45  ;;  %v4048_v54 = vld [vmem:[%s6436_s1 + $0x194] sm:$0xf]  ;;  %v4049_v56 = vld [vmem:[%s6436_s1 + $0x19c] sm:$0xf]  ;;  %v2921_v57 = vor.u32 %v4057_v50, %v2920_v49 }
   0xe   :  { %479 = vmatpush.bf16.msra.mxu2 %v2777_v34  ;;  %v2914_v55 = vld [vmem:[%s6436_s1 + $0x1d0] sm:$0xf0]  ;;  %v2922_v58 = vld [vmem:[%s6436_s1 + $0x1d8] sm:$0xf0]  ;;  %v2848_v59 = vld [vmem:[%s6436_s1 + $0x110] sm:$0xf] }
   0xf   :  { %492 = vmatpush.bf16.msra.mxu3 %v2781_v38  ;;  %v4040_v60 = vld [vmem:[%s6436_s1 + $0x14c] sm:$0xf0]  ;;  %v2856_v61 = vld [vmem:[%s6436_s1 + $0x118] sm:$0xf]  ;;  %v2917_v63 = vor.u32 %v4048_v54, %v2914_v55  ;;  %v2925_v0 = vor.u32 %v4049_v56, %v2922_v58  ;;  %v4032_v2 = vld [vmem:[%s6436_s1 + $0x114] sm:$0xf] }
  0x10   :  { %v4041_v62 = vld [vmem:[%s6436_s1 + $0x154] sm:$0xf0]  ;;  %v2849_v1 = vor.u32 %v4040_v60, %v2848_v59  ;;  %v2850_v3 = vld [vmem:[%s6436_s1 + $0x150] sm:$0xf0]  ;;  %v4033_v4 = vld [vmem:[%s6436_s1 + $0x11c] sm:$0xf] }
  0x11   :  { %454 = vmatpush.bf16.msra.mxu0 %v2705_v44  ;;  %467 = vmatpush.bf16.msra.mxu1 %v2709_v47  ;;  %v2857_v5 = vor.u32 %v4041_v62, %v2856_v61  ;;  %v2858_v6 = vld [vmem:[%s6436_s1 + $0x158] sm:$0xf0]  ;;  %v2784_v7 = vld [vmem:[%s6436_s1 + $0x90] sm:$0xf]  ;;  %v2792_v9 = vld [vmem:[%s6436_s1 + $0x98] sm:$0xf]  ;;  %v2853_v11 = vor.u32 %v4032_v2, %v2850_v3 }
  0x12   :  { %480 = vmatpush.bf16.msra.mxu2 %v2713_v48  ;;  %v4024_v8 = vld [vmem:[%s6436_s1 + $0xcc] sm:$0xf0]  ;;  %v4025_v10 = vld [vmem:[%s6436_s1 + $0xd4] sm:$0xf0]  ;;  %v4016_v12 = vld [vmem:[%s6436_s1 + $0x94] sm:$0xf]  ;;  %v2861_v13 = vor.u32 %v4033_v4, %v2858_v6 }
  0x13   :  { %493 = vmatpush.bf16.msra.mxu3 %v2717_v51  ;;  %v2785_v14 = vor.u32 %v4024_v8, %v2784_v7  ;;  %v2786_v15 = vld [vmem:[%s6436_s1 + $0xd0] sm:$0xf0]  ;;  %v4017_v16 = vld [vmem:[%s6436_s1 + $0x9c] sm:$0xf]  ;;  %v2793_v18 = vor.u32 %v4025_v10, %v2792_v9  ;;  %v2720_v19 = vld [vmem:[%s6436_s1 + $0x10] sm:$0xf] }
  0x14   :  { %2958 = vmatmul.msk.bf16.vlgmr.msra.gmra.mxu0 %vm443_vm0, %v4487_v52  ;;  %2959 = vmatmul.msk.bf16.vlgmr.msra.gmra.mxu1 %vm443_vm0, %v4487_v52  ;;  %v2794_v17 = vld [vmem:[%s6436_s1 + $0xd8] sm:$0xf0]  ;;  %v4008_v20 = vld [vmem:[%s6436_s1 + $0x4c] sm:$0xf0]  ;;  %v2728_v21 = vld [vmem:[%s6436_s1 + $0x18] sm:$0xf]  ;;  %v2789_v25 = vor.u32 %v4016_v12, %v2786_v15 }
  0x15   :  { %503 = vmatpush.bf16.msrb.mxu0 %v2913_v53  ;;  %2960 = vmatmul.msk.bf16.vlgmr.msra.gmra.mxu2 %vm443_vm0, %v4487_v52  ;;  %v4009_v22 = vld [vmem:[%s6436_s1 + $0x54] sm:$0xf0]  ;;  %v2928_v23 = vld [vmem:[%s6436_s1 + $0x1a0] sm:$0xf]  ;;  %v2936_v26 = vld [vmem:[%s6436_s1 + $0x1a8] sm:$0xf]  ;;  %v2797_v28 = vor.u32 %v4017_v16, %v2794_v17  ;;  %v2721_v29 = vor.u32 %v4008_v20, %v2720_v19 }
  0x16   :  { %529 = vmatpush.bf16.msrb.mxu2 %v2921_v57  ;;  %2961 = vmatmul.msk.bf16.vlgmr.msra.gmra.mxu3 %vm443_vm0, %v4487_v52  ;;  %v4058_v24 = vld [vmem:[%s6436_s1 + $0x1dc] sm:$0xf0]  ;;  %v4059_v27 = vld [vmem:[%s6436_s1 + $0x1e4] sm:$0xf0]  ;;  %v4000_v30 = vld [vmem:[%s6436_s1 + $0x14] sm:$0xf]  ;;  %v2729_v33 = vor.u32 %v4009_v22, %v2728_v21 }
  0x17   :  { %516 = vmatpush.bf16.msrb.mxu1 %v2917_v63  ;;  %542 = vmatpush.bf16.msrb.mxu3 %v2925_v0  ;;  %v2722_v31 = vld [vmem:[%s6436_s1 + $0x50] sm:$0xf0]  ;;  %v4001_v32 = vld [vmem:[%s6436_s1 + $0x1c] sm:$0xf]  ;;  %v2929_v35 = vor.u32 %v4058_v24, %v2928_v23  ;;  %v4050_v36 = vld [vmem:[%s6436_s1 + $0x1a4] sm:$0xf]  ;;  %v2937_v38 = vor.u32 %v4059_v27, %v2936_v26 }
  0x18   :  { %v2730_v34 = vld [vmem:[%s6436_s1 + $0x58] sm:$0xf0]  ;;  %v2930_v37 = vld [vmem:[%s6436_s1 + $0x1e0] sm:$0xf0]  ;;  %v4051_v39 = vld [vmem:[%s6436_s1 + $0x1ac] sm:$0xf]  ;;  %v2725_v41 = vor.u32 %v4000_v30, %v2722_v31 }
  0x19   :  { %504 = vmatpush.bf16.msrb.mxu0 %v2849_v1  ;;  %v2938_v40 = vld [vmem:[%s6436_s1 + $0x1e8] sm:$0xf0]  ;;  %v2733_v42 = vor.u32 %v4001_v32, %v2730_v34  ;;  %v2933_v43 = vor.u32 %v4050_v36, %v2930_v37  ;;  %v2864_v44 = vld [vmem:[%s6436_s1 + $0x120] sm:$0xf]  ;;  %v2872_v46 = vld [vmem:[%s6436_s1 + $0x128] sm:$0xf] }
  0x1a   :  { %530 = vmatpush.bf16.msrb.mxu2 %v2857_v5  ;;  %v4042_v45 = vld [vmem:[%s6436_s1 + $0x15c] sm:$0xf0]  ;;  %v2941_v47 = vor.u32 %v4051_v39, %v2938_v40  ;;  %v4043_v48 = vld [vmem:[%s6436_s1 + $0x164] sm:$0xf0]  ;;  %v4034_v49 = vld [vmem:[%s6436_s1 + $0x124] sm:$0xf] }
  0x1b   :  { %517 = vmatpush.bf16.msrb.mxu1 %v2853_v11  ;;  %543 = vmatpush.bf16.msrb.mxu3 %v2861_v13  ;;  %v2866_v50 = vld [vmem:[%s6436_s1 + $0x160] sm:$0xf0]  ;;  %v4035_v51 = vld [vmem:[%s6436_s1 + $0x12c] sm:$0xf]  ;;  %v2865_v54 = vor.u32 %v4042_v45, %v2864_v44  ;;  %v2873_v55 = vor.u32 %v4043_v48, %v2872_v46  ;;  %v2800_v57 = vld [vmem:[%s6436_s1 + $0xa0] sm:$0xf] }
  0x1c   :  { %v2874_v53 = vld [vmem:[%s6436_s1 + $0x168] sm:$0xf0]  ;;  %v2869_v56 = vor.u32 %v4034_v49, %v2866_v50  ;;  %v4026_v58 = vld [vmem:[%s6436_s1 + $0xdc] sm:$0xf0]  ;;  %v2808_v59 = vld [vmem:[%s6436_s1 + $0xa8] sm:$0xf] }
  0x1d   :  { %505 = vmatpush.bf16.msrb.mxu0 %v2785_v14  ;;  %v2877_v60 = vor.u32 %v4035_v51, %v2874_v53  ;;  %v4027_v61 = vld [vmem:[%s6436_s1 + $0xe4] sm:$0xf0]  ;;  %v4018_v62 = vld [vmem:[%s6436_s1 + $0xa4] sm:$0xf]  ;;  %v4019_v0 = vld [vmem:[%s6436_s1 + $0xac] sm:$0xf]  ;;  %v2801_v2 = vor.u32 %v4026_v58, %v2800_v57 }
  0x1e   :  { %531 = vmatpush.bf16.msrb.mxu2 %v2793_v18  ;;  %v2802_v63 = vld [vmem:[%s6436_s1 + $0xe0] sm:$0xf0]  ;;  %v2810_v1 = vld [vmem:[%s6436_s1 + $0xe8] sm:$0xf0]  ;;  %v2736_v3 = vld [vmem:[%s6436_s1 + $0x20] sm:$0xf]  ;;  %v2809_v5 = vor.u32 %v4027_v61, %v2808_v59 }
  0x1f   :  { %518 = vmatpush.bf16.msrb.mxu1 %v2789_v25  ;;  %544 = vmatpush.bf16.msrb.mxu3 %v2797_v28  ;;  %v4010_v4 = vld [vmem:[%s6436_s1 + $0x5c] sm:$0xf0]  ;;  %v2805_v6 = vor.u32 %v4018_v62, %v2802_v63  ;;  %v2744_v7 = vld [vmem:[%s6436_s1 + $0x28] sm:$0xf]  ;;  %v4002_v9 = vld [vmem:[%s6436_s1 + $0x24] sm:$0xf]  ;;  %v2813_v10 = vor.u32 %v4019_v0, %v2810_v1 }
  0x20   :  { %v4011_v8 = vld [vmem:[%s6436_s1 + $0x64] sm:$0xf0]  ;;  %v2738_v11 = vld [vmem:[%s6436_s1 + $0x60] sm:$0xf0]  ;;  %v4003_v12 = vld [vmem:[%s6436_s1 + $0x2c] sm:$0xf]  ;;  %v2737_v17 = vor.u32 %v4010_v4, %v2736_v3 }
  0x21   :  { %506 = vmatpush.bf16.msrb.mxu0 %v2721_v29  ;;  %v2746_v13 = vld [vmem:[%s6436_s1 + $0x68] sm:$0xf0]  ;;  %v2944_v14 = vld [vmem:[%s6436_s1 + $0x1b0] sm:$0xf]  ;;  %v2952_v16 = vld [vmem:[%s6436_s1 + $0x1b8] sm:$0xf]  ;;  %v2745_v21 = vor.u32 %v4011_v8, %v2744_v7  ;;  %v2741_v22 = vor.u32 %v4002_v9, %v2738_v11 }
  0x22   :  { %532 = vmatpush.bf16.msrb.mxu2 %v2729_v33  ;;  %v4060_v15 = vld [vmem:[%s6436_s1 + $0x1ec] sm:$0xf0]  ;;  %v4061_v18 = vld [vmem:[%s6436_s1 + $0x1f4] sm:$0xf0]  ;;  %v4052_v19 = vld [vmem:[%s6436_s1 + $0x1b4] sm:$0xf]  ;;  %v2749_v25 = vor.u32 %v4003_v12, %v2746_v13 }
  0x23   :  { %519 = vmatpush.bf16.msrb.mxu1 %v2725_v41  ;;  %545 = vmatpush.bf16.msrb.mxu3 %v2733_v42  ;;  %v2946_v20 = vld [vmem:[%s6436_s1 + $0x1f0] sm:$0xf0]  ;;  %v4053_v23 = vld [vmem:[%s6436_s1 + $0x1bc] sm:$0xf]  ;;  %v2945_v26 = vor.u32 %v4060_v15, %v2944_v14  ;;  %v2953_v27 = vor.u32 %v4061_v18, %v2952_v16  ;;  %v2880_v30 = vld [vmem:[%s6436_s1 + $0x130] sm:$0xf] }
  0x24   :  { %2962 = vmatmul.msk.bf16.vlgmr.msrb.gmra.mxu0 %vm443_vm0, %v4487_v52  ;;  %v2954_v24 = vld [vmem:[%s6436_s1 + $0x1f8] sm:$0xf0]  ;;  %v2949_v28 = vor.u32 %v4052_v19, %v2946_v20  ;;  %v4044_v31 = vld [vmem:[%s6436_s1 + $0x16c] sm:$0xf0]  ;;  %v2888_v32 = vld [vmem:[%s6436_s1 + $0x138] sm:$0xf] }
  0x25   :  { %555 = vmatpush.bf16.msra.mxu0 %v2929_v35  ;;  %2964 = vmatmul.msk.bf16.vlgmr.msrb.gmra.mxu2 %vm443_vm0, %v4487_v52  ;;  %v2957_v29 = vor.u32 %v4053_v23, %v2954_v24  ;;  %v4045_v33 = vld [vmem:[%s6436_s1 + $0x174] sm:$0xf0]  ;;  %v4036_v34 = vld [vmem:[%s6436_s1 + $0x134] sm:$0xf]  ;;  %v4037_v36 = vld [vmem:[%s6436_s1 + $0x13c] sm:$0xf] }
  0x26   :  { %581 = vmatpush.bf16.msra.mxu2 %v2937_v38  ;;  %2963 = vmatmul.msk.bf16.vlgmr.msrb.gmra.mxu1 %vm443_vm0, %v4487_v52  ;;  %v2882_v35 = vld [vmem:[%s6436_s1 + $0x170] sm:$0xf0]  ;;  %v2890_v37 = vld [vmem:[%s6436_s1 + $0x178] sm:$0xf0]  ;;  %v2881_v38 = vor.u32 %v4044_v31, %v2880_v30  ;;  %v2889_v39 = vor.u32 %v4045_v33, %v2888_v32  ;;  %v2816_v41 = vld [vmem:[%s6436_s1 + $0xb0] sm:$0xf] }
  0x27   :  { %568 = vmatpush.bf16.msra.mxu1 %v2933_v43  ;;  %594 = vmatpush.bf16.msra.mxu3 %v2941_v47  ;;  %v2885_v40 = vor.u32 %v4036_v34, %v2882_v35  ;;  %v4028_v42 = vld [vmem:[%s6436_s1 + $0xec] sm:$0xf0]  ;;  %v2824_v43 = vld [vmem:[%s6436_s1 + $0xb8] sm:$0xf]  ;;  %v2893_v44 = vor.u32 %v4037_v36, %v2890_v37  ;;  %v4020_v46 = vld [vmem:[%s6436_s1 + $0xb4] sm:$0xf] }
  0x28   :  { %2965 = vmatmul.msk.bf16.vlgmr.msrb.gmra.mxu3 %vm443_vm0, %v4487_v52  ;;  %v4029_v45 = vld [vmem:[%s6436_s1 + $0xf4] sm:$0xf0]  ;;  %v2818_v47 = vld [vmem:[%s6436_s1 + $0xf0] sm:$0xf0]  ;;  %v4021_v48 = vld [vmem:[%s6436_s1 + $0xbc] sm:$0xf]  ;;  %v2817_v50 = vor.u32 %v4028_v42, %v2816_v41 }
  0x29   :  { %556 = vmatpush.bf16.msra.mxu0 %v2865_v54  ;;  %v2826_v49 = vld [vmem:[%s6436_s1 + $0xf8] sm:$0xf0]  ;;  %v2752_v51 = vld [vmem:[%s6436_s1 + $0x30] sm:$0xf]  ;;  %v2825_v54 = vor.u32 %v4029_v45, %v2824_v43  ;;  %v4013_v57 = vld [vmem:[%s6436_s1 + $0x74] sm:$0xf0] }
  0x2a   :  { %582 = vmatpush.bf16.msra.mxu2 %v2873_v55  ;;  %v4012_v53 = vld [vmem:[%s6436_s1 + $0x6c] sm:$0xf0]  ;;  %v2821_v55 = vor.u32 %v4020_v46, %v2818_v47  ;;  %v4004_v58 = vld [vmem:[%s6436_s1 + $0x34] sm:$0xf]  ;;  %v2829_v59 = vor.u32 %v4021_v48, %v2826_v49  ;;  %v4005_v61 = vld [vmem:[%s6436_s1 + $0x3c] sm:$0xf] }
  0x2b   :  { %569 = vmatpush.bf16.msra.mxu1 %v2869_v56  ;;  %595 = vmatpush.bf16.msra.mxu3 %v2877_v60  ;;  %v2760_v56 = vld [vmem:[%s6436_s1 + $0x38] sm:$0xf]  ;;  %v2754_v60 = vld [vmem:[%s6436_s1 + $0x70] sm:$0xf0]  ;;  %v2762_v62 = vld [vmem:[%s6436_s1 + $0x78] sm:$0xf0] }
  0x2c   :  { %v3032_v63 = vld [vmem:[%s6438_s3 + $0x70] sm:$0xf]  ;;  %v4077_v0 = vld [vmem:[%s6438_s3 + $0x74] sm:$0xf0]  ;;  %v2757_v7 = vor.u32 %v4004_v58, %v2754_v60  ;;  %v3024_v15 = vld [vmem:[%s6438_s3 + $0x60] sm:$0xf] }
  0x2d   :  { %557 = vmatpush.bf16.msra.mxu0 %v2801_v2  ;;  %v3096_v1 = vld [vmem:[%s6438_s3 + $0xf0] sm:$0xf]  ;;  %v2753_v2 = vor.u32 %v4012_v53, %v2752_v51  ;;  %v4093_v3 = vld [vmem:[%s6438_s3 + $0xf4] sm:$0xf0]  ;;  %v3033_v11 = vor.u32 %v4077_v0, %v3032_v63  ;;  %v4075_v16 = vld [vmem:[%s6438_s3 + $0x64] sm:$0xf0] }
  0x2e   :  { %583 = vmatpush.bf16.msra.mxu2 %v2809_v5  ;;  %v3160_v4 = vld [vmem:[%s6438_s3 + $0x170] sm:$0xf]  ;;  %v4109_v5 = vld [vmem:[%s6438_s3 + $0x174] sm:$0xf0]  ;;  %v3097_v12 = vor.u32 %v4093_v3, %v3096_v1  ;;  %v4091_v18 = vld [vmem:[%s6438_s3 + $0xe4] sm:$0xf0]  ;;  %v3025_v23 = vor.u32 %v4075_v16, %v3024_v15 }
  0x2f   :  { %570 = vmatpush.bf16.msra.mxu1 %v2805_v6  ;;  %596 = vmatpush.bf16.msra.mxu3 %v2813_v10  ;;  %v2761_v6 = vor.u32 %v4013_v57, %v2760_v56  ;;  %v3224_v8 = vld [vmem:[%s6438_s3 + $0x1f0] sm:$0xf]  ;;  %v4125_v9 = vld [vmem:[%s6438_s3 + $0x1f4] sm:$0xf0]  ;;  %v2765_v10 = vor.u32 %v4005_v61, %v2762_v62  ;;  %v3161_v13 = vor.u32 %v4109_v5, %v3160_v4  ;;  %v3152_v19 = vld [vmem:[%s6438_s3 + $0x160] sm:$0xf] }
  0x30   :  { %v3225_v14 = vor.u32 %v4125_v9, %v3224_v8  ;;  %v4107_v20 = vld [vmem:[%s6438_s3 + $0x164] sm:$0xf0]  ;;  %v3144_v31 = vld [vmem:[%s6438_s3 + $0x150] sm:$0xf]  ;;  %v4105_v32 = vld [vmem:[%s6438_s3 + $0x154] sm:$0xf0] }
  0x31   :  { %558 = vmatpush.bf16.msra.mxu0 %v2737_v17  ;;  %v3088_v17 = vld [vmem:[%s6438_s3 + $0xe0] sm:$0xf]  ;;  %v3208_v33 = vld [vmem:[%s6438_s3 + $0x1d0] sm:$0xf]  ;;  %v4121_v34 = vld [vmem:[%s6438_s3 + $0x1d4] sm:$0xf0] }
  0x32   :  { %584 = vmatpush.bf16.msra.mxu2 %v2745_v21  ;;  %v3216_v21 = vld [vmem:[%s6438_s3 + $0x1e0] sm:$0xf]  ;;  %v3089_v24 = vor.u32 %v4091_v18, %v3088_v17  ;;  %v3209_v41 = vor.u32 %v4121_v34, %v3208_v33  ;;  %v4103_v43 = vld [vmem:[%s6438_s3 + $0x144] sm:$0xf0] }
  0x33   :  { %571 = vmatpush.bf16.msra.mxu1 %v2741_v22  ;;  %597 = vmatpush.bf16.msra.mxu3 %v2749_v25  ;;  %v4123_v22 = vld [vmem:[%s6438_s3 + $0x1e4] sm:$0xf0]  ;;  %v3016_v25 = vld [vmem:[%s6438_s3 + $0x50] sm:$0xf]  ;;  %v3008_v37 = vld [vmem:[%s6438_s3 + $0x40] sm:$0xf] }
  0x34   :  { %2966 = vmatmul.msk.bf16.vlgmr.msra.gmra.mxu0 %vm443_vm0, %v4487_v52  ;;  %v3217_v30 = vor.u32 %v4123_v22, %v3216_v21  ;;  %v3136_v42 = vld [vmem:[%s6438_s3 + $0x140] sm:$0xf]  ;;  %v4119_v45 = vld [vmem:[%s6438_s3 + $0x1c4] sm:$0xf0] }
  0x35   :  { %607 = vmatpush.bf16.msrb.mxu0 %v2945_v26  ;;  %2968 = vmatmul.msk.bf16.vlgmr.msra.gmra.mxu2 %vm443_vm0, %v4487_v52  ;;  %v4073_v26 = vld [vmem:[%s6438_s3 + $0x54] sm:$0xf0] }
  0x36   :  { %633 = vmatpush.bf16.msrb.mxu2 %v2953_v27  ;;  %2967 = vmatmul.msk.bf16.vlgmr.msra.gmra.mxu1 %vm443_vm0, %v4487_v52  ;;  %v3080_v27 = vld [vmem:[%s6438_s3 + $0xd0] sm:$0xf]  ;;  %v3017_v35 = vor.u32 %v4073_v26, %v3016_v25 }
  0x37   :  { %620 = vmatpush.bf16.msrb.mxu1 %v2949_v28  ;;  %646 = vmatpush.bf16.msrb.mxu3 %v2957_v29  ;;  %v3153_v28 = vor.u32 %v4107_v20, %v3152_v19  ;;  %v4089_v29 = vld [vmem:[%s6438_s3 + $0xd4] sm:$0xf0] }
  0x38   :  { %2969 = vmatmul.msk.bf16.vlgmr.msra.gmra.mxu3 %vm443_vm0, %v4487_v52  ;;  %v3081_v36 = vor.u32 %v4089_v29, %v3080_v27 }
  0x39   :  { %608 = vmatpush.bf16.msrb.mxu0 %v2881_v38  ;;  %v4071_v38 = vld [vmem:[%s6438_s3 + $0x44] sm:$0xf0] }
  0x3a   :  { %634 = vmatpush.bf16.msrb.mxu2 %v2889_v39  ;;  %v3072_v39 = vld [vmem:[%s6438_s3 + $0xc0] sm:$0xf]  ;;  %v3009_v46 = vor.u32 %v4071_v38, %v3008_v37 }
  0x3b   :  { %621 = vmatpush.bf16.msrb.mxu1 %v2885_v40  ;;  %647 = vmatpush.bf16.msrb.mxu3 %v2893_v44  ;;  %v3145_v40 = vor.u32 %v4105_v32, %v3144_v31  ;;  %v3200_v44 = vld [vmem:[%s6438_s3 + $0x1c0] sm:$0xf] }
  0x3d   :  { %609 = vmatpush.bf16.msrb.mxu0 %v2817_v50 }
  0x3e   :  { %635 = vmatpush.bf16.msrb.mxu2 %v2825_v54 }
  0x3f   :  { %622 = vmatpush.bf16.msrb.mxu1 %v2821_v55  ;;  %648 = vmatpush.bf16.msrb.mxu3 %v2829_v59 }
  0x41   :  { %610 = vmatpush.bf16.msrb.mxu0 %v2753_v2 }
  0x42   :  { %636 = vmatpush.bf16.msrb.mxu2 %v2761_v6 }
  0x43   :  { %623 = vmatpush.bf16.msrb.mxu1 %v2757_v7  ;;  %649 = vmatpush.bf16.msrb.mxu3 %v2765_v10 }
  0x44   :  { %2970 = vmatmul.msk.bf16.vlgmr.msrb.gmra.mxu0 %vm443_vm0, %v4487_v52 }
  0x45   :  { %2261 = vmatpush.bf16.msra.mxu0 %v3033_v11  ;;  %2972 = vmatmul.msk.bf16.vlgmr.msrb.gmra.mxu2 %vm443_vm0, %v4487_v52 }
  0x46   :  { %2287 = vmatpush.bf16.msra.mxu2 %v3161_v13  ;;  %2971 = vmatmul.msk.bf16.vlgmr.msrb.gmra.mxu1 %vm443_vm0, %v4487_v52 }
  0x47   :  { %2274 = vmatpush.bf16.msra.mxu1 %v3097_v12  ;;  %2300 = vmatpush.bf16.msra.mxu3 %v3225_v14 }
  0x48   :  { %2973 = vmatmul.msk.bf16.vlgmr.msrb.gmra.mxu3 %vm443_vm0, %v4487_v52  ;;  %v4087_v52 = vld [vmem:[%s6438_s3 + $0xc4] sm:$0xf0] }
  0x49   :  { %2262 = vmatpush.bf16.msra.mxu0 %v3025_v23 }
  0x4a   :  { %2288 = vmatpush.bf16.msra.mxu2 %v3153_v28 }
  0x4b   :  { %2275 = vmatpush.bf16.msra.mxu1 %v3089_v24  ;;  %2301 = vmatpush.bf16.msra.mxu3 %v3217_v30 }
  0x4d   :  { %2263 = vmatpush.bf16.msra.mxu0 %v3017_v35 }
  0x4e   :  { %10 = vsyncpa [#allocation3], 0  ;;  %v3073_v47 = vor.u32 %v4087_v52, %v3072_v39  ;;  %2289 = vmatpush.bf16.msra.mxu2 %v3145_v40  ;;  %v3000_v48 = vld [vmem:[%s6438_s3 + $0x30] sm:$0xf]  ;;  %v4069_v49 = vld [vmem:[%s6438_s3 + $0x34] sm:$0xf0]  ;;  %v3137_v51 = vor.u32 %v4103_v43, %v3136_v42  ;;  %v3201_v54 = vor.u32 %v4119_v45, %v3200_v44 }
  0x4f   :  { %2276 = vmatpush.bf16.msra.mxu1 %v3081_v36  ;;  %v3064_v50 = vld [vmem:[%s6438_s3 + $0xb0] sm:$0xf]  ;;  %2302 = vmatpush.bf16.msra.mxu3 %v3209_v41  ;;  %v4085_v53 = vld [vmem:[%s6438_s3 + $0xb4] sm:$0xf0]  ;;  %v3001_v59 = vor.u32 %v4069_v49, %v3000_v48  ;;  %v2992_v61 = vld [vmem:[%s6438_s3 + $0x20] sm:$0xf] }
  0x50   :  { %v3128_v55 = vld [vmem:[%s6438_s3 + $0x130] sm:$0xf]  ;;  %v4101_v56 = vld [vmem:[%s6438_s3 + $0x134] sm:$0xf0]  ;;  %v3065_v60 = vor.u32 %v4085_v53, %v3064_v50  ;;  %v4067_v62 = vld [vmem:[%s6438_s3 + $0x24] sm:$0xf0] }
  0x51   :  { %v3192_v57 = vld [vmem:[%s6438_s3 + $0x1b0] sm:$0xf]  ;;  %v4117_v58 = vld [vmem:[%s6438_s3 + $0x1b4] sm:$0xf0]  ;;  %2264 = vmatpush.bf16.msra.mxu0 %v3009_v46  ;;  %v3056_v63 = vld [vmem:[%s6438_s3 + $0xa0] sm:$0xf]  ;;  %v3129_v0 = vor.u32 %v4101_v56, %v3128_v55  ;;  %v2993_v7 = vor.u32 %v4067_v62, %v2992_v61 }
  0x52   :  { %2290 = vmatpush.bf16.msra.mxu2 %v3137_v51  ;;  %v4083_v1 = vld [vmem:[%s6438_s3 + $0xa4] sm:$0xf0]  ;;  %v3193_v2 = vor.u32 %v4117_v58, %v3192_v57  ;;  %v3120_v3 = vld [vmem:[%s6438_s3 + $0x120] sm:$0xf]  ;;  %v2984_v9 = vld [vmem:[%s6438_s3 + $0x10] sm:$0xf] }
  0x53   :  { %2277 = vmatpush.bf16.msra.mxu1 %v3073_v47  ;;  %2303 = vmatpush.bf16.msra.mxu3 %v3201_v54  ;;  %v4099_v4 = vld [vmem:[%s6438_s3 + $0x124] sm:$0xf0]  ;;  %v3184_v5 = vld [vmem:[%s6438_s3 + $0x1a0] sm:$0xf]  ;;  %v3057_v8 = vor.u32 %v4083_v1, %v3056_v63  ;;  %v4065_v10 = vld [vmem:[%s6438_s3 + $0x14] sm:$0xf0] }
  0x54   :  { %v4115_v6 = vld [vmem:[%s6438_s3 + $0x1a4] sm:$0xf0]  ;;  %v3048_v11 = vld [vmem:[%s6438_s3 + $0x90] sm:$0xf]  ;;  %v3121_v12 = vor.u32 %v4099_v4, %v3120_v3  ;;  %v4081_v13 = vld [vmem:[%s6438_s3 + $0x94] sm:$0xf0]  ;;  %v2985_v19 = vor.u32 %v4065_v10, %v2984_v9 }
  0x55   :  { %2265 = vmatpush.bf16.msra.mxu0 %v3001_v59  ;;  %v3185_v14 = vor.u32 %v4115_v6, %v3184_v5  ;;  %v3112_v15 = vld [vmem:[%s6438_s3 + $0x110] sm:$0xf]  ;;  %v4097_v16 = vld [vmem:[%s6438_s3 + $0x114] sm:$0xf0]  ;;  %v2976_v20 = vld [vmem:[%s6438_s3] sm:$0xf]  ;;  %v3049_v22 = vor.u32 %v4081_v13, %v3048_v11 }
  0x56   :  { %2291 = vmatpush.bf16.msra.mxu2 %v3129_v0  ;;  %v3176_v17 = vld [vmem:[%s6438_s3 + $0x190] sm:$0xf]  ;;  %v4113_v18 = vld [vmem:[%s6438_s3 + $0x194] sm:$0xf0]  ;;  %v4063_v21 = vld [vmem:[%s6438_s3 + $0x4] sm:$0xf0]  ;;  %v3113_v26 = vor.u32 %v4097_v16, %v3112_v15 }
  0x57   :  { %2278 = vmatpush.bf16.msra.mxu1 %v3065_v60  ;;  %2304 = vmatpush.bf16.msra.mxu3 %v3193_v2  ;;  %v3040_v23 = vld [vmem:[%s6438_s3 + $0x80] sm:$0xf]  ;;  %v4079_v24 = vld [vmem:[%s6438_s3 + $0x84] sm:$0xf0]  ;;  %v3288_v25 = vld [vmem:[%s6438_s3 + $0x270] sm:$0xf]  ;;  %v3177_v30 = vor.u32 %v4113_v18, %v3176_v17  ;;  %v2977_v34 = vor.u32 %v4063_v21, %v2976_v20 }
  0x58   :  { %v4141_v27 = vld [vmem:[%s6438_s3 + $0x274] sm:$0xf0]  ;;  %v3352_v28 = vld [vmem:[%s6438_s3 + $0x2f0] sm:$0xf]  ;;  %v3104_v31 = vld [vmem:[%s6438_s3 + $0x100] sm:$0xf]  ;;  %v3041_v38 = vor.u32 %v4079_v24, %v3040_v23 }
  0x59   :  { %2266 = vmatpush.bf16.msra.mxu0 %v2993_v7  ;;  %v4157_v29 = vld [vmem:[%s6438_s3 + $0x2f4] sm:$0xf0]  ;;  %v4095_v32 = vld [vmem:[%s6438_s3 + $0x104] sm:$0xf0]  ;;  %v3168_v33 = vld [vmem:[%s6438_s3 + $0x180] sm:$0xf]  ;;  %v3289_v39 = vor.u32 %v4141_v27, %v3288_v25 }
  0x5a   :  { %2292 = vmatpush.bf16.msra.mxu2 %v3121_v12  ;;  %v4111_v35 = vld [vmem:[%s6438_s3 + $0x184] sm:$0xf0]  ;;  %v3416_v36 = vld [vmem:[%s6438_s3 + $0x370] sm:$0xf]  ;;  %v4173_v37 = vld [vmem:[%s6438_s3 + $0x374] sm:$0xf0]  ;;  %v3353_v41 = vor.u32 %v4157_v29, %v3352_v28  ;;  %v3105_v44 = vor.u32 %v4095_v32, %v3104_v31 }
  0x5b   :  { %2279 = vmatpush.bf16.msra.mxu1 %v3057_v8  ;;  %2305 = vmatpush.bf16.msra.mxu3 %v3185_v14  ;;  %v3480_v40 = vld [vmem:[%s6438_s3 + $0x3f0] sm:$0xf]  ;;  %v4189_v52 = vld [vmem:[%s6438_s3 + $0x3f4] sm:$0xf0]  ;;  %v3280_v42 = vld [vmem:[%s6438_s3 + $0x260] sm:$0xf]  ;;  %v3169_v47 = vor.u32 %v4111_v35, %v3168_v33  ;;  %v3417_v48 = vor.u32 %v4173_v37, %v3416_v36 }
  0x5c   :  { %v4139_v43 = vld [vmem:[%s6438_s3 + $0x264] sm:$0xf0]  ;;  %v3344_v45 = vld [vmem:[%s6438_s3 + $0x2e0] sm:$0xf]  ;;  %v3481_v49 = vor.u32 %v4189_v52, %v3480_v40  ;;  %v3272_v57 = vld [vmem:[%s6438_s3 + $0x250] sm:$0xf] }
  0x5d   :  { %2267 = vmatpush.bf16.msra.mxu0 %v2985_v19  ;;  %v4155_v46 = vld [vmem:[%s6438_s3 + $0x2e4] sm:$0xf0]  ;;  %v3408_v50 = vld [vmem:[%s6438_s3 + $0x360] sm:$0xf]  ;;  %v3281_v53 = vor.u32 %v4139_v43, %v3280_v42  ;;  %v4137_v58 = vld [vmem:[%s6438_s3 + $0x254] sm:$0xf0] }
  0x5e   :  { %2293 = vmatpush.bf16.msra.mxu2 %v3113_v26  ;;  %v4171_v51 = vld [vmem:[%s6438_s3 + $0x364] sm:$0xf0]  ;;  %v3472_v54 = vld [vmem:[%s6438_s3 + $0x3e0] sm:$0xf]  ;;  %v3345_v56 = vor.u32 %v4155_v46, %v3344_v45  ;;  %v3336_v59 = vld [vmem:[%s6438_s3 + $0x2d0] sm:$0xf]  ;;  %v3273_v1 = vor.u32 %v4137_v58, %v3272_v57 }
  0x5f   :  { %2280 = vmatpush.bf16.msra.mxu1 %v3049_v22  ;;  %2306 = vmatpush.bf16.msra.mxu3 %v3177_v30  ;;  %v4187_v55 = vld [vmem:[%s6438_s3 + $0x3e4] sm:$0xf0]  ;;  %v4153_v60 = vld [vmem:[%s6438_s3 + $0x2d4] sm:$0xf0]  ;;  %v3409_v61 = vor.u32 %v4171_v51, %v3408_v50  ;;  %v3400_v63 = vld [vmem:[%s6438_s3 + $0x350] sm:$0xf] }
  0x60   :  { %v3473_v62 = vor.u32 %v4187_v55, %v3472_v54  ;;  %v4169_v0 = vld [vmem:[%s6438_s3 + $0x354] sm:$0xf0]  ;;  %v3464_v2 = vld [vmem:[%s6438_s3 + $0x3d0] sm:$0xf]  ;;  %v3337_v4 = vor.u32 %v4153_v60, %v3336_v59  ;;  %v3264_v5 = vld [vmem:[%s6438_s3 + $0x240] sm:$0xf] }
  0x61   :  { %2268 = vmatpush.bf16.msra.mxu0 %v2977_v34  ;;  %v4185_v3 = vld [vmem:[%s6438_s3 + $0x3d4] sm:$0xf0]  ;;  %v4135_v6 = vld [vmem:[%s6438_s3 + $0x244] sm:$0xf0]  ;;  %v3328_v7 = vld [vmem:[%s6438_s3 + $0x2c0] sm:$0xf]  ;;  %v3401_v9 = vor.u32 %v4169_v0, %v3400_v63 }
  0x62   :  { %2294 = vmatpush.bf16.msra.mxu2 %v3105_v44  ;;  %v4151_v8 = vld [vmem:[%s6438_s3 + $0x2c4] sm:$0xf0]  ;;  %v3465_v10 = vor.u32 %v4185_v3, %v3464_v2  ;;  %v3392_v11 = vld [vmem:[%s6438_s3 + $0x340] sm:$0xf]  ;;  %v3265_v13 = vor.u32 %v4135_v6, %v3264_v5  ;;  %v3256_v17 = vld [vmem:[%s6438_s3 + $0x230] sm:$0xf] }
  0x63   :  { %2281 = vmatpush.bf16.msra.mxu1 %v3041_v38  ;;  %2307 = vmatpush.bf16.msra.mxu3 %v3169_v47  ;;  %v4167_v12 = vld [vmem:[%s6438_s3 + $0x344] sm:$0xf0]  ;;  %v3456_v14 = vld [vmem:[%s6438_s3 + $0x3c0] sm:$0xf]  ;;  %v3329_v16 = vor.u32 %v4151_v8, %v3328_v7  ;;  %v4133_v18 = vld [vmem:[%s6438_s3 + $0x234] sm:$0xf0] }
  0x64   :  { %v4183_v15 = vld [vmem:[%s6438_s3 + $0x3c4] sm:$0xf0]  ;;  %v3320_v19 = vld [vmem:[%s6438_s3 + $0x2b0] sm:$0xf]  ;;  %v4149_v20 = vld [vmem:[%s6438_s3 + $0x2b4] sm:$0xf0]  ;;  %v3393_v21 = vor.u32 %v4167_v12, %v3392_v11  ;;  %v3257_v23 = vor.u32 %v4133_v18, %v3256_v17 }
  0x65   :  { %2313 = vmatpush.bf16.msrb.mxu0 %v3289_v39  ;;  %v3457_v22 = vor.u32 %v4183_v15, %v3456_v14  ;;  %v3321_v24 = vor.u32 %v4149_v20, %v3320_v19  ;;  %v3248_v25 = vld [vmem:[%s6438_s3 + $0x220] sm:$0xf]  ;;  %v4131_v26 = vld [vmem:[%s6438_s3 + $0x224] sm:$0xf0]  ;;  %v3384_v31 = vld [vmem:[%s6438_s3 + $0x330] sm:$0xf] }
  0x66   :  { %2339 = vmatpush.bf16.msrb.mxu2 %v3417_v48  ;;  %v3312_v27 = vld [vmem:[%s6438_s3 + $0x2a0] sm:$0xf]  ;;  %v4147_v28 = vld [vmem:[%s6438_s3 + $0x2a4] sm:$0xf0]  ;;  %v3249_v29 = vor.u32 %v4131_v26, %v3248_v25  ;;  %v4165_v32 = vld [vmem:[%s6438_s3 + $0x334] sm:$0xf0] }
  0x67   :  { %2326 = vmatpush.bf16.msrb.mxu1 %v3353_v41  ;;  %2352 = vmatpush.bf16.msrb.mxu3 %v3481_v49  ;;  %v3313_v30 = vor.u32 %v4147_v28, %v3312_v27  ;;  %v3448_v33 = vld [vmem:[%s6438_s3 + $0x3b0] sm:$0xf]  ;;  %v3385_v34 = vor.u32 %v4165_v32, %v3384_v31  ;;  %v4181_v35 = vld [vmem:[%s6438_s3 + $0x3b4] sm:$0xf0]  ;;  %v3376_v42 = vld [vmem:[%s6438_s3 + $0x320] sm:$0xf] }
  0x68   :  { %v3449_v36 = vor.u32 %v4181_v35, %v3448_v33  ;;  %v3240_v37 = vld [vmem:[%s6438_s3 + $0x210] sm:$0xf]  ;;  %v4129_v38 = vld [vmem:[%s6438_s3 + $0x214] sm:$0xf0]  ;;  %v4163_v43 = vld [vmem:[%s6438_s3 + $0x324] sm:$0xf0] }
  0x69   :  { %2314 = vmatpush.bf16.msrb.mxu0 %v3281_v53  ;;  %v3304_v39 = vld [vmem:[%s6438_s3 + $0x290] sm:$0xf]  ;;  %v3241_v40 = vor.u32 %v4129_v38, %v3240_v37  ;;  %v4145_v52 = vld [vmem:[%s6438_s3 + $0x294] sm:$0xf0]  ;;  %v3440_v44 = vld [vmem:[%s6438_s3 + $0x3a0] sm:$0xf]  ;;  %v3377_v45 = vor.u32 %v4163_v43, %v3376_v42 }
  0x6a   :  { %2340 = vmatpush.bf16.msrb.mxu2 %v3409_v61  ;;  %v3305_v41 = vor.u32 %v4145_v52, %v3304_v39  ;;  %v4179_v46 = vld [vmem:[%s6438_s3 + $0x3a4] sm:$0xf0]  ;;  %v3232_v48 = vld [vmem:[%s6438_s3 + $0x200] sm:$0xf]  ;;  %v3368_v55 = vld [vmem:[%s6438_s3 + $0x310] sm:$0xf] }
  0x6b   :  { %2327 = vmatpush.bf16.msrb.mxu1 %v3345_v56  ;;  %2353 = vmatpush.bf16.msrb.mxu3 %v3473_v62  ;;  %v3441_v47 = vor.u32 %v4179_v46, %v3440_v44  ;;  %v4127_v49 = vld [vmem:[%s6438_s3 + $0x204] sm:$0xf0]  ;;  %v3296_v50 = vld [vmem:[%s6438_s3 + $0x280] sm:$0xf]  ;;  %v4161_v56 = vld [vmem:[%s6438_s3 + $0x314] sm:$0xf0] }
  0x6c   :  { %v3233_v51 = vor.u32 %v4127_v49, %v3232_v48  ;;  %v4143_v53 = vld [vmem:[%s6438_s3 + $0x284] sm:$0xf0]  ;;  %v3432_v57 = vld [vmem:[%s6438_s3 + $0x390] sm:$0xf]  ;;  %v3369_v58 = vor.u32 %v4161_v56, %v3368_v55  ;;  %v4177_v59 = vld [vmem:[%s6438_s3 + $0x394] sm:$0xf0] }
  0x6d   :  { %2315 = vmatpush.bf16.msrb.mxu0 %v3273_v1  ;;  %v3297_v54 = vor.u32 %v4143_v53, %v3296_v50  ;;  %v3433_v60 = vor.u32 %v4177_v59, %v3432_v57  ;;  %v3360_v61 = vld [vmem:[%s6438_s3 + $0x300] sm:$0xf]  ;;  %v4159_v62 = vld [vmem:[%s6438_s3 + $0x304] sm:$0xf0]  ;;  %v4205_v11 = vld [vmem:[%s6438_s3 + $0x474] sm:$0xf0] }
  0x6e   :  { %2341 = vmatpush.bf16.msrb.mxu2 %v3401_v9  ;;  %v3361_v63 = vor.u32 %v4159_v62, %v3360_v61  ;;  %v3424_v0 = vld [vmem:[%s6438_s3 + $0x380] sm:$0xf]  ;;  %v4175_v1 = vld [vmem:[%s6438_s3 + $0x384] sm:$0xf0]  ;;  %v3608_v12 = vld [vmem:[%s6438_s3 + $0x4f0] sm:$0xf] }
  0x6f   :  { %2328 = vmatpush.bf16.msrb.mxu1 %v3337_v4  ;;  %2354 = vmatpush.bf16.msrb.mxu3 %v3465_v10  ;;  %v3425_v2 = vor.u32 %v4175_v1, %v3424_v0  ;;  %v5184_v3 = vld [vmem:[%s6437_s2] sm:$0xff]  ;;  %v3544_v10 = vld [vmem:[%s6438_s3 + $0x470] sm:$0xf]  ;;  %v4221_v14 = vld [vmem:[%s6438_s3 + $0x4f4] sm:$0xf0]  ;;  %s2693_s21 = sshll.u32 %s6440_s5, 4  ;;  %s2694_s21 = int_to_ptr.hbm [resolvable:$true] %s2693_s21 }
  0x70   :  { %v91_v4 = vperm.slane %v5184_v3, 0  ;;  %v92_v5 = vperm.slane %v5184_v3, 1  ;;  %v94_v18 = vperm.slane %v5184_v3, 3  ;;  %v3545_v19 = vor.u32 %v4205_v11, %v3544_v10  ;;  %v3600_v27 = vld [vmem:[%s6438_s3 + $0x4e0] sm:$0xf] }
  0x71   :  { %2316 = vmatpush.bf16.msrb.mxu0 %v3265_v13  ;;  %v4219_v28 = vld [vmem:[%s6438_s3 + $0x4e4] sm:$0xf0]  ;;  %v3672_v32 = vld [vmem:[%s6438_s3 + $0x570] sm:$0xf]  ;;  %v4237_v33 = vld [vmem:[%s6438_s3 + $0x574] sm:$0xf0] }
  0x72   :  { %2342 = vmatpush.bf16.msrb.mxu2 %v3393_v21  ;;  %v4253_v38 = vld [vmem:[%s6438_s3 + $0x5f4] sm:$0xf0]  ;;  %v3528_v39 = vld [vmem:[%s6438_s3 + $0x450] sm:$0xf]  ;;  %v3673_v46 = vor.u32 %v4237_v33, %v3672_v32  ;;  %v3664_v48 = vld [vmem:[%s6438_s3 + $0x560] sm:$0xf] }
  0x73   :  { %2329 = vmatpush.bf16.msrb.mxu1 %v3329_v16  ;;  %2355 = vmatpush.bf16.msrb.mxu3 %v3457_v22  ;;  %v93_v16 = vperm.slane %v5184_v3, 2  ;;  %v3609_v22 = vor.u32 %v4221_v14, %v3608_v12  ;;  %v3592_v42 = vld [vmem:[%s6438_s3 + $0x4d0] sm:$0xf]  ;;  %v4217_v44 = vld [vmem:[%s6438_s3 + $0x4d4] sm:$0xf0]  ;;  %v96_v59 = vperm.slane %v5184_v3, 5 }
  0x74   :  { %v3728_v55 = vld [vmem:[%s6438_s3 + $0x5e0] sm:$0xf]  ;;  %v4251_v56 = vld [vmem:[%s6438_s3 + $0x5e4] sm:$0xf0]  ;;  %v4233_v10 = vld [vmem:[%s6438_s3 + $0x554] sm:$0xf0] }
  0x75   :  { %2317 = vmatpush.bf16.msrb.mxu0 %v3257_v23  ;;  %v3536_v23 = vld [vmem:[%s6438_s3 + $0x460] sm:$0xf]  ;;  %v4199_v61 = vld [vmem:[%s6438_s3 + $0x444] sm:$0xf0]  ;;  %v3720_v11 = vld [vmem:[%s6438_s3 + $0x5d0] sm:$0xf] }
  0x76   :  { %2343 = vmatpush.bf16.msrb.mxu2 %v3385_v34  ;;  %v3736_v34 = vld [vmem:[%s6438_s3 + $0x5f0] sm:$0xf]  ;;  %v4215_v0 = vld [vmem:[%s6438_s3 + $0x4c4] sm:$0xf0]  ;;  %v4249_v12 = vld [vmem:[%s6438_s3 + $0x5d4] sm:$0xf0] }
  0x77   :  { %2330 = vmatpush.bf16.msrb.mxu1 %v3321_v24  ;;  %2356 = vmatpush.bf16.msrb.mxu3 %v3449_v36  ;;  %v4203_v24 = vld [vmem:[%s6438_s3 + $0x464] sm:$0xf0] }
  0x78   :  { %v3537_v37 = vor.u32 %v4203_v24, %v3536_v23  ;;  %v98_v24 = vperm.slane %v5184_v3, 7 }
  0x79   :  { %2318 = vmatpush.bf16.msrb.mxu0 %v3249_v29 }
  0x7a   :  { %2344 = vmatpush.bf16.msrb.mxu2 %v3377_v45 }
  0x7b   :  { %2331 = vmatpush.bf16.msrb.mxu1 %v3313_v30  ;;  %2357 = vmatpush.bf16.msrb.mxu3 %v3441_v47  ;;  %v95_v47 = vperm.slane %v5184_v3, 4 }
  0x7d   :  { %2319 = vmatpush.bf16.msrb.mxu0 %v3241_v40  ;;  %v4201_v40 = vld [vmem:[%s6438_s3 + $0x454] sm:$0xf0] }
  0x7e   :  { %2345 = vmatpush.bf16.msrb.mxu2 %v3369_v58  ;;  %v3529_v53 = vor.u32 %v4201_v40, %v3528_v39  ;;  %v3593_v58 = vor.u32 %v4217_v44, %v3592_v42  ;;  %v3568_v39 = vld [vmem:[%s6438_s3 + $0x4a0] sm:$0xf]  ;;  %v4211_v40 = vld [vmem:[%s6438_s3 + $0x4a4] sm:$0xf0]  ;;  %v3640_v44 = vld [vmem:[%s6438_s3 + $0x530] sm:$0xf] }
  0x7f   :  { %2332 = vmatpush.bf16.msrb.mxu1 %v3305_v41  ;;  %2358 = vmatpush.bf16.msrb.mxu3 %v3433_v60  ;;  %v3601_v41 = vor.u32 %v4219_v28, %v3600_v27  ;;  %v3520_v60 = vld [vmem:[%s6438_s3 + $0x440] sm:$0xf]  ;;  %v3721_v27 = vor.u32 %v4249_v12, %v3720_v11  ;;  %v4243_v11 = vld [vmem:[%s6438_s3 + $0x5a4] sm:$0xf0] }
  0x81   :  { %2320 = vmatpush.bf16.msrb.mxu0 %v3233_v51  ;;  %v3737_v51 = vor.u32 %v4253_v38, %v3736_v34  ;;  %v4247_v34 = vld [vmem:[%s6438_s3 + $0x5c4] sm:$0xf0] }
  0x82   :  { %2346 = vmatpush.bf16.msrb.mxu2 %v3361_v63  ;;  %v3584_v63 = vld [vmem:[%s6438_s3 + $0x4c0] sm:$0xf] }
  0x83   :  { %2333 = vmatpush.bf16.msrb.mxu1 %v3297_v54  ;;  %2359 = vmatpush.bf16.msrb.mxu3 %v3425_v2  ;;  %v4235_v54 = vld [vmem:[%s6438_s3 + $0x564] sm:$0xf0]  ;;  %v3585_v14 = vor.u32 %v4215_v0, %v3584_v63 }
  0x91   :  { %v456_v6 = vpop.f32.mrf.mxu0  ;;  %v469_v8 = vpop.f32.mrf.mxu1 }
  0x92   :  { %v457_v7 = vadd.f32 %v456_v6, %v91_v4  ;;  %v470_v9 = vadd.f32 %v469_v8, %v92_v5  ;;  %v3665_v4 = vor.u32 %v4235_v54, %v3664_v48  ;;  %v3656_v5 = vld [vmem:[%s6438_s3 + $0x550] sm:$0xf]  ;;  %v3729_v8 = vor.u32 %v4251_v56, %v3728_v55  ;;  %v4193_v55 = vld [vmem:[%s6438_s3 + $0x414] sm:$0xf0] }
  0x93   :  { %v3657_v23 = vor.u32 %v4233_v10, %v3656_v5  ;;  %v3496_v54 = vld [vmem:[%s6438_s3 + $0x410] sm:$0xf]  ;;  %v4227_v5 = vld [vmem:[%s6438_s3 + $0x524] sm:$0xf0]  ;;  %v3696_v10 = vld [vmem:[%s6438_s3 + $0x5a0] sm:$0xf] }
  0x94   :  { %vm655_vm1 = vcmp.ge.f32.partialorder %v457_v7, 0.0  ;;  %v671_v13 = vmul.f32 0.2, %v457_v7  ;;  %vm656_vm2 = vcmp.ge.f32.partialorder %v470_v9, 0.0  ;;  %v672_v15 = vmul.f32 0.2, %v470_v9 }
  0x96   :  { %v687_v17 = vsel %vm655_vm1, %v457_v7, %v671_v13  ;;  %v688_v21 = vsel %vm656_vm2, %v470_v9, %v672_v15  ;;  %v3521_v9 = vor.u32 %v4199_v61, %v3520_v60  ;;  %v3512_v15 = vld [vmem:[%s6438_s3 + $0x430] sm:$0xf]  ;;  %vm2680_vm1 = vcmask 1041408  }
  0x97   :  { %v5202_v20 = vpack.c.bf16 %v687_v17, %v687_v17  ;;  %v5210_v25 = vpack.c.bf16 %v688_v21, %v688_v21  ;;  %v3576_v17 = vld [vmem:[%s6438_s3 + $0x4b0] sm:$0xf]  ;;  %v4213_v21 = vld [vmem:[%s6438_s3 + $0x4b4] sm:$0xf0]  ;;  %vm2683_vm2 = vcmask 781314  }
  0x98   :  { %v482_v26 = vpop.f32.mrf.mxu2  ;;  %v3577_v33 = vor.u32 %v4213_v21, %v3576_v17  ;;  %v3560_v60 = vld [vmem:[%s6438_s3 + $0x490] sm:$0xf]  ;;  %v4269_v21 = vld [vmem:[%s6438_s3 + $0x674] sm:$0xf0] }
  0x99   :  { %v483_v29 = vadd.f32 %v482_v26, %v93_v16  ;;  %v495_v30 = vpop.f32.mrf.mxu3  ;;  %v458_v31 = vpop.f32.mrf.mxu0  ;;  %2269 = vmatmul.bf16.vlgmr.msra.gmra.mxu0 %v5202_v20  ;;  %2282 = vmatmul.bf16.vlgmr.msra.gmra.mxu1 %v5210_v25  ;;  %v4197_v16 = vld [vmem:[%s6438_s3 + $0x434] sm:$0xf0] }
  0x9a   :  { %v496_v35 = vadd.f32 %v495_v30, %v94_v18  ;;  %2365 = vmatpush.bf16.msra.mxu0 %v3545_v19  ;;  %v471_v36 = vpop.f32.mrf.mxu1  ;;  %2378 = vmatpush.bf16.msra.mxu1 %v3609_v22  ;;  %v97_v19 = vperm.slane %v5184_v3, 6  ;;  %v3513_v28 = vor.u32 %v4197_v16, %v3512_v15  ;;  %v4231_v30 = vld [vmem:[%s6438_s3 + $0x544] sm:$0xf0]  ;;  %v3712_v31 = vld [vmem:[%s6438_s3 + $0x5c0] sm:$0xf] }
  0x9b   :  { %vm657_vm3 = vcmp.ge.f32.partialorder %v483_v29, 0.0  ;;  %v673_v52 = vmul.f32 0.2, %v483_v29  ;;  %v4195_v36 = vld [vmem:[%s6438_s3 + $0x424] sm:$0xf0] }
  0x9c   :  { %vm658_vm4 = vcmp.ge.f32.partialorder %v496_v35, 0.0  ;;  %v674_v43 = vmul.f32 0.2, %v496_v35  ;;  %v4191_v15 = vld [vmem:[%s6438_s3 + $0x404] sm:$0xf0] }
  0x9d   :  { %v689_v45 = vsel %vm657_vm3, %v483_v29, %v673_v52  ;;  %v3648_v29 = vld [vmem:[%s6438_s3 + $0x540] sm:$0xf]  ;;  %vm2684_vm3 = vmor %vm2683_vm2, %vm2680_vm1 }
  0x9e   :  { %v5248_v49 = vpack.c.bf16 %v689_v45, %v689_v45  ;;  %v690_v50 = vsel %vm658_vm4, %v496_v35, %v674_v43  ;;  %2366 = vmatpush.bf16.msra.mxu0 %v3537_v37  ;;  %2379 = vmatpush.bf16.msra.mxu1 %v3601_v41  ;;  %v3504_v35 = vld [vmem:[%s6438_s3 + $0x420] sm:$0xf]  ;;  %v3649_v43 = vor.u32 %v4231_v30, %v3648_v29  ;;  %v4229_v45 = vld [vmem:[%s6438_s3 + $0x534] sm:$0xf0] }
  0x9f   :  { %v5259_v57 = vpack.c.bf16 %v690_v50, %v690_v50  ;;  %v3713_v50 = vor.u32 %v4247_v34, %v3712_v31  ;;  %v3641_v0 = vor.u32 %v4229_v45, %v3640_v44  ;;  %v3552_v16 = vld [vmem:[%s6438_s3 + $0x480] sm:$0xf]  ;;  %v3697_v31 = vor.u32 %v4243_v11, %v3696_v10  ;;  %v3688_v34 = vld [vmem:[%s6438_s3 + $0x590] sm:$0xf]  ;;  %v4283_v45 = vld [vmem:[%s6438_s3 + $0x6e4] sm:$0xf0] }
  0xa0   :  { %v484_v62 = vpop.f32.mrf.mxu2  ;;  %2295 = vmatmul.bf16.vlgmr.msra.gmra.mxu2 %v5248_v49 }
  0xa1   :  { %v497_v1 = vpop.f32.mrf.mxu3  ;;  %2308 = vmatmul.bf16.vlgmr.msra.gmra.mxu3 %v5259_v57  ;;  %2391 = vmatpush.bf16.msra.mxu2 %v3673_v46  ;;  %v508_v2 = vpop.f32.mrf.mxu0  ;;  %v3704_v46 = vld [vmem:[%s6438_s3 + $0x5b0] sm:$0xf]  ;;  %v4209_v62 = vld [vmem:[%s6438_s3 + $0x494] sm:$0xf0] }
  0xa2   :  { %2404 = vmatpush.bf16.msra.mxu3 %v3737_v51  ;;  %v509_v6 = vadd.f32 %v508_v2, %v95_v47  ;;  %2367 = vmatpush.bf16.msra.mxu0 %v3529_v53  ;;  %v3505_v51 = vor.u32 %v4195_v36, %v3504_v35  ;;  %v4245_v53 = vld [vmem:[%s6438_s3 + $0x5b4] sm:$0xf0]  ;;  %v3497_v2 = vor.u32 %v4193_v55, %v3496_v54  ;;  %v4223_v54 = vld [vmem:[%s6438_s3 + $0x504] sm:$0xf0]  ;;  %v3680_v55 = vld [vmem:[%s6438_s3 + $0x580] sm:$0xf] }
  0xa3   :  { %v521_v7 = vpop.f32.mrf.mxu1  ;;  %2380 = vmatpush.bf16.msra.mxu1 %v3593_v58  ;;  %v3569_v58 = vor.u32 %v4211_v40, %v3568_v39  ;;  %v3705_v1 = vor.u32 %v4245_v53, %v3704_v46  ;;  %v4241_v35 = vld [vmem:[%s6438_s3 + $0x594] sm:$0xf0]  ;;  %v3792_v40 = vld [vmem:[%s6438_s3 + $0x660] sm:$0xf] }
  0xa4   :  { %v522_v13 = vadd.f32 %v521_v7, %v96_v59  ;;  %vm659_vm5 = vcmp.ge.f32.partialorder %v509_v6, 0.0  ;;  %v675_v18 = vmul.f32 0.2, %v509_v6  ;;  %v5352_v59 = vld [vmem:[%s6437_s2 + $0x8] sm:$0xff]  ;;  %v3689_v53 = vor.u32 %v4241_v35, %v3688_v34  ;;  %v3840_v34 = vld [vmem:[%s6438_s3 + $0x6c0] sm:$0xf] }
  0xa5   :  { %2392 = vmatpush.bf16.msra.mxu2 %v3665_v4  ;;  %v3632_v4 = vld [vmem:[%s6438_s3 + $0x520] sm:$0xf]  ;;  %v101_v44 = vperm.slane %v5352_v59, 2  ;;  %v4279_v35 = vld [vmem:[%s6438_s3 + $0x6c4] sm:$0xf0] }
  0xa6   :  { %vm660_vm6 = vcmp.ge.f32.partialorder %v522_v13, 0.0  ;;  %v676_v22 = vmul.f32 0.2, %v522_v13  ;;  %v691_v26 = vsel %vm659_vm5, %v509_v6, %v675_v18  ;;  %2405 = vmatpush.bf16.msra.mxu3 %v3729_v8  ;;  %2368 = vmatpush.bf16.msra.mxu0 %v3521_v9  ;;  %v99_v8 = vperm.slane %v5352_v59, 0  ;;  %v4207_v18 = vld [vmem:[%s6438_s3 + $0x484] sm:$0xf0] }
  0xa7   :  { %v5311_v32 = vpack.c.bf16 %v691_v26, %v691_v26  ;;  %2381 = vmatpush.bf16.msra.mxu1 %v3585_v14  ;;  %v100_v9 = vperm.slane %v5352_v59, 1  ;;  %v3488_v14 = vld [vmem:[%s6438_s3 + $0x400] sm:$0xf]  ;;  %v3864_v26 = vld [vmem:[%s6438_s3 + $0x6f0] sm:$0xf] }
  0xa8   :  { %v692_v3 = vsel %vm660_vm6, %v522_v13, %v676_v22  ;;  %v534_v38 = vpop.f32.mrf.mxu2  ;;  %v3561_v13 = vor.u32 %v4209_v62, %v3560_v60  ;;  %v3928_v62 = vld [vmem:[%s6438_s3 + $0x770] sm:$0xf] }
  0xa9   :  { %v5322_v37 = vpack.c.bf16 %v692_v3, %v692_v3  ;;  %v535_v52 = vadd.f32 %v534_v38, %v97_v19  ;;  %2393 = vmatpush.bf16.msra.mxu2 %v3657_v23  ;;  %v510_v41 = vpop.f32.mrf.mxu0  ;;  %2321 = vmatmul.bf16.vlgmr.msrb.gmra.mxu0 %v5311_v32  ;;  %v3800_v19 = vld [vmem:[%s6438_s3 + $0x670] sm:$0xf]  ;;  %v3489_v3 = vor.u32 %v4191_v15, %v3488_v14  ;;  %v4281_v14 = vld [vmem:[%s6438_s3 + $0x6d4] sm:$0xf0]  ;;  %v3920_v15 = vld [vmem:[%s6438_s3 + $0x760] sm:$0xf] }
  0xaa   :  { %2406 = vmatpush.bf16.msra.mxu3 %v3721_v27  ;;  %2369 = vmatpush.bf16.msra.mxu0 %v3513_v28  ;;  %v4285_v27 = vld [vmem:[%s6438_s3 + $0x6f4] sm:$0xf0]  ;;  %v3624_v28 = vld [vmem:[%s6438_s3 + $0x510] sm:$0xf]  ;;  %v3553_v38 = vor.u32 %v4207_v18, %v3552_v16  ;;  %v3801_v39 = vor.u32 %v4269_v21, %v3800_v19  ;;  %v3856_v41 = vld [vmem:[%s6438_s3 + $0x6e0] sm:$0xf] }
  0xab   :  { %v547_v42 = vpop.f32.mrf.mxu3  ;;  %v523_v48 = vpop.f32.mrf.mxu1  ;;  %vm661_vm7 = vcmp.ge.f32.partialorder %v535_v52, 0.0  ;;  %v677_v56 = vmul.f32 0.2, %v535_v52  ;;  %2382 = vmatpush.bf16.msra.mxu1 %v3577_v33  ;;  %v4225_v33 = vld [vmem:[%s6438_s3 + $0x514] sm:$0xf0] }
  0xac   :  { %v548_v47 = vadd.f32 %v547_v42, %v98_v24  ;;  %2334 = vmatmul.bf16.vlgmr.msrb.gmra.mxu1 %v5322_v37  ;;  %v3633_v24 = vor.u32 %v4227_v5, %v3632_v4  ;;  %v102_v48 = vperm.slane %v5352_v59, 3  ;;  %v4317_v4 = vld [vmem:[%s6438_s3 + $0x7f4] sm:$0xf0]  ;;  %v3784_v5 = vld [vmem:[%s6438_s3 + $0x650] sm:$0xf] }
  0xad   :  { %v693_v63 = vsel %vm661_vm7, %v535_v52, %v677_v56  ;;  %2394 = vmatpush.bf16.msra.mxu2 %v3649_v43  ;;  %v4267_v52 = vld [vmem:[%s6438_s3 + $0x664] sm:$0xf0]  ;;  %v3865_v43 = vor.u32 %v4285_v27, %v3864_v26 }
  0xae   :  { %vm662_vm8 = vcmp.ge.f32.partialorder %v548_v47, 0.0  ;;  %v678_v61 = vmul.f32 0.2, %v548_v47  ;;  %v5367_v6 = vpack.c.bf16 %v693_v63, %v693_v63  ;;  %2407 = vmatpush.bf16.msra.mxu3 %v3713_v50  ;;  %2370 = vmatpush.bf16.msra.mxu0 %v3505_v51  ;;  %v3616_v50 = vld [vmem:[%s6438_s3 + $0x500] sm:$0xf] }
  0xaf   :  { %2383 = vmatpush.bf16.msra.mxu1 %v3569_v58  ;;  %v4239_v56 = vld [vmem:[%s6438_s3 + $0x584] sm:$0xf0]  ;;  %v4301_v63 = vld [vmem:[%s6438_s3 + $0x774] sm:$0xf0]  ;;  %v3617_v11 = vor.u32 %v4223_v54, %v3616_v50 }
  0xb0   :  { %v694_v7 = vsel %vm662_vm8, %v548_v47, %v678_v61  ;;  %v536_v17 = vpop.f32.mrf.mxu2  ;;  %2347 = vmatmul.bf16.vlgmr.msrb.gmra.mxu2 %v5367_v6  ;;  %v3625_v47 = vor.u32 %v4225_v33, %v3624_v28  ;;  %v3793_v61 = vor.u32 %v4267_v52, %v3792_v40  ;;  %v3681_v18 = vor.u32 %v4239_v56, %v3680_v55  ;;  %v4299_v21 = vld [vmem:[%s6438_s3 + $0x764] sm:$0xf0] }
  0xb1   :  { %v5377_v12 = vpack.c.bf16 %v694_v7, %v694_v7  ;;  %2395 = vmatpush.bf16.msra.mxu2 %v3641_v0  ;;  %v560_v23 = vpop.f32.mrf.mxu0  ;;  %v3992_v0 = vld [vmem:[%s6438_s3 + $0x7f0] sm:$0xf]  ;;  %v4265_v7 = vld [vmem:[%s6438_s3 + $0x654] sm:$0xf0]  ;;  %v3929_v19 = vor.u32 %v4301_v63, %v3928_v62 }
  0xb2   :  { %2408 = vmatpush.bf16.msra.mxu3 %v3705_v1  ;;  %v561_v29 = vadd.f32 %v560_v23, %v99_v8  ;;  %2371 = vmatpush.bf16.msra.mxu0 %v3497_v2  ;;  %v3857_v2 = vor.u32 %v4283_v45, %v3856_v41  ;;  %v4315_v23 = vld [vmem:[%s6438_s3 + $0x7e4] sm:$0xf0]  ;;  %v3993_v27 = vor.u32 %v4317_v4, %v3992_v0  ;;  %v103_v4 = vperm.slane %v5352_v59, 4 }
  0xb3   :  { %v549_v22 = vpop.f32.mrf.mxu3  ;;  %2360 = vmatmul.bf16.vlgmr.msrb.gmra.mxu3 %v5377_v12  ;;  %v573_v30 = vpop.f32.mrf.mxu1  ;;  %2384 = vmatpush.bf16.msra.mxu1 %v3561_v13  ;;  %v3848_v13 = vld [vmem:[%s6438_s3 + $0x6d0] sm:$0xf]  ;;  %v3785_v28 = vor.u32 %v4265_v7, %v3784_v5  ;;  %v3841_v45 = vor.u32 %v4279_v35, %v3840_v34  ;;  %v3760_v7 = vld [vmem:[%s6438_s3 + $0x620] sm:$0xf]  ;;  %v4307_v34 = vld [vmem:[%s6438_s3 + $0x7a4] sm:$0xf0] }
  0xb4   :  { %v574_v36 = vadd.f32 %v573_v30, %v100_v9  ;;  %vm663_vm9 = vcmp.ge.f32.partialorder %v561_v29, 0.0  ;;  %v679_v42 = vmul.f32 0.2, %v561_v29  ;;  %v3984_v22 = vld [vmem:[%s6438_s3 + $0x7e0] sm:$0xf] }
  0xb5   :  { %2396 = vmatpush.bf16.msra.mxu2 %v3633_v24  ;;  %v3985_v52 = vor.u32 %v4315_v23, %v3984_v22  ;;  %v3752_v23 = vld [vmem:[%s6438_s3 + $0x610] sm:$0xf] }
  0xb6   :  { %vm664_vm10 = vcmp.ge.f32.partialorder %v574_v36, 0.0  ;;  %v680_v46 = vmul.f32 0.2, %v574_v36  ;;  %v695_v51 = vsel %vm663_vm9, %v561_v29, %v679_v42  ;;  %2409 = vmatpush.bf16.msra.mxu3 %v3697_v31  ;;  %2372 = vmatpush.bf16.msra.mxu0 %v3489_v3  ;;  %v3776_v29 = vld [vmem:[%s6438_s3 + $0x640] sm:$0xf]  ;;  %v3849_v31 = vor.u32 %v4281_v14, %v3848_v13 }
  0xb7   :  { %v5443_v58 = vpack.c.bf16 %v695_v51, %v695_v51  ;;  %2385 = vmatpush.bf16.msra.mxu1 %v3553_v38  ;;  %v4263_v3 = vld [vmem:[%s6438_s3 + $0x644] sm:$0xf0]  ;;  %v3912_v42 = vld [vmem:[%s6438_s3 + $0x750] sm:$0xf] }
  0xb8   :  { %v696_v60 = vsel %vm664_vm10, %v574_v36, %v680_v46  ;;  %v586_v1 = vpop.f32.mrf.mxu2  ;;  %v3777_v41 = vor.u32 %v4263_v3, %v3776_v29  ;;  %v4313_v46 = vld [vmem:[%s6438_s3 + $0x7d4] sm:$0xf0]  ;;  %v3832_v51 = vld [vmem:[%s6438_s3 + $0x6b0] sm:$0xf]  ;;  %v4275_v13 = vld [vmem:[%s6438_s3 + $0x6a4] sm:$0xf0] }
  0xb9   :  { %v5463_v8 = vpack.c.bf16 %v696_v60, %v696_v60  ;;  %v587_v9 = vadd.f32 %v586_v1, %v101_v44  ;;  %2397 = vmatpush.bf16.msra.mxu2 %v3625_v47  ;;  %2373 = vmatmul.bf16.vlgmr.msra.gmra.mxu0 %v5443_v58  ;;  %v562_v16 = vpop.f32.mrf.mxu0  ;;  %v3976_v44 = vld [vmem:[%s6438_s3 + $0x7d0] sm:$0xf]  ;;  %v3904_v60 = vld [vmem:[%s6438_s3 + $0x740] sm:$0xf]  ;;  %v4291_v3 = vld [vmem:[%s6438_s3 + $0x724] sm:$0xf0] }
  0xba   :  { %2417 = vmatpush.bf16.msrb.mxu0 %v3801_v39  ;;  %2410 = vmatpush.bf16.msra.mxu3 %v3689_v53  ;;  %v3921_v39 = vor.u32 %v4299_v21, %v3920_v15  ;;  %v3768_v47 = vld [vmem:[%s6438_s3 + $0x630] sm:$0xf]  ;;  %v4277_v53 = vld [vmem:[%s6438_s3 + $0x6b4] sm:$0xf0]  ;;  %v3977_v63 = vor.u32 %v4313_v46, %v3976_v44  ;;  %v3968_v1 = vld [vmem:[%s6438_s3 + $0x7c0] sm:$0xf] }
  0xbb   :  { %2430 = vmatpush.bf16.msrb.mxu1 %v3865_v43  ;;  %v599_v10 = vpop.f32.mrf.mxu3  ;;  %v575_v24 = vpop.f32.mrf.mxu1  ;;  %vm665_vm11 = vcmp.ge.f32.partialorder %v587_v9, 0.0  ;;  %v681_v26 = vmul.f32 0.2, %v587_v9  ;;  %v4297_v43 = vld [vmem:[%s6438_s3 + $0x754] sm:$0xf0]  ;;  %v3833_v5 = vor.u32 %v4277_v53, %v3832_v51 }
  0xbc   :  { %v600_v17 = vadd.f32 %v599_v10, %v102_v48  ;;  %2386 = vmatmul.bf16.vlgmr.msra.gmra.mxu1 %v5463_v8  ;;  %v4261_v48 = vld [vmem:[%s6438_s3 + $0x634] sm:$0xf0]  ;;  %v3913_v56 = vor.u32 %v4297_v43, %v3912_v42  ;;  %v104_v10 = vperm.slane %v5352_v59, 5  ;;  %v3896_v15 = vld [vmem:[%s6438_s3 + $0x730] sm:$0xf]  ;;  %v105_v42 = vperm.slane %v5352_v59, 6 }
  0xbd   :  { %v697_v33 = vsel %vm665_vm11, %v587_v9, %v681_v26  ;;  %2398 = vmatpush.bf16.msra.mxu2 %v3617_v11  ;;  %v3769_v0 = vor.u32 %v4261_v48, %v3768_v47  ;;  %v4259_v9 = vld [vmem:[%s6438_s3 + $0x624] sm:$0xf0]  ;;  %v3824_v11 = vld [vmem:[%s6438_s3 + $0x6a0] sm:$0xf]  ;;  %v4293_v16 = vld [vmem:[%s6438_s3 + $0x734] sm:$0xf0] }
  0xbe   :  { %2418 = vmatpush.bf16.msrb.mxu0 %v3793_v61  ;;  %vm666_vm12 = vcmp.ge.f32.partialorder %v600_v17, 0.0  ;;  %v682_v30 = vmul.f32 0.2, %v600_v17  ;;  %v5497_v36 = vpack.c.bf16 %v697_v33, %v697_v33  ;;  %2411 = vmatpush.bf16.msra.mxu3 %v3681_v18  ;;  %v4295_v61 = vld [vmem:[%s6438_s3 + $0x744] sm:$0xf0]  ;;  %v3761_v18 = vor.u32 %v4259_v9, %v3760_v7 }
  0xbf   :  { %2431 = vmatpush.bf16.msrb.mxu1 %v3857_v2  ;;  %v4311_v2 = vld [vmem:[%s6438_s3 + $0x7c4] sm:$0xf0]  ;;  %v3905_v14 = vor.u32 %v4295_v61, %v3904_v60  ;;  %v4309_v21 = vld [vmem:[%s6438_s3 + $0x7b4] sm:$0xf0]  ;;  %v3825_v24 = vor.u32 %v4275_v13, %v3824_v11  ;;  %v3952_v33 = vld [vmem:[%s6438_s3 + $0x7a0] sm:$0xf] }
  0xc0   :  { %v698_v38 = vsel %vm666_vm12, %v600_v17, %v682_v30  ;;  %2399 = vmatmul.bf16.vlgmr.msra.gmra.mxu2 %v5497_v36  ;;  %v588_v50 = vpop.f32.mrf.mxu2  ;;  %v3969_v17 = vor.u32 %v4311_v2, %v3968_v1  ;;  %v4257_v26 = vld [vmem:[%s6438_s3 + $0x614] sm:$0xf0]  ;;  %v3808_v47 = vld [vmem:[%s6438_s3 + $0x680] sm:$0xf]  ;;  %v106_v48 = vperm.slane %v5352_v59, 7  ;;  %v3953_v59 = vor.u32 %v4307_v34, %v3952_v33 }
  0xc1   :  { %2443 = vmatpush.bf16.msrb.mxu2 %v3929_v19  ;;  %v5499_v40 = vpack.c.bf16 %v698_v38, %v698_v38  ;;  %v612_v55 = vpop.f32.mrf.mxu0  ;;  %v3960_v19 = vld [vmem:[%s6438_s3 + $0x7b0] sm:$0xf]  ;;  %v3753_v46 = vor.u32 %v4257_v26, %v3752_v23  ;;  %v4271_v53 = vld [vmem:[%s6438_s3 + $0x684] sm:$0xf0]  ;;  %v4092_v61 = vld [vmem:[%s6438_s3 + $0xf4] sm:$0xf] }
  0xc2   :  { %2456 = vmatpush.bf16.msrb.mxu3 %v3993_v27  ;;  %2419 = vmatpush.bf16.msrb.mxu0 %v3785_v28  ;;  %v613_v22 = vadd.f32 %v612_v55, %v103_v4  ;;  %v3816_v27 = vld [vmem:[%s6438_s3 + $0x690] sm:$0xf]  ;;  %v4273_v28 = vld [vmem:[%s6438_s3 + $0x694] sm:$0xf0]  ;;  %v3961_v44 = vor.u32 %v4309_v21, %v3960_v19  ;;  %v3034_v55 = vld [vmem:[%s6438_s3 + $0x78] sm:$0xf0] }
  0xc3   :  { %2432 = vmatpush.bf16.msrb.mxu1 %v3849_v31  ;;  %2412 = vmatmul.bf16.vlgmr.msra.gmra.mxu3 %v5499_v40  ;;  %v601_v54 = vpop.f32.mrf.mxu3  ;;  %v625_v62 = vpop.f32.mrf.mxu1  ;;  %v3888_v31 = vld [vmem:[%s6438_s3 + $0x720] sm:$0xf]  ;;  %v3817_v50 = vor.u32 %v4273_v28, %v3816_v27  ;;  %v4289_v2 = vld [vmem:[%s6438_s3 + $0x714] sm:$0xf0]  ;;  %v3944_v4 = vld [vmem:[%s6438_s3 + $0x790] sm:$0xf] }
  0xc4   :  { %v626_v29 = vadd.f32 %v625_v62, %v104_v10  ;;  %vm667_vm13 = vcmp.ge.f32.partialorder %v613_v22, 0.0  ;;  %v4076_v54 = vld [vmem:[%s6438_s3 + $0x74] sm:$0xf]  ;;  %v3098_v62 = vld [vmem:[%s6438_s3 + $0xf8] sm:$0xf0]  ;;  %v3809_v10 = vor.u32 %v4271_v53, %v3808_v47 }
  0xc5   :  { %2444 = vmatpush.bf16.msrb.mxu2 %v3921_v39  ;;  %v3897_v39 = vor.u32 %v4293_v16, %v3896_v15  ;;  %v3037_v11 = vor.u32 %v4076_v54, %v3034_v55  ;;  %v4074_v13 = vld [vmem:[%s6438_s3 + $0x64] sm:$0xf]  ;;  %v3872_v19 = vld [vmem:[%s6438_s3 + $0x700] sm:$0xf]  ;;  %v4287_v21 = vld [vmem:[%s6438_s3 + $0x704] sm:$0xf0] }
  0xc6   :  { %2457 = vmatpush.bf16.msrb.mxu3 %v3985_v52  ;;  %2420 = vmatpush.bf16.msrb.mxu0 %v3777_v41  ;;  %v3744_v52 = vld [vmem:[%s6438_s3 + $0x600] sm:$0xf]  ;;  %v4255_v41 = vld [vmem:[%s6438_s3 + $0x604] sm:$0xf0]  ;;  %v684_v51 = vmul.f32 0.2, %v626_v29 }
  0xc7   :  { %2433 = vmatpush.bf16.msrb.mxu1 %v3841_v45  ;;  %v683_v45 = vmul.f32 0.2, %v613_v22  ;;  %vm668_vm14 = vcmp.ge.f32.partialorder %v626_v29, 0.0  ;;  %v3745_v1 = vor.u32 %v4255_v41, %v3744_v52  ;;  %v4090_v15 = vld [vmem:[%s6438_s3 + $0xe4] sm:$0xf] }
  0xc8   :  { %v638_v30 = vpop.f32.mrf.mxu2  ;;  %v700_v9 = vsel %vm668_vm14, %v626_v29, %v684_v51  ;;  %v3936_v27 = vld [vmem:[%s6438_s3 + $0x780] sm:$0xf]  ;;  %v4303_v28 = vld [vmem:[%s6438_s3 + $0x784] sm:$0xf0]  ;;  %v3162_v34 = vld [vmem:[%s6438_s3 + $0x178] sm:$0xf0] }
  0xc9   :  { %2445 = vmatpush.bf16.msrb.mxu2 %v3913_v56  ;;  %v614_v38 = vpop.f32.mrf.mxu0  ;;  %v3889_v56 = vor.u32 %v4291_v3, %v3888_v31  ;;  %v639_v60 = vadd.f32 %v638_v30, %v105_v42  ;;  %v5654_v29 = vpack.c.bf16 %v700_v9, %v700_v9  ;;  %v4108_v3 = vld [vmem:[%s6438_s3 + $0x174] sm:$0xf]  ;;  %v3018_v41 = vld [vmem:[%s6438_s3 + $0x58] sm:$0xf0]  ;;  %v3937_v47 = vor.u32 %v4303_v28, %v3936_v27  ;;  %v4106_v53 = vld [vmem:[%s6438_s3 + $0x164] sm:$0xf] }
  0xca   :  { %2458 = vmatpush.bf16.msrb.mxu3 %v3977_v63  ;;  %2421 = vmatpush.bf16.msrb.mxu0 %v3769_v0  ;;  %v3880_v63 = vld [vmem:[%s6438_s3 + $0x710] sm:$0xf]  ;;  %v699_v0 = vsel %vm667_vm13, %v613_v22, %v683_v45  ;;  %v4072_v52 = vld [vmem:[%s6438_s3 + $0x54] sm:$0xf]  ;;  %v3082_v45 = vld [vmem:[%s6438_s3 + $0xd8] sm:$0xf0] }
  0xcb   :  { %2434 = vmatpush.bf16.msrb.mxu1 %v3833_v5  ;;  %v651_v35 = vpop.f32.mrf.mxu3  ;;  %v627_v43 = vpop.f32.mrf.mxu1  ;;  %v4305_v5 = vld [vmem:[%s6438_s3 + $0x794] sm:$0xf0]  ;;  %v5646_v23 = vpack.c.bf16 %v699_v0, %v699_v0  ;;  %v3881_v26 = vor.u32 %v4289_v2, %v3880_v63  ;;  %vm669_vm15 = vcmp.ge.f32.partialorder %v639_v60, 0.0  ;;  %v3021_v51 = vor.u32 %v4072_v52, %v3018_v41  ;;  %v3154_v54 = vld [vmem:[%s6438_s3 + $0x168] sm:$0xf0] }
  0xcc   :  { %v652_v7 = vadd.f32 %v651_v35, %v106_v48  ;;  %v3945_v30 = vor.u32 %v4305_v5, %v3944_v4  ;;  %v4124_v35 = vld [vmem:[%s6438_s3 + $0x1f4] sm:$0xf]  ;;  %v3873_v43 = vor.u32 %v4287_v21, %v3872_v19  ;;  %v3165_v48 = vor.u32 %v4108_v3, %v3162_v34  ;;  %v4122_v55 = vld [vmem:[%s6438_s3 + $0x1e4] sm:$0xf]  ;;  %v3146_v9 = vld [vmem:[%s6438_s3 + $0x158] sm:$0xf0] }
  0xcd   :  { %2446 = vmatpush.bf16.msrb.mxu2 %v3905_v14  ;;  %v3026_v14 = vld [vmem:[%s6438_s3 + $0x68] sm:$0xf0]  ;;  %v4086_v0 = vld [vmem:[%s6438_s3 + $0xc4] sm:$0xf]  ;;  %v3157_v2 = vor.u32 %v4106_v53, %v3154_v54  ;;  %v3130_v52 = vld [vmem:[%s6438_s3 + $0x138] sm:$0xf0] }
  0xce   :  { %2459 = vmatpush.bf16.msrb.mxu3 %v3969_v17  ;;  %2422 = vmatpush.bf16.msrb.mxu0 %v3761_v18  ;;  %v3101_v17 = vor.u32 %v4092_v61, %v3098_v62  ;;  %v3090_v18 = vld [vmem:[%s6438_s3 + $0xe8] sm:$0xf0]  ;;  %v686_v31 = vmul.f32 0.2, %v652_v7  ;;  %vm670_vm0 = vcmp.ge.f32.partialorder %v652_v7, 0.0  ;;  %v3029_v33 = vor.u32 %v4074_v13, %v3026_v14 }
  0xcf   :  { %2435 = vmatpush.bf16.msrb.mxu1 %v3825_v24  ;;  %v685_v24 = vmul.f32 0.2, %v639_v60  ;;  %v3093_v38 = vor.u32 %v4090_v15, %v3090_v18  ;;  %v4070_v61 = vld [vmem:[%s6438_s3 + $0x44] sm:$0xf]  ;;  %v3010_v62 = vld [vmem:[%s6438_s3 + $0x48] sm:$0xf0] }
  0xd0   :  { %v640_v16 = vpop.f32.mrf.mxu2  ;;  %v3013_v5 = vor.u32 %v4070_v61, %v3010_v62  ;;  %v3210_v13 = vld [vmem:[%s6438_s3 + $0x1d8] sm:$0xf0]  ;;  %v4068_v14 = vld [vmem:[%s6438_s3 + $0x34] sm:$0xf]  ;;  %v3202_v28 = vld [vmem:[%s6438_s3 + $0x1c8] sm:$0xf0] }
  0xd1   :  { %2447 = vmatpush.bf16.msrb.mxu2 %v3897_v39  ;;  %v3226_v39 = vld [vmem:[%s6438_s3 + $0x1f8] sm:$0xf0]  ;;  %v701_v42 = vsel %vm669_vm15, %v639_v60, %v685_v24  ;;  %v3218_v60 = vld [vmem:[%s6438_s3 + $0x1e8] sm:$0xf0]  ;;  %v4084_v16 = vld [vmem:[%s6438_s3 + $0xb4] sm:$0xf] }
  0xd2   :  { %2460 = vmatpush.bf16.msrb.mxu3 %v3961_v44  ;;  %2423 = vmatpush.bf16.msrb.mxu0 %v3753_v46  ;;  %v4088_v44 = vld [vmem:[%s6438_s3 + $0xd4] sm:$0xf]  ;;  %v702_v46 = vsel %vm670_vm0, %v652_v7, %v686_v31  ;;  %v3221_v4 = vor.u32 %v4122_v55, %v3218_v60  ;;  %v3002_v15 = vld [vmem:[%s6438_s3 + $0x38] sm:$0xf0]  ;;  %v3138_v24 = vld [vmem:[%s6438_s3 + $0x148] sm:$0xf0] }
  0xd3   :  { %2436 = vmatpush.bf16.msrb.mxu1 %v3817_v50  ;;  %v653_v22 = vpop.f32.mrf.mxu3  ;;  %v3229_v50 = vor.u32 %v4124_v35, %v3226_v39  ;;  %v5703_v63 = vpack.c.bf16 %v702_v46, %v702_v46  ;;  %v4104_v7 = vld [vmem:[%s6438_s3 + $0x154] sm:$0xf]  ;;  %v3005_v21 = vor.u32 %v4068_v14, %v3002_v15  ;;  %v2994_v31 = vld [vmem:[%s6438_s3 + $0x28] sm:$0xf0]  ;;  %v4082_v3 = vld [vmem:[%s6438_s3 + $0xa4] sm:$0xf] }
  0xd4   :  { %v3149_v18 = vor.u32 %v4104_v7, %v3146_v9  ;;  %v4102_v22 = vld [vmem:[%s6438_s3 + $0x144] sm:$0xf]  ;;  %v4100_v39 = vld [vmem:[%s6438_s3 + $0x134] sm:$0xf]  ;;  %v3122_v54 = vld [vmem:[%s6438_s3 + $0x128] sm:$0xf0] }
  0xd5   :  { %2448 = vmatpush.bf16.msrb.mxu2 %v3889_v56  ;;  %v5692_v56 = vpack.c.bf16 %v701_v42, %v701_v42  ;;  %v3141_v34 = vor.u32 %v4102_v22, %v3138_v24  ;;  %v4116_v41 = vld [vmem:[%s6438_s3 + $0x1b4] sm:$0xf]  ;;  %v4114_v55 = vld [vmem:[%s6438_s3 + $0x1a4] sm:$0xf]  ;;  %v2978_v62 = vld [vmem:[%s6438_s3 + $0x8] sm:$0xf0] }
  0xd6   :  { %2461 = vmatpush.bf16.msrb.mxu3 %v3953_v59  ;;  %2424 = vmatpush.bf16.msrb.mxu0 %v3745_v1  ;;  %v3085_v59 = vor.u32 %v4088_v44, %v3082_v45  ;;  %v3074_v1 = vld [vmem:[%s6438_s3 + $0xc8] sm:$0xf0]  ;;  %v4064_v44 = vld [vmem:[%s6438_s3 + $0x14] sm:$0xf]  ;;  %v2986_v45 = vld [vmem:[%s6438_s3 + $0x18] sm:$0xf0] }
  0xd7   :  { %2437 = vmatpush.bf16.msrb.mxu1 %v3809_v10  ;;  %v4120_v10 = vld [vmem:[%s6438_s3 + $0x1d4] sm:$0xf]  ;;  %v2989_v53 = vor.u32 %v4064_v44, %v2986_v45  ;;  %v4062_v61 = vld [vmem:[%s6438_s3 + $0x4] sm:$0xf]  ;;  %v3354_v9 = vld [vmem:[%s6438_s3 + $0x2f8] sm:$0xf0] }
  0xd8   :  { %v3213_v19 = vor.u32 %v4120_v10, %v3210_v13  ;;  %v4080_v46 = vld [vmem:[%s6438_s3 + $0x94] sm:$0xf]  ;;  %v3114_v14 = vld [vmem:[%s6438_s3 + $0x118] sm:$0xf0]  ;;  %v3282_v22 = vld [vmem:[%s6438_s3 + $0x268] sm:$0xf0] }
  0xd9   :  { %2449 = vmatpush.bf16.msrb.mxu2 %v3881_v26  ;;  %2425 = vmatmul.bf16.vlgmr.msrb.gmra.mxu0 %v5646_v23  ;;  %v4118_v26 = vld [vmem:[%s6438_s3 + $0x1c4] sm:$0xf]  ;;  %v4156_v7 = vld [vmem:[%s6438_s3 + $0x2f4] sm:$0xf] }
  0xda   :  { %2469 = vmatpush.bf16.msra.mxu0 %v3037_v11  ;;  %2462 = vmatpush.bf16.msrb.mxu3 %v3945_v30  ;;  %v3077_v11 = vor.u32 %v4086_v0, %v3074_v1  ;;  %v4066_v30 = vld [vmem:[%s6438_s3 + $0x24] sm:$0xf]  ;;  %v3205_v35 = vor.u32 %v4118_v26, %v3202_v28  ;;  %v3042_v1 = vld [vmem:[%s6438_s3 + $0x88] sm:$0xf0]  ;;  %v4096_v13 = vld [vmem:[%s6438_s3 + $0x114] sm:$0xf] }
  0xdb   :  { %2482 = vmatpush.bf16.msra.mxu1 %v3101_v17  ;;  %v3066_v17 = vld [vmem:[%s6438_s3 + $0xb8] sm:$0xf0]  ;;  %v4078_v0 = vld [vmem:[%s6438_s3 + $0x84] sm:$0xf]  ;;  %v3117_v24 = vor.u32 %v4096_v13, %v3114_v14  ;;  %v4152_v45 = vld [vmem:[%s6438_s3 + $0x2d4] sm:$0xf] }
  0xdc   :  { %2438 = vmatmul.bf16.vlgmr.msrb.gmra.mxu1 %v5654_v29  ;;  %v3069_v27 = vor.u32 %v4084_v16, %v3066_v17  ;;  %v3045_v15 = vor.u32 %v4078_v0, %v3042_v1  ;;  %v4112_v17 = vld [vmem:[%s6438_s3 + $0x194] sm:$0xf]  ;;  %v4154_v26 = vld [vmem:[%s6438_s3 + $0x2e4] sm:$0xf]  ;;  %v3258_v13 = vld [vmem:[%s6438_s3 + $0x238] sm:$0xf0] }
  0xdd   :  { %2450 = vmatpush.bf16.msrb.mxu2 %v3873_v43  ;;  %v3194_v43 = vld [vmem:[%s6438_s3 + $0x1b8] sm:$0xf0]  ;;  %v4094_v28 = vld [vmem:[%s6438_s3 + $0x104] sm:$0xf] }
  0xde   :  { %2470 = vmatpush.bf16.msra.mxu0 %v3029_v33  ;;  %2463 = vmatpush.bf16.msrb.mxu3 %v3937_v47  ;;  %v3058_v33 = vld [vmem:[%s6438_s3 + $0xa8] sm:$0xf0]  ;;  %v3050_v47 = vld [vmem:[%s6438_s3 + $0x98] sm:$0xf0] }
  0xdf   :  { %2483 = vmatpush.bf16.msra.mxu1 %v3093_v38  ;;  %v2997_v38 = vor.u32 %v4066_v30, %v2994_v31  ;;  %v3061_v42 = vor.u32 %v4082_v3, %v3058_v33  ;;  %v3053_v60 = vor.u32 %v4080_v46, %v3050_v47  ;;  %v3106_v31 = vld [vmem:[%s6438_s3 + $0x108] sm:$0xf0]  ;;  %v4110_v3 = vld [vmem:[%s6438_s3 + $0x184] sm:$0xf]  ;;  %v3338_v46 = vld [vmem:[%s6438_s3 + $0x2d8] sm:$0xf0] }
  0xe0   :  { %2451 = vmatmul.bf16.vlgmr.msrb.gmra.mxu2 %v5692_v56  ;;  %v3170_v33 = vld [vmem:[%s6438_s3 + $0x188] sm:$0xf0]  ;;  %v3109_v44 = vor.u32 %v4094_v28, %v3106_v31  ;;  %v3322_v14 = vld [vmem:[%s6438_s3 + $0x2b8] sm:$0xf0] }
  0xe1   :  { %2495 = vmatpush.bf16.msra.mxu2 %v3165_v48  ;;  %2464 = vmatmul.bf16.vlgmr.msrb.gmra.mxu3 %v5703_v63  ;;  %v3133_v48 = vor.u32 %v4100_v39, %v3130_v52  ;;  %v4188_v39 = vld [vmem:[%s6438_s3 + $0x3f4] sm:$0xf]  ;;  %v3173_v47 = vor.u32 %v4110_v3, %v3170_v33  ;;  %v3314_v28 = vld [vmem:[%s6438_s3 + $0x2a8] sm:$0xf0] }
  0xe2   :  { %2508 = vmatpush.bf16.msra.mxu3 %v3229_v50  ;;  %2471 = vmatpush.bf16.msra.mxu0 %v3021_v51  ;;  %v4098_v50 = vld [vmem:[%s6438_s3 + $0x124] sm:$0xf]  ;;  %v3197_v51 = vor.u32 %v4116_v41, %v3194_v43  ;;  %v3482_v41 = vld [vmem:[%s6438_s3 + $0x3f8] sm:$0xf0]  ;;  %v4164_v33 = vld [vmem:[%s6438_s3 + $0x334] sm:$0xf] }
  0xe3   :  { %2484 = vmatpush.bf16.msra.mxu1 %v3085_v59  ;;  %v3186_v59 = vld [vmem:[%s6438_s3 + $0x1a8] sm:$0xf0]  ;;  %v3274_v43 = vld [vmem:[%s6438_s3 + $0x258] sm:$0xf0] }
  0xe4   :  { %v3189_v10 = vor.u32 %v4114_v55, %v3186_v59  ;;  %v3341_v55 = vor.u32 %v4152_v45, %v3338_v46  ;;  %v4134_v59 = vld [vmem:[%s6438_s3 + $0x244] sm:$0xf] }
  0xe5   :  { %2496 = vmatpush.bf16.msra.mxu2 %v3157_v2  ;;  %v4140_v2 = vld [vmem:[%s6438_s3 + $0x274] sm:$0xf]  ;;  %v4162_v45 = vld [vmem:[%s6438_s3 + $0x324] sm:$0xf] }
  0xe6   :  { %2509 = vmatpush.bf16.msra.mxu3 %v3221_v4  ;;  %2472 = vmatpush.bf16.msra.mxu0 %v3013_v5  ;;  %v3290_v4 = vld [vmem:[%s6438_s3 + $0x278] sm:$0xf0]  ;;  %v3125_v5 = vor.u32 %v4098_v50, %v3122_v54  ;;  %v3485_v50 = vor.u32 %v4188_v39, %v3482_v41  ;;  %v4186_v54 = vld [vmem:[%s6438_s3 + $0x3e4] sm:$0xf] }
  0xe7   :  { %2485 = vmatpush.bf16.msra.mxu1 %v3077_v11  ;;  %v2981_v11 = vor.u32 %v4062_v61, %v2978_v62  ;;  %v3293_v16 = vor.u32 %v4140_v2, %v3290_v4  ;;  %v4150_v61 = vld [vmem:[%s6438_s3 + $0x2c4] sm:$0xf]  ;;  %v3330_v62 = vld [vmem:[%s6438_s3 + $0x2c8] sm:$0xf0]  ;;  %v4168_v4 = vld [vmem:[%s6438_s3 + $0x354] sm:$0xf] }
  0xe8   :  { %v3450_v39 = vld [vmem:[%s6438_s3 + $0x3b8] sm:$0xf0] }
  0xe9   :  { %2497 = vmatpush.bf16.msra.mxu2 %v3149_v18  ;;  %v3178_v18 = vld [vmem:[%s6438_s3 + $0x198] sm:$0xf0] }
  0xea   :  { %2510 = vmatpush.bf16.msra.mxu3 %v3213_v19  ;;  %2473 = vmatpush.bf16.msra.mxu0 %v3005_v21  ;;  %v3357_v19 = vor.u32 %v4156_v7, %v3354_v9  ;;  %v4138_v21 = vld [vmem:[%s6438_s3 + $0x264] sm:$0xf]  ;;  %v3181_v30 = vor.u32 %v4112_v17, %v3178_v18  ;;  %v4184_v7 = vld [vmem:[%s6438_s3 + $0x3d4] sm:$0xf]  ;;  %v3333_v9 = vor.u32 %v4150_v61, %v3330_v62  ;;  %v3242_v41 = vld [vmem:[%s6438_s3 + $0x218] sm:$0xf0] }
  0xeb   :  { %2486 = vmatpush.bf16.msra.mxu1 %v3069_v27  ;;  %v3346_v27 = vld [vmem:[%s6438_s3 + $0x2e8] sm:$0xf0]  ;;  %v4166_v18 = vld [vmem:[%s6438_s3 + $0x344] sm:$0xf]  ;;  %v4220_v62 = vld [vmem:[%s6438_s3 + $0x4f4] sm:$0xf] }
  0xec   :  { %v3349_v52 = vor.u32 %v4154_v26, %v3346_v27  ;;  %v3250_v26 = vld [vmem:[%s6438_s3 + $0x228] sm:$0xf0]  ;;  %v4146_v27 = vld [vmem:[%s6438_s3 + $0x2a4] sm:$0xf] }
  0xed   :  { %2498 = vmatpush.bf16.msra.mxu2 %v3141_v34  ;;  %v3285_v34 = vor.u32 %v4138_v21, %v3282_v22  ;;  %v3458_v22 = vld [vmem:[%s6438_s3 + $0x3c8] sm:$0xf0] }
  0xee   :  { %2511 = vmatpush.bf16.msra.mxu3 %v3205_v35  ;;  %2474 = vmatpush.bf16.msra.mxu0 %v2997_v38  ;;  %v4172_v35 = vld [vmem:[%s6438_s3 + $0x374] sm:$0xf]  ;;  %v3418_v38 = vld [vmem:[%s6438_s3 + $0x378] sm:$0xf0] }
  0xef   :  { %2487 = vmatpush.bf16.msra.mxu1 %v3061_v42  ;;  %v4136_v42 = vld [vmem:[%s6438_s3 + $0x254] sm:$0xf] }
  0xf1   :  { %2499 = vmatpush.bf16.msra.mxu2 %v3133_v48  ;;  %v3421_v48 = vor.u32 %v4172_v35, %v3418_v38  ;;  %v4180_v35 = vld [vmem:[%s6438_s3 + $0x3b4] sm:$0xf]  ;;  %v3317_v38 = vor.u32 %v4146_v27, %v3314_v28  ;;  %v3674_v27 = vld [vmem:[%s6438_s3 + $0x578] sm:$0xf0] }
  0xf2   :  { %2512 = vmatpush.bf16.msra.mxu3 %v3197_v51  ;;  %2475 = vmatpush.bf16.msra.mxu0 %v2989_v53  ;;  %v3277_v51 = vor.u32 %v4136_v42, %v3274_v43  ;;  %v3410_v53 = vld [vmem:[%s6438_s3 + $0x368] sm:$0xf0]  ;;  %v4144_v42 = vld [vmem:[%s6438_s3 + $0x294] sm:$0xf]  ;;  %v3306_v43 = vld [vmem:[%s6438_s3 + $0x298] sm:$0xf0]  ;;  %v3453_v46 = vor.u32 %v4180_v35, %v3450_v39 }
  0xf3   :  { %2488 = vmatpush.bf16.msra.mxu1 %v3053_v60  ;;  %v3266_v60 = vld [vmem:[%s6438_s3 + $0x248] sm:$0xf0]  ;;  %v4252_v28 = vld [vmem:[%s6438_s3 + $0x5f4] sm:$0xf]  ;;  %v6081_v39 = vld [vmem:[%s6439_s4] sm:$0x3] }
  0xf4   :  { %v3269_v2 = vor.u32 %v4134_v59, %v3266_v60  ;;  %v4204_v59 = vld [vmem:[%s6438_s3 + $0x474] sm:$0xf]  ;;  %v3546_v60 = vld [vmem:[%s6438_s3 + $0x478] sm:$0xf0] }
  0xf5   :  { %2500 = vmatpush.bf16.msra.mxu2 %v3125_v5  ;;  %v3402_v5 = vld [vmem:[%s6438_s3 + $0x358] sm:$0xf0]  ;;  %v4216_v35 = vld [vmem:[%s6438_s3 + $0x4d4] sm:$0xf] }
  0xf6   :  { %2513 = vmatpush.bf16.msra.mxu3 %v3189_v10  ;;  %2476 = vmatpush.bf16.msra.mxu0 %v2981_v11  ;;  %v3466_v10 = vld [vmem:[%s6438_s3 + $0x3d8] sm:$0xf0]  ;;  %v4132_v11 = vld [vmem:[%s6438_s3 + $0x234] sm:$0xf] }
  0xf7   :  { %2489 = vmatpush.bf16.msra.mxu1 %v3045_v15  ;;  %v3405_v15 = vor.u32 %v4168_v4, %v3402_v5  ;;  %v3261_v17 = vor.u32 %v4132_v11, %v3258_v13  ;;  %v4160_v4 = vld [vmem:[%s6438_s3 + $0x314] sm:$0xf]  ;;  %v3370_v5 = vld [vmem:[%s6438_s3 + $0x318] sm:$0xf0] }
  0xf8   :  { %v3434_v11 = vld [vmem:[%s6438_s3 + $0x398] sm:$0xf0] }
  0xf9   :  { %2501 = vmatpush.bf16.msra.mxu2 %v3117_v24  ;;  %2477 = vmatmul.bf16.vlgmr.msra.gmra.mxu0 %v5202_v20  ;;  %v4170_v20 = vld [vmem:[%s6438_s3 + $0x364] sm:$0xf] }
  0xfa   :  { %2521 = vmatpush.bf16.msrb.mxu0 %v3293_v16  ;;  %2514 = vmatpush.bf16.msra.mxu3 %v3181_v30  ;;  %v3413_v0 = vor.u32 %v4170_v20, %v3410_v53  ;;  %v3469_v16 = vor.u32 %v4184_v7, %v3466_v10  ;;  %v4130_v24 = vld [vmem:[%s6438_s3 + $0x224] sm:$0xf]  ;;  %v3309_v20 = vor.u32 %v4144_v42, %v3306_v43  ;;  %v4176_v10 = vld [vmem:[%s6438_s3 + $0x394] sm:$0xf] }
  0xfb   :  { %2534 = vmatpush.bf16.msrb.mxu1 %v3357_v19  ;;  %v4182_v19 = vld [vmem:[%s6438_s3 + $0x3c4] sm:$0xf]  ;;  %v3253_v3 = vor.u32 %v4130_v24, %v3250_v26  ;;  %v4236_v26 = vld [vmem:[%s6438_s3 + $0x574] sm:$0xf] }
  0xfc   :  { %2490 = vmatmul.bf16.vlgmr.msra.gmra.mxu1 %v5210_v25  ;;  %v3474_v25 = vld [vmem:[%s6438_s3 + $0x3e8] sm:$0xf0]  ;;  %v3461_v31 = vor.u32 %v4182_v19, %v3458_v22  ;;  %v4126_v53 = vld [vmem:[%s6438_s3 + $0x204] sm:$0xf] }
  0xfd   :  { %2502 = vmatpush.bf16.msra.mxu2 %v3109_v44  ;;  %v3477_v1 = vor.u32 %v4186_v54, %v3474_v25  ;;  %v3234_v54 = vld [vmem:[%s6438_s3 + $0x208] sm:$0xf0] }
  0xfe   :  { %2522 = vmatpush.bf16.msrb.mxu0 %v3285_v34  ;;  %2515 = vmatpush.bf16.msra.mxu3 %v3173_v47  ;;  %v3386_v34 = vld [vmem:[%s6438_s3 + $0x338] sm:$0xf0]  ;;  %v3298_v25 = vld [vmem:[%s6438_s3 + $0x288] sm:$0xf0] }
  0xff   :  { %2535 = vmatpush.bf16.msrb.mxu1 %v3349_v52  ;;  %v4128_v52 = vld [vmem:[%s6438_s3 + $0x214] sm:$0xf]  ;;  %v3389_v44 = vor.u32 %v4164_v33, %v3386_v34  ;;  %v3362_v19 = vld [vmem:[%s6438_s3 + $0x308] sm:$0xf0]  ;;  %v3530_v33 = vld [vmem:[%s6438_s3 + $0x458] sm:$0xf0] }
 0x100   :  { %2503 = vmatmul.bf16.vlgmr.msra.gmra.mxu2 %v5248_v49  ;;  %v4148_v49 = vld [vmem:[%s6438_s3 + $0x2b4] sm:$0xf]  ;;  %v3245_v47 = vor.u32 %v4128_v52, %v3242_v41  ;;  %v3426_v22 = vld [vmem:[%s6438_s3 + $0x388] sm:$0xf0]  ;;  %v3677_v41 = vor.u32 %v4236_v26, %v3674_v27 }
 0x101   :  { %2547 = vmatpush.bf16.msrb.mxu2 %v3421_v48  ;;  %2516 = vmatmul.bf16.vlgmr.msra.gmra.mxu3 %v5259_v57  ;;  %v3394_v57 = vld [vmem:[%s6438_s3 + $0x348] sm:$0xf0]  ;;  %v3325_v21 = vor.u32 %v4148_v49, %v3322_v14  ;;  %v4202_v49 = vld [vmem:[%s6438_s3 + $0x464] sm:$0xf]  ;;  %v4228_v27 = vld [vmem:[%s6438_s3 + $0x534] sm:$0xf] }
 0x102   :  { %2560 = vmatpush.bf16.msrb.mxu3 %v3485_v50  ;;  %2523 = vmatpush.bf16.msrb.mxu0 %v3277_v51  ;;  %v3397_v30 = vor.u32 %v4166_v18, %v3394_v57  ;;  %v3378_v48 = vld [vmem:[%s6438_s3 + $0x328] sm:$0xf0]  ;;  %v4178_v50 = vld [vmem:[%s6438_s3 + $0x3a4] sm:$0xf]  ;;  %v3437_v57 = vor.u32 %v4176_v10, %v3434_v11 }
 0x103   :  { %2536 = vmatpush.bf16.msrb.mxu1 %v3341_v55  ;;  %v3442_v51 = vld [vmem:[%s6438_s3 + $0x3a8] sm:$0xf0]  ;;  %v4142_v55 = vld [vmem:[%s6438_s3 + $0x284] sm:$0xf]  ;;  %v3381_v61 = vor.u32 %v4162_v45, %v3378_v48 }
 0x104   :  { %v3301_v7 = vor.u32 %v4142_v55, %v3298_v25  ;;  %v3538_v14 = vld [vmem:[%s6438_s3 + $0x468] sm:$0xf0]  ;;  %v4158_v18 = vld [vmem:[%s6438_s3 + $0x304] sm:$0xf] }
 0x105   :  { %2548 = vmatpush.bf16.msrb.mxu2 %v3413_v0  ;;  %v3610_v0 = vld [vmem:[%s6438_s3 + $0x4f8] sm:$0xf0]  ;;  %v3541_v24 = vor.u32 %v4202_v49, %v3538_v14  ;;  %v3365_v34 = vor.u32 %v4158_v18, %v3362_v19  ;;  %v4250_v45 = vld [vmem:[%s6438_s3 + $0x5e4] sm:$0xf]  ;;  %v3506_v18 = vld [vmem:[%s6438_s3 + $0x428] sm:$0xf0] }
 0x106   :  { %2561 = vmatpush.bf16.msrb.mxu3 %v3477_v1  ;;  %2524 = vmatpush.bf16.msrb.mxu0 %v3269_v2  ;;  %v3445_v1 = vor.u32 %v4178_v50, %v3442_v51  ;;  %v3237_v2 = vor.u32 %v4126_v53, %v3234_v54  ;;  %v3613_v13 = vor.u32 %v4220_v62, %v3610_v0  ;;  %v4198_v48 = vld [vmem:[%s6438_s3 + $0x444] sm:$0xf]  ;;  %v3522_v50 = vld [vmem:[%s6438_s3 + $0x448] sm:$0xf0] }
 0x107   :  { %2537 = vmatpush.bf16.msrb.mxu1 %v3333_v9  ;;  %v3549_v9 = vor.u32 %v4204_v59, %v3546_v60  ;;  %v4214_v51 = vld [vmem:[%s6438_s3 + $0x4c4] sm:$0xf]  ;;  %v3525_v25 = vor.u32 %v4198_v48, %v3522_v50  ;;  %v4232_v59 = vld [vmem:[%s6438_s3 + $0x554] sm:$0xf]  ;;  %v3658_v60 = vld [vmem:[%s6438_s3 + $0x558] sm:$0xf0] }
 0x108   :  { %v3661_v10 = vor.u32 %v4232_v59, %v3658_v60  ;;  %v4230_v49 = vld [vmem:[%s6438_s3 + $0x544] sm:$0xf]  ;;  %v3570_v19 = vld [vmem:[%s6438_s3 + $0x4a8] sm:$0xf0]  ;;  %v4284_v60 = vld [vmem:[%s6438_s3 + $0x6f4] sm:$0xf] }
 0x109   :  { %2549 = vmatpush.bf16.msrb.mxu2 %v3405_v15  ;;  %v3373_v15 = vor.u32 %v4160_v4, %v3370_v5  ;;  %v4196_v4 = vld [vmem:[%s6438_s3 + $0x434] sm:$0xf]  ;;  %v3514_v5 = vld [vmem:[%s6438_s3 + $0x438] sm:$0xf0]  ;;  %v4246_v14 = vld [vmem:[%s6438_s3 + $0x5c4] sm:$0xf] }
 0x10a   :  { %2562 = vmatpush.bf16.msrb.mxu3 %v3469_v16  ;;  %2525 = vmatpush.bf16.msrb.mxu0 %v3261_v17  ;;  %v4218_v16 = vld [vmem:[%s6438_s3 + $0x4e4] sm:$0xf]  ;;  %v3602_v17 = vld [vmem:[%s6438_s3 + $0x4e8] sm:$0xf0] }
 0x10b   :  { %2538 = vmatpush.bf16.msrb.mxu1 %v3325_v21  ;;  %v4174_v21 = vld [vmem:[%s6438_s3 + $0x384] sm:$0xf]  ;;  %v3490_v50 = vld [vmem:[%s6438_s3 + $0x408] sm:$0xf0] }
 0x10c   :  { %v3429_v52 = vor.u32 %v4174_v21, %v3426_v22  ;;  %v4190_v48 = vld [vmem:[%s6438_s3 + $0x404] sm:$0xf] }
 0x10d   :  { %2550 = vmatpush.bf16.msrb.mxu2 %v3397_v30  ;;  %v3605_v30 = vor.u32 %v4218_v16, %v3602_v17  ;;  %v3714_v16 = vld [vmem:[%s6438_s3 + $0x5c8] sm:$0xf0]  ;;  %v4194_v17 = vld [vmem:[%s6438_s3 + $0x424] sm:$0xf] }
 0x10e   :  { %2563 = vmatpush.bf16.msrb.mxu3 %v3461_v31  ;;  %2526 = vmatpush.bf16.msrb.mxu0 %v3253_v3  ;;  %v3738_v31 = vld [vmem:[%s6438_s3 + $0x5f8] sm:$0xf0]  ;;  %v4200_v3 = vld [vmem:[%s6438_s3 + $0x454] sm:$0xf]  ;;  %v3509_v26 = vor.u32 %v4194_v17, %v3506_v18  ;;  %v3858_v17 = vld [vmem:[%s6438_s3 + $0x6e8] sm:$0xf0] }
 0x10f   :  { %2539 = vmatpush.bf16.msrb.mxu1 %v3317_v38  ;;  %v3594_v38 = vld [vmem:[%s6438_s3 + $0x4d8] sm:$0xf0]  ;;  %v3741_v42 = vor.u32 %v4252_v28, %v3738_v31  ;;  %v3533_v43 = vor.u32 %v4200_v3, %v3530_v33  ;;  %v4222_v18 = vld [vmem:[%s6438_s3 + $0x504] sm:$0xf] }
 0x110   :  { %v3642_v28 = vld [vmem:[%s6438_s3 + $0x538] sm:$0xf0] }
 0x111   :  { %2551 = vmatpush.bf16.msrb.mxu2 %v3389_v44  ;;  %v3666_v44 = vld [vmem:[%s6438_s3 + $0x568] sm:$0xf0]  ;;  %v3706_v33 = vld [vmem:[%s6438_s3 + $0x5b8] sm:$0xf0] }
 0x112   :  { %2564 = vmatpush.bf16.msrb.mxu3 %v3453_v46  ;;  %2527 = vmatpush.bf16.msrb.mxu0 %v3245_v47  ;;  %v3597_v46 = vor.u32 %v4216_v35, %v3594_v38  ;;  %v977_v47 = vperm.slane %v6081_v39, 0  ;;  %v3498_v35 = vld [vmem:[%s6438_s3 + $0x418] sm:$0xf0]  ;;  %v4208_v38 = vld [vmem:[%s6438_s3 + $0x494] sm:$0xf] }
 0x113   :  { %2540 = vmatpush.bf16.msrb.mxu1 %v3309_v20  ;;  %v3586_v20 = vld [vmem:[%s6438_s3 + $0x4c8] sm:$0xf0] }
 0x115   :  { %2552 = vmatpush.bf16.msrb.mxu2 %v3381_v61  ;;  %v4248_v61 = vld [vmem:[%s6438_s3 + $0x5d4] sm:$0xf] }
 0x116   :  { %2565 = vmatpush.bf16.msrb.mxu3 %v3445_v1  ;;  %2528 = vmatpush.bf16.msrb.mxu0 %v3237_v2  ;;  %v2270_v54 = vpop.f32.mrf.mxu0  ;;  %v2283_v0 = vpop.f32.mrf.mxu1  ;;  %v3589_v1 = vor.u32 %v4214_v51, %v3586_v20  ;;  %v3722_v2 = vld [vmem:[%s6438_s3 + $0x5d8] sm:$0xf0]  ;;  %v4206_v51 = vld [vmem:[%s6438_s3 + $0x484] sm:$0xf] }
 0x117   :  { %2541 = vmatpush.bf16.msrb.mxu1 %v3301_v7  ;;  %v2271_v62 = vadd.f32 %v2270_v54, %v977_v47  ;;  %v3578_v7 = vld [vmem:[%s6438_s3 + $0x4b8] sm:$0xf0]  ;;  %v3725_v11 = vor.u32 %v4248_v61, %v3722_v2  ;;  %v3554_v54 = vld [vmem:[%s6438_s3 + $0x488] sm:$0xf0]  ;;  %v3493_v2 = vor.u32 %v4190_v48, %v3490_v50  ;;  %v4262_v50 = vld [vmem:[%s6438_s3 + $0x644] sm:$0xf] }
 0x118   :  { %v3866_v61 = vld [vmem:[%s6438_s3 + $0x6f8] sm:$0xf0]  ;;  %v3986_v48 = vld [vmem:[%s6438_s3 + $0x7e8] sm:$0xf0] }
 0x119   :  { %2553 = vmatpush.bf16.msrb.mxu2 %v3373_v15  ;;  %2529 = vmatmul.bf16.vlgmr.msrb.gmra.mxu0 %v5311_v32  ;;  %v4234_v32 = vld [vmem:[%s6438_s3 + $0x564] sm:$0xf] }
 0x11a   :  { %2573 = vmatpush.bf16.msra.mxu0 %v3549_v9  ;;  %2566 = vmatpush.bf16.msrb.mxu3 %v3437_v57  ;;  %v3669_v53 = vor.u32 %v4234_v32, %v3666_v44  ;;  %v2284_v9 = vadd.f32 %v2283_v0, %v2271_v62  ;;  %v4210_v57 = vld [vmem:[%s6438_s3 + $0x4a4] sm:$0xf]  ;;  %v3634_v44 = vld [vmem:[%s6438_s3 + $0x528] sm:$0xf0] }
 0x11b   :  { %2586 = vmatpush.bf16.msra.mxu1 %v3613_v13  ;;  %v3517_v13 = vor.u32 %v4196_v4, %v3514_v5  ;;  %v3573_v3 = vor.u32 %v4210_v57, %v3570_v19  ;;  %v4226_v32 = vld [vmem:[%s6438_s3 + $0x524] sm:$0xf]  ;;  %v4224_v4 = vld [vmem:[%s6438_s3 + $0x514] sm:$0xf]  ;;  %v3626_v5 = vld [vmem:[%s6438_s3 + $0x518] sm:$0xf0] }
 0x11c   :  { %2542 = vmatmul.bf16.vlgmr.msrb.gmra.mxu1 %v5322_v37  ;;  %v3730_v37 = vld [vmem:[%s6438_s3 + $0x5e8] sm:$0xf0]  ;;  %v3637_v59 = vor.u32 %v4226_v32, %v3634_v44  ;;  %v3850_v32 = vld [vmem:[%s6438_s3 + $0x6d8] sm:$0xf0] }
 0x11d   :  { %2554 = vmatpush.bf16.msrb.mxu2 %v3365_v34  ;;  %v3733_v55 = vor.u32 %v4250_v45, %v3730_v37  ;;  %v4192_v34 = vld [vmem:[%s6438_s3 + $0x414] sm:$0xf]  ;;  %v4242_v45 = vld [vmem:[%s6438_s3 + $0x5a4] sm:$0xf]  ;;  %v3698_v37 = vld [vmem:[%s6438_s3 + $0x5a8] sm:$0xf0] }
 0x11e   :  { %2574 = vmatpush.bf16.msra.mxu0 %v3541_v24  ;;  %2567 = vmatpush.bf16.msrb.mxu3 %v3429_v52  ;;  %v2272_v22 = vpop.f32.mrf.mxu0  ;;  %v3717_v24 = vor.u32 %v4246_v14, %v3714_v16  ;;  %v2285_v31 = vpop.f32.mrf.mxu1  ;;  %v3562_v52 = vld [vmem:[%s6438_s3 + $0x498] sm:$0xf0]  ;;  %v4282_v16 = vld [vmem:[%s6438_s3 + $0x6e4] sm:$0xf] }
 0x11f   :  { %2587 = vmatpush.bf16.msra.mxu1 %v3605_v30  ;;  %v4244_v30 = vld [vmem:[%s6438_s3 + $0x5b4] sm:$0xf]  ;;  %v3565_v47 = vor.u32 %v4208_v38, %v3562_v52  ;;  %v4238_v22 = vld [vmem:[%s6438_s3 + $0x584] sm:$0xf]  ;;  %v3786_v38 = vld [vmem:[%s6438_s3 + $0x658] sm:$0xf0] }
 0x120   :  { %2555 = vmatmul.bf16.vlgmr.msrb.gmra.mxu2 %v5367_v6  ;;  %v4212_v6 = vld [vmem:[%s6438_s3 + $0x4b4] sm:$0xf] }
 0x121   :  { %2599 = vmatpush.bf16.msra.mxu2 %v3677_v41  ;;  %2568 = vmatmul.bf16.vlgmr.msrb.gmra.mxu3 %v5377_v12  ;;  %v3650_v12 = vld [vmem:[%s6438_s3 + $0x548] sm:$0xf0]  ;;  %v3581_v15 = vor.u32 %v4212_v6, %v3578_v7  ;;  %v3645_v41 = vor.u32 %v4228_v27, %v3642_v28  ;;  %v3557_v6 = vor.u32 %v4206_v51, %v3554_v54  ;;  %v4300_v28 = vld [vmem:[%s6438_s3 + $0x774] sm:$0xf] }
 0x122   :  { %2612 = vmatpush.bf16.msra.mxu3 %v3741_v42  ;;  %2575 = vmatpush.bf16.msra.mxu0 %v3533_v43  ;;  %v3653_v21 = vor.u32 %v4230_v49, %v3650_v12  ;;  %v3709_v42 = vor.u32 %v4244_v30, %v3706_v33  ;;  %v3501_v43 = vor.u32 %v4192_v34, %v3498_v35  ;;  %v4266_v49 = vld [vmem:[%s6438_s3 + $0x664] sm:$0xf]  ;;  %v3794_v12 = vld [vmem:[%s6438_s3 + $0x668] sm:$0xf0]  ;;  %v3930_v30 = vld [vmem:[%s6438_s3 + $0x778] sm:$0xf0] }
 0x123   :  { %2588 = vmatpush.bf16.msra.mxu1 %v3597_v46  ;;  %v2296_v46 = vpop.f32.mrf.mxu2  ;;  %v3797_v27 = vor.u32 %v4266_v49, %v3794_v12  ;;  %v4316_v31 = vld [vmem:[%s6438_s3 + $0x7f4] sm:$0xf]  ;;  %v3861_v33 = vor.u32 %v4282_v16, %v3858_v17  ;;  %v3994_v34 = vld [vmem:[%s6438_s3 + $0x7f8] sm:$0xf0]  ;;  %v3933_v44 = vor.u32 %v4300_v28, %v3930_v30  ;;  %v3778_v51 = vld [vmem:[%s6438_s3 + $0x648] sm:$0xf0] }
 0x124   :  { %v2297_v20 = vadd.f32 %v2296_v46, %v2284_v9  ;;  %v4240_v9 = vld [vmem:[%s6438_s3 + $0x594] sm:$0xf]  ;;  %v3922_v46 = vld [vmem:[%s6438_s3 + $0x768] sm:$0xf0] }
 0x125   :  { %2600 = vmatpush.bf16.msra.mxu2 %v3669_v53  ;;  %v2309_v53 = vpop.f32.mrf.mxu3  ;;  %v4264_v35 = vld [vmem:[%s6438_s3 + $0x654] sm:$0xf]  ;;  %v3842_v54 = vld [vmem:[%s6438_s3 + $0x6c8] sm:$0xf0] }
 0x126   :  { %2613 = vmatpush.bf16.msra.mxu3 %v3733_v55  ;;  %2576 = vmatpush.bf16.msra.mxu0 %v3525_v25  ;;  %v4268_v55 = vld [vmem:[%s6438_s3 + $0x674] sm:$0xf]  ;;  %v3802_v25 = vld [vmem:[%s6438_s3 + $0x678] sm:$0xf0]  ;;  %v2310_v62 = vadd.f32 %v2309_v53, %v2297_v20  ;;  %v2322_v0 = vpop.f32.mrf.mxu0  ;;  %v4278_v53 = vld [vmem:[%s6438_s3 + $0x6c4] sm:$0xf] }
 0x127   :  { %2589 = vmatpush.bf16.msra.mxu1 %v3589_v1  ;;  %v3701_v1 = vor.u32 %v4242_v45, %v3698_v37  ;;  %v3805_v7 = vor.u32 %v4268_v55, %v3802_v25  ;;  %v3997_v45 = vor.u32 %v4316_v31, %v3994_v34  ;;  %v3789_v37 = vor.u32 %v4264_v35, %v3786_v38  ;;  %v4308_v34 = vld [vmem:[%s6438_s3 + $0x7b4] sm:$0xf] }
 0x129   :  { %2601 = vmatpush.bf16.msra.mxu2 %v3661_v10  ;;  %v3690_v10 = vld [vmem:[%s6438_s3 + $0x598] sm:$0xf0]  ;;  %v2335_v14 = vpop.f32.mrf.mxu1 }
 0x12a   :  { %2614 = vmatpush.bf16.msra.mxu3 %v3725_v11  ;;  %2577 = vmatpush.bf16.msra.mxu0 %v3517_v13  ;;  %v2323_v11 = vadd.f32 %v2322_v0, %v2310_v62  ;;  %v3869_v13 = vor.u32 %v4284_v60, %v3866_v61  ;;  %v3693_v19 = vor.u32 %v4240_v9, %v3690_v10  ;;  %v4296_v61 = vld [vmem:[%s6438_s3 + $0x754] sm:$0xf]  ;;  %v3914_v62 = vld [vmem:[%s6438_s3 + $0x758] sm:$0xf0] }
 0x12b   :  { %2590 = vmatpush.bf16.msra.mxu1 %v3581_v15  ;;  %v3629_v15 = vor.u32 %v4224_v4, %v3626_v5  ;;  %v3781_v60 = vor.u32 %v4262_v50, %v3778_v51  ;;  %v4312_v0 = vld [vmem:[%s6438_s3 + $0x7d4] sm:$0xf]  ;;  %v3845_v4 = vor.u32 %v4278_v53, %v3842_v54  ;;  %v3978_v5 = vld [vmem:[%s6438_s3 + $0x7d8] sm:$0xf0]  ;;  %v3954_v50 = vld [vmem:[%s6438_s3 + $0x7a8] sm:$0xf0] }
 0x12c   :  { %v2336_v57 = vadd.f32 %v2335_v14, %v2323_v11  ;;  %v3834_v9 = vld [vmem:[%s6438_s3 + $0x6b8] sm:$0xf0]  ;;  %v3981_v49 = vor.u32 %v4312_v0, %v3978_v5  ;;  %v3906_v14 = vld [vmem:[%s6438_s3 + $0x748] sm:$0xf0]  ;;  %v4254_v51 = vld [vmem:[%s6438_s3 + $0x604] sm:$0xf] }
 0x12d   :  { %2602 = vmatpush.bf16.msra.mxu2 %v3653_v21  ;;  %v3618_v21 = vld [vmem:[%s6438_s3 + $0x508] sm:$0xf0]  ;;  %v4270_v53 = vld [vmem:[%s6438_s3 + $0x684] sm:$0xf]  ;;  %v3882_v0 = vld [vmem:[%s6438_s3 + $0x718] sm:$0xf0] }
 0x12e   :  { %2615 = vmatpush.bf16.msra.mxu3 %v3717_v24  ;;  %2578 = vmatpush.bf16.msra.mxu0 %v3509_v26  ;;  %v3682_v24 = vld [vmem:[%s6438_s3 + $0x588] sm:$0xf0]  ;;  %v2298_v26 = vpop.f32.mrf.mxu2  ;;  %v3621_v52 = vor.u32 %v4222_v18, %v3618_v21  ;;  %v4274_v21 = vld [vmem:[%s6438_s3 + $0x6a4] sm:$0xf]  ;;  %v4304_v5 = vld [vmem:[%s6438_s3 + $0x794] sm:$0xf] }
 0x12f   :  { %2591 = vmatpush.bf16.msra.mxu1 %v3573_v3  ;;  %v2311_v3 = vpop.f32.mrf.mxu3  ;;  %v3970_v18 = vld [vmem:[%s6438_s3 + $0x7c8] sm:$0xf0] }
 0x130   :  { %v4292_v3 = vld [vmem:[%s6438_s3 + $0x734] sm:$0xf]  ;;  %v3810_v54 = vld [vmem:[%s6438_s3 + $0x688] sm:$0xf0] }
 0x131   :  { %2603 = vmatpush.bf16.msra.mxu2 %v3645_v41  ;;  %v4280_v41 = vld [vmem:[%s6438_s3 + $0x6d4] sm:$0xf]  ;;  %v2337_v20 = vpop.f32.mrf.mxu1 }
 0x132   :  { %2616 = vmatpush.bf16.msra.mxu3 %v3709_v42  ;;  %2579 = vmatpush.bf16.msra.mxu0 %v3501_v43  ;;  %v2324_v42 = vpop.f32.mrf.mxu0  ;;  %v3685_v43 = vor.u32 %v4238_v22, %v3682_v24  ;;  %v3826_v22 = vld [vmem:[%s6438_s3 + $0x6a8] sm:$0xf0] }
 0x133   :  { %2592 = vmatpush.bf16.msra.mxu1 %v3565_v47  ;;  %v4314_v47 = vld [vmem:[%s6438_s3 + $0x7e4] sm:$0xf]  ;;  %v3829_v38 = vor.u32 %v4274_v21, %v3826_v22  ;;  %v4272_v42 = vld [vmem:[%s6438_s3 + $0x694] sm:$0xf]  ;;  %v3746_v20 = vld [vmem:[%s6438_s3 + $0x608] sm:$0xf0] }
 0x135   :  { %2604 = vmatpush.bf16.msra.mxu2 %v3637_v59  ;;  %v3989_v59 = vor.u32 %v4314_v47, %v3986_v48  ;;  %v3890_v47 = vld [vmem:[%s6438_s3 + $0x728] sm:$0xf0] }
 0x136   :  { %2617 = vmatpush.bf16.msra.mxu3 %v3701_v1  ;;  %2580 = vmatpush.bf16.msra.mxu0 %v3493_v2  ;;  %v2348_v25 = vpop.f32.mrf.mxu2 }
 0x137   :  { %2593 = vmatpush.bf16.msra.mxu1 %v3557_v6  ;;  %v2349_v1 = vadd.f32 %v2348_v25, %v2336_v57  ;;  %v2361_v2 = vpop.f32.mrf.mxu3  ;;  %v4260_v6 = vld [vmem:[%s6438_s3 + $0x634] sm:$0xf]  ;;  %v4258_v57 = vld [vmem:[%s6438_s3 + $0x624] sm:$0xf] }
 0x139   :  { %2605 = vmatpush.bf16.msra.mxu2 %v3629_v15  ;;  %2581 = vmatmul.bf16.vlgmr.msra.gmra.mxu0 %v5443_v58  ;;  %v4298_v58 = vld [vmem:[%s6438_s3 + $0x764] sm:$0xf]  ;;  %v2362_v10 = vadd.f32 %v2361_v2, %v2349_v1  ;;  %v2387_v24 = vpop.f32.mrf.mxu1 }
 0x13a   :  { %2625 = vmatpush.bf16.msrb.mxu0 %v3805_v7  ;;  %2618 = vmatpush.bf16.msra.mxu3 %v3693_v19  ;;  %v3925_v55 = vor.u32 %v4298_v58, %v3922_v46  ;;  %v3770_v7 = vld [vmem:[%s6438_s3 + $0x638] sm:$0xf0]  ;;  %v2374_v11 = vpop.f32.mrf.mxu0  ;;  %v4310_v15 = vld [vmem:[%s6438_s3 + $0x7c4] sm:$0xf]  ;;  %v3762_v19 = vld [vmem:[%s6438_s3 + $0x628] sm:$0xf0] }
 0x13b   :  { %2638 = vmatpush.bf16.msrb.mxu1 %v3869_v13  ;;  %v3917_v13 = vor.u32 %v4296_v61, %v3914_v62  ;;  %v3773_v12 = vor.u32 %v4260_v6, %v3770_v7  ;;  %v2375_v16 = vadd.f32 %v2374_v11, %v2362_v10  ;;  %v3973_v30 = vor.u32 %v4310_v15, %v3970_v18  ;;  %v4290_v46 = vld [vmem:[%s6438_s3 + $0x724] sm:$0xf]  ;;  %v4288_v62 = vld [vmem:[%s6438_s3 + $0x714] sm:$0xf]  ;;  %v3946_v6 = vld [vmem:[%s6438_s3 + $0x798] sm:$0xf0] }
 0x13c   :  { %2594 = vmatmul.bf16.vlgmr.msra.gmra.mxu1 %v5463_v8  ;;  %v3853_v8 = vor.u32 %v4280_v41, %v3850_v32  ;;  %v3765_v31 = vor.u32 %v4258_v57, %v3762_v19  ;;  %v4256_v41 = vld [vmem:[%s6438_s3 + $0x614] sm:$0xf]  ;;  %v3754_v32 = vld [vmem:[%s6438_s3 + $0x618] sm:$0xf0]  ;;  %v3749_v61 = vor.u32 %v4254_v51, %v3746_v20  ;;  %v4286_v10 = vld [vmem:[%s6438_s3 + $0x704] sm:$0xf] }
 0x13d   :  { %2606 = vmatpush.bf16.msra.mxu2 %v3621_v52  ;;  %v3962_v52 = vld [vmem:[%s6438_s3 + $0x7b8] sm:$0xf0]  ;;  %v3757_v58 = vor.u32 %v4256_v41, %v3754_v32  ;;  %v3874_v11 = vld [vmem:[%s6438_s3 + $0x708] sm:$0xf0] }
 0x13e   :  { %2626 = vmatpush.bf16.msrb.mxu0 %v3797_v27  ;;  %2619 = vmatpush.bf16.msra.mxu3 %v3685_v43  ;;  %v2388_v27 = vadd.f32 %v2387_v24, %v2375_v16  ;;  %v2350_v28 = vpop.f32.mrf.mxu2  ;;  %v3818_v43 = vld [vmem:[%s6438_s3 + $0x698] sm:$0xf0] }
 0x13f   :  { %2639 = vmatpush.bf16.msrb.mxu1 %v3861_v33  ;;  %v3898_v33 = vld [vmem:[%s6438_s3 + $0x738] sm:$0xf0]  ;;  %v2363_v35 = vpop.f32.mrf.mxu3  ;;  %v3821_v48 = vor.u32 %v4272_v42, %v3818_v43  ;;  %v978_v28 = vperm.slane %v6081_v39, 1 }
 0x140   :  { %2607 = vmatmul.bf16.vlgmr.msra.gmra.mxu2 %v5497_v36  ;;  %v4276_v36 = vld [vmem:[%s6438_s3 + $0x6b4] sm:$0xf] }
 0x141   :  { %2651 = vmatpush.bf16.msrb.mxu2 %v3933_v44  ;;  %2620 = vmatmul.bf16.vlgmr.msra.gmra.mxu3 %v5499_v40  ;;  %v4294_v40 = vld [vmem:[%s6438_s3 + $0x744] sm:$0xf]  ;;  %v3837_v17 = vor.u32 %v4276_v36, %v3834_v9  ;;  %v3901_v44 = vor.u32 %v4292_v3, %v3898_v33  ;;  %v2389_v25 = vpop.f32.mrf.mxu1  ;;  %v3885_v36 = vor.u32 %v4288_v62, %v3882_v0 }
 0x142   :  { %2664 = vmatpush.bf16.msrb.mxu3 %v3997_v45  ;;  %2627 = vmatpush.bf16.msrb.mxu0 %v3789_v37  ;;  %v3909_v26 = vor.u32 %v4294_v40, %v3906_v14  ;;  %v2376_v45 = vpop.f32.mrf.mxu0  ;;  %v3965_v37 = vor.u32 %v4308_v34, %v3962_v52  ;;  %v3949_v9 = vor.u32 %v4304_v5, %v3946_v6 }
 0x143   :  { %2640 = vmatpush.bf16.msrb.mxu1 %v3853_v8  ;;  %v4306_v8 = vld [vmem:[%s6438_s3 + $0x7a4] sm:$0xf] }
 0x145   :  { %2652 = vmatpush.bf16.msrb.mxu2 %v3925_v55  ;;  %v3893_v55 = vor.u32 %v4290_v46, %v3890_v47 }
 0x146   :  { %2665 = vmatpush.bf16.msrb.mxu3 %v3989_v59  ;;  %2628 = vmatpush.bf16.msrb.mxu0 %v3781_v60  ;;  %v2400_v59 = vpop.f32.mrf.mxu2  ;;  %v3957_v60 = vor.u32 %v4306_v8, %v3954_v50 }
 0x147   :  { %2641 = vmatpush.bf16.msrb.mxu1 %v3845_v4  ;;  %v2401_v1 = vadd.f32 %v2400_v59, %v2388_v27  ;;  %v2413_v2 = vpop.f32.mrf.mxu3  ;;  %v3813_v4 = vor.u32 %v4270_v53, %v3810_v54 }
 0x149   :  { %2653 = vmatpush.bf16.msrb.mxu2 %v3917_v13  ;;  %v2414_v7 = vadd.f32 %v2413_v2, %v2401_v1  ;;  %v4302_v13 = vld [vmem:[%s6438_s3 + $0x784] sm:$0xf] }
 0x14a   :  { %2666 = vmatpush.bf16.msrb.mxu3 %v3981_v49  ;;  %2629 = vmatpush.bf16.msrb.mxu0 %v3773_v12  ;;  %v3938_v49 = vld [vmem:[%s6438_s3 + $0x788] sm:$0xf0]  ;;  %v3877_v12 = vor.u32 %v4286_v10, %v3874_v11  ;;  %s4345_s3 = smov [#allocation2]  }
 0x14b   :  { %2642 = vmatpush.bf16.msrb.mxu1 %v3837_v17  ;;  %v3941_v40 = vor.u32 %v4302_v13, %v3938_v49  ;;  %s2691_s18 = sshll.u32 %s4345_s3, 4  ;;  %s2692_s18 = int_to_ptr.vmem [resolvable:$true] %s2691_s18 }
 0x14d   :  { %2654 = vmatpush.bf16.msrb.mxu2 %v3909_v26 }
 0x14e   :  { %2667 = vmatpush.bf16.msrb.mxu3 %v3973_v30  ;;  %2630 = vmatpush.bf16.msrb.mxu0 %v3765_v31  ;;  %v2402_v14 = vpop.f32.mrf.mxu2 }
 0x14f   :  { %2643 = vmatpush.bf16.msrb.mxu1 %v3829_v38  ;;  %v2415_v15 = vpop.f32.mrf.mxu3 }
 0x151   :  { %2655 = vmatpush.bf16.msrb.mxu2 %v3901_v44 }
 0x152   :  { %2668 = vmatpush.bf16.msrb.mxu3 %v3965_v37  ;;  %2631 = vmatpush.bf16.msrb.mxu0 %v3757_v58 }
 0x153   :  { %2644 = vmatpush.bf16.msrb.mxu1 %v3821_v48 }
 0x155   :  { %2656 = vmatpush.bf16.msrb.mxu2 %v3893_v55 }
 0x156   :  { %2669 = vmatpush.bf16.msrb.mxu3 %v3957_v60  ;;  %2632 = vmatpush.bf16.msrb.mxu0 %v3749_v61  ;;  %v2426_v16 = vpop.f32.mrf.mxu0 }
 0x157   :  { %2645 = vmatpush.bf16.msrb.mxu1 %v3813_v4  ;;  %v2427_v17 = vadd.f32 %v2426_v16, %v2414_v7 }
 0x159   :  { %2657 = vmatpush.bf16.msrb.mxu2 %v3885_v36  ;;  %2633 = vmatmul.bf16.vlgmr.msrb.gmra.mxu0 %v5646_v23  ;;  %v2439_v18 = vpop.f32.mrf.mxu1 }
 0x15a   :  { %2670 = vmatpush.bf16.msrb.mxu3 %v3949_v9  ;;  %2646 = vmatmul.bf16.vlgmr.msrb.gmra.mxu1 %v5654_v29  ;;  %v2440_v57 = vadd.f32 %v2439_v18, %v2427_v17 }
 0x15d   :  { %2658 = vmatpush.bf16.msrb.mxu2 %v3877_v12 }
 0x15e   :  { %2671 = vmatpush.bf16.msrb.mxu3 %v3941_v40  ;;  %v2428_v19 = vpop.f32.mrf.mxu0 }
 0x160   :  { %2659 = vmatmul.bf16.vlgmr.msrb.gmra.mxu2 %v5692_v56 }
 0x161   :  { %2672 = vmatmul.bf16.vlgmr.msrb.gmra.mxu3 %v5703_v63  ;;  %v2441_v21 = vpop.f32.mrf.mxu1 }
 0x163   :  { %v2452_v23 = vpop.f32.mrf.mxu2 }
 0x164   :  { %v2453_v22 = vadd.f32 %v2452_v23, %v2440_v57  ;;  %v2465_v24 = vpop.f32.mrf.mxu3 }
 0x166   :  { %v2466_v26 = vadd.f32 %v2465_v24, %v2453_v22 }
 0x16b   :  { %v2454_v29 = vpop.f32.mrf.mxu2 }
 0x16c   :  { %v2467_v27 = vpop.f32.mrf.mxu3 }
 0x176   :  { %v2478_v30 = vpop.f32.mrf.mxu0 }
 0x177   :  { %v2479_v31 = vadd.f32 %v2478_v30, %v978_v28 }
 0x179   :  { %v2491_v3 = vpop.f32.mrf.mxu1 }
 0x17a   :  { %v2492_v56 = vadd.f32 %v2491_v3, %v2479_v31 }
 0x17e   :  { %v2480_v33 = vpop.f32.mrf.mxu0 }
 0x181   :  { %v2493_v63 = vpop.f32.mrf.mxu1 }
 0x183   :  { %v2504_v34 = vpop.f32.mrf.mxu2 }
 0x184   :  { %v2505_v35 = vadd.f32 %v2504_v34, %v2492_v56  ;;  %v2517_v38 = vpop.f32.mrf.mxu3 }
 0x186   :  { %v2518_v52 = vadd.f32 %v2517_v38, %v2505_v35 }
 0x18b   :  { %v2506_v41 = vpop.f32.mrf.mxu2 }
 0x18c   :  { %v2519_v32 = vpop.f32.mrf.mxu3 }
 0x196   :  { %v2530_v42 = vpop.f32.mrf.mxu0 }
 0x197   :  { %v2531_v51 = vadd.f32 %v2530_v42, %v2518_v52 }
 0x199   :  { %v2543_v43 = vpop.f32.mrf.mxu1 }
 0x19a   :  { %v2544_v54 = vadd.f32 %v2543_v43, %v2531_v51 }
 0x19e   :  { %v2532_v44 = vpop.f32.mrf.mxu0 }
 0x1a1   :  { %v2545_v45 = vpop.f32.mrf.mxu1 }
 0x1a3   :  { %v2556_v37 = vpop.f32.mrf.mxu2 }
 0x1a4   :  { %v2569_v58 = vpop.f32.mrf.mxu3  ;;  %v2557_v55 = vadd.f32 %v2556_v37, %v2544_v54 }
 0x1a6   :  { %v2570_v60 = vadd.f32 %v2569_v58, %v2557_v55 }
 0x1ab   :  { %v2558_v46 = vpop.f32.mrf.mxu2 }
 0x1ac   :  { %v2571_v39 = vpop.f32.mrf.mxu3 }
 0x1b6   :  { %v2582_v47 = vpop.f32.mrf.mxu0 }
 0x1b7   :  { %v2583_v61 = vadd.f32 %v2582_v47, %v2570_v60 }
 0x1b9   :  { %v2595_v8 = vpop.f32.mrf.mxu1 }
 0x1ba   :  { %v2596_v62 = vadd.f32 %v2595_v8, %v2583_v61 }
 0x1be   :  { %v2584_v48 = vpop.f32.mrf.mxu0 }
 0x1c1   :  { %v2597_v50 = vpop.f32.mrf.mxu1 }
 0x1c3   :  { %v2608_v20 = vpop.f32.mrf.mxu2 }
 0x1c4   :  { %v2621_v53 = vpop.f32.mrf.mxu3  ;;  %v2609_v2 = vadd.f32 %v2608_v20, %v2596_v62 }
 0x1c6   :  { %v2622_v4 = vadd.f32 %v2621_v53, %v2609_v2 }
 0x1cb   :  { %v2610_v25 = vpop.f32.mrf.mxu2 }
 0x1cc   :  { %v2623_v59 = vpop.f32.mrf.mxu3 }
 0x1d6   :  { %v2634_v0 = vpop.f32.mrf.mxu0 }
 0x1d7   :  { %v2647_v1 = vpop.f32.mrf.mxu1  ;;  %v2635_v5 = vadd.f32 %v2634_v0, %v2622_v4 }
 0x1d9   :  { %v2648_v36 = vadd.f32 %v2647_v1, %v2635_v5 }
 0x1de   :  { %v2636_v6 = vpop.f32.mrf.mxu0 }
 0x1df   :  { %v2649_v7 = vpop.f32.mrf.mxu1 }
 0x1e3   :  { %v2660_v9 = vpop.f32.mrf.mxu2 }
 0x1e4   :  { %v2661_v10 = vadd.f32 %v2660_v9, %v2648_v36  ;;  %v2673_v11 = vpop.f32.mrf.mxu3 }
 0x1e6   :  { %v2674_v13 = vadd.f32 %v2673_v11, %v2661_v10 }
 0x1e8   :  { %v2679_v49 = vrot.slane %v2674_v13, 6 }
 0x1ea   :  { %v2681_v12 = vsel %vm2680_vm1, %v2466_v26, %v2679_v49 }
 0x1eb   :  { %v2662_v40 = vpop.f32.mrf.mxu2  ;;  %2685 = vst.msk [vmem:[#allocation2] sm:$0xf] %vm2684_vm3, %v2681_v12 }
 0x1ec   :  { %v2675_v14 = vpop.f32.mrf.mxu3  ;;  %2696 = dma.vmem_to_hbm [thread:$0]  %s2692_s18, 64, %s2694_s21, [#allocation3]  }
 0x1ed   :  { %4343 = dma.done.wait [#allocation3], 64  }
 0x1ee   :  { %4344 = vsyncadd [#allocation3], 4294967232 }
 0x1ef   :  { %2701 = vsyncpa [#allocation3], 1 }

</bundles_post_ra>
